<compile_context>
chip_gen: v6e
topology: v6e:2x2x1
jax: 0.10.0
libtpu: 0.0.40
codegen_flags: <defaults>
</compile_context>

<pallas_src>
import functools

import jax
import jax.numpy as jnp
from jax import lax
from jax.experimental import pallas as pl
from jax.experimental.pallas import tpu as pltpu

CPAD = 128   # conv output channels / fc hidden & logits padded to a full lane width
KSIZE = 5    # conv kernel size (padding=2, stride=1 for every conv in the model)


# ---------------------------------------------------------------------------
# Pallas kernels
# ---------------------------------------------------------------------------
def conv_pool_kernel(x_ref, w_ref, b_ref, o_ref, hrow_ref, pool_ref, *, H, W, Wp):
    """Fused Conv2d(5x5, pad=2) + bias + MaxPool2d(2) for ONE image.

    The im2col patch matrix never exists: for a fixed tap (dh, dw), the needed
    inputs xp[h+dh, w+dw, :] form a contiguous run of the row-flattened padded
    image, so each tap is a plain matmul on a shifted slice.  Columns w >= W of
    a conv row are wrap-around junk and are never read by the pooling step.

    x_ref:    ((H+5)*Wp, Cin)  f32   spatially padded image, (row, col) flattened
    w_ref:    (25, Cin, CPAD)  bf16  per-tap weights (zero-padded channels)
    b_ref:    (1, CPAD)        f32   bias (added after the max-pool)
    o_ref:    (Ho*Wo, CPAD)    bf16  pooled output, (ho, wo) flattened
    hrow_ref: (W, CPAD)        f32   scratch: h-maxed conv row pair
    pool_ref: (Ho*Wo, CPAD)    f32   scratch: pooled rows, stored densely once
    """
    Ho, Wo = H // 2, W // 2
    bias = b_ref[...]                                      # (1, CPAD), hoisted

    def row_pair(hp, carry):
        # Conv rows 2*hp and 2*hp+1, accumulated over the 25 taps in registers
        # (f32 accumulator, bf16 MXU operands).  acc rows [0,Wp) / [Wp,2*Wp)
        # hold the two conv rows over the padded width.
        acc = None
        for dh in range(KSIZE):
            base = (2 * hp + dh) * Wp
            for dw in range(KSIZE):
                lhs = x_ref[pl.ds(base + dw, 2 * Wp), :].astype(jnp.bfloat16)
                t = jnp.dot(lhs, w_ref[dh * KSIZE + dw],
                            preferred_element_type=jnp.float32)
                acc = t if acc is None else acc + t
        # 2x2 max pool: dense h-direction max first, then one stride-2 pass
        # along w.  Bias goes after the max (max(a+b, c+b) == max(a, c)+b).
        hrow_ref[...] = jnp.maximum(acc[0:W, :], acc[Wp:Wp + W, :])
        pooled = jnp.maximum(hrow_ref[pl.ds(0, Wo, stride=2), :],
                             hrow_ref[pl.ds(1, Wo, stride=2), :])
        pool_ref[pl.ds(hp * Wo, Wo), :] = pooled + bias
        return carry

    lax.fori_loop(0, Ho, row_pair, None)
    o_ref[...] = pool_ref[...].astype(o_ref.dtype)          # one dense bf16 store


def fc_fused_kernel(x_ref, w1_ref, b1_ref, w2_ref, b2_ref, o_ref):
    """Linear(1024,64) -> Linear(64,10), both padded to 128 lanes and fused so the
    hidden activation never touches HBM."""
    h = (jnp.dot(x_ref[...], w1_ref[...], preferred_element_type=jnp.float32)
         + b1_ref[...])
    o_ref[...] = (jnp.dot(h.astype(jnp.bfloat16), w2_ref[...],
                          preferred_element_type=jnp.float32) + b2_ref[...])


# ---------------------------------------------------------------------------
# XLA-side glue (weight prep / tiny layout plumbing only — no patch matrices)
# ---------------------------------------------------------------------------
def prep_conv_params(w_oihw, b, cin_pad):
    """PyTorch (Cout,Cin,5,5) -> (25, cin_pad, CPAD) bf16 tap weights + (1,CPAD) bias."""
    Cout, Cin, kh, kw = w_oihw.shape
    taps = jnp.transpose(w_oihw, (2, 3, 1, 0)).reshape(kh * kw, Cin, Cout)
    taps = jnp.pad(taps, ((0, 0), (0, cin_pad - Cin), (0, CPAD - Cout)))
    bias = jnp.pad(b, (0, CPAD - Cout)).astype(jnp.float32).reshape(1, CPAD)
    return taps.astype(jnp.bfloat16), bias


def conv_pool_layer(x_nhwc, w_taps, bias_p):
    """Conv2d(k=5, pad=2, stride=1) + MaxPool2d(2): one pallas_call, grid over images."""
    N, H, W, Cin = x_nhwc.shape
    assert H % 2 == 0 and W % 2 == 0 and Cin == w_taps.shape[1]
    Hp, Wp = H + KSIZE, W + KSIZE - 1      # top/bottom pad 2/3 (the extra zero row
    Ho, Wo = H // 2, W // 2                # keeps every tap slice in bounds), l/r pad 2
    xp = jnp.pad(x_nhwc.astype(jnp.float32), ((0, 0), (2, 3), (2, 2), (0, 0)))
    xflat = xp.reshape(N, Hp * Wp, Cin)

    kern = functools.partial(conv_pool_kernel, H=H, W=W, Wp=Wp)
    return pl.pallas_call(
        kern,
        out_shape=jax.ShapeDtypeStruct((N * Ho * Wo, CPAD), jnp.bfloat16),
        grid_spec=pltpu.PrefetchScalarGridSpec(
            num_scalar_prefetch=0,
            grid=(N,),                                       # one image per grid step
            in_specs=[
                pl.BlockSpec((None, Hp * Wp, Cin), lambda n: (n, 0, 0)),
                pl.BlockSpec((KSIZE * KSIZE, Cin, CPAD), lambda n: (0, 0, 0)),
                pl.BlockSpec((1, CPAD), lambda n: (0, 0)),
            ],
            out_specs=pl.BlockSpec((Ho * Wo, CPAD), lambda n: (n, 0)),
            scratch_shapes=[pltpu.VMEM((W, CPAD), jnp.float32),
                            pltpu.VMEM((Ho * Wo, CPAD), jnp.float32)],
        ),
        compiler_params=pltpu.CompilerParams(
            dimension_semantics=("parallel",)),              # images shard across TCs
    )(xflat, w_taps, bias_p)


def fc_fused(x2d, w1, b1, w2, b2):
    B, K1 = x2d.shape
    H1, N2 = w1.shape[1], w2.shape[1]
    return pl.pallas_call(
        fc_fused_kernel,
        out_shape=jax.ShapeDtypeStruct((B, N2), jnp.float32),
        grid_spec=pltpu.PrefetchScalarGridSpec(
            num_scalar_prefetch=0,
            grid=(1,),
            in_specs=[
                pl.BlockSpec((B, K1), lambda i: (0, 0)),
                pl.BlockSpec((K1, H1), lambda i: (0, 0)),
                pl.BlockSpec((1, H1), lambda i: (0, 0)),
                pl.BlockSpec((H1, N2), lambda i: (0, 0)),
                pl.BlockSpec((1, N2), lambda i: (0, 0)),
            ],
            out_specs=pl.BlockSpec((B, N2), lambda i: (0, 0)),
        ),
    )(x2d, w1, b1, w2, b2)


# ---------------------------------------------------------------------------
# The Tian network forward pass
# ---------------------------------------------------------------------------
def tian_forward(x_nchw, params):
    N, _, H, W = x_nchw.shape
    x = jnp.transpose(x_nchw, (0, 2, 3, 1))                  # NCHW -> NHWC (tiny)
    x = jnp.pad(x, ((0, 0), (0, 0), (0, 0), (0, 8 - x.shape[-1])))   # Cin 3 -> 8

    names = ("c1", "c2", "c3")
    for idx, name in enumerate(names):
        w, b = params[name + "_w"], params[name + "_b"]
        wt, bt = prep_conv_params(w, b, cin_pad=x.shape[-1])
        pooled = conv_pool_layer(x, wt, bt)                  # (N*Ho*Wo, 128) bf16
        H, W = H // 2, W // 2
        x = pooled.reshape(N, H, W, CPAD)
        if idx + 1 < len(names):
            x = x[:, :, :, :params[names[idx + 1] + "_w"].shape[1]]

    # PyTorch Flatten is over NCHW; fold that permutation AND the 64->128 channel
    # padding into fc1's weights so the pooled conv3 output is consumed as-is.
    Ho, Wo, C = H, W, params["c3_w"].shape[0]                # 4, 4, 64
    xf = x.reshape(N, Ho * Wo * CPAD)                        # (N, 2048) bf16
    w1 = jnp.transpose(params["fc1_w"].reshape(64, C, Ho, Wo), (2, 3, 1, 0))
    w1 = jnp.pad(w1, ((0, 0), (0, 0), (0, CPAD - C), (0, CPAD - 64)))
    w1 = w1.reshape(Ho * Wo * CPAD, CPAD).astype(jnp.bfloat16)
    b1 = jnp.pad(params["fc1_b"], (0, CPAD - 64)).reshape(1, CPAD).astype(jnp.float32)
    w2 = jnp.pad(params["fc2_w"].T, ((0, CPAD - 64), (0, CPAD - 10))).astype(jnp.bfloat16)
    b2 = jnp.pad(params["fc2_b"], (0, CPAD - 10)).reshape(1, CPAD).astype(jnp.float32)

    out = fc_fused(xf, w1, b1, w2, b2)                       # (N, 128) f32
    return out[:, :10]


def init_params(key):
    ks = jax.random.split(key, 10)
    s = 0.05
    return {
        "c1_w": s * jax.random.normal(ks[0], (32, 3, 5, 5), jnp.float32),
        "c1_b": s * jax.random.normal(ks[1], (32,), jnp.float32),
        "c2_w": s * jax.random.normal(ks[2], (32, 32, 5, 5), jnp.float32),
        "c2_b": s * jax.random.normal(ks[3], (32,), jnp.float32),
        "c3_w": s * jax.random.normal(ks[4], (64, 32, 5, 5), jnp.float32),
        "c3_b": s * jax.random.normal(ks[5], (64,), jnp.float32),
        "fc1_w": s * jax.random.normal(ks[6], (64, 1024), jnp.float32),
        "fc1_b": s * jax.random.normal(ks[7], (64,), jnp.float32),
        "fc2_w": s * jax.random.normal(ks[8], (10, 64), jnp.float32),
        "fc2_b": s * jax.random.normal(ks[9], (10,), jnp.float32),
    }


if __name__ == "__main__":
    key = jax.random.PRNGKey(0)
    pkey, xkey = jax.random.split(key)
    params = init_params(pkey)
    # Linear(1024, 64) after three 2x pools with 64 channels implies a 3x32x32 input.
    x = jax.random.normal(xkey, (2, 3, 32, 32), jnp.float32)   # NCHW, batch=2

    fwd = jax.jit(functools.partial(tian_forward, params=params))
    out = fwd(x)
    jax.block_until_ready(out)
    assert out.shape == (2, 10) and out.dtype == jnp.float32
    assert bool(jnp.all(jnp.isfinite(out)))
    print("KERNEL_OK")
</pallas_src>

<mosaic_0001>
module attributes {stable_mosaic.version = 11 : i64} {
  func.func @conv_pool_kernel(%arg0: i32, %arg1: memref<1x1332x8xf32, #tpu.memory_space<vmem>>, %arg2: memref<25x8x128xbf16, #tpu.memory_space<vmem>>, %arg3: memref<1x128xf32, #tpu.memory_space<vmem>>, %arg4: memref<256x128xbf16, #tpu.memory_space<vmem>>, %arg5: memref<32x128xf32, #tpu.memory_space<vmem>>, %arg6: memref<256x128xf32, #tpu.memory_space<vmem>>) attributes {dimension_semantics = [#tpu.dimension_semantics<parallel>], iteration_bounds = array<i64: 2>, scalar_prefetch = 0 : i64, scratch_operands = 2 : i64, tpu.core_type = #tpu.core_type<tc>, window_params = [{transform_indices = @transform_0, window_bounds = array<i64: 1, 1332, 8>}, {pipeline_mode = #tpu.pipeline_mode<synchronous>, transform_indices = @transform_1, window_bounds = array<i64: 25, 8, 128>}, {pipeline_mode = #tpu.pipeline_mode<synchronous>, transform_indices = @transform_2, window_bounds = array<i64: 1, 128>}, {transform_indices = @transform_3, window_bounds = array<i64: 256, 128>}]} {
    %c0 = arith.constant 0 : index
    %c0_0 = arith.constant 0 : index
    %0 = vector.load %arg3[%c0, %c0_0] : memref<1x128xf32, #tpu.memory_space<vmem>>, vector<1x128xf32>
    %c0_i32 = arith.constant 0 : i32
    %c16_i32 = arith.constant 16 : i32
    %1 = arith.addi %c0_i32, %c16_i32 : i32
    %c1_i32 = arith.constant 1 : i32
    scf.for %arg7 = %c0_i32 to %1 step %c1_i32  : i32 {
      %c2_i32 = arith.constant 2 : i32
      %5 = arith.muli %c2_i32, %arg7 : i32
      %c0_i32_6 = arith.constant 0 : i32
      %6 = arith.addi %5, %c0_i32_6 : i32
      %c36_i32 = arith.constant 36 : i32
      %7 = arith.muli %6, %c36_i32 : i32
      %c0_i32_7 = arith.constant 0 : i32
      %8 = arith.addi %7, %c0_i32_7 : i32
      %c0_8 = arith.constant 0 : index
      %9 = arith.index_cast %8 : i32 to index
      %c0_9 = arith.constant 0 : index
      %10 = vector.load %arg1[%c0_8, %9, %c0_9] : memref<1x1332x8xf32, #tpu.memory_space<vmem>>, vector<1x72x8xf32>
      %11 = vector.shape_cast %10 : vector<1x72x8xf32> to vector<72x8xf32>
      %12 = arith.truncf %11 : vector<72x8xf32> to vector<72x8xbf16>
      %c0_10 = arith.constant 0 : index
      %c0_11 = arith.constant 0 : index
      %c0_12 = arith.constant 0 : index
      %13 = vector.load %arg2[%c0_10, %c0_11, %c0_12] : memref<25x8x128xbf16, #tpu.memory_space<vmem>>, vector<1x8x128xbf16>
      %14 = vector.shape_cast %13 : vector<1x8x128xbf16> to vector<8x128xbf16>
      %cst = arith.constant dense<0.000000e+00> : vector<72x128xf32>
      %15 = tpu.matmul %12, %14, %cst {dimension_numbers = #tpu.dot_dimension_numbers<[1], [0], [0], [1], [0, 0, 1, 1], [], []>} : vector<72x8xbf16>, vector<8x128xbf16>, vector<72x128xf32> -> vector<72x128xf32>
      %c1_i32_13 = arith.constant 1 : i32
      %16 = arith.addi %7, %c1_i32_13 : i32
      %c0_14 = arith.constant 0 : index
      %17 = arith.index_cast %16 : i32 to index
      %c0_15 = arith.constant 0 : index
      %18 = vector.load %arg1[%c0_14, %17, %c0_15] : memref<1x1332x8xf32, #tpu.memory_space<vmem>>, vector<1x72x8xf32>
      %19 = vector.shape_cast %18 : vector<1x72x8xf32> to vector<72x8xf32>
      %20 = arith.truncf %19 : vector<72x8xf32> to vector<72x8xbf16>
      %c1 = arith.constant 1 : index
      %c0_16 = arith.constant 0 : index
      %c0_17 = arith.constant 0 : index
      %21 = vector.load %arg2[%c1, %c0_16, %c0_17] : memref<25x8x128xbf16, #tpu.memory_space<vmem>>, vector<1x8x128xbf16>
      %22 = vector.shape_cast %21 : vector<1x8x128xbf16> to vector<8x128xbf16>
      %cst_18 = arith.constant dense<0.000000e+00> : vector<72x128xf32>
      %23 = tpu.matmul %20, %22, %cst_18 {dimension_numbers = #tpu.dot_dimension_numbers<[1], [0], [0], [1], [0, 0, 1, 1], [], []>} : vector<72x8xbf16>, vector<8x128xbf16>, vector<72x128xf32> -> vector<72x128xf32>
      %24 = arith.addf %15, %23 : vector<72x128xf32>
      %c2_i32_19 = arith.constant 2 : i32
      %25 = arith.addi %7, %c2_i32_19 : i32
      %c0_20 = arith.constant 0 : index
      %26 = arith.index_cast %25 : i32 to index
      %c0_21 = arith.constant 0 : index
      %27 = vector.load %arg1[%c0_20, %26, %c0_21] : memref<1x1332x8xf32, #tpu.memory_space<vmem>>, vector<1x72x8xf32>
      %28 = vector.shape_cast %27 : vector<1x72x8xf32> to vector<72x8xf32>
      %29 = arith.truncf %28 : vector<72x8xf32> to vector<72x8xbf16>
      %c2 = arith.constant 2 : index
      %c0_22 = arith.constant 0 : index
      %c0_23 = arith.constant 0 : index
      %30 = vector.load %arg2[%c2, %c0_22, %c0_23] : memref<25x8x128xbf16, #tpu.memory_space<vmem>>, vector<1x8x128xbf16>
      %31 = vector.shape_cast %30 : vector<1x8x128xbf16> to vector<8x128xbf16>
      %cst_24 = arith.constant dense<0.000000e+00> : vector<72x128xf32>
      %32 = tpu.matmul %29, %31, %cst_24 {dimension_numbers = #tpu.dot_dimension_numbers<[1], [0], [0], [1], [0, 0, 1, 1], [], []>} : vector<72x8xbf16>, vector<8x128xbf16>, vector<72x128xf32> -> vector<72x128xf32>
      %33 = arith.addf %24, %32 : vector<72x128xf32>
      %c3_i32 = arith.constant 3 : i32
      %34 = arith.addi %7, %c3_i32 : i32
      %c0_25 = arith.constant 0 : index
      %35 = arith.index_cast %34 : i32 to index
      %c0_26 = arith.constant 0 : index
      %36 = vector.load %arg1[%c0_25, %35, %c0_26] : memref<1x1332x8xf32, #tpu.memory_space<vmem>>, vector<1x72x8xf32>
      %37 = vector.shape_cast %36 : vector<1x72x8xf32> to vector<72x8xf32>
      %38 = arith.truncf %37 : vector<72x8xf32> to vector<72x8xbf16>
      %c3 = arith.constant 3 : index
      %c0_27 = arith.constant 0 : index
      %c0_28 = arith.constant 0 : index
      %39 = vector.load %arg2[%c3, %c0_27, %c0_28] : memref<25x8x128xbf16, #tpu.memory_space<vmem>>, vector<1x8x128xbf16>
      %40 = vector.shape_cast %39 : vector<1x8x128xbf16> to vector<8x128xbf16>
      %cst_29 = arith.constant dense<0.000000e+00> : vector<72x128xf32>
      %41 = tpu.matmul %38, %40, %cst_29 {dimension_numbers = #tpu.dot_dimension_numbers<[1], [0], [0], [1], [0, 0, 1, 1], [], []>} : vector<72x8xbf16>, vector<8x128xbf16>, vector<72x128xf32> -> vector<72x128xf32>
      %42 = arith.addf %33, %41 : vector<72x128xf32>
      %c4_i32 = arith.constant 4 : i32
      %43 = arith.addi %7, %c4_i32 : i32
      %c0_30 = arith.constant 0 : index
      %44 = arith.index_cast %43 : i32 to index
      %c0_31 = arith.constant 0 : index
      %45 = vector.load %arg1[%c0_30, %44, %c0_31] : memref<1x1332x8xf32, #tpu.memory_space<vmem>>, vector<1x72x8xf32>
      %46 = vector.shape_cast %45 : vector<1x72x8xf32> to vector<72x8xf32>
      %47 = arith.truncf %46 : vector<72x8xf32> to vector<72x8xbf16>
      %c4 = arith.constant 4 : index
      %c0_32 = arith.constant 0 : index
      %c0_33 = arith.constant 0 : index
      %48 = vector.load %arg2[%c4, %c0_32, %c0_33] : memref<25x8x128xbf16, #tpu.memory_space<vmem>>, vector<1x8x128xbf16>
      %49 = vector.shape_cast %48 : vector<1x8x128xbf16> to vector<8x128xbf16>
      %cst_34 = arith.constant dense<0.000000e+00> : vector<72x128xf32>
      %50 = tpu.matmul %47, %49, %cst_34 {dimension_numbers = #tpu.dot_dimension_numbers<[1], [0], [0], [1], [0, 0, 1, 1], [], []>} : vector<72x8xbf16>, vector<8x128xbf16>, vector<72x128xf32> -> vector<72x128xf32>
      %51 = arith.addf %42, %50 : vector<72x128xf32>
      %c2_i32_35 = arith.constant 2 : i32
      %52 = arith.muli %c2_i32_35, %arg7 : i32
      %c1_i32_36 = arith.constant 1 : i32
      %53 = arith.addi %52, %c1_i32_36 : i32
      %c36_i32_37 = arith.constant 36 : i32
      %54 = arith.muli %53, %c36_i32_37 : i32
      %c0_i32_38 = arith.constant 0 : i32
      %55 = arith.addi %54, %c0_i32_38 : i32
      %c0_39 = arith.constant 0 : index
      %56 = arith.index_cast %55 : i32 to index
      %c0_40 = arith.constant 0 : index
      %57 = vector.load %arg1[%c0_39, %56, %c0_40] : memref<1x1332x8xf32, #tpu.memory_space<vmem>>, vector<1x72x8xf32>
      %58 = vector.shape_cast %57 : vector<1x72x8xf32> to vector<72x8xf32>
      %59 = arith.truncf %58 : vector<72x8xf32> to vector<72x8xbf16>
      %c5 = arith.constant 5 : index
      %c0_41 = arith.constant 0 : index
      %c0_42 = arith.constant 0 : index
      %60 = vector.load %arg2[%c5, %c0_41, %c0_42] : memref<25x8x128xbf16, #tpu.memory_space<vmem>>, vector<1x8x128xbf16>
      %61 = vector.shape_cast %60 : vector<1x8x128xbf16> to vector<8x128xbf16>
      %cst_43 = arith.constant dense<0.000000e+00> : vector<72x128xf32>
      %62 = tpu.matmul %59, %61, %cst_43 {dimension_numbers = #tpu.dot_dimension_numbers<[1], [0], [0], [1], [0, 0, 1, 1], [], []>} : vector<72x8xbf16>, vector<8x128xbf16>, vector<72x128xf32> -> vector<72x128xf32>
      %63 = arith.addf %51, %62 : vector<72x128xf32>
      %c1_i32_44 = arith.constant 1 : i32
      %64 = arith.addi %54, %c1_i32_44 : i32
      %c0_45 = arith.constant 0 : index
      %65 = arith.index_cast %64 : i32 to index
      %c0_46 = arith.constant 0 : index
      %66 = vector.load %arg1[%c0_45, %65, %c0_46] : memref<1x1332x8xf32, #tpu.memory_space<vmem>>, vector<1x72x8xf32>
      %67 = vector.shape_cast %66 : vector<1x72x8xf32> to vector<72x8xf32>
      %68 = arith.truncf %67 : vector<72x8xf32> to vector<72x8xbf16>
      %c6 = arith.constant 6 : index
      %c0_47 = arith.constant 0 : index
      %c0_48 = arith.constant 0 : index
      %69 = vector.load %arg2[%c6, %c0_47, %c0_48] : memref<25x8x128xbf16, #tpu.memory_space<vmem>>, vector<1x8x128xbf16>
      %70 = vector.shape_cast %69 : vector<1x8x128xbf16> to vector<8x128xbf16>
      %cst_49 = arith.constant dense<0.000000e+00> : vector<72x128xf32>
      %71 = tpu.matmul %68, %70, %cst_49 {dimension_numbers = #tpu.dot_dimension_numbers<[1], [0], [0], [1], [0, 0, 1, 1], [], []>} : vector<72x8xbf16>, vector<8x128xbf16>, vector<72x128xf32> -> vector<72x128xf32>
      %72 = arith.addf %63, %71 : vector<72x128xf32>
      %c2_i32_50 = arith.constant 2 : i32
      %73 = arith.addi %54, %c2_i32_50 : i32
      %c0_51 = arith.constant 0 : index
      %74 = arith.index_cast %73 : i32 to index
      %c0_52 = arith.constant 0 : index
      %75 = vector.load %arg1[%c0_51, %74, %c0_52] : memref<1x1332x8xf32, #tpu.memory_space<vmem>>, vector<1x72x8xf32>
      %76 = vector.shape_cast %75 : vector<1x72x8xf32> to vector<72x8xf32>
      %77 = arith.truncf %76 : vector<72x8xf32> to vector<72x8xbf16>
      %c7 = arith.constant 7 : index
      %c0_53 = arith.constant 0 : index
      %c0_54 = arith.constant 0 : index
      %78 = vector.load %arg2[%c7, %c0_53, %c0_54] : memref<25x8x128xbf16, #tpu.memory_space<vmem>>, vector<1x8x128xbf16>
      %79 = vector.shape_cast %78 : vector<1x8x128xbf16> to vector<8x128xbf16>
      %cst_55 = arith.constant dense<0.000000e+00> : vector<72x128xf32>
      %80 = tpu.matmul %77, %79, %cst_55 {dimension_numbers = #tpu.dot_dimension_numbers<[1], [0], [0], [1], [0, 0, 1, 1], [], []>} : vector<72x8xbf16>, vector<8x128xbf16>, vector<72x128xf32> -> vector<72x128xf32>
      %81 = arith.addf %72, %80 : vector<72x128xf32>
      %c3_i32_56 = arith.constant 3 : i32
      %82 = arith.addi %54, %c3_i32_56 : i32
      %c0_57 = arith.constant 0 : index
      %83 = arith.index_cast %82 : i32 to index
      %c0_58 = arith.constant 0 : index
      %84 = vector.load %arg1[%c0_57, %83, %c0_58] : memref<1x1332x8xf32, #tpu.memory_space<vmem>>, vector<1x72x8xf32>
      %85 = vector.shape_cast %84 : vector<1x72x8xf32> to vector<72x8xf32>
      %86 = arith.truncf %85 : vector<72x8xf32> to vector<72x8xbf16>
      %c8 = arith.constant 8 : index
      %c0_59 = arith.constant 0 : index
      %c0_60 = arith.constant 0 : index
      %87 = vector.load %arg2[%c8, %c0_59, %c0_60] : memref<25x8x128xbf16, #tpu.memory_space<vmem>>, vector<1x8x128xbf16>
      %88 = vector.shape_cast %87 : vector<1x8x128xbf16> to vector<8x128xbf16>
      %cst_61 = arith.constant dense<0.000000e+00> : vector<72x128xf32>
      %89 = tpu.matmul %86, %88, %cst_61 {dimension_numbers = #tpu.dot_dimension_numbers<[1], [0], [0], [1], [0, 0, 1, 1], [], []>} : vector<72x8xbf16>, vector<8x128xbf16>, vector<72x128xf32> -> vector<72x128xf32>
      %90 = arith.addf %81, %89 : vector<72x128xf32>
      %c4_i32_62 = arith.constant 4 : i32
      %91 = arith.addi %54, %c4_i32_62 : i32
      %c0_63 = arith.constant 0 : index
      %92 = arith.index_cast %91 : i32 to index
      %c0_64 = arith.constant 0 : index
      %93 = vector.load %arg1[%c0_63, %92, %c0_64] : memref<1x1332x8xf32, #tpu.memory_space<vmem>>, vector<1x72x8xf32>
      %94 = vector.shape_cast %93 : vector<1x72x8xf32> to vector<72x8xf32>
      %95 = arith.truncf %94 : vector<72x8xf32> to vector<72x8xbf16>
      %c9 = arith.constant 9 : index
      %c0_65 = arith.constant 0 : index
      %c0_66 = arith.constant 0 : index
      %96 = vector.load %arg2[%c9, %c0_65, %c0_66] : memref<25x8x128xbf16, #tpu.memory_space<vmem>>, vector<1x8x128xbf16>
      %97 = vector.shape_cast %96 : vector<1x8x128xbf16> to vector<8x128xbf16>
      %cst_67 = arith.constant dense<0.000000e+00> : vector<72x128xf32>
      %98 = tpu.matmul %95, %97, %cst_67 {dimension_numbers = #tpu.dot_dimension_numbers<[1], [0], [0], [1], [0, 0, 1, 1], [], []>} : vector<72x8xbf16>, vector<8x128xbf16>, vector<72x128xf32> -> vector<72x128xf32>
      %99 = arith.addf %90, %98 : vector<72x128xf32>
      %c2_i32_68 = arith.constant 2 : i32
      %100 = arith.muli %c2_i32_68, %arg7 : i32
      %c2_i32_69 = arith.constant 2 : i32
      %101 = arith.addi %100, %c2_i32_69 : i32
      %c36_i32_70 = arith.constant 36 : i32
      %102 = arith.muli %101, %c36_i32_70 : i32
      %c0_i32_71 = arith.constant 0 : i32
      %103 = arith.addi %102, %c0_i32_71 : i32
      %c0_72 = arith.constant 0 : index
      %104 = arith.index_cast %103 : i32 to index
      %c0_73 = arith.constant 0 : index
      %105 = vector.load %arg1[%c0_72, %104, %c0_73] : memref<1x1332x8xf32, #tpu.memory_space<vmem>>, vector<1x72x8xf32>
      %106 = vector.shape_cast %105 : vector<1x72x8xf32> to vector<72x8xf32>
      %107 = arith.truncf %106 : vector<72x8xf32> to vector<72x8xbf16>
      %c10 = arith.constant 10 : index
      %c0_74 = arith.constant 0 : index
      %c0_75 = arith.constant 0 : index
      %108 = vector.load %arg2[%c10, %c0_74, %c0_75] : memref<25x8x128xbf16, #tpu.memory_space<vmem>>, vector<1x8x128xbf16>
      %109 = vector.shape_cast %108 : vector<1x8x128xbf16> to vector<8x128xbf16>
      %cst_76 = arith.constant dense<0.000000e+00> : vector<72x128xf32>
      %110 = tpu.matmul %107, %109, %cst_76 {dimension_numbers = #tpu.dot_dimension_numbers<[1], [0], [0], [1], [0, 0, 1, 1], [], []>} : vector<72x8xbf16>, vector<8x128xbf16>, vector<72x128xf32> -> vector<72x128xf32>
      %111 = arith.addf %99, %110 : vector<72x128xf32>
      %c1_i32_77 = arith.constant 1 : i32
      %112 = arith.addi %102, %c1_i32_77 : i32
      %c0_78 = arith.constant 0 : index
      %113 = arith.index_cast %112 : i32 to index
      %c0_79 = arith.constant 0 : index
      %114 = vector.load %arg1[%c0_78, %113, %c0_79] : memref<1x1332x8xf32, #tpu.memory_space<vmem>>, vector<1x72x8xf32>
      %115 = vector.shape_cast %114 : vector<1x72x8xf32> to vector<72x8xf32>
      %116 = arith.truncf %115 : vector<72x8xf32> to vector<72x8xbf16>
      %c11 = arith.constant 11 : index
      %c0_80 = arith.constant 0 : index
      %c0_81 = arith.constant 0 : index
      %117 = vector.load %arg2[%c11, %c0_80, %c0_81] : memref<25x8x128xbf16, #tpu.memory_space<vmem>>, vector<1x8x128xbf16>
      %118 = vector.shape_cast %117 : vector<1x8x128xbf16> to vector<8x128xbf16>
      %cst_82 = arith.constant dense<0.000000e+00> : vector<72x128xf32>
      %119 = tpu.matmul %116, %118, %cst_82 {dimension_numbers = #tpu.dot_dimension_numbers<[1], [0], [0], [1], [0, 0, 1, 1], [], []>} : vector<72x8xbf16>, vector<8x128xbf16>, vector<72x128xf32> -> vector<72x128xf32>
      %120 = arith.addf %111, %119 : vector<72x128xf32>
      %c2_i32_83 = arith.constant 2 : i32
      %121 = arith.addi %102, %c2_i32_83 : i32
      %c0_84 = arith.constant 0 : index
      %122 = arith.index_cast %121 : i32 to index
      %c0_85 = arith.constant 0 : index
      %123 = vector.load %arg1[%c0_84, %122, %c0_85] : memref<1x1332x8xf32, #tpu.memory_space<vmem>>, vector<1x72x8xf32>
      %124 = vector.shape_cast %123 : vector<1x72x8xf32> to vector<72x8xf32>
      %125 = arith.truncf %124 : vector<72x8xf32> to vector<72x8xbf16>
      %c12 = arith.constant 12 : index
      %c0_86 = arith.constant 0 : index
      %c0_87 = arith.constant 0 : index
      %126 = vector.load %arg2[%c12, %c0_86, %c0_87] : memref<25x8x128xbf16, #tpu.memory_space<vmem>>, vector<1x8x128xbf16>
      %127 = vector.shape_cast %126 : vector<1x8x128xbf16> to vector<8x128xbf16>
      %cst_88 = arith.constant dense<0.000000e+00> : vector<72x128xf32>
      %128 = tpu.matmul %125, %127, %cst_88 {dimension_numbers = #tpu.dot_dimension_numbers<[1], [0], [0], [1], [0, 0, 1, 1], [], []>} : vector<72x8xbf16>, vector<8x128xbf16>, vector<72x128xf32> -> vector<72x128xf32>
      %129 = arith.addf %120, %128 : vector<72x128xf32>
      %c3_i32_89 = arith.constant 3 : i32
      %130 = arith.addi %102, %c3_i32_89 : i32
      %c0_90 = arith.constant 0 : index
      %131 = arith.index_cast %130 : i32 to index
      %c0_91 = arith.constant 0 : index
      %132 = vector.load %arg1[%c0_90, %131, %c0_91] : memref<1x1332x8xf32, #tpu.memory_space<vmem>>, vector<1x72x8xf32>
      %133 = vector.shape_cast %132 : vector<1x72x8xf32> to vector<72x8xf32>
      %134 = arith.truncf %133 : vector<72x8xf32> to vector<72x8xbf16>
      %c13 = arith.constant 13 : index
      %c0_92 = arith.constant 0 : index
      %c0_93 = arith.constant 0 : index
      %135 = vector.load %arg2[%c13, %c0_92, %c0_93] : memref<25x8x128xbf16, #tpu.memory_space<vmem>>, vector<1x8x128xbf16>
      %136 = vector.shape_cast %135 : vector<1x8x128xbf16> to vector<8x128xbf16>
      %cst_94 = arith.constant dense<0.000000e+00> : vector<72x128xf32>
      %137 = tpu.matmul %134, %136, %cst_94 {dimension_numbers = #tpu.dot_dimension_numbers<[1], [0], [0], [1], [0, 0, 1, 1], [], []>} : vector<72x8xbf16>, vector<8x128xbf16>, vector<72x128xf32> -> vector<72x128xf32>
      %138 = arith.addf %129, %137 : vector<72x128xf32>
      %c4_i32_95 = arith.constant 4 : i32
      %139 = arith.addi %102, %c4_i32_95 : i32
      %c0_96 = arith.constant 0 : index
      %140 = arith.index_cast %139 : i32 to index
      %c0_97 = arith.constant 0 : index
      %141 = vector.load %arg1[%c0_96, %140, %c0_97] : memref<1x1332x8xf32, #tpu.memory_space<vmem>>, vector<1x72x8xf32>
      %142 = vector.shape_cast %141 : vector<1x72x8xf32> to vector<72x8xf32>
      %143 = arith.truncf %142 : vector<72x8xf32> to vector<72x8xbf16>
      %c14 = arith.constant 14 : index
      %c0_98 = arith.constant 0 : index
      %c0_99 = arith.constant 0 : index
      %144 = vector.load %arg2[%c14, %c0_98, %c0_99] : memref<25x8x128xbf16, #tpu.memory_space<vmem>>, vector<1x8x128xbf16>
      %145 = vector.shape_cast %144 : vector<1x8x128xbf16> to vector<8x128xbf16>
      %cst_100 = arith.constant dense<0.000000e+00> : vector<72x128xf32>
      %146 = tpu.matmul %143, %145, %cst_100 {dimension_numbers = #tpu.dot_dimension_numbers<[1], [0], [0], [1], [0, 0, 1, 1], [], []>} : vector<72x8xbf16>, vector<8x128xbf16>, vector<72x128xf32> -> vector<72x128xf32>
      %147 = arith.addf %138, %146 : vector<72x128xf32>
      %c2_i32_101 = arith.constant 2 : i32
      %148 = arith.muli %c2_i32_101, %arg7 : i32
      %c3_i32_102 = arith.constant 3 : i32
      %149 = arith.addi %148, %c3_i32_102 : i32
      %c36_i32_103 = arith.constant 36 : i32
      %150 = arith.muli %149, %c36_i32_103 : i32
      %c0_i32_104 = arith.constant 0 : i32
      %151 = arith.addi %150, %c0_i32_104 : i32
      %c0_105 = arith.constant 0 : index
      %152 = arith.index_cast %151 : i32 to index
      %c0_106 = arith.constant 0 : index
      %153 = vector.load %arg1[%c0_105, %152, %c0_106] : memref<1x1332x8xf32, #tpu.memory_space<vmem>>, vector<1x72x8xf32>
      %154 = vector.shape_cast %153 : vector<1x72x8xf32> to vector<72x8xf32>
      %155 = arith.truncf %154 : vector<72x8xf32> to vector<72x8xbf16>
      %c15 = arith.constant 15 : index
      %c0_107 = arith.constant 0 : index
      %c0_108 = arith.constant 0 : index
      %156 = vector.load %arg2[%c15, %c0_107, %c0_108] : memref<25x8x128xbf16, #tpu.memory_space<vmem>>, vector<1x8x128xbf16>
      %157 = vector.shape_cast %156 : vector<1x8x128xbf16> to vector<8x128xbf16>
      %cst_109 = arith.constant dense<0.000000e+00> : vector<72x128xf32>
      %158 = tpu.matmul %155, %157, %cst_109 {dimension_numbers = #tpu.dot_dimension_numbers<[1], [0], [0], [1], [0, 0, 1, 1], [], []>} : vector<72x8xbf16>, vector<8x128xbf16>, vector<72x128xf32> -> vector<72x128xf32>
      %159 = arith.addf %147, %158 : vector<72x128xf32>
      %c1_i32_110 = arith.constant 1 : i32
      %160 = arith.addi %150, %c1_i32_110 : i32
      %c0_111 = arith.constant 0 : index
      %161 = arith.index_cast %160 : i32 to index
      %c0_112 = arith.constant 0 : index
      %162 = vector.load %arg1[%c0_111, %161, %c0_112] : memref<1x1332x8xf32, #tpu.memory_space<vmem>>, vector<1x72x8xf32>
      %163 = vector.shape_cast %162 : vector<1x72x8xf32> to vector<72x8xf32>
      %164 = arith.truncf %163 : vector<72x8xf32> to vector<72x8xbf16>
      %c16 = arith.constant 16 : index
      %c0_113 = arith.constant 0 : index
      %c0_114 = arith.constant 0 : index
      %165 = vector.load %arg2[%c16, %c0_113, %c0_114] : memref<25x8x128xbf16, #tpu.memory_space<vmem>>, vector<1x8x128xbf16>
      %166 = vector.shape_cast %165 : vector<1x8x128xbf16> to vector<8x128xbf16>
      %cst_115 = arith.constant dense<0.000000e+00> : vector<72x128xf32>
      %167 = tpu.matmul %164, %166, %cst_115 {dimension_numbers = #tpu.dot_dimension_numbers<[1], [0], [0], [1], [0, 0, 1, 1], [], []>} : vector<72x8xbf16>, vector<8x128xbf16>, vector<72x128xf32> -> vector<72x128xf32>
      %168 = arith.addf %159, %167 : vector<72x128xf32>
      %c2_i32_116 = arith.constant 2 : i32
      %169 = arith.addi %150, %c2_i32_116 : i32
      %c0_117 = arith.constant 0 : index
      %170 = arith.index_cast %169 : i32 to index
      %c0_118 = arith.constant 0 : index
      %171 = vector.load %arg1[%c0_117, %170, %c0_118] : memref<1x1332x8xf32, #tpu.memory_space<vmem>>, vector<1x72x8xf32>
      %172 = vector.shape_cast %171 : vector<1x72x8xf32> to vector<72x8xf32>
      %173 = arith.truncf %172 : vector<72x8xf32> to vector<72x8xbf16>
      %c17 = arith.constant 17 : index
      %c0_119 = arith.constant 0 : index
      %c0_120 = arith.constant 0 : index
      %174 = vector.load %arg2[%c17, %c0_119, %c0_120] : memref<25x8x128xbf16, #tpu.memory_space<vmem>>, vector<1x8x128xbf16>
      %175 = vector.shape_cast %174 : vector<1x8x128xbf16> to vector<8x128xbf16>
      %cst_121 = arith.constant dense<0.000000e+00> : vector<72x128xf32>
      %176 = tpu.matmul %173, %175, %cst_121 {dimension_numbers = #tpu.dot_dimension_numbers<[1], [0], [0], [1], [0, 0, 1, 1], [], []>} : vector<72x8xbf16>, vector<8x128xbf16>, vector<72x128xf32> -> vector<72x128xf32>
      %177 = arith.addf %168, %176 : vector<72x128xf32>
      %c3_i32_122 = arith.constant 3 : i32
      %178 = arith.addi %150, %c3_i32_122 : i32
      %c0_123 = arith.constant 0 : index
      %179 = arith.index_cast %178 : i32 to index
      %c0_124 = arith.constant 0 : index
      %180 = vector.load %arg1[%c0_123, %179, %c0_124] : memref<1x1332x8xf32, #tpu.memory_space<vmem>>, vector<1x72x8xf32>
      %181 = vector.shape_cast %180 : vector<1x72x8xf32> to vector<72x8xf32>
      %182 = arith.truncf %181 : vector<72x8xf32> to vector<72x8xbf16>
      %c18 = arith.constant 18 : index
      %c0_125 = arith.constant 0 : index
      %c0_126 = arith.constant 0 : index
      %183 = vector.load %arg2[%c18, %c0_125, %c0_126] : memref<25x8x128xbf16, #tpu.memory_space<vmem>>, vector<1x8x128xbf16>
      %184 = vector.shape_cast %183 : vector<1x8x128xbf16> to vector<8x128xbf16>
      %cst_127 = arith.constant dense<0.000000e+00> : vector<72x128xf32>
      %185 = tpu.matmul %182, %184, %cst_127 {dimension_numbers = #tpu.dot_dimension_numbers<[1], [0], [0], [1], [0, 0, 1, 1], [], []>} : vector<72x8xbf16>, vector<8x128xbf16>, vector<72x128xf32> -> vector<72x128xf32>
      %186 = arith.addf %177, %185 : vector<72x128xf32>
      %c4_i32_128 = arith.constant 4 : i32
      %187 = arith.addi %150, %c4_i32_128 : i32
      %c0_129 = arith.constant 0 : index
      %188 = arith.index_cast %187 : i32 to index
      %c0_130 = arith.constant 0 : index
      %189 = vector.load %arg1[%c0_129, %188, %c0_130] : memref<1x1332x8xf32, #tpu.memory_space<vmem>>, vector<1x72x8xf32>
      %190 = vector.shape_cast %189 : vector<1x72x8xf32> to vector<72x8xf32>
      %191 = arith.truncf %190 : vector<72x8xf32> to vector<72x8xbf16>
      %c19 = arith.constant 19 : index
      %c0_131 = arith.constant 0 : index
      %c0_132 = arith.constant 0 : index
      %192 = vector.load %arg2[%c19, %c0_131, %c0_132] : memref<25x8x128xbf16, #tpu.memory_space<vmem>>, vector<1x8x128xbf16>
      %193 = vector.shape_cast %192 : vector<1x8x128xbf16> to vector<8x128xbf16>
      %cst_133 = arith.constant dense<0.000000e+00> : vector<72x128xf32>
      %194 = tpu.matmul %191, %193, %cst_133 {dimension_numbers = #tpu.dot_dimension_numbers<[1], [0], [0], [1], [0, 0, 1, 1], [], []>} : vector<72x8xbf16>, vector<8x128xbf16>, vector<72x128xf32> -> vector<72x128xf32>
      %195 = arith.addf %186, %194 : vector<72x128xf32>
      %c2_i32_134 = arith.constant 2 : i32
      %196 = arith.muli %c2_i32_134, %arg7 : i32
      %c4_i32_135 = arith.constant 4 : i32
      %197 = arith.addi %196, %c4_i32_135 : i32
      %c36_i32_136 = arith.constant 36 : i32
      %198 = arith.muli %197, %c36_i32_136 : i32
      %c0_i32_137 = arith.constant 0 : i32
      %199 = arith.addi %198, %c0_i32_137 : i32
      %c0_138 = arith.constant 0 : index
      %200 = arith.index_cast %199 : i32 to index
      %c0_139 = arith.constant 0 : index
      %201 = vector.load %arg1[%c0_138, %200, %c0_139] : memref<1x1332x8xf32, #tpu.memory_space<vmem>>, vector<1x72x8xf32>
      %202 = vector.shape_cast %201 : vector<1x72x8xf32> to vector<72x8xf32>
      %203 = arith.truncf %202 : vector<72x8xf32> to vector<72x8xbf16>
      %c20 = arith.constant 20 : index
      %c0_140 = arith.constant 0 : index
      %c0_141 = arith.constant 0 : index
      %204 = vector.load %arg2[%c20, %c0_140, %c0_141] : memref<25x8x128xbf16, #tpu.memory_space<vmem>>, vector<1x8x128xbf16>
      %205 = vector.shape_cast %204 : vector<1x8x128xbf16> to vector<8x128xbf16>
      %cst_142 = arith.constant dense<0.000000e+00> : vector<72x128xf32>
      %206 = tpu.matmul %203, %205, %cst_142 {dimension_numbers = #tpu.dot_dimension_numbers<[1], [0], [0], [1], [0, 0, 1, 1], [], []>} : vector<72x8xbf16>, vector<8x128xbf16>, vector<72x128xf32> -> vector<72x128xf32>
      %207 = arith.addf %195, %206 : vector<72x128xf32>
      %c1_i32_143 = arith.constant 1 : i32
      %208 = arith.addi %198, %c1_i32_143 : i32
      %c0_144 = arith.constant 0 : index
      %209 = arith.index_cast %208 : i32 to index
      %c0_145 = arith.constant 0 : index
      %210 = vector.load %arg1[%c0_144, %209, %c0_145] : memref<1x1332x8xf32, #tpu.memory_space<vmem>>, vector<1x72x8xf32>
      %211 = vector.shape_cast %210 : vector<1x72x8xf32> to vector<72x8xf32>
      %212 = arith.truncf %211 : vector<72x8xf32> to vector<72x8xbf16>
      %c21 = arith.constant 21 : index
      %c0_146 = arith.constant 0 : index
      %c0_147 = arith.constant 0 : index
      %213 = vector.load %arg2[%c21, %c0_146, %c0_147] : memref<25x8x128xbf16, #tpu.memory_space<vmem>>, vector<1x8x128xbf16>
      %214 = vector.shape_cast %213 : vector<1x8x128xbf16> to vector<8x128xbf16>
      %cst_148 = arith.constant dense<0.000000e+00> : vector<72x128xf32>
      %215 = tpu.matmul %212, %214, %cst_148 {dimension_numbers = #tpu.dot_dimension_numbers<[1], [0], [0], [1], [0, 0, 1, 1], [], []>} : vector<72x8xbf16>, vector<8x128xbf16>, vector<72x128xf32> -> vector<72x128xf32>
      %216 = arith.addf %207, %215 : vector<72x128xf32>
      %c2_i32_149 = arith.constant 2 : i32
      %217 = arith.addi %198, %c2_i32_149 : i32
      %c0_150 = arith.constant 0 : index
      %218 = arith.index_cast %217 : i32 to index
      %c0_151 = arith.constant 0 : index
      %219 = vector.load %arg1[%c0_150, %218, %c0_151] : memref<1x1332x8xf32, #tpu.memory_space<vmem>>, vector<1x72x8xf32>
      %220 = vector.shape_cast %219 : vector<1x72x8xf32> to vector<72x8xf32>
      %221 = arith.truncf %220 : vector<72x8xf32> to vector<72x8xbf16>
      %c22 = arith.constant 22 : index
      %c0_152 = arith.constant 0 : index
      %c0_153 = arith.constant 0 : index
      %222 = vector.load %arg2[%c22, %c0_152, %c0_153] : memref<25x8x128xbf16, #tpu.memory_space<vmem>>, vector<1x8x128xbf16>
      %223 = vector.shape_cast %222 : vector<1x8x128xbf16> to vector<8x128xbf16>
      %cst_154 = arith.constant dense<0.000000e+00> : vector<72x128xf32>
      %224 = tpu.matmul %221, %223, %cst_154 {dimension_numbers = #tpu.dot_dimension_numbers<[1], [0], [0], [1], [0, 0, 1, 1], [], []>} : vector<72x8xbf16>, vector<8x128xbf16>, vector<72x128xf32> -> vector<72x128xf32>
      %225 = arith.addf %216, %224 : vector<72x128xf32>
      %c3_i32_155 = arith.constant 3 : i32
      %226 = arith.addi %198, %c3_i32_155 : i32
      %c0_156 = arith.constant 0 : index
      %227 = arith.index_cast %226 : i32 to index
      %c0_157 = arith.constant 0 : index
      %228 = vector.load %arg1[%c0_156, %227, %c0_157] : memref<1x1332x8xf32, #tpu.memory_space<vmem>>, vector<1x72x8xf32>
      %229 = vector.shape_cast %228 : vector<1x72x8xf32> to vector<72x8xf32>
      %230 = arith.truncf %229 : vector<72x8xf32> to vector<72x8xbf16>
      %c23 = arith.constant 23 : index
      %c0_158 = arith.constant 0 : index
      %c0_159 = arith.constant 0 : index
      %231 = vector.load %arg2[%c23, %c0_158, %c0_159] : memref<25x8x128xbf16, #tpu.memory_space<vmem>>, vector<1x8x128xbf16>
      %232 = vector.shape_cast %231 : vector<1x8x128xbf16> to vector<8x128xbf16>
      %cst_160 = arith.constant dense<0.000000e+00> : vector<72x128xf32>
      %233 = tpu.matmul %230, %232, %cst_160 {dimension_numbers = #tpu.dot_dimension_numbers<[1], [0], [0], [1], [0, 0, 1, 1], [], []>} : vector<72x8xbf16>, vector<8x128xbf16>, vector<72x128xf32> -> vector<72x128xf32>
      %234 = arith.addf %225, %233 : vector<72x128xf32>
      %c4_i32_161 = arith.constant 4 : i32
      %235 = arith.addi %198, %c4_i32_161 : i32
      %c0_162 = arith.constant 0 : index
      %236 = arith.index_cast %235 : i32 to index
      %c0_163 = arith.constant 0 : index
      %237 = vector.load %arg1[%c0_162, %236, %c0_163] : memref<1x1332x8xf32, #tpu.memory_space<vmem>>, vector<1x72x8xf32>
      %238 = vector.shape_cast %237 : vector<1x72x8xf32> to vector<72x8xf32>
      %239 = arith.truncf %238 : vector<72x8xf32> to vector<72x8xbf16>
      %c24 = arith.constant 24 : index
      %c0_164 = arith.constant 0 : index
      %c0_165 = arith.constant 0 : index
      %240 = vector.load %arg2[%c24, %c0_164, %c0_165] : memref<25x8x128xbf16, #tpu.memory_space<vmem>>, vector<1x8x128xbf16>
      %241 = vector.shape_cast %240 : vector<1x8x128xbf16> to vector<8x128xbf16>
      %cst_166 = arith.constant dense<0.000000e+00> : vector<72x128xf32>
      %242 = tpu.matmul %239, %241, %cst_166 {dimension_numbers = #tpu.dot_dimension_numbers<[1], [0], [0], [1], [0, 0, 1, 1], [], []>} : vector<72x8xbf16>, vector<8x128xbf16>, vector<72x128xf32> -> vector<72x128xf32>
      %243 = arith.addf %234, %242 : vector<72x128xf32>
      %244 = vector.extract_strided_slice %243 {offsets = [0, 0], sizes = [32, 128], strides = [1, 1]} : vector<72x128xf32> to vector<32x128xf32>
      %245 = vector.extract_strided_slice %243 {offsets = [36, 0], sizes = [32, 128], strides = [1, 1]} : vector<72x128xf32> to vector<32x128xf32>
      %246 = arith.maximumf %244, %245 : vector<32x128xf32>
      %c0_167 = arith.constant 0 : index
      %c0_168 = arith.constant 0 : index
      %247 = vector.load %arg5[%c0_167, %c0_168] : memref<32x128xf32, #tpu.memory_space<vmem>>, vector<32x128xf32>
      tpu.vector_store %arg5[%c0_167, %c0_168], %246 {strides = array<i32>} : memref<32x128xf32, #tpu.memory_space<vmem>>, vector<32x128xf32>,
      %c0_169 = arith.constant 0 : index
      %c0_170 = arith.constant 0 : index
      %248 = tpu.strided_load %arg5[%c0_169, %c0_170] {strides = array<i32: 2, 1>} : memref<32x128xf32, #tpu.memory_space<vmem>>, vector<16x128xf32>
      %c1_171 = arith.constant 1 : index
      %c0_172 = arith.constant 0 : index
      %249 = tpu.strided_load %arg5[%c1_171, %c0_172] {strides = array<i32: 2, 1>} : memref<32x128xf32, #tpu.memory_space<vmem>>, vector<16x128xf32>
      %250 = arith.maximumf %248, %249 : vector<16x128xf32>
      %251 = vector.broadcast %0 : vector<1x128xf32> to vector<16x128xf32>
      %252 = arith.addf %250, %251 : vector<16x128xf32>
      %c16_i32_173 = arith.constant 16 : i32
      %253 = arith.muli %arg7, %c16_i32_173 : i32
      %254 = arith.index_cast %253 : i32 to index
      %c0_174 = arith.constant 0 : index
      %255 = vector.load %arg6[%254, %c0_174] : memref<256x128xf32, #tpu.memory_space<vmem>>, vector<16x128xf32>
      tpu.vector_store %arg6[%254, %c0_174], %252 {strides = array<i32>} : memref<256x128xf32, #tpu.memory_space<vmem>>, vector<16x128xf32>,
    }
    %c16_i32_1 = arith.constant 16 : i32
    %c0_2 = arith.constant 0 : index
    %c0_3 = arith.constant 0 : index
    %2 = vector.load %arg6[%c0_2, %c0_3] : memref<256x128xf32, #tpu.memory_space<vmem>>, vector<256x128xf32>
    %3 = arith.truncf %2 : vector<256x128xf32> to vector<256x128xbf16>
    %c0_4 = arith.constant 0 : index
    %c0_5 = arith.constant 0 : index
    %4 = vector.load %arg4[%c0_4, %c0_5] : memref<256x128xbf16, #tpu.memory_space<vmem>>, vector<256x128xbf16>
    tpu.vector_store %arg4[%c0_4, %c0_5], %3 {strides = array<i32>} : memref<256x128xbf16, #tpu.memory_space<vmem>>, vector<256x128xbf16>,
    return
  }
  func.func @transform_0(%arg0: i32) -> (i32, i32, i32) {
    %c0_i32 = arith.constant 0 : i32
    %c0_i32_0 = arith.constant 0 : i32
    %c0_i32_1 = arith.constant 0 : i32
    return %arg0, %c0_i32, %c0_i32_0 : i32, i32, i32
  }
  func.func @transform_1(%arg0: i32) -> (i32, i32, i32) {
    %c0_i32 = arith.constant 0 : i32
    %c0_i32_0 = arith.constant 0 : i32
    %c0_i32_1 = arith.constant 0 : i32
    %c0_i32_2 = arith.constant 0 : i32
    return %c0_i32, %c0_i32_0, %c0_i32_1 : i32, i32, i32
  }
  func.func @transform_2(%arg0: i32) -> (i32, i32) {
    %c0_i32 = arith.constant 0 : i32
    %c0_i32_0 = arith.constant 0 : i32
    %c0_i32_1 = arith.constant 0 : i32
    return %c0_i32, %c0_i32_0 : i32, i32
  }
  func.func @transform_3(%arg0: i32) -> (i32, i32) {
    %c0_i32 = arith.constant 0 : i32
    %c0_i32_0 = arith.constant 0 : i32
    return %arg0, %c0_i32 : i32, i32
  }
}

module attributes {stable_mosaic.version = 11 : i64} {
  func.func @conv_pool_kernel(%arg0: i32, %arg1: memref<1x420x32xf32, #tpu.memory_space<vmem>>, %arg2: memref<25x32x128xbf16, #tpu.memory_space<vmem>>, %arg3: memref<1x128xf32, #tpu.memory_space<vmem>>, %arg4: memref<64x128xbf16, #tpu.memory_space<vmem>>, %arg5: memref<16x128xf32, #tpu.memory_space<vmem>>, %arg6: memref<64x128xf32, #tpu.memory_space<vmem>>) attributes {dimension_semantics = [#tpu.dimension_semantics<parallel>], iteration_bounds = array<i64: 2>, scalar_prefetch = 0 : i64, scratch_operands = 2 : i64, tpu.core_type = #tpu.core_type<tc>, window_params = [{transform_indices = @transform_0, window_bounds = array<i64: 1, 420, 32>}, {pipeline_mode = #tpu.pipeline_mode<synchronous>, transform_indices = @transform_1, window_bounds = array<i64: 25, 32, 128>}, {pipeline_mode = #tpu.pipeline_mode<synchronous>, transform_indices = @transform_2, window_bounds = array<i64: 1, 128>}, {transform_indices = @transform_3, window_bounds = array<i64: 64, 128>}]} {
    %c0 = arith.constant 0 : index
    %c0_0 = arith.constant 0 : index
    %0 = vector.load %arg3[%c0, %c0_0] : memref<1x128xf32, #tpu.memory_space<vmem>>, vector<1x128xf32>
    %c0_i32 = arith.constant 0 : i32
    %c8_i32 = arith.constant 8 : i32
    %1 = arith.addi %c0_i32, %c8_i32 : i32
    %c1_i32 = arith.constant 1 : i32
    scf.for %arg7 = %c0_i32 to %1 step %c1_i32  : i32 {
      %c2_i32 = arith.constant 2 : i32
      %5 = arith.muli %c2_i32, %arg7 : i32
      %c0_i32_6 = arith.constant 0 : i32
      %6 = arith.addi %5, %c0_i32_6 : i32
      %c20_i32 = arith.constant 20 : i32
      %7 = arith.muli %6, %c20_i32 : i32
      %c0_i32_7 = arith.constant 0 : i32
      %8 = arith.addi %7, %c0_i32_7 : i32
      %c0_8 = arith.constant 0 : index
      %9 = arith.index_cast %8 : i32 to index
      %c0_9 = arith.constant 0 : index
      %10 = vector.load %arg1[%c0_8, %9, %c0_9] : memref<1x420x32xf32, #tpu.memory_space<vmem>>, vector<1x40x32xf32>
      %11 = vector.shape_cast %10 : vector<1x40x32xf32> to vector<40x32xf32>
      %12 = arith.truncf %11 : vector<40x32xf32> to vector<40x32xbf16>
      %c0_10 = arith.constant 0 : index
      %c0_11 = arith.constant 0 : index
      %c0_12 = arith.constant 0 : index
      %13 = vector.load %arg2[%c0_10, %c0_11, %c0_12] : memref<25x32x128xbf16, #tpu.memory_space<vmem>>, vector<1x32x128xbf16>
      %14 = vector.shape_cast %13 : vector<1x32x128xbf16> to vector<32x128xbf16>
      %cst = arith.constant dense<0.000000e+00> : vector<40x128xf32>
      %15 = tpu.matmul %12, %14, %cst {dimension_numbers = #tpu.dot_dimension_numbers<[1], [0], [0], [1], [0, 0, 1, 1], [], []>} : vector<40x32xbf16>, vector<32x128xbf16>, vector<40x128xf32> -> vector<40x128xf32>
      %c1_i32_13 = arith.constant 1 : i32
      %16 = arith.addi %7, %c1_i32_13 : i32
      %c0_14 = arith.constant 0 : index
      %17 = arith.index_cast %16 : i32 to index
      %c0_15 = arith.constant 0 : index
      %18 = vector.load %arg1[%c0_14, %17, %c0_15] : memref<1x420x32xf32, #tpu.memory_space<vmem>>, vector<1x40x32xf32>
      %19 = vector.shape_cast %18 : vector<1x40x32xf32> to vector<40x32xf32>
      %20 = arith.truncf %19 : vector<40x32xf32> to vector<40x32xbf16>
      %c1 = arith.constant 1 : index
      %c0_16 = arith.constant 0 : index
      %c0_17 = arith.constant 0 : index
      %21 = vector.load %arg2[%c1, %c0_16, %c0_17] : memref<25x32x128xbf16, #tpu.memory_space<vmem>>, vector<1x32x128xbf16>
      %22 = vector.shape_cast %21 : vector<1x32x128xbf16> to vector<32x128xbf16>
      %cst_18 = arith.constant dense<0.000000e+00> : vector<40x128xf32>
      %23 = tpu.matmul %20, %22, %cst_18 {dimension_numbers = #tpu.dot_dimension_numbers<[1], [0], [0], [1], [0, 0, 1, 1], [], []>} : vector<40x32xbf16>, vector<32x128xbf16>, vector<40x128xf32> -> vector<40x128xf32>
      %24 = arith.addf %15, %23 : vector<40x128xf32>
      %c2_i32_19 = arith.constant 2 : i32
      %25 = arith.addi %7, %c2_i32_19 : i32
      %c0_20 = arith.constant 0 : index
      %26 = arith.index_cast %25 : i32 to index
      %c0_21 = arith.constant 0 : index
      %27 = vector.load %arg1[%c0_20, %26, %c0_21] : memref<1x420x32xf32, #tpu.memory_space<vmem>>, vector<1x40x32xf32>
      %28 = vector.shape_cast %27 : vector<1x40x32xf32> to vector<40x32xf32>
      %29 = arith.truncf %28 : vector<40x32xf32> to vector<40x32xbf16>
      %c2 = arith.constant 2 : index
      %c0_22 = arith.constant 0 : index
      %c0_23 = arith.constant 0 : index
      %30 = vector.load %arg2[%c2, %c0_22, %c0_23] : memref<25x32x128xbf16, #tpu.memory_space<vmem>>, vector<1x32x128xbf16>
      %31 = vector.shape_cast %30 : vector<1x32x128xbf16> to vector<32x128xbf16>
      %cst_24 = arith.constant dense<0.000000e+00> : vector<40x128xf32>
      %32 = tpu.matmul %29, %31, %cst_24 {dimension_numbers = #tpu.dot_dimension_numbers<[1], [0], [0], [1], [0, 0, 1, 1], [], []>} : vector<40x32xbf16>, vector<32x128xbf16>, vector<40x128xf32> -> vector<40x128xf32>
      %33 = arith.addf %24, %32 : vector<40x128xf32>
      %c3_i32 = arith.constant 3 : i32
      %34 = arith.addi %7, %c3_i32 : i32
      %c0_25 = arith.constant 0 : index
      %35 = arith.index_cast %34 : i32 to index
      %c0_26 = arith.constant 0 : index
      %36 = vector.load %arg1[%c0_25, %35, %c0_26] : memref<1x420x32xf32, #tpu.memory_space<vmem>>, vector<1x40x32xf32>
      %37 = vector.shape_cast %36 : vector<1x40x32xf32> to vector<40x32xf32>
      %38 = arith.truncf %37 : vector<40x32xf32> to vector<40x32xbf16>
      %c3 = arith.constant 3 : index
      %c0_27 = arith.constant 0 : index
      %c0_28 = arith.constant 0 : index
      %39 = vector.load %arg2[%c3, %c0_27, %c0_28] : memref<25x32x128xbf16, #tpu.memory_space<vmem>>, vector<1x32x128xbf16>
      %40 = vector.shape_cast %39 : vector<1x32x128xbf16> to vector<32x128xbf16>
      %cst_29 = arith.constant dense<0.000000e+00> : vector<40x128xf32>
      %41 = tpu.matmul %38, %40, %cst_29 {dimension_numbers = #tpu.dot_dimension_numbers<[1], [0], [0], [1], [0, 0, 1, 1], [], []>} : vector<40x32xbf16>, vector<32x128xbf16>, vector<40x128xf32> -> vector<40x128xf32>
      %42 = arith.addf %33, %41 : vector<40x128xf32>
      %c4_i32 = arith.constant 4 : i32
      %43 = arith.addi %7, %c4_i32 : i32
      %c0_30 = arith.constant 0 : index
      %44 = arith.index_cast %43 : i32 to index
      %c0_31 = arith.constant 0 : index
      %45 = vector.load %arg1[%c0_30, %44, %c0_31] : memref<1x420x32xf32, #tpu.memory_space<vmem>>, vector<1x40x32xf32>
      %46 = vector.shape_cast %45 : vector<1x40x32xf32> to vector<40x32xf32>
      %47 = arith.truncf %46 : vector<40x32xf32> to vector<40x32xbf16>
      %c4 = arith.constant 4 : index
      %c0_32 = arith.constant 0 : index
      %c0_33 = arith.constant 0 : index
      %48 = vector.load %arg2[%c4, %c0_32, %c0_33] : memref<25x32x128xbf16, #tpu.memory_space<vmem>>, vector<1x32x128xbf16>
      %49 = vector.shape_cast %48 : vector<1x32x128xbf16> to vector<32x128xbf16>
      %cst_34 = arith.constant dense<0.000000e+00> : vector<40x128xf32>
      %50 = tpu.matmul %47, %49, %cst_34 {dimension_numbers = #tpu.dot_dimension_numbers<[1], [0], [0], [1], [0, 0, 1, 1], [], []>} : vector<40x32xbf16>, vector<32x128xbf16>, vector<40x128xf32> -> vector<40x128xf32>
      %51 = arith.addf %42, %50 : vector<40x128xf32>
      %c2_i32_35 = arith.constant 2 : i32
      %52 = arith.muli %c2_i32_35, %arg7 : i32
      %c1_i32_36 = arith.constant 1 : i32
      %53 = arith.addi %52, %c1_i32_36 : i32
      %c20_i32_37 = arith.constant 20 : i32
      %54 = arith.muli %53, %c20_i32_37 : i32
      %c0_i32_38 = arith.constant 0 : i32
      %55 = arith.addi %54, %c0_i32_38 : i32
      %c0_39 = arith.constant 0 : index
      %56 = arith.index_cast %55 : i32 to index
      %c0_40 = arith.constant 0 : index
      %57 = vector.load %arg1[%c0_39, %56, %c0_40] : memref<1x420x32xf32, #tpu.memory_space<vmem>>, vector<1x40x32xf32>
      %58 = vector.shape_cast %57 : vector<1x40x32xf32> to vector<40x32xf32>
      %59 = arith.truncf %58 : vector<40x32xf32> to vector<40x32xbf16>
      %c5 = arith.constant 5 : index
      %c0_41 = arith.constant 0 : index
      %c0_42 = arith.constant 0 : index
      %60 = vector.load %arg2[%c5, %c0_41, %c0_42] : memref<25x32x128xbf16, #tpu.memory_space<vmem>>, vector<1x32x128xbf16>
      %61 = vector.shape_cast %60 : vector<1x32x128xbf16> to vector<32x128xbf16>
      %cst_43 = arith.constant dense<0.000000e+00> : vector<40x128xf32>
      %62 = tpu.matmul %59, %61, %cst_43 {dimension_numbers = #tpu.dot_dimension_numbers<[1], [0], [0], [1], [0, 0, 1, 1], [], []>} : vector<40x32xbf16>, vector<32x128xbf16>, vector<40x128xf32> -> vector<40x128xf32>
      %63 = arith.addf %51, %62 : vector<40x128xf32>
      %c1_i32_44 = arith.constant 1 : i32
      %64 = arith.addi %54, %c1_i32_44 : i32
      %c0_45 = arith.constant 0 : index
      %65 = arith.index_cast %64 : i32 to index
      %c0_46 = arith.constant 0 : index
      %66 = vector.load %arg1[%c0_45, %65, %c0_46] : memref<1x420x32xf32, #tpu.memory_space<vmem>>, vector<1x40x32xf32>
      %67 = vector.shape_cast %66 : vector<1x40x32xf32> to vector<40x32xf32>
      %68 = arith.truncf %67 : vector<40x32xf32> to vector<40x32xbf16>
      %c6 = arith.constant 6 : index
      %c0_47 = arith.constant 0 : index
      %c0_48 = arith.constant 0 : index
      %69 = vector.load %arg2[%c6, %c0_47, %c0_48] : memref<25x32x128xbf16, #tpu.memory_space<vmem>>, vector<1x32x128xbf16>
      %70 = vector.shape_cast %69 : vector<1x32x128xbf16> to vector<32x128xbf16>
      %cst_49 = arith.constant dense<0.000000e+00> : vector<40x128xf32>
      %71 = tpu.matmul %68, %70, %cst_49 {dimension_numbers = #tpu.dot_dimension_numbers<[1], [0], [0], [1], [0, 0, 1, 1], [], []>} : vector<40x32xbf16>, vector<32x128xbf16>, vector<40x128xf32> -> vector<40x128xf32>
      %72 = arith.addf %63, %71 : vector<40x128xf32>
      %c2_i32_50 = arith.constant 2 : i32
      %73 = arith.addi %54, %c2_i32_50 : i32
      %c0_51 = arith.constant 0 : index
      %74 = arith.index_cast %73 : i32 to index
      %c0_52 = arith.constant 0 : index
      %75 = vector.load %arg1[%c0_51, %74, %c0_52] : memref<1x420x32xf32, #tpu.memory_space<vmem>>, vector<1x40x32xf32>
      %76 = vector.shape_cast %75 : vector<1x40x32xf32> to vector<40x32xf32>
      %77 = arith.truncf %76 : vector<40x32xf32> to vector<40x32xbf16>
      %c7 = arith.constant 7 : index
      %c0_53 = arith.constant 0 : index
      %c0_54 = arith.constant 0 : index
      %78 = vector.load %arg2[%c7, %c0_53, %c0_54] : memref<25x32x128xbf16, #tpu.memory_space<vmem>>, vector<1x32x128xbf16>
      %79 = vector.shape_cast %78 : vector<1x32x128xbf16> to vector<32x128xbf16>
      %cst_55 = arith.constant dense<0.000000e+00> : vector<40x128xf32>
      %80 = tpu.matmul %77, %79, %cst_55 {dimension_numbers = #tpu.dot_dimension_numbers<[1], [0], [0], [1], [0, 0, 1, 1], [], []>} : vector<40x32xbf16>, vector<32x128xbf16>, vector<40x128xf32> -> vector<40x128xf32>
      %81 = arith.addf %72, %80 : vector<40x128xf32>
      %c3_i32_56 = arith.constant 3 : i32
      %82 = arith.addi %54, %c3_i32_56 : i32
      %c0_57 = arith.constant 0 : index
      %83 = arith.index_cast %82 : i32 to index
      %c0_58 = arith.constant 0 : index
      %84 = vector.load %arg1[%c0_57, %83, %c0_58] : memref<1x420x32xf32, #tpu.memory_space<vmem>>, vector<1x40x32xf32>
      %85 = vector.shape_cast %84 : vector<1x40x32xf32> to vector<40x32xf32>
      %86 = arith.truncf %85 : vector<40x32xf32> to vector<40x32xbf16>
      %c8 = arith.constant 8 : index
      %c0_59 = arith.constant 0 : index
      %c0_60 = arith.constant 0 : index
      %87 = vector.load %arg2[%c8, %c0_59, %c0_60] : memref<25x32x128xbf16, #tpu.memory_space<vmem>>, vector<1x32x128xbf16>
      %88 = vector.shape_cast %87 : vector<1x32x128xbf16> to vector<32x128xbf16>
      %cst_61 = arith.constant dense<0.000000e+00> : vector<40x128xf32>
      %89 = tpu.matmul %86, %88, %cst_61 {dimension_numbers = #tpu.dot_dimension_numbers<[1], [0], [0], [1], [0, 0, 1, 1], [], []>} : vector<40x32xbf16>, vector<32x128xbf16>, vector<40x128xf32> -> vector<40x128xf32>
      %90 = arith.addf %81, %89 : vector<40x128xf32>
      %c4_i32_62 = arith.constant 4 : i32
      %91 = arith.addi %54, %c4_i32_62 : i32
      %c0_63 = arith.constant 0 : index
      %92 = arith.index_cast %91 : i32 to index
      %c0_64 = arith.constant 0 : index
      %93 = vector.load %arg1[%c0_63, %92, %c0_64] : memref<1x420x32xf32, #tpu.memory_space<vmem>>, vector<1x40x32xf32>
      %94 = vector.shape_cast %93 : vector<1x40x32xf32> to vector<40x32xf32>
      %95 = arith.truncf %94 : vector<40x32xf32> to vector<40x32xbf16>
      %c9 = arith.constant 9 : index
      %c0_65 = arith.constant 0 : index
      %c0_66 = arith.constant 0 : index
      %96 = vector.load %arg2[%c9, %c0_65, %c0_66] : memref<25x32x128xbf16, #tpu.memory_space<vmem>>, vector<1x32x128xbf16>
      %97 = vector.shape_cast %96 : vector<1x32x128xbf16> to vector<32x128xbf16>
      %cst_67 = arith.constant dense<0.000000e+00> : vector<40x128xf32>
      %98 = tpu.matmul %95, %97, %cst_67 {dimension_numbers = #tpu.dot_dimension_numbers<[1], [0], [0], [1], [0, 0, 1, 1], [], []>} : vector<40x32xbf16>, vector<32x128xbf16>, vector<40x128xf32> -> vector<40x128xf32>
      %99 = arith.addf %90, %98 : vector<40x128xf32>
      %c2_i32_68 = arith.constant 2 : i32
      %100 = arith.muli %c2_i32_68, %arg7 : i32
      %c2_i32_69 = arith.constant 2 : i32
      %101 = arith.addi %100, %c2_i32_69 : i32
      %c20_i32_70 = arith.constant 20 : i32
      %102 = arith.muli %101, %c20_i32_70 : i32
      %c0_i32_71 = arith.constant 0 : i32
      %103 = arith.addi %102, %c0_i32_71 : i32
      %c0_72 = arith.constant 0 : index
      %104 = arith.index_cast %103 : i32 to index
      %c0_73 = arith.constant 0 : index
      %105 = vector.load %arg1[%c0_72, %104, %c0_73] : memref<1x420x32xf32, #tpu.memory_space<vmem>>, vector<1x40x32xf32>
      %106 = vector.shape_cast %105 : vector<1x40x32xf32> to vector<40x32xf32>
      %107 = arith.truncf %106 : vector<40x32xf32> to vector<40x32xbf16>
      %c10 = arith.constant 10 : index
      %c0_74 = arith.constant 0 : index
      %c0_75 = arith.constant 0 : index
      %108 = vector.load %arg2[%c10, %c0_74, %c0_75] : memref<25x32x128xbf16, #tpu.memory_space<vmem>>, vector<1x32x128xbf16>
      %109 = vector.shape_cast %108 : vector<1x32x128xbf16> to vector<32x128xbf16>
      %cst_76 = arith.constant dense<0.000000e+00> : vector<40x128xf32>
      %110 = tpu.matmul %107, %109, %cst_76 {dimension_numbers = #tpu.dot_dimension_numbers<[1], [0], [0], [1], [0, 0, 1, 1], [], []>} : vector<40x32xbf16>, vector<32x128xbf16>, vector<40x128xf32> -> vector<40x128xf32>
      %111 = arith.addf %99, %110 : vector<40x128xf32>
      %c1_i32_77 = arith.constant 1 : i32
      %112 = arith.addi %102, %c1_i32_77 : i32
      %c0_78 = arith.constant 0 : index
      %113 = arith.index_cast %112 : i32 to index
      %c0_79 = arith.constant 0 : index
      %114 = vector.load %arg1[%c0_78, %113, %c0_79] : memref<1x420x32xf32, #tpu.memory_space<vmem>>, vector<1x40x32xf32>
      %115 = vector.shape_cast %114 : vector<1x40x32xf32> to vector<40x32xf32>
      %116 = arith.truncf %115 : vector<40x32xf32> to vector<40x32xbf16>
      %c11 = arith.constant 11 : index
      %c0_80 = arith.constant 0 : index
      %c0_81 = arith.constant 0 : index
      %117 = vector.load %arg2[%c11, %c0_80, %c0_81] : memref<25x32x128xbf16, #tpu.memory_space<vmem>>, vector<1x32x128xbf16>
      %118 = vector.shape_cast %117 : vector<1x32x128xbf16> to vector<32x128xbf16>
      %cst_82 = arith.constant dense<0.000000e+00> : vector<40x128xf32>
      %119 = tpu.matmul %116, %118, %cst_82 {dimension_numbers = #tpu.dot_dimension_numbers<[1], [0], [0], [1], [0, 0, 1, 1], [], []>} : vector<40x32xbf16>, vector<32x128xbf16>, vector<40x128xf32> -> vector<40x128xf32>
      %120 = arith.addf %111, %119 : vector<40x128xf32>
      %c2_i32_83 = arith.constant 2 : i32
      %121 = arith.addi %102, %c2_i32_83 : i32
      %c0_84 = arith.constant 0 : index
      %122 = arith.index_cast %121 : i32 to index
      %c0_85 = arith.constant 0 : index
      %123 = vector.load %arg1[%c0_84, %122, %c0_85] : memref<1x420x32xf32, #tpu.memory_space<vmem>>, vector<1x40x32xf32>
      %124 = vector.shape_cast %123 : vector<1x40x32xf32> to vector<40x32xf32>
      %125 = arith.truncf %124 : vector<40x32xf32> to vector<40x32xbf16>
      %c12 = arith.constant 12 : index
      %c0_86 = arith.constant 0 : index
      %c0_87 = arith.constant 0 : index
      %126 = vector.load %arg2[%c12, %c0_86, %c0_87] : memref<25x32x128xbf16, #tpu.memory_space<vmem>>, vector<1x32x128xbf16>
      %127 = vector.shape_cast %126 : vector<1x32x128xbf16> to vector<32x128xbf16>
      %cst_88 = arith.constant dense<0.000000e+00> : vector<40x128xf32>
      %128 = tpu.matmul %125, %127, %cst_88 {dimension_numbers = #tpu.dot_dimension_numbers<[1], [0], [0], [1], [0, 0, 1, 1], [], []>} : vector<40x32xbf16>, vector<32x128xbf16>, vector<40x128xf32> -> vector<40x128xf32>
      %129 = arith.addf %120, %128 : vector<40x128xf32>
      %c3_i32_89 = arith.constant 3 : i32
      %130 = arith.addi %102, %c3_i32_89 : i32
      %c0_90 = arith.constant 0 : index
      %131 = arith.index_cast %130 : i32 to index
      %c0_91 = arith.constant 0 : index
      %132 = vector.load %arg1[%c0_90, %131, %c0_91] : memref<1x420x32xf32, #tpu.memory_space<vmem>>, vector<1x40x32xf32>
      %133 = vector.shape_cast %132 : vector<1x40x32xf32> to vector<40x32xf32>
      %134 = arith.truncf %133 : vector<40x32xf32> to vector<40x32xbf16>
      %c13 = arith.constant 13 : index
      %c0_92 = arith.constant 0 : index
      %c0_93 = arith.constant 0 : index
      %135 = vector.load %arg2[%c13, %c0_92, %c0_93] : memref<25x32x128xbf16, #tpu.memory_space<vmem>>, vector<1x32x128xbf16>
      %136 = vector.shape_cast %135 : vector<1x32x128xbf16> to vector<32x128xbf16>
      %cst_94 = arith.constant dense<0.000000e+00> : vector<40x128xf32>
      %137 = tpu.matmul %134, %136, %cst_94 {dimension_numbers = #tpu.dot_dimension_numbers<[1], [0], [0], [1], [0, 0, 1, 1], [], []>} : vector<40x32xbf16>, vector<32x128xbf16>, vector<40x128xf32> -> vector<40x128xf32>
      %138 = arith.addf %129, %137 : vector<40x128xf32>
      %c4_i32_95 = arith.constant 4 : i32
      %139 = arith.addi %102, %c4_i32_95 : i32
      %c0_96 = arith.constant 0 : index
      %140 = arith.index_cast %139 : i32 to index
      %c0_97 = arith.constant 0 : index
      %141 = vector.load %arg1[%c0_96, %140, %c0_97] : memref<1x420x32xf32, #tpu.memory_space<vmem>>, vector<1x40x32xf32>
      %142 = vector.shape_cast %141 : vector<1x40x32xf32> to vector<40x32xf32>
      %143 = arith.truncf %142 : vector<40x32xf32> to vector<40x32xbf16>
      %c14 = arith.constant 14 : index
      %c0_98 = arith.constant 0 : index
      %c0_99 = arith.constant 0 : index
      %144 = vector.load %arg2[%c14, %c0_98, %c0_99] : memref<25x32x128xbf16, #tpu.memory_space<vmem>>, vector<1x32x128xbf16>
      %145 = vector.shape_cast %144 : vector<1x32x128xbf16> to vector<32x128xbf16>
      %cst_100 = arith.constant dense<0.000000e+00> : vector<40x128xf32>
      %146 = tpu.matmul %143, %145, %cst_100 {dimension_numbers = #tpu.dot_dimension_numbers<[1], [0], [0], [1], [0, 0, 1, 1], [], []>} : vector<40x32xbf16>, vector<32x128xbf16>, vector<40x128xf32> -> vector<40x128xf32>
      %147 = arith.addf %138, %146 : vector<40x128xf32>
      %c2_i32_101 = arith.constant 2 : i32
      %148 = arith.muli %c2_i32_101, %arg7 : i32
      %c3_i32_102 = arith.constant 3 : i32
      %149 = arith.addi %148, %c3_i32_102 : i32
      %c20_i32_103 = arith.constant 20 : i32
      %150 = arith.muli %149, %c20_i32_103 : i32
      %c0_i32_104 = arith.constant 0 : i32
      %151 = arith.addi %150, %c0_i32_104 : i32
      %c0_105 = arith.constant 0 : index
      %152 = arith.index_cast %151 : i32 to index
      %c0_106 = arith.constant 0 : index
      %153 = vector.load %arg1[%c0_105, %152, %c0_106] : memref<1x420x32xf32, #tpu.memory_space<vmem>>, vector<1x40x32xf32>
      %154 = vector.shape_cast %153 : vector<1x40x32xf32> to vector<40x32xf32>
      %155 = arith.truncf %154 : vector<40x32xf32> to vector<40x32xbf16>
      %c15 = arith.constant 15 : index
      %c0_107 = arith.constant 0 : index
      %c0_108 = arith.constant 0 : index
      %156 = vector.load %arg2[%c15, %c0_107, %c0_108] : memref<25x32x128xbf16, #tpu.memory_space<vmem>>, vector<1x32x128xbf16>
      %157 = vector.shape_cast %156 : vector<1x32x128xbf16> to vector<32x128xbf16>
      %cst_109 = arith.constant dense<0.000000e+00> : vector<40x128xf32>
      %158 = tpu.matmul %155, %157, %cst_109 {dimension_numbers = #tpu.dot_dimension_numbers<[1], [0], [0], [1], [0, 0, 1, 1], [], []>} : vector<40x32xbf16>, vector<32x128xbf16>, vector<40x128xf32> -> vector<40x128xf32>
      %159 = arith.addf %147, %158 : vector<40x128xf32>
      %c1_i32_110 = arith.constant 1 : i32
      %160 = arith.addi %150, %c1_i32_110 : i32
      %c0_111 = arith.constant 0 : index
      %161 = arith.index_cast %160 : i32 to index
      %c0_112 = arith.constant 0 : index
      %162 = vector.load %arg1[%c0_111, %161, %c0_112] : memref<1x420x32xf32, #tpu.memory_space<vmem>>, vector<1x40x32xf32>
      %163 = vector.shape_cast %162 : vector<1x40x32xf32> to vector<40x32xf32>
      %164 = arith.truncf %163 : vector<40x32xf32> to vector<40x32xbf16>
      %c16 = arith.constant 16 : index
      %c0_113 = arith.constant 0 : index
      %c0_114 = arith.constant 0 : index
      %165 = vector.load %arg2[%c16, %c0_113, %c0_114] : memref<25x32x128xbf16, #tpu.memory_space<vmem>>, vector<1x32x128xbf16>
      %166 = vector.shape_cast %165 : vector<1x32x128xbf16> to vector<32x128xbf16>
      %cst_115 = arith.constant dense<0.000000e+00> : vector<40x128xf32>
      %167 = tpu.matmul %164, %166, %cst_115 {dimension_numbers = #tpu.dot_dimension_numbers<[1], [0], [0], [1], [0, 0, 1, 1], [], []>} : vector<40x32xbf16>, vector<32x128xbf16>, vector<40x128xf32> -> vector<40x128xf32>
      %168 = arith.addf %159, %167 : vector<40x128xf32>
      %c2_i32_116 = arith.constant 2 : i32
      %169 = arith.addi %150, %c2_i32_116 : i32
      %c0_117 = arith.constant 0 : index
      %170 = arith.index_cast %169 : i32 to index
      %c0_118 = arith.constant 0 : index
      %171 = vector.load %arg1[%c0_117, %170, %c0_118] : memref<1x420x32xf32, #tpu.memory_space<vmem>>, vector<1x40x32xf32>
      %172 = vector.shape_cast %171 : vector<1x40x32xf32> to vector<40x32xf32>
      %173 = arith.truncf %172 : vector<40x32xf32> to vector<40x32xbf16>
      %c17 = arith.constant 17 : index
      %c0_119 = arith.constant 0 : index
      %c0_120 = arith.constant 0 : index
      %174 = vector.load %arg2[%c17, %c0_119, %c0_120] : memref<25x32x128xbf16, #tpu.memory_space<vmem>>, vector<1x32x128xbf16>
      %175 = vector.shape_cast %174 : vector<1x32x128xbf16> to vector<32x128xbf16>
      %cst_121 = arith.constant dense<0.000000e+00> : vector<40x128xf32>
      %176 = tpu.matmul %173, %175, %cst_121 {dimension_numbers = #tpu.dot_dimension_numbers<[1], [0], [0], [1], [0, 0, 1, 1], [], []>} : vector<40x32xbf16>, vector<32x128xbf16>, vector<40x128xf32> -> vector<40x128xf32>
      %177 = arith.addf %168, %176 : vector<40x128xf32>
      %c3_i32_122 = arith.constant 3 : i32
      %178 = arith.addi %150, %c3_i32_122 : i32
      %c0_123 = arith.constant 0 : index
      %179 = arith.index_cast %178 : i32 to index
      %c0_124 = arith.constant 0 : index
      %180 = vector.load %arg1[%c0_123, %179, %c0_124] : memref<1x420x32xf32, #tpu.memory_space<vmem>>, vector<1x40x32xf32>
      %181 = vector.shape_cast %180 : vector<1x40x32xf32> to vector<40x32xf32>
      %182 = arith.truncf %181 : vector<40x32xf32> to vector<40x32xbf16>
      %c18 = arith.constant 18 : index
      %c0_125 = arith.constant 0 : index
      %c0_126 = arith.constant 0 : index
      %183 = vector.load %arg2[%c18, %c0_125, %c0_126] : memref<25x32x128xbf16, #tpu.memory_space<vmem>>, vector<1x32x128xbf16>
      %184 = vector.shape_cast %183 : vector<1x32x128xbf16> to vector<32x128xbf16>
      %cst_127 = arith.constant dense<0.000000e+00> : vector<40x128xf32>
      %185 = tpu.matmul %182, %184, %cst_127 {dimension_numbers = #tpu.dot_dimension_numbers<[1], [0], [0], [1], [0, 0, 1, 1], [], []>} : vector<40x32xbf16>, vector<32x128xbf16>, vector<40x128xf32> -> vector<40x128xf32>
      %186 = arith.addf %177, %185 : vector<40x128xf32>
      %c4_i32_128 = arith.constant 4 : i32
      %187 = arith.addi %150, %c4_i32_128 : i32
      %c0_129 = arith.constant 0 : index
      %188 = arith.index_cast %187 : i32 to index
      %c0_130 = arith.constant 0 : index
      %189 = vector.load %arg1[%c0_129, %188, %c0_130] : memref<1x420x32xf32, #tpu.memory_space<vmem>>, vector<1x40x32xf32>
      %190 = vector.shape_cast %189 : vector<1x40x32xf32> to vector<40x32xf32>
      %191 = arith.truncf %190 : vector<40x32xf32> to vector<40x32xbf16>
      %c19 = arith.constant 19 : index
      %c0_131 = arith.constant 0 : index
      %c0_132 = arith.constant 0 : index
      %192 = vector.load %arg2[%c19, %c0_131, %c0_132] : memref<25x32x128xbf16, #tpu.memory_space<vmem>>, vector<1x32x128xbf16>
      %193 = vector.shape_cast %192 : vector<1x32x128xbf16> to vector<32x128xbf16>
      %cst_133 = arith.constant dense<0.000000e+00> : vector<40x128xf32>
      %194 = tpu.matmul %191, %193, %cst_133 {dimension_numbers = #tpu.dot_dimension_numbers<[1], [0], [0], [1], [0, 0, 1, 1], [], []>} : vector<40x32xbf16>, vector<32x128xbf16>, vector<40x128xf32> -> vector<40x128xf32>
      %195 = arith.addf %186, %194 : vector<40x128xf32>
      %c2_i32_134 = arith.constant 2 : i32
      %196 = arith.muli %c2_i32_134, %arg7 : i32
      %c4_i32_135 = arith.constant 4 : i32
      %197 = arith.addi %196, %c4_i32_135 : i32
      %c20_i32_136 = arith.constant 20 : i32
      %198 = arith.muli %197, %c20_i32_136 : i32
      %c0_i32_137 = arith.constant 0 : i32
      %199 = arith.addi %198, %c0_i32_137 : i32
      %c0_138 = arith.constant 0 : index
      %200 = arith.index_cast %199 : i32 to index
      %c0_139 = arith.constant 0 : index
      %201 = vector.load %arg1[%c0_138, %200, %c0_139] : memref<1x420x32xf32, #tpu.memory_space<vmem>>, vector<1x40x32xf32>
      %202 = vector.shape_cast %201 : vector<1x40x32xf32> to vector<40x32xf32>
      %203 = arith.truncf %202 : vector<40x32xf32> to vector<40x32xbf16>
      %c20 = arith.constant 20 : index
      %c0_140 = arith.constant 0 : index
      %c0_141 = arith.constant 0 : index
      %204 = vector.load %arg2[%c20, %c0_140, %c0_141] : memref<25x32x128xbf16, #tpu.memory_space<vmem>>, vector<1x32x128xbf16>
      %205 = vector.shape_cast %204 : vector<1x32x128xbf16> to vector<32x128xbf16>
      %cst_142 = arith.constant dense<0.000000e+00> : vector<40x128xf32>
      %206 = tpu.matmul %203, %205, %cst_142 {dimension_numbers = #tpu.dot_dimension_numbers<[1], [0], [0], [1], [0, 0, 1, 1], [], []>} : vector<40x32xbf16>, vector<32x128xbf16>, vector<40x128xf32> -> vector<40x128xf32>
      %207 = arith.addf %195, %206 : vector<40x128xf32>
      %c1_i32_143 = arith.constant 1 : i32
      %208 = arith.addi %198, %c1_i32_143 : i32
      %c0_144 = arith.constant 0 : index
      %209 = arith.index_cast %208 : i32 to index
      %c0_145 = arith.constant 0 : index
      %210 = vector.load %arg1[%c0_144, %209, %c0_145] : memref<1x420x32xf32, #tpu.memory_space<vmem>>, vector<1x40x32xf32>
      %211 = vector.shape_cast %210 : vector<1x40x32xf32> to vector<40x32xf32>
      %212 = arith.truncf %211 : vector<40x32xf32> to vector<40x32xbf16>
      %c21 = arith.constant 21 : index
      %c0_146 = arith.constant 0 : index
      %c0_147 = arith.constant 0 : index
      %213 = vector.load %arg2[%c21, %c0_146, %c0_147] : memref<25x32x128xbf16, #tpu.memory_space<vmem>>, vector<1x32x128xbf16>
      %214 = vector.shape_cast %213 : vector<1x32x128xbf16> to vector<32x128xbf16>
      %cst_148 = arith.constant dense<0.000000e+00> : vector<40x128xf32>
      %215 = tpu.matmul %212, %214, %cst_148 {dimension_numbers = #tpu.dot_dimension_numbers<[1], [0], [0], [1], [0, 0, 1, 1], [], []>} : vector<40x32xbf16>, vector<32x128xbf16>, vector<40x128xf32> -> vector<40x128xf32>
      %216 = arith.addf %207, %215 : vector<40x128xf32>
      %c2_i32_149 = arith.constant 2 : i32
      %217 = arith.addi %198, %c2_i32_149 : i32
      %c0_150 = arith.constant 0 : index
      %218 = arith.index_cast %217 : i32 to index
      %c0_151 = arith.constant 0 : index
      %219 = vector.load %arg1[%c0_150, %218, %c0_151] : memref<1x420x32xf32, #tpu.memory_space<vmem>>, vector<1x40x32xf32>
      %220 = vector.shape_cast %219 : vector<1x40x32xf32> to vector<40x32xf32>
      %221 = arith.truncf %220 : vector<40x32xf32> to vector<40x32xbf16>
      %c22 = arith.constant 22 : index
      %c0_152 = arith.constant 0 : index
      %c0_153 = arith.constant 0 : index
      %222 = vector.load %arg2[%c22, %c0_152, %c0_153] : memref<25x32x128xbf16, #tpu.memory_space<vmem>>, vector<1x32x128xbf16>
      %223 = vector.shape_cast %222 : vector<1x32x128xbf16> to vector<32x128xbf16>
      %cst_154 = arith.constant dense<0.000000e+00> : vector<40x128xf32>
      %224 = tpu.matmul %221, %223, %cst_154 {dimension_numbers = #tpu.dot_dimension_numbers<[1], [0], [0], [1], [0, 0, 1, 1], [], []>} : vector<40x32xbf16>, vector<32x128xbf16>, vector<40x128xf32> -> vector<40x128xf32>
      %225 = arith.addf %216, %224 : vector<40x128xf32>
      %c3_i32_155 = arith.constant 3 : i32
      %226 = arith.addi %198, %c3_i32_155 : i32
      %c0_156 = arith.constant 0 : index
      %227 = arith.index_cast %226 : i32 to index
      %c0_157 = arith.constant 0 : index
      %228 = vector.load %arg1[%c0_156, %227, %c0_157] : memref<1x420x32xf32, #tpu.memory_space<vmem>>, vector<1x40x32xf32>
      %229 = vector.shape_cast %228 : vector<1x40x32xf32> to vector<40x32xf32>
      %230 = arith.truncf %229 : vector<40x32xf32> to vector<40x32xbf16>
      %c23 = arith.constant 23 : index
      %c0_158 = arith.constant 0 : index
      %c0_159 = arith.constant 0 : index
      %231 = vector.load %arg2[%c23, %c0_158, %c0_159] : memref<25x32x128xbf16, #tpu.memory_space<vmem>>, vector<1x32x128xbf16>
      %232 = vector.shape_cast %231 : vector<1x32x128xbf16> to vector<32x128xbf16>
      %cst_160 = arith.constant dense<0.000000e+00> : vector<40x128xf32>
      %233 = tpu.matmul %230, %232, %cst_160 {dimension_numbers = #tpu.dot_dimension_numbers<[1], [0], [0], [1], [0, 0, 1, 1], [], []>} : vector<40x32xbf16>, vector<32x128xbf16>, vector<40x128xf32> -> vector<40x128xf32>
      %234 = arith.addf %225, %233 : vector<40x128xf32>
      %c4_i32_161 = arith.constant 4 : i32
      %235 = arith.addi %198, %c4_i32_161 : i32
      %c0_162 = arith.constant 0 : index
      %236 = arith.index_cast %235 : i32 to index
      %c0_163 = arith.constant 0 : index
      %237 = vector.load %arg1[%c0_162, %236, %c0_163] : memref<1x420x32xf32, #tpu.memory_space<vmem>>, vector<1x40x32xf32>
      %238 = vector.shape_cast %237 : vector<1x40x32xf32> to vector<40x32xf32>
      %239 = arith.truncf %238 : vector<40x32xf32> to vector<40x32xbf16>
      %c24 = arith.constant 24 : index
      %c0_164 = arith.constant 0 : index
      %c0_165 = arith.constant 0 : index
      %240 = vector.load %arg2[%c24, %c0_164, %c0_165] : memref<25x32x128xbf16, #tpu.memory_space<vmem>>, vector<1x32x128xbf16>
      %241 = vector.shape_cast %240 : vector<1x32x128xbf16> to vector<32x128xbf16>
      %cst_166 = arith.constant dense<0.000000e+00> : vector<40x128xf32>
      %242 = tpu.matmul %239, %241, %cst_166 {dimension_numbers = #tpu.dot_dimension_numbers<[1], [0], [0], [1], [0, 0, 1, 1], [], []>} : vector<40x32xbf16>, vector<32x128xbf16>, vector<40x128xf32> -> vector<40x128xf32>
      %243 = arith.addf %234, %242 : vector<40x128xf32>
      %244 = vector.extract_strided_slice %243 {offsets = [0, 0], sizes = [16, 128], strides = [1, 1]} : vector<40x128xf32> to vector<16x128xf32>
      %245 = vector.extract_strided_slice %243 {offsets = [20, 0], sizes = [16, 128], strides = [1, 1]} : vector<40x128xf32> to vector<16x128xf32>
      %246 = arith.maximumf %244, %245 : vector<16x128xf32>
      %c0_167 = arith.constant 0 : index
      %c0_168 = arith.constant 0 : index
      %247 = vector.load %arg5[%c0_167, %c0_168] : memref<16x128xf32, #tpu.memory_space<vmem>>, vector<16x128xf32>
      tpu.vector_store %arg5[%c0_167, %c0_168], %246 {strides = array<i32>} : memref<16x128xf32, #tpu.memory_space<vmem>>, vector<16x128xf32>,
      %c0_169 = arith.constant 0 : index
      %c0_170 = arith.constant 0 : index
      %248 = tpu.strided_load %arg5[%c0_169, %c0_170] {strides = array<i32: 2, 1>} : memref<16x128xf32, #tpu.memory_space<vmem>>, vector<8x128xf32>
      %c1_171 = arith.constant 1 : index
      %c0_172 = arith.constant 0 : index
      %249 = tpu.strided_load %arg5[%c1_171, %c0_172] {strides = array<i32: 2, 1>} : memref<16x128xf32, #tpu.memory_space<vmem>>, vector<8x128xf32>
      %250 = arith.maximumf %248, %249 : vector<8x128xf32>
      %251 = vector.broadcast %0 : vector<1x128xf32> to vector<8x128xf32>
      %252 = arith.addf %250, %251 : vector<8x128xf32>
      %c8_i32_173 = arith.constant 8 : i32
      %253 = arith.muli %arg7, %c8_i32_173 : i32
      %254 = arith.index_cast %253 : i32 to index
      %c0_174 = arith.constant 0 : index
      %255 = vector.load %arg6[%254, %c0_174] : memref<64x128xf32, #tpu.memory_space<vmem>>, vector<8x128xf32>
      tpu.vector_store %arg6[%254, %c0_174], %252 {strides = array<i32>} : memref<64x128xf32, #tpu.memory_space<vmem>>, vector<8x128xf32>,
    }
    %c8_i32_1 = arith.constant 8 : i32
    %c0_2 = arith.constant 0 : index
    %c0_3 = arith.constant 0 : index
    %2 = vector.load %arg6[%c0_2, %c0_3] : memref<64x128xf32, #tpu.memory_space<vmem>>, vector<64x128xf32>
    %3 = arith.truncf %2 : vector<64x128xf32> to vector<64x128xbf16>
    %c0_4 = arith.constant 0 : index
    %c0_5 = arith.constant 0 : index
    %4 = vector.load %arg4[%c0_4, %c0_5] : memref<64x128xbf16, #tpu.memory_space<vmem>>, vector<64x128xbf16>
    tpu.vector_store %arg4[%c0_4, %c0_5], %3 {strides = array<i32>} : memref<64x128xbf16, #tpu.memory_space<vmem>>, vector<64x128xbf16>,
    return
  }
  func.func @transform_0(%arg0: i32) -> (i32, i32, i32) {
    %c0_i32 = arith.constant 0 : i32
    %c0_i32_0 = arith.constant 0 : i32
    %c0_i32_1 = arith.constant 0 : i32
    return %arg0, %c0_i32, %c0_i32_0 : i32, i32, i32
  }
  func.func @transform_1(%arg0: i32) -> (i32, i32, i32) {
    %c0_i32 = arith.constant 0 : i32
    %c0_i32_0 = arith.constant 0 : i32
    %c0_i32_1 = arith.constant 0 : i32
    %c0_i32_2 = arith.constant 0 : i32
    return %c0_i32, %c0_i32_0, %c0_i32_1 : i32, i32, i32
  }
  func.func @transform_2(%arg0: i32) -> (i32, i32) {
    %c0_i32 = arith.constant 0 : i32
    %c0_i32_0 = arith.constant 0 : i32
    %c0_i32_1 = arith.constant 0 : i32
    return %c0_i32, %c0_i32_0 : i32, i32
  }
  func.func @transform_3(%arg0: i32) -> (i32, i32) {
    %c0_i32 = arith.constant 0 : i32
    %c0_i32_0 = arith.constant 0 : i32
    return %arg0, %c0_i32 : i32, i32
  }
}

module attributes {stable_mosaic.version = 11 : i64} {
  func.func @conv_pool_kernel(%arg0: i32, %arg1: memref<1x156x32xf32, #tpu.memory_space<vmem>>, %arg2: memref<25x32x128xbf16, #tpu.memory_space<vmem>>, %arg3: memref<1x128xf32, #tpu.memory_space<vmem>>, %arg4: memref<16x128xbf16, #tpu.memory_space<vmem>>, %arg5: memref<8x128xf32, #tpu.memory_space<vmem>>, %arg6: memref<16x128xf32, #tpu.memory_space<vmem>>) attributes {dimension_semantics = [#tpu.dimension_semantics<parallel>], iteration_bounds = array<i64: 2>, scalar_prefetch = 0 : i64, scratch_operands = 2 : i64, tpu.core_type = #tpu.core_type<tc>, window_params = [{transform_indices = @transform_0, window_bounds = array<i64: 1, 156, 32>}, {pipeline_mode = #tpu.pipeline_mode<synchronous>, transform_indices = @transform_1, window_bounds = array<i64: 25, 32, 128>}, {pipeline_mode = #tpu.pipeline_mode<synchronous>, transform_indices = @transform_2, window_bounds = array<i64: 1, 128>}, {transform_indices = @transform_3, window_bounds = array<i64: 16, 128>}]} {
    %c0 = arith.constant 0 : index
    %c0_0 = arith.constant 0 : index
    %0 = vector.load %arg3[%c0, %c0_0] : memref<1x128xf32, #tpu.memory_space<vmem>>, vector<1x128xf32>
    %c0_i32 = arith.constant 0 : i32
    %c4_i32 = arith.constant 4 : i32
    %1 = arith.addi %c0_i32, %c4_i32 : i32
    %c1_i32 = arith.constant 1 : i32
    scf.for %arg7 = %c0_i32 to %1 step %c1_i32  : i32 {
      %c2_i32 = arith.constant 2 : i32
      %5 = arith.muli %c2_i32, %arg7 : i32
      %c0_i32_6 = arith.constant 0 : i32
      %6 = arith.addi %5, %c0_i32_6 : i32
      %c12_i32 = arith.constant 12 : i32
      %7 = arith.muli %6, %c12_i32 : i32
      %c0_i32_7 = arith.constant 0 : i32
      %8 = arith.addi %7, %c0_i32_7 : i32
      %c0_8 = arith.constant 0 : index
      %9 = arith.index_cast %8 : i32 to index
      %c0_9 = arith.constant 0 : index
      %10 = vector.load %arg1[%c0_8, %9, %c0_9] : memref<1x156x32xf32, #tpu.memory_space<vmem>>, vector<1x24x32xf32>
      %11 = vector.shape_cast %10 : vector<1x24x32xf32> to vector<24x32xf32>
      %12 = arith.truncf %11 : vector<24x32xf32> to vector<24x32xbf16>
      %c0_10 = arith.constant 0 : index
      %c0_11 = arith.constant 0 : index
      %c0_12 = arith.constant 0 : index
      %13 = vector.load %arg2[%c0_10, %c0_11, %c0_12] : memref<25x32x128xbf16, #tpu.memory_space<vmem>>, vector<1x32x128xbf16>
      %14 = vector.shape_cast %13 : vector<1x32x128xbf16> to vector<32x128xbf16>
      %cst = arith.constant dense<0.000000e+00> : vector<24x128xf32>
      %15 = tpu.matmul %12, %14, %cst {dimension_numbers = #tpu.dot_dimension_numbers<[1], [0], [0], [1], [0, 0, 1, 1], [], []>} : vector<24x32xbf16>, vector<32x128xbf16>, vector<24x128xf32> -> vector<24x128xf32>
      %c1_i32_13 = arith.constant 1 : i32
      %16 = arith.addi %7, %c1_i32_13 : i32
      %c0_14 = arith.constant 0 : index
      %17 = arith.index_cast %16 : i32 to index
      %c0_15 = arith.constant 0 : index
      %18 = vector.load %arg1[%c0_14, %17, %c0_15] : memref<1x156x32xf32, #tpu.memory_space<vmem>>, vector<1x24x32xf32>
      %19 = vector.shape_cast %18 : vector<1x24x32xf32> to vector<24x32xf32>
      %20 = arith.truncf %19 : vector<24x32xf32> to vector<24x32xbf16>
      %c1 = arith.constant 1 : index
      %c0_16 = arith.constant 0 : index
      %c0_17 = arith.constant 0 : index
      %21 = vector.load %arg2[%c1, %c0_16, %c0_17] : memref<25x32x128xbf16, #tpu.memory_space<vmem>>, vector<1x32x128xbf16>
      %22 = vector.shape_cast %21 : vector<1x32x128xbf16> to vector<32x128xbf16>
      %cst_18 = arith.constant dense<0.000000e+00> : vector<24x128xf32>
      %23 = tpu.matmul %20, %22, %cst_18 {dimension_numbers = #tpu.dot_dimension_numbers<[1], [0], [0], [1], [0, 0, 1, 1], [], []>} : vector<24x32xbf16>, vector<32x128xbf16>, vector<24x128xf32> -> vector<24x128xf32>
      %24 = arith.addf %15, %23 : vector<24x128xf32>
      %c2_i32_19 = arith.constant 2 : i32
      %25 = arith.addi %7, %c2_i32_19 : i32
      %c0_20 = arith.constant 0 : index
      %26 = arith.index_cast %25 : i32 to index
      %c0_21 = arith.constant 0 : index
      %27 = vector.load %arg1[%c0_20, %26, %c0_21] : memref<1x156x32xf32, #tpu.memory_space<vmem>>, vector<1x24x32xf32>
      %28 = vector.shape_cast %27 : vector<1x24x32xf32> to vector<24x32xf32>
      %29 = arith.truncf %28 : vector<24x32xf32> to vector<24x32xbf16>
      %c2 = arith.constant 2 : index
      %c0_22 = arith.constant 0 : index
      %c0_23 = arith.constant 0 : index
      %30 = vector.load %arg2[%c2, %c0_22, %c0_23] : memref<25x32x128xbf16, #tpu.memory_space<vmem>>, vector<1x32x128xbf16>
      %31 = vector.shape_cast %30 : vector<1x32x128xbf16> to vector<32x128xbf16>
      %cst_24 = arith.constant dense<0.000000e+00> : vector<24x128xf32>
      %32 = tpu.matmul %29, %31, %cst_24 {dimension_numbers = #tpu.dot_dimension_numbers<[1], [0], [0], [1], [0, 0, 1, 1], [], []>} : vector<24x32xbf16>, vector<32x128xbf16>, vector<24x128xf32> -> vector<24x128xf32>
      %33 = arith.addf %24, %32 : vector<24x128xf32>
      %c3_i32 = arith.constant 3 : i32
      %34 = arith.addi %7, %c3_i32 : i32
      %c0_25 = arith.constant 0 : index
      %35 = arith.index_cast %34 : i32 to index
      %c0_26 = arith.constant 0 : index
      %36 = vector.load %arg1[%c0_25, %35, %c0_26] : memref<1x156x32xf32, #tpu.memory_space<vmem>>, vector<1x24x32xf32>
      %37 = vector.shape_cast %36 : vector<1x24x32xf32> to vector<24x32xf32>
      %38 = arith.truncf %37 : vector<24x32xf32> to vector<24x32xbf16>
      %c3 = arith.constant 3 : index
      %c0_27 = arith.constant 0 : index
      %c0_28 = arith.constant 0 : index
      %39 = vector.load %arg2[%c3, %c0_27, %c0_28] : memref<25x32x128xbf16, #tpu.memory_space<vmem>>, vector<1x32x128xbf16>
      %40 = vector.shape_cast %39 : vector<1x32x128xbf16> to vector<32x128xbf16>
      %cst_29 = arith.constant dense<0.000000e+00> : vector<24x128xf32>
      %41 = tpu.matmul %38, %40, %cst_29 {dimension_numbers = #tpu.dot_dimension_numbers<[1], [0], [0], [1], [0, 0, 1, 1], [], []>} : vector<24x32xbf16>, vector<32x128xbf16>, vector<24x128xf32> -> vector<24x128xf32>
      %42 = arith.addf %33, %41 : vector<24x128xf32>
      %c4_i32_30 = arith.constant 4 : i32
      %43 = arith.addi %7, %c4_i32_30 : i32
      %c0_31 = arith.constant 0 : index
      %44 = arith.index_cast %43 : i32 to index
      %c0_32 = arith.constant 0 : index
      %45 = vector.load %arg1[%c0_31, %44, %c0_32] : memref<1x156x32xf32, #tpu.memory_space<vmem>>, vector<1x24x32xf32>
      %46 = vector.shape_cast %45 : vector<1x24x32xf32> to vector<24x32xf32>
      %47 = arith.truncf %46 : vector<24x32xf32> to vector<24x32xbf16>
      %c4 = arith.constant 4 : index
      %c0_33 = arith.constant 0 : index
      %c0_34 = arith.constant 0 : index
      %48 = vector.load %arg2[%c4, %c0_33, %c0_34] : memref<25x32x128xbf16, #tpu.memory_space<vmem>>, vector<1x32x128xbf16>
      %49 = vector.shape_cast %48 : vector<1x32x128xbf16> to vector<32x128xbf16>
      %cst_35 = arith.constant dense<0.000000e+00> : vector<24x128xf32>
      %50 = tpu.matmul %47, %49, %cst_35 {dimension_numbers = #tpu.dot_dimension_numbers<[1], [0], [0], [1], [0, 0, 1, 1], [], []>} : vector<24x32xbf16>, vector<32x128xbf16>, vector<24x128xf32> -> vector<24x128xf32>
      %51 = arith.addf %42, %50 : vector<24x128xf32>
      %c2_i32_36 = arith.constant 2 : i32
      %52 = arith.muli %c2_i32_36, %arg7 : i32
      %c1_i32_37 = arith.constant 1 : i32
      %53 = arith.addi %52, %c1_i32_37 : i32
      %c12_i32_38 = arith.constant 12 : i32
      %54 = arith.muli %53, %c12_i32_38 : i32
      %c0_i32_39 = arith.constant 0 : i32
      %55 = arith.addi %54, %c0_i32_39 : i32
      %c0_40 = arith.constant 0 : index
      %56 = arith.index_cast %55 : i32 to index
      %c0_41 = arith.constant 0 : index
      %57 = vector.load %arg1[%c0_40, %56, %c0_41] : memref<1x156x32xf32, #tpu.memory_space<vmem>>, vector<1x24x32xf32>
      %58 = vector.shape_cast %57 : vector<1x24x32xf32> to vector<24x32xf32>
      %59 = arith.truncf %58 : vector<24x32xf32> to vector<24x32xbf16>
      %c5 = arith.constant 5 : index
      %c0_42 = arith.constant 0 : index
      %c0_43 = arith.constant 0 : index
      %60 = vector.load %arg2[%c5, %c0_42, %c0_43] : memref<25x32x128xbf16, #tpu.memory_space<vmem>>, vector<1x32x128xbf16>
      %61 = vector.shape_cast %60 : vector<1x32x128xbf16> to vector<32x128xbf16>
      %cst_44 = arith.constant dense<0.000000e+00> : vector<24x128xf32>
      %62 = tpu.matmul %59, %61, %cst_44 {dimension_numbers = #tpu.dot_dimension_numbers<[1], [0], [0], [1], [0, 0, 1, 1], [], []>} : vector<24x32xbf16>, vector<32x128xbf16>, vector<24x128xf32> -> vector<24x128xf32>
      %63 = arith.addf %51, %62 : vector<24x128xf32>
      %c1_i32_45 = arith.constant 1 : i32
      %64 = arith.addi %54, %c1_i32_45 : i32
      %c0_46 = arith.constant 0 : index
      %65 = arith.index_cast %64 : i32 to index
      %c0_47 = arith.constant 0 : index
      %66 = vector.load %arg1[%c0_46, %65, %c0_47] : memref<1x156x32xf32, #tpu.memory_space<vmem>>, vector<1x24x32xf32>
      %67 = vector.shape_cast %66 : vector<1x24x32xf32> to vector<24x32xf32>
      %68 = arith.truncf %67 : vector<24x32xf32> to vector<24x32xbf16>
      %c6 = arith.constant 6 : index
      %c0_48 = arith.constant 0 : index
      %c0_49 = arith.constant 0 : index
      %69 = vector.load %arg2[%c6, %c0_48, %c0_49] : memref<25x32x128xbf16, #tpu.memory_space<vmem>>, vector<1x32x128xbf16>
      %70 = vector.shape_cast %69 : vector<1x32x128xbf16> to vector<32x128xbf16>
      %cst_50 = arith.constant dense<0.000000e+00> : vector<24x128xf32>
      %71 = tpu.matmul %68, %70, %cst_50 {dimension_numbers = #tpu.dot_dimension_numbers<[1], [0], [0], [1], [0, 0, 1, 1], [], []>} : vector<24x32xbf16>, vector<32x128xbf16>, vector<24x128xf32> -> vector<24x128xf32>
      %72 = arith.addf %63, %71 : vector<24x128xf32>
      %c2_i32_51 = arith.constant 2 : i32
      %73 = arith.addi %54, %c2_i32_51 : i32
      %c0_52 = arith.constant 0 : index
      %74 = arith.index_cast %73 : i32 to index
      %c0_53 = arith.constant 0 : index
      %75 = vector.load %arg1[%c0_52, %74, %c0_53] : memref<1x156x32xf32, #tpu.memory_space<vmem>>, vector<1x24x32xf32>
      %76 = vector.shape_cast %75 : vector<1x24x32xf32> to vector<24x32xf32>
      %77 = arith.truncf %76 : vector<24x32xf32> to vector<24x32xbf16>
      %c7 = arith.constant 7 : index
      %c0_54 = arith.constant 0 : index
      %c0_55 = arith.constant 0 : index
      %78 = vector.load %arg2[%c7, %c0_54, %c0_55] : memref<25x32x128xbf16, #tpu.memory_space<vmem>>, vector<1x32x128xbf16>
      %79 = vector.shape_cast %78 : vector<1x32x128xbf16> to vector<32x128xbf16>
      %cst_56 = arith.constant dense<0.000000e+00> : vector<24x128xf32>
      %80 = tpu.matmul %77, %79, %cst_56 {dimension_numbers = #tpu.dot_dimension_numbers<[1], [0], [0], [1], [0, 0, 1, 1], [], []>} : vector<24x32xbf16>, vector<32x128xbf16>, vector<24x128xf32> -> vector<24x128xf32>
      %81 = arith.addf %72, %80 : vector<24x128xf32>
      %c3_i32_57 = arith.constant 3 : i32
      %82 = arith.addi %54, %c3_i32_57 : i32
      %c0_58 = arith.constant 0 : index
      %83 = arith.index_cast %82 : i32 to index
      %c0_59 = arith.constant 0 : index
      %84 = vector.load %arg1[%c0_58, %83, %c0_59] : memref<1x156x32xf32, #tpu.memory_space<vmem>>, vector<1x24x32xf32>
      %85 = vector.shape_cast %84 : vector<1x24x32xf32> to vector<24x32xf32>
      %86 = arith.truncf %85 : vector<24x32xf32> to vector<24x32xbf16>
      %c8 = arith.constant 8 : index
      %c0_60 = arith.constant 0 : index
      %c0_61 = arith.constant 0 : index
      %87 = vector.load %arg2[%c8, %c0_60, %c0_61] : memref<25x32x128xbf16, #tpu.memory_space<vmem>>, vector<1x32x128xbf16>
      %88 = vector.shape_cast %87 : vector<1x32x128xbf16> to vector<32x128xbf16>
      %cst_62 = arith.constant dense<0.000000e+00> : vector<24x128xf32>
      %89 = tpu.matmul %86, %88, %cst_62 {dimension_numbers = #tpu.dot_dimension_numbers<[1], [0], [0], [1], [0, 0, 1, 1], [], []>} : vector<24x32xbf16>, vector<32x128xbf16>, vector<24x128xf32> -> vector<24x128xf32>
      %90 = arith.addf %81, %89 : vector<24x128xf32>
      %c4_i32_63 = arith.constant 4 : i32
      %91 = arith.addi %54, %c4_i32_63 : i32
      %c0_64 = arith.constant 0 : index
      %92 = arith.index_cast %91 : i32 to index
      %c0_65 = arith.constant 0 : index
      %93 = vector.load %arg1[%c0_64, %92, %c0_65] : memref<1x156x32xf32, #tpu.memory_space<vmem>>, vector<1x24x32xf32>
      %94 = vector.shape_cast %93 : vector<1x24x32xf32> to vector<24x32xf32>
      %95 = arith.truncf %94 : vector<24x32xf32> to vector<24x32xbf16>
      %c9 = arith.constant 9 : index
      %c0_66 = arith.constant 0 : index
      %c0_67 = arith.constant 0 : index
      %96 = vector.load %arg2[%c9, %c0_66, %c0_67] : memref<25x32x128xbf16, #tpu.memory_space<vmem>>, vector<1x32x128xbf16>
      %97 = vector.shape_cast %96 : vector<1x32x128xbf16> to vector<32x128xbf16>
      %cst_68 = arith.constant dense<0.000000e+00> : vector<24x128xf32>
      %98 = tpu.matmul %95, %97, %cst_68 {dimension_numbers = #tpu.dot_dimension_numbers<[1], [0], [0], [1], [0, 0, 1, 1], [], []>} : vector<24x32xbf16>, vector<32x128xbf16>, vector<24x128xf32> -> vector<24x128xf32>
      %99 = arith.addf %90, %98 : vector<24x128xf32>
      %c2_i32_69 = arith.constant 2 : i32
      %100 = arith.muli %c2_i32_69, %arg7 : i32
      %c2_i32_70 = arith.constant 2 : i32
      %101 = arith.addi %100, %c2_i32_70 : i32
      %c12_i32_71 = arith.constant 12 : i32
      %102 = arith.muli %101, %c12_i32_71 : i32
      %c0_i32_72 = arith.constant 0 : i32
      %103 = arith.addi %102, %c0_i32_72 : i32
      %c0_73 = arith.constant 0 : index
      %104 = arith.index_cast %103 : i32 to index
      %c0_74 = arith.constant 0 : index
      %105 = vector.load %arg1[%c0_73, %104, %c0_74] : memref<1x156x32xf32, #tpu.memory_space<vmem>>, vector<1x24x32xf32>
      %106 = vector.shape_cast %105 : vector<1x24x32xf32> to vector<24x32xf32>
      %107 = arith.truncf %106 : vector<24x32xf32> to vector<24x32xbf16>
      %c10 = arith.constant 10 : index
      %c0_75 = arith.constant 0 : index
      %c0_76 = arith.constant 0 : index
      %108 = vector.load %arg2[%c10, %c0_75, %c0_76] : memref<25x32x128xbf16, #tpu.memory_space<vmem>>, vector<1x32x128xbf16>
      %109 = vector.shape_cast %108 : vector<1x32x128xbf16> to vector<32x128xbf16>
      %cst_77 = arith.constant dense<0.000000e+00> : vector<24x128xf32>
      %110 = tpu.matmul %107, %109, %cst_77 {dimension_numbers = #tpu.dot_dimension_numbers<[1], [0], [0], [1], [0, 0, 1, 1], [], []>} : vector<24x32xbf16>, vector<32x128xbf16>, vector<24x128xf32> -> vector<24x128xf32>
      %111 = arith.addf %99, %110 : vector<24x128xf32>
      %c1_i32_78 = arith.constant 1 : i32
      %112 = arith.addi %102, %c1_i32_78 : i32
      %c0_79 = arith.constant 0 : index
      %113 = arith.index_cast %112 : i32 to index
      %c0_80 = arith.constant 0 : index
      %114 = vector.load %arg1[%c0_79, %113, %c0_80] : memref<1x156x32xf32, #tpu.memory_space<vmem>>, vector<1x24x32xf32>
      %115 = vector.shape_cast %114 : vector<1x24x32xf32> to vector<24x32xf32>
      %116 = arith.truncf %115 : vector<24x32xf32> to vector<24x32xbf16>
      %c11 = arith.constant 11 : index
      %c0_81 = arith.constant 0 : index
      %c0_82 = arith.constant 0 : index
      %117 = vector.load %arg2[%c11, %c0_81, %c0_82] : memref<25x32x128xbf16, #tpu.memory_space<vmem>>, vector<1x32x128xbf16>
      %118 = vector.shape_cast %117 : vector<1x32x128xbf16> to vector<32x128xbf16>
      %cst_83 = arith.constant dense<0.000000e+00> : vector<24x128xf32>
      %119 = tpu.matmul %116, %118, %cst_83 {dimension_numbers = #tpu.dot_dimension_numbers<[1], [0], [0], [1], [0, 0, 1, 1], [], []>} : vector<24x32xbf16>, vector<32x128xbf16>, vector<24x128xf32> -> vector<24x128xf32>
      %120 = arith.addf %111, %119 : vector<24x128xf32>
      %c2_i32_84 = arith.constant 2 : i32
      %121 = arith.addi %102, %c2_i32_84 : i32
      %c0_85 = arith.constant 0 : index
      %122 = arith.index_cast %121 : i32 to index
      %c0_86 = arith.constant 0 : index
      %123 = vector.load %arg1[%c0_85, %122, %c0_86] : memref<1x156x32xf32, #tpu.memory_space<vmem>>, vector<1x24x32xf32>
      %124 = vector.shape_cast %123 : vector<1x24x32xf32> to vector<24x32xf32>
      %125 = arith.truncf %124 : vector<24x32xf32> to vector<24x32xbf16>
      %c12 = arith.constant 12 : index
      %c0_87 = arith.constant 0 : index
      %c0_88 = arith.constant 0 : index
      %126 = vector.load %arg2[%c12, %c0_87, %c0_88] : memref<25x32x128xbf16, #tpu.memory_space<vmem>>, vector<1x32x128xbf16>
      %127 = vector.shape_cast %126 : vector<1x32x128xbf16> to vector<32x128xbf16>
      %cst_89 = arith.constant dense<0.000000e+00> : vector<24x128xf32>
      %128 = tpu.matmul %125, %127, %cst_89 {dimension_numbers = #tpu.dot_dimension_numbers<[1], [0], [0], [1], [0, 0, 1, 1], [], []>} : vector<24x32xbf16>, vector<32x128xbf16>, vector<24x128xf32> -> vector<24x128xf32>
      %129 = arith.addf %120, %128 : vector<24x128xf32>
      %c3_i32_90 = arith.constant 3 : i32
      %130 = arith.addi %102, %c3_i32_90 : i32
      %c0_91 = arith.constant 0 : index
      %131 = arith.index_cast %130 : i32 to index
      %c0_92 = arith.constant 0 : index
      %132 = vector.load %arg1[%c0_91, %131, %c0_92] : memref<1x156x32xf32, #tpu.memory_space<vmem>>, vector<1x24x32xf32>
      %133 = vector.shape_cast %132 : vector<1x24x32xf32> to vector<24x32xf32>
      %134 = arith.truncf %133 : vector<24x32xf32> to vector<24x32xbf16>
      %c13 = arith.constant 13 : index
      %c0_93 = arith.constant 0 : index
      %c0_94 = arith.constant 0 : index
      %135 = vector.load %arg2[%c13, %c0_93, %c0_94] : memref<25x32x128xbf16, #tpu.memory_space<vmem>>, vector<1x32x128xbf16>
      %136 = vector.shape_cast %135 : vector<1x32x128xbf16> to vector<32x128xbf16>
      %cst_95 = arith.constant dense<0.000000e+00> : vector<24x128xf32>
      %137 = tpu.matmul %134, %136, %cst_95 {dimension_numbers = #tpu.dot_dimension_numbers<[1], [0], [0], [1], [0, 0, 1, 1], [], []>} : vector<24x32xbf16>, vector<32x128xbf16>, vector<24x128xf32> -> vector<24x128xf32>
      %138 = arith.addf %129, %137 : vector<24x128xf32>
      %c4_i32_96 = arith.constant 4 : i32
      %139 = arith.addi %102, %c4_i32_96 : i32
      %c0_97 = arith.constant 0 : index
      %140 = arith.index_cast %139 : i32 to index
      %c0_98 = arith.constant 0 : index
      %141 = vector.load %arg1[%c0_97, %140, %c0_98] : memref<1x156x32xf32, #tpu.memory_space<vmem>>, vector<1x24x32xf32>
      %142 = vector.shape_cast %141 : vector<1x24x32xf32> to vector<24x32xf32>
      %143 = arith.truncf %142 : vector<24x32xf32> to vector<24x32xbf16>
      %c14 = arith.constant 14 : index
      %c0_99 = arith.constant 0 : index
      %c0_100 = arith.constant 0 : index
      %144 = vector.load %arg2[%c14, %c0_99, %c0_100] : memref<25x32x128xbf16, #tpu.memory_space<vmem>>, vector<1x32x128xbf16>
      %145 = vector.shape_cast %144 : vector<1x32x128xbf16> to vector<32x128xbf16>
      %cst_101 = arith.constant dense<0.000000e+00> : vector<24x128xf32>
      %146 = tpu.matmul %143, %145, %cst_101 {dimension_numbers = #tpu.dot_dimension_numbers<[1], [0], [0], [1], [0, 0, 1, 1], [], []>} : vector<24x32xbf16>, vector<32x128xbf16>, vector<24x128xf32> -> vector<24x128xf32>
      %147 = arith.addf %138, %146 : vector<24x128xf32>
      %c2_i32_102 = arith.constant 2 : i32
      %148 = arith.muli %c2_i32_102, %arg7 : i32
      %c3_i32_103 = arith.constant 3 : i32
      %149 = arith.addi %148, %c3_i32_103 : i32
      %c12_i32_104 = arith.constant 12 : i32
      %150 = arith.muli %149, %c12_i32_104 : i32
      %c0_i32_105 = arith.constant 0 : i32
      %151 = arith.addi %150, %c0_i32_105 : i32
      %c0_106 = arith.constant 0 : index
      %152 = arith.index_cast %151 : i32 to index
      %c0_107 = arith.constant 0 : index
      %153 = vector.load %arg1[%c0_106, %152, %c0_107] : memref<1x156x32xf32, #tpu.memory_space<vmem>>, vector<1x24x32xf32>
      %154 = vector.shape_cast %153 : vector<1x24x32xf32> to vector<24x32xf32>
      %155 = arith.truncf %154 : vector<24x32xf32> to vector<24x32xbf16>
      %c15 = arith.constant 15 : index
      %c0_108 = arith.constant 0 : index
      %c0_109 = arith.constant 0 : index
      %156 = vector.load %arg2[%c15, %c0_108, %c0_109] : memref<25x32x128xbf16, #tpu.memory_space<vmem>>, vector<1x32x128xbf16>
      %157 = vector.shape_cast %156 : vector<1x32x128xbf16> to vector<32x128xbf16>
      %cst_110 = arith.constant dense<0.000000e+00> : vector<24x128xf32>
      %158 = tpu.matmul %155, %157, %cst_110 {dimension_numbers = #tpu.dot_dimension_numbers<[1], [0], [0], [1], [0, 0, 1, 1], [], []>} : vector<24x32xbf16>, vector<32x128xbf16>, vector<24x128xf32> -> vector<24x128xf32>
      %159 = arith.addf %147, %158 : vector<24x128xf32>
      %c1_i32_111 = arith.constant 1 : i32
      %160 = arith.addi %150, %c1_i32_111 : i32
      %c0_112 = arith.constant 0 : index
      %161 = arith.index_cast %160 : i32 to index
      %c0_113 = arith.constant 0 : index
      %162 = vector.load %arg1[%c0_112, %161, %c0_113] : memref<1x156x32xf32, #tpu.memory_space<vmem>>, vector<1x24x32xf32>
      %163 = vector.shape_cast %162 : vector<1x24x32xf32> to vector<24x32xf32>
      %164 = arith.truncf %163 : vector<24x32xf32> to vector<24x32xbf16>
      %c16 = arith.constant 16 : index
      %c0_114 = arith.constant 0 : index
      %c0_115 = arith.constant 0 : index
      %165 = vector.load %arg2[%c16, %c0_114, %c0_115] : memref<25x32x128xbf16, #tpu.memory_space<vmem>>, vector<1x32x128xbf16>
      %166 = vector.shape_cast %165 : vector<1x32x128xbf16> to vector<32x128xbf16>
      %cst_116 = arith.constant dense<0.000000e+00> : vector<24x128xf32>
      %167 = tpu.matmul %164, %166, %cst_116 {dimension_numbers = #tpu.dot_dimension_numbers<[1], [0], [0], [1], [0, 0, 1, 1], [], []>} : vector<24x32xbf16>, vector<32x128xbf16>, vector<24x128xf32> -> vector<24x128xf32>
      %168 = arith.addf %159, %167 : vector<24x128xf32>
      %c2_i32_117 = arith.constant 2 : i32
      %169 = arith.addi %150, %c2_i32_117 : i32
      %c0_118 = arith.constant 0 : index
      %170 = arith.index_cast %169 : i32 to index
      %c0_119 = arith.constant 0 : index
      %171 = vector.load %arg1[%c0_118, %170, %c0_119] : memref<1x156x32xf32, #tpu.memory_space<vmem>>, vector<1x24x32xf32>
      %172 = vector.shape_cast %171 : vector<1x24x32xf32> to vector<24x32xf32>
      %173 = arith.truncf %172 : vector<24x32xf32> to vector<24x32xbf16>
      %c17 = arith.constant 17 : index
      %c0_120 = arith.constant 0 : index
      %c0_121 = arith.constant 0 : index
      %174 = vector.load %arg2[%c17, %c0_120, %c0_121] : memref<25x32x128xbf16, #tpu.memory_space<vmem>>, vector<1x32x128xbf16>
      %175 = vector.shape_cast %174 : vector<1x32x128xbf16> to vector<32x128xbf16>
      %cst_122 = arith.constant dense<0.000000e+00> : vector<24x128xf32>
      %176 = tpu.matmul %173, %175, %cst_122 {dimension_numbers = #tpu.dot_dimension_numbers<[1], [0], [0], [1], [0, 0, 1, 1], [], []>} : vector<24x32xbf16>, vector<32x128xbf16>, vector<24x128xf32> -> vector<24x128xf32>
      %177 = arith.addf %168, %176 : vector<24x128xf32>
      %c3_i32_123 = arith.constant 3 : i32
      %178 = arith.addi %150, %c3_i32_123 : i32
      %c0_124 = arith.constant 0 : index
      %179 = arith.index_cast %178 : i32 to index
      %c0_125 = arith.constant 0 : index
      %180 = vector.load %arg1[%c0_124, %179, %c0_125] : memref<1x156x32xf32, #tpu.memory_space<vmem>>, vector<1x24x32xf32>
      %181 = vector.shape_cast %180 : vector<1x24x32xf32> to vector<24x32xf32>
      %182 = arith.truncf %181 : vector<24x32xf32> to vector<24x32xbf16>
      %c18 = arith.constant 18 : index
      %c0_126 = arith.constant 0 : index
      %c0_127 = arith.constant 0 : index
      %183 = vector.load %arg2[%c18, %c0_126, %c0_127] : memref<25x32x128xbf16, #tpu.memory_space<vmem>>, vector<1x32x128xbf16>
      %184 = vector.shape_cast %183 : vector<1x32x128xbf16> to vector<32x128xbf16>
      %cst_128 = arith.constant dense<0.000000e+00> : vector<24x128xf32>
      %185 = tpu.matmul %182, %184, %cst_128 {dimension_numbers = #tpu.dot_dimension_numbers<[1], [0], [0], [1], [0, 0, 1, 1], [], []>} : vector<24x32xbf16>, vector<32x128xbf16>, vector<24x128xf32> -> vector<24x128xf32>
      %186 = arith.addf %177, %185 : vector<24x128xf32>
      %c4_i32_129 = arith.constant 4 : i32
      %187 = arith.addi %150, %c4_i32_129 : i32
      %c0_130 = arith.constant 0 : index
      %188 = arith.index_cast %187 : i32 to index
      %c0_131 = arith.constant 0 : index
      %189 = vector.load %arg1[%c0_130, %188, %c0_131] : memref<1x156x32xf32, #tpu.memory_space<vmem>>, vector<1x24x32xf32>
      %190 = vector.shape_cast %189 : vector<1x24x32xf32> to vector<24x32xf32>
      %191 = arith.truncf %190 : vector<24x32xf32> to vector<24x32xbf16>
      %c19 = arith.constant 19 : index
      %c0_132 = arith.constant 0 : index
      %c0_133 = arith.constant 0 : index
      %192 = vector.load %arg2[%c19, %c0_132, %c0_133] : memref<25x32x128xbf16, #tpu.memory_space<vmem>>, vector<1x32x128xbf16>
      %193 = vector.shape_cast %192 : vector<1x32x128xbf16> to vector<32x128xbf16>
      %cst_134 = arith.constant dense<0.000000e+00> : vector<24x128xf32>
      %194 = tpu.matmul %191, %193, %cst_134 {dimension_numbers = #tpu.dot_dimension_numbers<[1], [0], [0], [1], [0, 0, 1, 1], [], []>} : vector<24x32xbf16>, vector<32x128xbf16>, vector<24x128xf32> -> vector<24x128xf32>
      %195 = arith.addf %186, %194 : vector<24x128xf32>
      %c2_i32_135 = arith.constant 2 : i32
      %196 = arith.muli %c2_i32_135, %arg7 : i32
      %c4_i32_136 = arith.constant 4 : i32
      %197 = arith.addi %196, %c4_i32_136 : i32
      %c12_i32_137 = arith.constant 12 : i32
      %198 = arith.muli %197, %c12_i32_137 : i32
      %c0_i32_138 = arith.constant 0 : i32
      %199 = arith.addi %198, %c0_i32_138 : i32
      %c0_139 = arith.constant 0 : index
      %200 = arith.index_cast %199 : i32 to index
      %c0_140 = arith.constant 0 : index
      %201 = vector.load %arg1[%c0_139, %200, %c0_140] : memref<1x156x32xf32, #tpu.memory_space<vmem>>, vector<1x24x32xf32>
      %202 = vector.shape_cast %201 : vector<1x24x32xf32> to vector<24x32xf32>
      %203 = arith.truncf %202 : vector<24x32xf32> to vector<24x32xbf16>
      %c20 = arith.constant 20 : index
      %c0_141 = arith.constant 0 : index
      %c0_142 = arith.constant 0 : index
      %204 = vector.load %arg2[%c20, %c0_141, %c0_142] : memref<25x32x128xbf16, #tpu.memory_space<vmem>>, vector<1x32x128xbf16>
      %205 = vector.shape_cast %204 : vector<1x32x128xbf16> to vector<32x128xbf16>
      %cst_143 = arith.constant dense<0.000000e+00> : vector<24x128xf32>
      %206 = tpu.matmul %203, %205, %cst_143 {dimension_numbers = #tpu.dot_dimension_numbers<[1], [0], [0], [1], [0, 0, 1, 1], [], []>} : vector<24x32xbf16>, vector<32x128xbf16>, vector<24x128xf32> -> vector<24x128xf32>
      %207 = arith.addf %195, %206 : vector<24x128xf32>
      %c1_i32_144 = arith.constant 1 : i32
      %208 = arith.addi %198, %c1_i32_144 : i32
      %c0_145 = arith.constant 0 : index
      %209 = arith.index_cast %208 : i32 to index
      %c0_146 = arith.constant 0 : index
      %210 = vector.load %arg1[%c0_145, %209, %c0_146] : memref<1x156x32xf32, #tpu.memory_space<vmem>>, vector<1x24x32xf32>
      %211 = vector.shape_cast %210 : vector<1x24x32xf32> to vector<24x32xf32>
      %212 = arith.truncf %211 : vector<24x32xf32> to vector<24x32xbf16>
      %c21 = arith.constant 21 : index
      %c0_147 = arith.constant 0 : index
      %c0_148 = arith.constant 0 : index
      %213 = vector.load %arg2[%c21, %c0_147, %c0_148] : memref<25x32x128xbf16, #tpu.memory_space<vmem>>, vector<1x32x128xbf16>
      %214 = vector.shape_cast %213 : vector<1x32x128xbf16> to vector<32x128xbf16>
      %cst_149 = arith.constant dense<0.000000e+00> : vector<24x128xf32>
      %215 = tpu.matmul %212, %214, %cst_149 {dimension_numbers = #tpu.dot_dimension_numbers<[1], [0], [0], [1], [0, 0, 1, 1], [], []>} : vector<24x32xbf16>, vector<32x128xbf16>, vector<24x128xf32> -> vector<24x128xf32>
      %216 = arith.addf %207, %215 : vector<24x128xf32>
      %c2_i32_150 = arith.constant 2 : i32
      %217 = arith.addi %198, %c2_i32_150 : i32
      %c0_151 = arith.constant 0 : index
      %218 = arith.index_cast %217 : i32 to index
      %c0_152 = arith.constant 0 : index
      %219 = vector.load %arg1[%c0_151, %218, %c0_152] : memref<1x156x32xf32, #tpu.memory_space<vmem>>, vector<1x24x32xf32>
      %220 = vector.shape_cast %219 : vector<1x24x32xf32> to vector<24x32xf32>
      %221 = arith.truncf %220 : vector<24x32xf32> to vector<24x32xbf16>
      %c22 = arith.constant 22 : index
      %c0_153 = arith.constant 0 : index
      %c0_154 = arith.constant 0 : index
      %222 = vector.load %arg2[%c22, %c0_153, %c0_154] : memref<25x32x128xbf16, #tpu.memory_space<vmem>>, vector<1x32x128xbf16>
      %223 = vector.shape_cast %222 : vector<1x32x128xbf16> to vector<32x128xbf16>
      %cst_155 = arith.constant dense<0.000000e+00> : vector<24x128xf32>
      %224 = tpu.matmul %221, %223, %cst_155 {dimension_numbers = #tpu.dot_dimension_numbers<[1], [0], [0], [1], [0, 0, 1, 1], [], []>} : vector<24x32xbf16>, vector<32x128xbf16>, vector<24x128xf32> -> vector<24x128xf32>
      %225 = arith.addf %216, %224 : vector<24x128xf32>
      %c3_i32_156 = arith.constant 3 : i32
      %226 = arith.addi %198, %c3_i32_156 : i32
      %c0_157 = arith.constant 0 : index
      %227 = arith.index_cast %226 : i32 to index
      %c0_158 = arith.constant 0 : index
      %228 = vector.load %arg1[%c0_157, %227, %c0_158] : memref<1x156x32xf32, #tpu.memory_space<vmem>>, vector<1x24x32xf32>
      %229 = vector.shape_cast %228 : vector<1x24x32xf32> to vector<24x32xf32>
      %230 = arith.truncf %229 : vector<24x32xf32> to vector<24x32xbf16>
      %c23 = arith.constant 23 : index
      %c0_159 = arith.constant 0 : index
      %c0_160 = arith.constant 0 : index
      %231 = vector.load %arg2[%c23, %c0_159, %c0_160] : memref<25x32x128xbf16, #tpu.memory_space<vmem>>, vector<1x32x128xbf16>
      %232 = vector.shape_cast %231 : vector<1x32x128xbf16> to vector<32x128xbf16>
      %cst_161 = arith.constant dense<0.000000e+00> : vector<24x128xf32>
      %233 = tpu.matmul %230, %232, %cst_161 {dimension_numbers = #tpu.dot_dimension_numbers<[1], [0], [0], [1], [0, 0, 1, 1], [], []>} : vector<24x32xbf16>, vector<32x128xbf16>, vector<24x128xf32> -> vector<24x128xf32>
      %234 = arith.addf %225, %233 : vector<24x128xf32>
      %c4_i32_162 = arith.constant 4 : i32
      %235 = arith.addi %198, %c4_i32_162 : i32
      %c0_163 = arith.constant 0 : index
      %236 = arith.index_cast %235 : i32 to index
      %c0_164 = arith.constant 0 : index
      %237 = vector.load %arg1[%c0_163, %236, %c0_164] : memref<1x156x32xf32, #tpu.memory_space<vmem>>, vector<1x24x32xf32>
      %238 = vector.shape_cast %237 : vector<1x24x32xf32> to vector<24x32xf32>
      %239 = arith.truncf %238 : vector<24x32xf32> to vector<24x32xbf16>
      %c24 = arith.constant 24 : index
      %c0_165 = arith.constant 0 : index
      %c0_166 = arith.constant 0 : index
      %240 = vector.load %arg2[%c24, %c0_165, %c0_166] : memref<25x32x128xbf16, #tpu.memory_space<vmem>>, vector<1x32x128xbf16>
      %241 = vector.shape_cast %240 : vector<1x32x128xbf16> to vector<32x128xbf16>
      %cst_167 = arith.constant dense<0.000000e+00> : vector<24x128xf32>
      %242 = tpu.matmul %239, %241, %cst_167 {dimension_numbers = #tpu.dot_dimension_numbers<[1], [0], [0], [1], [0, 0, 1, 1], [], []>} : vector<24x32xbf16>, vector<32x128xbf16>, vector<24x128xf32> -> vector<24x128xf32>
      %243 = arith.addf %234, %242 : vector<24x128xf32>
      %244 = vector.extract_strided_slice %243 {offsets = [0, 0], sizes = [8, 128], strides = [1, 1]} : vector<24x128xf32> to vector<8x128xf32>
      %245 = vector.extract_strided_slice %243 {offsets = [12, 0], sizes = [8, 128], strides = [1, 1]} : vector<24x128xf32> to vector<8x128xf32>
      %246 = arith.maximumf %244, %245 : vector<8x128xf32>
      %c0_168 = arith.constant 0 : index
      %c0_169 = arith.constant 0 : index
      %247 = vector.load %arg5[%c0_168, %c0_169] : memref<8x128xf32, #tpu.memory_space<vmem>>, vector<8x128xf32>
      tpu.vector_store %arg5[%c0_168, %c0_169], %246 {strides = array<i32>} : memref<8x128xf32, #tpu.memory_space<vmem>>, vector<8x128xf32>,
      %c0_170 = arith.constant 0 : index
      %c0_171 = arith.constant 0 : index
      %248 = tpu.strided_load %arg5[%c0_170, %c0_171] {strides = array<i32: 2, 1>} : memref<8x128xf32, #tpu.memory_space<vmem>>, vector<4x128xf32>
      %c1_172 = arith.constant 1 : index
      %c0_173 = arith.constant 0 : index
      %249 = tpu.strided_load %arg5[%c1_172, %c0_173] {strides = array<i32: 2, 1>} : memref<8x128xf32, #tpu.memory_space<vmem>>, vector<4x128xf32>
      %250 = arith.maximumf %248, %249 : vector<4x128xf32>
      %251 = vector.broadcast %0 : vector<1x128xf32> to vector<4x128xf32>
      %252 = arith.addf %250, %251 : vector<4x128xf32>
      %c4_i32_174 = arith.constant 4 : i32
      %253 = arith.muli %arg7, %c4_i32_174 : i32
      %254 = arith.index_cast %253 : i32 to index
      %c0_175 = arith.constant 0 : index
      %255 = vector.load %arg6[%254, %c0_175] : memref<16x128xf32, #tpu.memory_space<vmem>>, vector<4x128xf32>
      tpu.vector_store %arg6[%254, %c0_175], %252 {strides = array<i32>} : memref<16x128xf32, #tpu.memory_space<vmem>>, vector<4x128xf32>,
    }
    %c4_i32_1 = arith.constant 4 : i32
    %c0_2 = arith.constant 0 : index
    %c0_3 = arith.constant 0 : index
    %2 = vector.load %arg6[%c0_2, %c0_3] : memref<16x128xf32, #tpu.memory_space<vmem>>, vector<16x128xf32>
    %3 = arith.truncf %2 : vector<16x128xf32> to vector<16x128xbf16>
    %c0_4 = arith.constant 0 : index
    %c0_5 = arith.constant 0 : index
    %4 = vector.load %arg4[%c0_4, %c0_5] : memref<16x128xbf16, #tpu.memory_space<vmem>>, vector<16x128xbf16>
    tpu.vector_store %arg4[%c0_4, %c0_5], %3 {strides = array<i32>} : memref<16x128xbf16, #tpu.memory_space<vmem>>, vector<16x128xbf16>,
    return
  }
  func.func @transform_0(%arg0: i32) -> (i32, i32, i32) {
    %c0_i32 = arith.constant 0 : i32
    %c0_i32_0 = arith.constant 0 : i32
    %c0_i32_1 = arith.constant 0 : i32
    return %arg0, %c0_i32, %c0_i32_0 : i32, i32, i32
  }
  func.func @transform_1(%arg0: i32) -> (i32, i32, i32) {
    %c0_i32 = arith.constant 0 : i32
    %c0_i32_0 = arith.constant 0 : i32
    %c0_i32_1 = arith.constant 0 : i32
    %c0_i32_2 = arith.constant 0 : i32
    return %c0_i32, %c0_i32_0, %c0_i32_1 : i32, i32, i32
  }
  func.func @transform_2(%arg0: i32) -> (i32, i32) {
    %c0_i32 = arith.constant 0 : i32
    %c0_i32_0 = arith.constant 0 : i32
    %c0_i32_1 = arith.constant 0 : i32
    return %c0_i32, %c0_i32_0 : i32, i32
  }
  func.func @transform_3(%arg0: i32) -> (i32, i32) {
    %c0_i32 = arith.constant 0 : i32
    %c0_i32_0 = arith.constant 0 : i32
    return %arg0, %c0_i32 : i32, i32
  }
}

module attributes {stable_mosaic.version = 11 : i64} {
  func.func @fc_fused_kernel(%arg0: i32, %arg1: memref<2x2048xbf16, #tpu.memory_space<vmem>>, %arg2: memref<2048x128xbf16, #tpu.memory_space<vmem>>, %arg3: memref<1x128xf32, #tpu.memory_space<vmem>>, %arg4: memref<128x128xbf16, #tpu.memory_space<vmem>>, %arg5: memref<1x128xf32, #tpu.memory_space<vmem>>, %arg6: memref<2x128xf32, #tpu.memory_space<vmem>>) attributes {dimension_semantics = [#tpu.dimension_semantics<arbitrary>], iteration_bounds = array<i64: 1>, scalar_prefetch = 0 : i64, scratch_operands = 0 : i64, tpu.core_type = #tpu.core_type<tc>, window_params = [{pipeline_mode = #tpu.pipeline_mode<synchronous>, transform_indices = @transform_0, window_bounds = array<i64: 2, 2048>}, {pipeline_mode = #tpu.pipeline_mode<synchronous>, transform_indices = @transform_1, window_bounds = array<i64: 2048, 128>}, {pipeline_mode = #tpu.pipeline_mode<synchronous>, transform_indices = @transform_2, window_bounds = array<i64: 1, 128>}, {pipeline_mode = #tpu.pipeline_mode<synchronous>, transform_indices = @transform_3, window_bounds = array<i64: 128, 128>}, {pipeline_mode = #tpu.pipeline_mode<synchronous>, transform_indices = @transform_4, window_bounds = array<i64: 1, 128>}, {pipeline_mode = #tpu.pipeline_mode<synchronous>, transform_indices = @transform_5, window_bounds = array<i64: 2, 128>}]} {
    %c0 = arith.constant 0 : index
    %c0_0 = arith.constant 0 : index
    %0 = vector.load %arg1[%c0, %c0_0] : memref<2x2048xbf16, #tpu.memory_space<vmem>>, vector<2x2048xbf16>
    %c0_1 = arith.constant 0 : index
    %c0_2 = arith.constant 0 : index
    %1 = vector.load %arg2[%c0_1, %c0_2] : memref<2048x128xbf16, #tpu.memory_space<vmem>>, vector<2048x128xbf16>
    %cst = arith.constant dense<0.000000e+00> : vector<2x128xf32>
    %2 = tpu.matmul %0, %1, %cst {dimension_numbers = #tpu.dot_dimension_numbers<[1], [0], [0], [1], [0, 0, 1, 1], [], []>} : vector<2x2048xbf16>, vector<2048x128xbf16>, vector<2x128xf32> -> vector<2x128xf32>
    %c0_3 = arith.constant 0 : index
    %c0_4 = arith.constant 0 : index
    %3 = vector.load %arg3[%c0_3, %c0_4] : memref<1x128xf32, #tpu.memory_space<vmem>>, vector<1x128xf32>
    %4 = vector.broadcast %3 : vector<1x128xf32> to vector<2x128xf32>
    %5 = arith.addf %2, %4 : vector<2x128xf32>
    %6 = arith.truncf %5 : vector<2x128xf32> to vector<2x128xbf16>
    %c0_5 = arith.constant 0 : index
    %c0_6 = arith.constant 0 : index
    %7 = vector.load %arg4[%c0_5, %c0_6] : memref<128x128xbf16, #tpu.memory_space<vmem>>, vector<128x128xbf16>
    %cst_7 = arith.constant dense<0.000000e+00> : vector<2x128xf32>
    %8 = tpu.matmul %6, %7, %cst_7 {dimension_numbers = #tpu.dot_dimension_numbers<[1], [0], [0], [1], [0, 0, 1, 1], [], []>} : vector<2x128xbf16>, vector<128x128xbf16>, vector<2x128xf32> -> vector<2x128xf32>
    %c0_8 = arith.constant 0 : index
    %c0_9 = arith.constant 0 : index
    %9 = vector.load %arg5[%c0_8, %c0_9] : memref<1x128xf32, #tpu.memory_space<vmem>>, vector<1x128xf32>
    %10 = vector.broadcast %9 : vector<1x128xf32> to vector<2x128xf32>
    %11 = arith.addf %8, %10 : vector<2x128xf32>
    %c0_10 = arith.constant 0 : index
    %c0_11 = arith.constant 0 : index
    %12 = vector.load %arg6[%c0_10, %c0_11] : memref<2x128xf32, #tpu.memory_space<vmem>>, vector<2x128xf32>
    tpu.vector_store %arg6[%c0_10, %c0_11], %11 {strides = array<i32>} : memref<2x128xf32, #tpu.memory_space<vmem>>, vector<2x128xf32>,
    return
  }
  func.func @transform_0(%arg0: i32) -> (i32, i32) {
    %c0_i32 = arith.constant 0 : i32
    %c0_i32_0 = arith.constant 0 : i32
    %c0_i32_1 = arith.constant 0 : i32
    return %c0_i32, %c0_i32_0 : i32, i32
  }
  func.func @transform_1(%arg0: i32) -> (i32, i32) {
    %c0_i32 = arith.constant 0 : i32
    %c0_i32_0 = arith.constant 0 : i32
    %c0_i32_1 = arith.constant 0 : i32
    return %c0_i32, %c0_i32_0 : i32, i32
  }
  func.func @transform_2(%arg0: i32) -> (i32, i32) {
    %c0_i32 = arith.constant 0 : i32
    %c0_i32_0 = arith.constant 0 : i32
    %c0_i32_1 = arith.constant 0 : i32
    return %c0_i32, %c0_i32_0 : i32, i32
  }
  func.func @transform_3(%arg0: i32) -> (i32, i32) {
    %c0_i32 = arith.constant 0 : i32
    %c0_i32_0 = arith.constant 0 : i32
    %c0_i32_1 = arith.constant 0 : i32
    return %c0_i32, %c0_i32_0 : i32, i32
  }
  func.func @transform_4(%arg0: i32) -> (i32, i32) {
    %c0_i32 = arith.constant 0 : i32
    %c0_i32_0 = arith.constant 0 : i32
    %c0_i32_1 = arith.constant 0 : i32
    return %c0_i32, %c0_i32_0 : i32, i32
  }
  func.func @transform_5(%arg0: i32) -> (i32, i32) {
    %c0_i32 = arith.constant 0 : i32
    %c0_i32_0 = arith.constant 0 : i32
    %c0_i32_1 = arith.constant 0 : i32
    return %c0_i32, %c0_i32_0 : i32, i32
  }
}

</mosaic_0001>

<bundles_post_ra>
// kernel: tian_forward.4
= control target key start
LH: loop header
LB: loop body
LE: loop exit
PB: predicated region body
PF: predicated region fallthrough
CT: control target
= control target key end

     0   :  { %s4824_s12 = smov 0   ;;  %s5894_s0 = inlined_call_operand.vmem [shape: f32[2,1332,8], index: 0, kind: input, shape index: {}]   ;;  %s5895_s1 = inlined_call_operand.vmem [shape: bf16[25,8,128], index: 1, kind: input, shape index: {}]   ;;  %s5896_s2 = inlined_call_operand.vmem [shape: f32[1,128], index: 2, kind: input, shape index: {}]   ;;  %s5897_s3 = inlined_call_operand.vmem [shape: bf16[512,128], index: 3, kind: output, shape index: {}]  }
   0x1 LB: > { %s3489_s13 = sadd.s32 4294967295, %s4796_s12   ;;  %p3493_p0 = scmp.ge.s32.totalorder %s4796_s12, 1  ;;  %s4796_s12 = sphi %s4824_s12, %s13_s12  }
   0x2   : > { %p137_p1 = scmp.lt.s32.totalorder %s4796_s12, 3 }
   0x4   : > { %p138_p2 = pnand %p3493_p0, %p137_p1 }
   0x5   : > { %p161_p3 = scmp.lt.s32.totalorder (!%p138_p2), %s3489_s13, 1  ;;  %s3495_s14 = sshll.u32 (!%p138_p2), %s3489_s13, 5 }
   0x6   : > { %141 = sbr.rel (%p138_p2) target bundleno = 751 (0x2ef), region = 32  ;;  %p167_p4 = scmp.lt.s32.totalorder (!%p138_p2), %s3495_s14, 63 }
   0x7   : > { %s4847_s25 = smov (!%p138_p2), 0  }
   0xb   : > { %v4835_v0 = vld [vmem:[%s5896_s2] ss:$0 sm:$0xff]  ;;  %s5899_s13 = smov (!%p161_p3, %s3489_s13), 1  ;;  %s5901_s14 = smov (!%p167_p4, %s3495_s14), 63 }
   0xc   : > { %s4767_s17 = smul.u32 1336, %s5899_s13  ;;  %s3496_s18 = sshll.u32 %s5901_s14, 2 }
   0xd   : > { %s4845_s24 = scalar_lea.vmem %s5897_s3, %s3496_s18 }
   0xe   : > { %s4840_s21 = scalar_lea.vmem %s5894_s0, %s4767_s17 }
   0xf LB: >> { %v3506_v1 = vld [vmem:[%s5895_s1 + $0x4] sm:$0xf]  ;;  %vm231_vm0 = vcmask 1043456   ;;  %v4802_v2 = vmov 0.0   ;;  %s180_s28 = smul.u32 72, %s4800_s25  ;;  %vm4803_vm1 = vmmov 0   ;;  %s4800_s25 = sphi %s4847_s25, %s179_s25  }
  0x10   : >> { %4215 = vmatprep.subr.bf16.mxu0 %v4802_v2  ;;  %4765 = vmatprep.subr.bf16.mxu1 %v4802_v2  ;;  %v233_v3 = vsel %vm231_vm0, %v3506_v1, 0  ;;  %v3526_v4 = vld [vmem:[%s5895_s1 + $0x8] sm:$0xf]  ;;  %v196_v5 = vld [vmem:[%s5895_s1] sm:$0xf]  ;;  %vm215_vm2 = vcmask 64512  }
  0x11   : >> { %4216 = vmatpush3.bf16.msra.mxu0 %v233_v3  ;;  %4766 = vmatpush3.bf16.msra.mxu1 %v233_v3  ;;  %s4868_s4 = scalar_lea.vmem %s4840_s21, %s180_s28  ;;  %v431_v11 = vsel %vm231_vm0, %v3526_v4, 0  ;;  %v323_v13 = vsel %vm231_vm0, %v196_v5, 0  ;;  %v3541_v24 = vld [vmem:[%s5895_s1 + $0xc] sm:$0xf]  ;;  %v3556_v31 = vld [vmem:[%s5895_s1 + $0x10] sm:$0xf] }
  0x12   : >> { %4217 = vmatprep.mubr.msk.bf16.mxu0 %vm4803_vm1, %v4802_v2  ;;  %4229 = vmatprep.mubr.msk.bf16.mxu1 %vm4803_vm1, %v4802_v2  ;;  %v3497_v6 = vld [vmem:[%s4868_s4 + $0x1] sm:$0xff]  ;;  %v3498_v7 = vld [vmem:[%s4868_s4 + $0x9] sm:$0xff]  ;;  %v3503_v8 = vld [vmem:[%s4868_s4 + $0x31] sm:$0xff]  ;;  %v548_v26 = vsel %vm231_vm0, %v3541_v24, 0  ;;  %v665_v34 = vsel %vm231_vm0, %v3556_v31, 0 }
  0x13   : >> { %4259 = vmatprep.subr.bf16.mxu0 %v4802_v2  ;;  %4237 = vmatprep.subr.bf16.mxu1 %v4802_v2  ;;  %v208_v9 = vpack.c.bf16 %v3498_v7, %v3497_v6  ;;  %v3504_v10 = vld [vmem:[%s4868_s4 + $0x39] sm:$0xff]  ;;  %v3499_v14 = vld [vmem:[%s4868_s4 + $0x11] sm:$0xff]  ;;  %v3505_v16 = vld [vmem:[%s4868_s4 + $0x41] sm:$0xff] }
  0x14   : >> { %v211_v12 = vpack.c.bf16 %v3504_v10, %v3503_v8  ;;  %v3500_v15 = vld [vmem:[%s4868_s4 + $0x19] sm:$0xff]  ;;  %v212_v18 = vpack.c.bf16 %v3505_v16, %v3505_v16  ;;  %v3501_v19 = vld [vmem:[%s4868_s4 + $0x21] sm:$0xff]  ;;  %v3502_v20 = vld [vmem:[%s4868_s4 + $0x29] sm:$0xff] }
  0x15   : >> { %4218 = vmatmul.mubr.msk.bf16.vlgmr.msra.gmra.mxu0 %vm215_vm2, %v208_v9  ;;  %v209_v17 = vpack.c.bf16 %v3500_v15, %v3499_v14  ;;  %v182_v21 = vld [vmem:[%s4868_s4] sm:$0xff]  ;;  %v183_v22 = vld [vmem:[%s4868_s4 + $0x8] sm:$0xff]  ;;  %v210_v23 = vpack.c.bf16 %v3502_v20, %v3501_v19  ;;  %v184_v29 = vld [vmem:[%s4868_s4 + $0x10] sm:$0xff] }
  0x16   : >> { %4230 = vmatmul.mubr.msk.bf16.vlgmr.msra.gmra.mxu1 %vm215_vm2, %v211_v12  ;;  %4260 = vmatpush3.bf16.msra.mxu0 %v431_v11  ;;  %v191_v25 = vpack.c.bf16 %v183_v22, %v182_v21  ;;  %v3517_v27 = vld [vmem:[%s4868_s4 + $0x2] sm:$0xff]  ;;  %v3518_v28 = vld [vmem:[%s4868_s4 + $0xa] sm:$0xff]  ;;  %v185_v30 = vld [vmem:[%s4868_s4 + $0x18] sm:$0xff] }
  0x17   : >> { %4238 = vmatpush3.bf16.msra.mxu1 %v323_v13  ;;  %4221 = vmatprep.mubr.msk.bf16.mxu0 %vm4803_vm1, %v4802_v2  ;;  %v408_v32 = vpack.c.bf16 %v3518_v28, %v3517_v27  ;;  %v192_v33 = vpack.c.bf16 %v185_v30, %v184_v29  ;;  %v3519_v35 = vld [vmem:[%s4868_s4 + $0x12] sm:$0xff]  ;;  %v3520_v36 = vld [vmem:[%s4868_s4 + $0x1a] sm:$0xff]  ;;  %v4930_v38 = vld [vmem:[%s4868_s4 + $0x28] sm:$0xff] }
  0x18   : >> { %4233 = vmatprep.mubr.msk.bf16.mxu1 %vm4803_vm1, %v4802_v2  ;;  %4281 = vmatprep.subr.bf16.mxu1 %v4802_v2  ;;  %v186_v37 = vld [vmem:[%s4868_s4 + $0x20] sm:$0xff]  ;;  %v409_v39 = vpack.c.bf16 %v3520_v36, %v3519_v35  ;;  %v3522_v42 = vld [vmem:[%s4868_s4 + $0x2a] sm:$0xff]  ;;  %v4946_v44 = vld [vmem:[%s4868_s4 + $0x38] sm:$0xff] }
  0x19   : >> { %4303 = vmatprep.subr.bf16.mxu0 %v4802_v2  ;;  %v193_v40 = vpack.c.bf16 %v4930_v38, %v186_v37  ;;  %v3521_v41 = vld [vmem:[%s4868_s4 + $0x22] sm:$0xff]  ;;  %v4943_v43 = vld [vmem:[%s4868_s4 + $0x30] sm:$0xff]  ;;  %v3524_v48 = vld [vmem:[%s4868_s4 + $0x3a] sm:$0xff] }
  0x1a   : >> { %v410_v45 = vpack.c.bf16 %v3522_v42, %v3521_v41  ;;  %v194_v46 = vpack.c.bf16 %v4946_v44, %v4943_v43  ;;  %v3523_v47 = vld [vmem:[%s4868_s4 + $0x32] sm:$0xff]  ;;  %v4959_v49 = vld [vmem:[%s4868_s4 + $0x40] sm:$0xff]  ;;  %v1229_v52 = vpack.c.bf16 %v4943_v43, %v4930_v38 }
  0x1b   : >> { %v411_v50 = vpack.c.bf16 %v3524_v48, %v3523_v47  ;;  %v195_v51 = vpack.c.bf16 %v4959_v49, %v4959_v49  ;;  %v3525_v53 = vld [vmem:[%s4868_s4 + $0x42] sm:$0xff]  ;;  %v3533_v55 = vld [vmem:[%s4868_s4 + $0xb] sm:$0xff]  ;;  %v1230_v56 = vpack.c.bf16 %v4959_v49, %v4946_v44  ;;  %v3573_v58 = vld [vmem:[%s5895_s1 + $0x14] sm:$0xf] }
  0x1c   : >> { %v3532_v54 = vld [vmem:[%s4868_s4 + $0x3] sm:$0xff]  ;;  %v412_v57 = vpack.c.bf16 %v3525_v53, %v3525_v53  ;;  %v784_v60 = vsel %vm231_vm0, %v3573_v58, 0  ;;  %v3548_v62 = vld [vmem:[%s4868_s4 + $0xc] sm:$0xff]  ;;  %v3535_v1 = vld [vmem:[%s4868_s4 + $0x1b] sm:$0xff] }
  0x1d   : >> { %4222 = vmatmul.mubr.msk.bf16.gmra.mxu0 %vm215_vm2, %v209_v17  ;;  %v525_v59 = vpack.c.bf16 %v3533_v55, %v3532_v54  ;;  %v3547_v61 = vld [vmem:[%s4868_s4 + $0x4] sm:$0xff]  ;;  %v3534_v63 = vld [vmem:[%s4868_s4 + $0x13] sm:$0xff]  ;;  %v3550_v8 = vld [vmem:[%s4868_s4 + $0x1c] sm:$0xff] }
  0x1e   : >> { %4234 = vmatmul.mubr.msk.bf16.gmra.mxu1 %vm215_vm2, %v212_v18  ;;  %4225 = vmatprep.mubr.msk.bf16.mxu0 %vm4803_vm1, %v4802_v2  ;;  %v3590_v3 = vld [vmem:[%s5895_s1 + $0x18] sm:$0xf]  ;;  %v642_v4 = vpack.c.bf16 %v3548_v62, %v3547_v61  ;;  %v526_v5 = vpack.c.bf16 %v3535_v1, %v3534_v63  ;;  %v3536_v9 = vld [vmem:[%s4868_s4 + $0x23] sm:$0xff]  ;;  %v3537_v10 = vld [vmem:[%s4868_s4 + $0x2b] sm:$0xff] }
  0x1f   : >> { %4239 = vmatprep.mubr.msk.bf16.mxu1 %vm4803_vm1, %v4802_v2  ;;  %v901_v6 = vsel %vm231_vm0, %v3590_v3, 0  ;;  %v3549_v7 = vld [vmem:[%s4868_s4 + $0x14] sm:$0xff]  ;;  %v527_v12 = vpack.c.bf16 %v3537_v10, %v3536_v9  ;;  %v3551_v13 = vld [vmem:[%s4868_s4 + $0x24] sm:$0xff]  ;;  %v3552_v14 = vld [vmem:[%s4868_s4 + $0x2c] sm:$0xff] }
  0x20   : >> { %v643_v11 = vpack.c.bf16 %v3550_v8, %v3549_v7  ;;  %v3538_v15 = vld [vmem:[%s4868_s4 + $0x33] sm:$0xff]  ;;  %v3539_v16 = vld [vmem:[%s4868_s4 + $0x3b] sm:$0xff]  ;;  %v644_v17 = vpack.c.bf16 %v3552_v14, %v3551_v13  ;;  %v3540_v21 = vld [vmem:[%s4868_s4 + $0x43] sm:$0xff] }
  0x21   : >> { %v528_v18 = vpack.c.bf16 %v3539_v16, %v3538_v15  ;;  %v3553_v19 = vld [vmem:[%s4868_s4 + $0x34] sm:$0xff]  ;;  %v3554_v20 = vld [vmem:[%s4868_s4 + $0x3c] sm:$0xff]  ;;  %v3555_v24 = vld [vmem:[%s4868_s4 + $0x44] sm:$0xff] }
  0x22   : >> { %v645_v22 = vpack.c.bf16 %v3554_v20, %v3553_v19  ;;  %v3581_v28 = vld [vmem:[%s4868_s4 + $0x25] sm:$0xff]  ;;  %v3582_v29 = vld [vmem:[%s4868_s4 + $0x2d] sm:$0xff]  ;;  %v3624_v30 = vld [vmem:[%s5895_s1 + $0x20] sm:$0xf] }
  0x23   : >> { %v878_v31 = vpack.c.bf16 %v3582_v29, %v3581_v28  ;;  %v5058_v35 = vld [vmem:[%s4868_s4 + $0x4c] sm:$0xff]  ;;  %v5071_v41 = vld [vmem:[%s4868_s4 + $0x54] sm:$0xff]  ;;  %v5074_v42 = vld [vmem:[%s4868_s4 + $0x5c] sm:$0xff] }
  0x24   : >> { %v763_v37 = vpack.c.bf16 %v5058_v35, %v3555_v24  ;;  %v3587_v47 = vld [vmem:[%s4868_s4 + $0x55] sm:$0xff]  ;;  %v3588_v48 = vld [vmem:[%s4868_s4 + $0x5d] sm:$0xff]  ;;  %v3589_v54 = vld [vmem:[%s4868_s4 + $0x65] sm:$0xff] }
  0x25   : >> { %4226 = vmatmul.mubr.msk.bf16.gmra.mxu0 %vm215_vm2, %v210_v23  ;;  %v529_v23 = vpack.c.bf16 %v3540_v21, %v3540_v21  ;;  %v3598_v55 = vld [vmem:[%s4868_s4 + $0x26] sm:$0xff]  ;;  %v882_v58 = vpack.c.bf16 %v3589_v54, %v3589_v54  ;;  %v3616_v63 = vld [vmem:[%s4868_s4 + $0x2f] sm:$0xff]  ;;  %v3601_v3 = vld [vmem:[%s4868_s4 + $0x3e] sm:$0xff] }
  0x26   : >> { %4240 = vmatmul.mubr.msk.bf16.vlgmr.msra.gmra.mxu1 %vm215_vm2, %v191_v25  ;;  %4261 = vmatprep.mubr.msk.bf16.mxu0 %vm4803_vm1, %v4802_v2  ;;  %v646_v25 = vpack.c.bf16 %v3555_v24, %v3555_v24  ;;  %v3615_v62 = vld [vmem:[%s4868_s4 + $0x27] sm:$0xff]  ;;  %v3600_v1 = vld [vmem:[%s4868_s4 + $0x36] sm:$0xff]  ;;  %v3618_v9 = vld [vmem:[%s4868_s4 + $0x3f] sm:$0xff] }
  0x27   : >> { %4282 = vmatpush3.bf16.msra.mxu1 %v548_v26  ;;  %4243 = vmatprep.mubr.msk.bf16.mxu1 %vm4803_vm1, %v4802_v2  ;;  %v3607_v26 = vld [vmem:[%s5895_s1 + $0x1c] sm:$0xf]  ;;  %v3602_v10 = vld [vmem:[%s4868_s4 + $0x46] sm:$0xff]  ;;  %v3620_v15 = vld [vmem:[%s4868_s4 + $0x4f] sm:$0xff] }
  0x28   : >> { %4325 = vmatprep.subr.bf16.mxu1 %v4802_v2  ;;  %v1018_v27 = vsel %vm231_vm0, %v3607_v26, 0  ;;  %v3617_v8 = vld [vmem:[%s4868_s4 + $0x37] sm:$0xff]  ;;  %v3619_v14 = vld [vmem:[%s4868_s4 + $0x47] sm:$0xff]  ;;  %v3622_v21 = vld [vmem:[%s4868_s4 + $0x5f] sm:$0xff] }
  0x29   : >> { %v3604_v16 = vld [vmem:[%s4868_s4 + $0x56] sm:$0xff]  ;;  %v3649_v29 = vld [vmem:[%s4868_s4 + $0x48] sm:$0xff]  ;;  %v5213_v54 = vld [vmem:[%s4868_s4 + $0x80] sm:$0xff] }
  0x2a   : >> { %v3621_v20 = vld [vmem:[%s4868_s4 + $0x57] sm:$0xff]  ;;  %v3653_v44 = vld [vmem:[%s4868_s4 + $0x68] sm:$0xff] }
  0x2b   : >> { %v3651_v43 = vld [vmem:[%s4868_s4 + $0x58] sm:$0xff]  ;;  %v5196_v49 = vld [vmem:[%s4868_s4 + $0x70] sm:$0xff] }
  0x2d   : >> { %4262 = vmatmul.mubr.msk.bf16.vlgmr.msra.gmra.mxu0 %vm215_vm2, %v408_v32  ;;  %v1135_v32 = vsel %vm231_vm0, %v3624_v30, 0  ;;  %v3650_v30 = vld [vmem:[%s4868_s4 + $0x50] sm:$0xff] }
  0x2e   : >> { %4244 = vmatmul.mubr.msk.bf16.gmra.mxu1 %vm215_vm2, %v192_v33  ;;  %4304 = vmatpush3.bf16.msra.mxu0 %v665_v34  ;;  %v3583_v33 = vld [vmem:[%s4868_s4 + $0x35] sm:$0xff]  ;;  %v3584_v34 = vld [vmem:[%s4868_s4 + $0x3d] sm:$0xff] }
  0x2f   : >> { %4247 = vmatprep.mubr.msk.bf16.mxu1 %vm4803_vm1, %v4802_v2  ;;  %4265 = vmatprep.mubr.msk.bf16.mxu0 %vm4803_vm1, %v4802_v2  ;;  %v879_v36 = vpack.c.bf16 %v3584_v34, %v3583_v33 }
  0x30   : >> { %4347 = vmatprep.subr.bf16.mxu0 %v4802_v2 }
  0x35   : >> { %4266 = vmatmul.mubr.msk.bf16.gmra.mxu0 %vm215_vm2, %v409_v39  ;;  %v3585_v39 = vld [vmem:[%s4868_s4 + $0x45] sm:$0xff] }
  0x36   : >> { %4248 = vmatmul.mubr.msk.bf16.gmra.mxu1 %vm215_vm2, %v193_v40  ;;  %4269 = vmatprep.mubr.msk.bf16.mxu0 %vm4803_vm1, %v4802_v2  ;;  %v3586_v40 = vld [vmem:[%s4868_s4 + $0x4d] sm:$0xff] }
  0x37   : >> { %4251 = vmatprep.mubr.msk.bf16.mxu1 %vm4803_vm1, %v4802_v2 }
  0x3d   : >> { %4270 = vmatmul.mubr.msk.bf16.gmra.mxu0 %vm215_vm2, %v410_v45  ;;  %v880_v45 = vpack.c.bf16 %v3586_v40, %v3585_v39  ;;  %v1349_v40 = vpack.c.bf16 %v5196_v49, %v3653_v44 }
  0x3e   : >> { %4252 = vmatmul.mubr.msk.bf16.gmra.mxu1 %vm215_vm2, %v194_v46  ;;  %4273 = vmatprep.mubr.msk.bf16.mxu0 %vm4803_vm1, %v4802_v2  ;;  %v764_v46 = vpack.c.bf16 %v5074_v42, %v5071_v41 }
  0x3f   : >> { %4255 = vmatprep.mubr.msk.bf16.mxu1 %vm4803_vm1, %v4802_v2 }
  0x45   : >> { %4274 = vmatmul.mubr.msk.bf16.gmra.mxu0 %vm215_vm2, %v411_v50  ;;  %v5087_v50 = vld [vmem:[%s4868_s4 + $0x64] sm:$0xff] }
  0x46   : >> { %4256 = vmatmul.mubr.msk.bf16.gmra.mxu1 %vm215_vm2, %v195_v51  ;;  %4277 = vmatprep.mubr.msk.bf16.mxu0 %vm4803_vm1, %v4802_v2  ;;  %v881_v51 = vpack.c.bf16 %v3588_v48, %v3587_v47  ;;  %v765_v53 = vpack.c.bf16 %v5087_v50, %v5087_v50 }
  0x47   : >> { %4283 = vmatprep.mubr.msk.bf16.mxu1 %vm4803_vm1, %v4802_v2 }
  0x4d   : >> { %4278 = vmatmul.mubr.msk.bf16.gmra.mxu0 %vm215_vm2, %v412_v57  ;;  %v3599_v57 = vld [vmem:[%s4868_s4 + $0x2e] sm:$0xff] }
  0x4e   : >> { %4284 = vmatmul.mubr.msk.bf16.vlgmr.msra.gmra.mxu1 %vm215_vm2, %v525_v59  ;;  %4305 = vmatprep.mubr.msk.bf16.mxu0 %vm4803_vm1, %v4802_v2  ;;  %v3641_v59 = vld [vmem:[%s5895_s1 + $0x24] sm:$0xf] }
  0x4f   : >> { %4326 = vmatpush3.bf16.msra.mxu1 %v784_v60  ;;  %4287 = vmatprep.mubr.msk.bf16.mxu1 %vm4803_vm1, %v4802_v2  ;;  %v995_v60 = vpack.c.bf16 %v3599_v57, %v3598_v55  ;;  %v1252_v61 = vsel %vm231_vm0, %v3641_v59, 0 }
  0x50   : >> { %4369 = vmatprep.subr.bf16.mxu1 %v4802_v2 }
  0x55   : >> { %4306 = vmatmul.mubr.msk.bf16.vlgmr.msra.gmra.mxu0 %vm215_vm2, %v642_v4  ;;  %v3658_v4 = vld [vmem:[%s5895_s1 + $0x28] sm:$0xf] }
  0x56   : >> { %4288 = vmatmul.mubr.msk.bf16.gmra.mxu1 %vm215_vm2, %v526_v5  ;;  %4348 = vmatpush3.bf16.msra.mxu0 %v901_v6  ;;  %v1112_v5 = vpack.c.bf16 %v3616_v63, %v3615_v62  ;;  %v996_v6 = vpack.c.bf16 %v3601_v3, %v3600_v1  ;;  %v1370_v7 = vsel %vm231_vm0, %v3658_v4, 0  ;;  %v5224_v4 = vld [vmem:[%s4868_s4 + $0x88] sm:$0xff] }
  0x57   : >> { %4291 = vmatprep.mubr.msk.bf16.mxu1 %vm4803_vm1, %v4802_v2  ;;  %4309 = vmatprep.mubr.msk.bf16.mxu0 %vm4803_vm1, %v4802_v2 }
  0x58   : >> { %4391 = vmatprep.subr.bf16.mxu0 %v4802_v2 }
  0x5d   : >> { %4310 = vmatmul.mubr.msk.bf16.gmra.mxu0 %vm215_vm2, %v643_v11  ;;  %v3603_v11 = vld [vmem:[%s4868_s4 + $0x4e] sm:$0xff] }
  0x5e   : >> { %4292 = vmatmul.mubr.msk.bf16.gmra.mxu1 %vm215_vm2, %v527_v12  ;;  %4313 = vmatprep.mubr.msk.bf16.mxu0 %vm4803_vm1, %v4802_v2  ;;  %v1113_v12 = vpack.c.bf16 %v3618_v9, %v3617_v8  ;;  %v997_v13 = vpack.c.bf16 %v3603_v11, %v3602_v10  ;;  %v3667_v8 = vld [vmem:[%s4868_s4 + $0x51] sm:$0xff]  ;;  %v1351_v11 = vpack.c.bf16 %v5224_v4, %v5224_v4 }
  0x5f   : >> { %4295 = vmatprep.mubr.msk.bf16.mxu1 %vm4803_vm1, %v4802_v2 }
  0x65   : >> { %4314 = vmatmul.mubr.msk.bf16.gmra.mxu0 %vm215_vm2, %v644_v17 }
  0x66   : >> { %4296 = vmatmul.mubr.msk.bf16.gmra.mxu1 %vm215_vm2, %v528_v18  ;;  %4317 = vmatprep.mubr.msk.bf16.mxu0 %vm4803_vm1, %v4802_v2  ;;  %v1114_v18 = vpack.c.bf16 %v3620_v15, %v3619_v14 }
  0x67   : >> { %4299 = vmatprep.mubr.msk.bf16.mxu1 %vm4803_vm1, %v4802_v2 }
  0x6d   : >> { %4318 = vmatmul.mubr.msk.bf16.gmra.mxu0 %vm215_vm2, %v645_v22 }
  0x6e   : >> { %4300 = vmatmul.mubr.msk.bf16.gmra.mxu1 %vm215_vm2, %v529_v23  ;;  %4321 = vmatprep.mubr.msk.bf16.mxu0 %vm4803_vm1, %v4802_v2  ;;  %v1115_v23 = vpack.c.bf16 %v3622_v21, %v3621_v20 }
  0x6f   : >> { %4327 = vmatprep.mubr.msk.bf16.mxu1 %vm4803_vm1, %v4802_v2 }
  0x75   : >> { %4322 = vmatmul.mubr.msk.bf16.gmra.mxu0 %vm215_vm2, %v646_v25  ;;  %v3623_v25 = vld [vmem:[%s4868_s4 + $0x67] sm:$0xff] }
  0x76   : >> { %4328 = vmatmul.mubr.msk.bf16.vlgmr.msra.gmra.mxu1 %vm215_vm2, %v644_v17  ;;  %4349 = vmatprep.mubr.msk.bf16.mxu0 %vm4803_vm1, %v4802_v2  ;;  %v3605_v17 = vld [vmem:[%s4868_s4 + $0x5e] sm:$0xff]  ;;  %v1116_v26 = vpack.c.bf16 %v3623_v25, %v3623_v25 }
  0x77   : >> { %4370 = vmatpush3.bf16.msra.mxu1 %v1018_v27  ;;  %4331 = vmatprep.mubr.msk.bf16.mxu1 %vm4803_vm1, %v4802_v2  ;;  %v998_v19 = vpack.c.bf16 %v3605_v17, %v3604_v16  ;;  %v3675_v27 = vld [vmem:[%s5895_s1 + $0x2c] sm:$0xf] }
  0x78   : >> { %4413 = vmatprep.subr.bf16.mxu1 %v4802_v2  ;;  %v1487_v28 = vsel %vm231_vm0, %v3675_v27, 0  ;;  %v3669_v27 = vld [vmem:[%s4868_s4 + $0x61] sm:$0xff] }
  0x7d   : >> { %4350 = vmatmul.mubr.msk.bf16.vlgmr.msra.gmra.mxu0 %vm215_vm2, %v878_v31  ;;  %v3692_v31 = vld [vmem:[%s5895_s1 + $0x30] sm:$0xf] }
  0x7e   : >> { %4332 = vmatmul.mubr.msk.bf16.gmra.mxu1 %vm215_vm2, %v645_v22  ;;  %4392 = vmatpush3.bf16.msra.mxu0 %v1135_v32  ;;  %v3606_v22 = vld [vmem:[%s4868_s4 + $0x66] sm:$0xff]  ;;  %v1347_v32 = vpack.c.bf16 %v3650_v30, %v3649_v29  ;;  %v1604_v38 = vsel %vm231_vm0, %v3692_v31, 0  ;;  %v3726_v29 = vld [vmem:[%s5895_s1 + $0x38] sm:$0xf] }
  0x7f   : >> { %4335 = vmatprep.mubr.msk.bf16.mxu1 %vm4803_vm1, %v4802_v2  ;;  %4353 = vmatprep.mubr.msk.bf16.mxu0 %vm4803_vm1, %v4802_v2  ;;  %v999_v24 = vpack.c.bf16 %v3606_v22, %v3606_v22  ;;  %v3683_v22 = vld [vmem:[%s4868_s4 + $0x4a] sm:$0xff] }
  0x80   : >> { %4435 = vmatprep.subr.bf16.mxu0 %v4802_v2 }
  0x85   : >> { %4354 = vmatmul.mubr.msk.bf16.gmra.mxu0 %vm215_vm2, %v879_v36 }
  0x86   : >> { %4336 = vmatmul.mubr.msk.bf16.gmra.mxu1 %vm215_vm2, %v763_v37  ;;  %4357 = vmatprep.mubr.msk.bf16.mxu0 %vm4803_vm1, %v4802_v2 }
  0x87   : >> { %4339 = vmatprep.mubr.msk.bf16.mxu1 %vm4803_vm1, %v4802_v2 }
  0x8d   : >> { %4358 = vmatmul.mubr.msk.bf16.gmra.mxu0 %vm215_vm2, %v880_v45 }
  0x8e   : >> { %4340 = vmatmul.mubr.msk.bf16.gmra.mxu1 %vm215_vm2, %v764_v46  ;;  %4361 = vmatprep.mubr.msk.bf16.mxu0 %vm4803_vm1, %v4802_v2 }
  0x8f   : >> { %4343 = vmatprep.mubr.msk.bf16.mxu1 %vm4803_vm1, %v4802_v2 }
  0x95   : >> { %4362 = vmatmul.mubr.msk.bf16.gmra.mxu0 %vm215_vm2, %v881_v51 }
  0x96   : >> { %4344 = vmatmul.mubr.msk.bf16.gmra.mxu1 %vm215_vm2, %v765_v53  ;;  %4365 = vmatprep.mubr.msk.bf16.mxu0 %vm4803_vm1, %v4802_v2  ;;  %v5210_v53 = vld [vmem:[%s4868_s4 + $0x78] sm:$0xff] }
  0x97   : >> { %4371 = vmatprep.mubr.msk.bf16.mxu1 %vm4803_vm1, %v4802_v2  ;;  %v1350_v59 = vpack.c.bf16 %v5213_v54, %v5210_v53 }
  0x9d   : >> { %4366 = vmatmul.mubr.msk.bf16.gmra.mxu0 %vm215_vm2, %v882_v58 }
  0x9e   : >> { %4372 = vmatmul.mubr.msk.bf16.vlgmr.msra.gmra.mxu1 %vm215_vm2, %v995_v60  ;;  %4393 = vmatprep.mubr.msk.bf16.mxu0 %vm4803_vm1, %v4802_v2 }
  0x9f   : >> { %4414 = vmatpush3.bf16.msra.mxu1 %v1252_v61  ;;  %4375 = vmatprep.mubr.msk.bf16.mxu1 %vm4803_vm1, %v4802_v2  ;;  %v1233_v61 = vpack.c.bf16 %v3653_v44, %v3653_v44 }
  0xa0   : >> { %4457 = vmatprep.subr.bf16.mxu1 %v4802_v2 }
  0xa5   : >> { %4394 = vmatmul.mubr.msk.bf16.vlgmr.msra.gmra.mxu0 %vm215_vm2, %v1112_v5 }
  0xa6   : >> { %4376 = vmatmul.mubr.msk.bf16.gmra.mxu1 %vm215_vm2, %v996_v6  ;;  %4436 = vmatpush3.bf16.msra.mxu0 %v1370_v7  ;;  %v3666_v7 = vld [vmem:[%s4868_s4 + $0x49] sm:$0xff] }
  0xa7   : >> { %4379 = vmatprep.mubr.msk.bf16.mxu1 %vm4803_vm1, %v4802_v2  ;;  %4397 = vmatprep.mubr.msk.bf16.mxu0 %vm4803_vm1, %v4802_v2  ;;  %v1464_v14 = vpack.c.bf16 %v3667_v8, %v3666_v7 }
  0xa8   : >> { %4479 = vmatprep.subr.bf16.mxu0 %v4802_v2 }
  0xad   : >> { %4398 = vmatmul.mubr.msk.bf16.gmra.mxu0 %vm215_vm2, %v1113_v12  ;;  %v3709_v12 = vld [vmem:[%s5895_s1 + $0x34] sm:$0xf] }
  0xae   : >> { %4380 = vmatmul.mubr.msk.bf16.gmra.mxu1 %vm215_vm2, %v997_v13  ;;  %4401 = vmatprep.mubr.msk.bf16.mxu0 %vm4803_vm1, %v4802_v2 }
  0xaf   : >> { %4383 = vmatprep.mubr.msk.bf16.mxu1 %vm4803_vm1, %v4802_v2 }
  0xb5   : >> { %4402 = vmatmul.mubr.msk.bf16.gmra.mxu0 %vm215_vm2, %v1114_v18  ;;  %v1721_v18 = vsel %vm231_vm0, %v3709_v12, 0 }
  0xb6   : >> { %4384 = vmatmul.mubr.msk.bf16.gmra.mxu1 %vm215_vm2, %v998_v19  ;;  %4405 = vmatprep.mubr.msk.bf16.mxu0 %vm4803_vm1, %v4802_v2 }
  0xb7   : >> { %4387 = vmatprep.mubr.msk.bf16.mxu1 %vm4803_vm1, %v4802_v2 }
  0xbd   : >> { %4406 = vmatmul.mubr.msk.bf16.gmra.mxu0 %vm215_vm2, %v1115_v23  ;;  %v3684_v23 = vld [vmem:[%s4868_s4 + $0x52] sm:$0xff] }
  0xbe   : >> { %4388 = vmatmul.mubr.msk.bf16.gmra.mxu1 %vm215_vm2, %v999_v24  ;;  %4409 = vmatprep.mubr.msk.bf16.mxu0 %vm4803_vm1, %v4802_v2  ;;  %v1581_v31 = vpack.c.bf16 %v3684_v23, %v3683_v22 }
  0xbf   : >> { %4415 = vmatprep.mubr.msk.bf16.mxu1 %vm4803_vm1, %v4802_v2 }
  0xc5   : >> { %4410 = vmatmul.mubr.msk.bf16.gmra.mxu0 %vm215_vm2, %v1116_v26  ;;  %v3668_v26 = vld [vmem:[%s4868_s4 + $0x59] sm:$0xff] }
  0xc6   : >> { %4416 = vmatmul.mubr.msk.bf16.vlgmr.msra.gmra.mxu1 %vm215_vm2, %v1229_v52  ;;  %4437 = vmatprep.mubr.msk.bf16.mxu0 %vm4803_vm1, %v4802_v2  ;;  %v3652_v52 = vld [vmem:[%s4868_s4 + $0x60] sm:$0xff] }
  0xc7   : >> { %4458 = vmatpush3.bf16.msra.mxu1 %v1487_v28  ;;  %4419 = vmatprep.mubr.msk.bf16.mxu1 %vm4803_vm1, %v4802_v2  ;;  %v1348_v33 = vpack.c.bf16 %v3652_v52, %v3651_v43  ;;  %v1465_v43 = vpack.c.bf16 %v3669_v27, %v3668_v26  ;;  %v3689_v27 = vld [vmem:[%s4868_s4 + $0x7a] sm:$0xff] }
  0xc8   : >> { %4501 = vmatprep.subr.bf16.mxu1 %v4802_v2 }
  0xcd   : >> { %4438 = vmatmul.mubr.msk.bf16.vlgmr.msra.gmra.mxu0 %vm215_vm2, %v1347_v32 }
  0xce   : >> { %4420 = vmatmul.mubr.msk.bf16.gmra.mxu1 %vm215_vm2, %v1230_v56  ;;  %4480 = vmatpush3.bf16.msra.mxu0 %v1604_v38 }
  0xcf   : >> { %4423 = vmatprep.mubr.msk.bf16.mxu1 %vm4803_vm1, %v4802_v2  ;;  %4441 = vmatprep.mubr.msk.bf16.mxu0 %vm4803_vm1, %v4802_v2 }
  0xd0   : >> { %4523 = vmatprep.subr.bf16.mxu0 %v4802_v2 }
  0xd5   : >> { %v269_v34 = vpop.f32.mrf.mxu0  ;;  %4442 = vmatmul.mubr.msk.bf16.gmra.mxu0 %vm215_vm2, %v1348_v33 }
  0xd6   : >> { %v5189_v36 = vpop.f32.mrf.mxu1  ;;  %4424 = vmatmul.mubr.msk.bf16.gmra.mxu1 %vm215_vm2, %v1347_v32  ;;  %4445 = vmatprep.mubr.msk.bf16.mxu0 %vm4803_vm1, %v4802_v2 }
  0xd7   : >> { %v4219_v56 = vpop.f32.mrf.mxu0  ;;  %4427 = vmatprep.mubr.msk.bf16.mxu1 %vm4803_vm1, %v4802_v2 }
  0xd8   : >> { %v4231_v37 = vpop.f32.mrf.mxu1 }
  0xd9   : >> { %v272_v39 = vpop.f32.mrf.mxu0 }
  0xda   : >> { %v5201_v45 = vpop.f32.mrf.mxu1 }
  0xdb   : >> { %v4220_v46 = vpop.f32.mrf.mxu0 }
  0xdc   : >> { %v4232_v47 = vpop.f32.mrf.mxu1  ;;  %v3686_v46 = vld [vmem:[%s4868_s4 + $0x62] sm:$0xff] }
  0xdd   : >> { %v277_v48 = vpop.f32.mrf.mxu0  ;;  %4446 = vmatmul.mubr.msk.bf16.gmra.mxu0 %vm215_vm2, %v1349_v40  ;;  %v3685_v40 = vld [vmem:[%s4868_s4 + $0x5a] sm:$0xff] }
  0xde   : >> { %v5204_v51 = vpop.f32.mrf.mxu1  ;;  %4428 = vmatmul.mubr.msk.bf16.gmra.mxu1 %vm215_vm2, %v1348_v33  ;;  %4449 = vmatprep.mubr.msk.bf16.mxu0 %vm4803_vm1, %v4802_v2 }
  0xdf   : >> { %v4223_v55 = vpop.f32.mrf.mxu0  ;;  %4431 = vmatprep.mubr.msk.bf16.mxu1 %vm4803_vm1, %v4802_v2 }
  0xe0   : >> { %v4235_v57 = vpop.f32.mrf.mxu1  ;;  %v3670_v55 = vld [vmem:[%s4868_s4 + $0x69] sm:$0xff] }
  0xe1   : >> { %v280_v58 = vpop.f32.mrf.mxu0  ;;  %v3671_v57 = vld [vmem:[%s4868_s4 + $0x71] sm:$0xff] }
  0xe2   : >> { %v304_v60 = vpop.f32.mrf.mxu1 }
  0xe3   : >> { %v4224_v62 = vpop.f32.mrf.mxu0  ;;  %v1582_v60 = vpack.c.bf16 %v3686_v46, %v3685_v40  ;;  %v3691_v46 = vld [vmem:[%s4868_s4 + $0x8a] sm:$0xff] }
  0xe4   : >> { %v4236_v63 = vpop.f32.mrf.mxu1 }
  0xe5   : >> { %v285_v1 = vpop.f32.mrf.mxu0  ;;  %4450 = vmatmul.mubr.msk.bf16.gmra.mxu0 %vm215_vm2, %v1350_v59  ;;  %v1466_v63 = vpack.c.bf16 %v3671_v57, %v3670_v55  ;;  %v3700_v55 = vld [vmem:[%s4868_s4 + $0x4b] sm:$0xff]  ;;  %v3701_v57 = vld [vmem:[%s4868_s4 + $0x53] sm:$0xff] }
  0xe6   : >> { %v359_v3 = vpop.f32.mrf.mxu1  ;;  %4432 = vmatmul.mubr.msk.bf16.gmra.mxu1 %vm215_vm2, %v1233_v61  ;;  %4453 = vmatprep.mubr.msk.bf16.mxu0 %vm4803_vm1, %v4802_v2 }
  0xe7   : >> { %v360_v5 = vadd.f32 %v359_v3, %v269_v34  ;;  %v4227_v6 = vpop.f32.mrf.mxu0  ;;  %4459 = vmatprep.mubr.msk.bf16.mxu1 %vm4803_vm1, %v4802_v2  ;;  %v1838_v34 = vsel %vm231_vm0, %v3726_v29, 0 }
  0xe8   : >> { %v4241_v9 = vpop.f32.mrf.mxu1 }
  0xe9   : >> { %v288_v10 = vpop.f32.mrf.mxu0  ;;  %v3687_v9 = vld [vmem:[%s4868_s4 + $0x6a] sm:$0xff] }
  0xea   : >> { %v362_v13 = vpop.f32.mrf.mxu1 }
  0xeb   : >> { %v363_v15 = vadd.f32 %v362_v13, %v272_v39  ;;  %v4228_v16 = vpop.f32.mrf.mxu0 }
  0xec   : >> { %v4242_v17 = vpop.f32.mrf.mxu1 }
  0xed   : >> { %v467_v19 = vpop.f32.mrf.mxu0  ;;  %4454 = vmatmul.mubr.msk.bf16.gmra.mxu0 %vm215_vm2, %v1351_v11  ;;  %v3688_v11 = vld [vmem:[%s4868_s4 + $0x72] sm:$0xff] }
  0xee   : >> { %v367_v20 = vpop.f32.mrf.mxu1  ;;  %v5237_v21 = vadd.f32 %v467_v19, %v360_v5  ;;  %4460 = vmatmul.mubr.msk.bf16.vlgmr.msra.gmra.mxu1 %vm215_vm2, %v1464_v14  ;;  %4481 = vmatprep.mubr.msk.bf16.mxu0 %vm4803_vm1, %v4802_v2  ;;  %v3673_v14 = vld [vmem:[%s4868_s4 + $0x81] sm:$0xff]  ;;  %v1583_v17 = vpack.c.bf16 %v3688_v11, %v3687_v9 }
  0xef   : >> { %v368_v24 = vadd.f32 %v367_v20, %v277_v48  ;;  %v4263_v25 = vpop.f32.mrf.mxu0  ;;  %4502 = vmatpush3.bf16.msra.mxu1 %v1721_v18  ;;  %4463 = vmatprep.mubr.msk.bf16.mxu1 %vm4803_vm1, %v4802_v2 }
  0xf0   : >> { %v4245_v28 = vpop.f32.mrf.mxu1  ;;  %4545 = vmatprep.subr.bf16.mxu1 %v4802_v2 }
  0xf1   : >> { %v470_v30 = vpop.f32.mrf.mxu0  ;;  %v3690_v28 = vld [vmem:[%s4868_s4 + $0x82] sm:$0xff] }
  0xf2   : >> { %v370_v32 = vpop.f32.mrf.mxu1  ;;  %v5252_v38 = vadd.f32 %v470_v30, %v363_v15 }
  0xf3   : >> { %v371_v52 = vadd.f32 %v370_v32, %v280_v58  ;;  %v4264_v33 = vpop.f32.mrf.mxu0 }
  0xf4   : >> { %v4246_v44 = vpop.f32.mrf.mxu1 }
  0xf5   : >> { %v475_v56 = vpop.f32.mrf.mxu0  ;;  %4482 = vmatmul.mubr.msk.bf16.vlgmr.msra.gmra.mxu0 %vm215_vm2, %v1581_v31 }
  0xf6   : >> { %v375_v37 = vpop.f32.mrf.mxu1  ;;  %v5256_v39 = vadd.f32 %v475_v56, %v368_v24  ;;  %4464 = vmatmul.mubr.msk.bf16.gmra.mxu1 %vm215_vm2, %v1465_v43  ;;  %4524 = vmatpush3.bf16.msra.mxu0 %v1838_v34  ;;  %v1584_v43 = vpack.c.bf16 %v3690_v28, %v3689_v27 }
  0xf7   : >> { %v376_v47 = vadd.f32 %v375_v37, %v285_v1  ;;  %v4267_v48 = vpop.f32.mrf.mxu0  ;;  %4467 = vmatprep.mubr.msk.bf16.mxu1 %vm4803_vm1, %v4802_v2  ;;  %4485 = vmatprep.mubr.msk.bf16.mxu0 %vm4803_vm1, %v4802_v2 }
  0xf8   : >> { %v4249_v58 = vpop.f32.mrf.mxu1  ;;  %4567 = vmatprep.subr.bf16.mxu0 %v4802_v2 }
  0xf9   : >> { %v478_v59 = vpop.f32.mrf.mxu0 }
  0xfa   : >> { %v378_v61 = vpop.f32.mrf.mxu1  ;;  %v5268_v62 = vadd.f32 %v478_v59, %v371_v52 }
  0xfb   : >> { %v379_v1 = vadd.f32 %v378_v61, %v288_v10  ;;  %v4268_v3 = vpop.f32.mrf.mxu0  ;;  %v3672_v10 = vld [vmem:[%s4868_s4 + $0x79] sm:$0xff] }
  0xfc   : >> { %v4250_v5 = vpop.f32.mrf.mxu1  ;;  %v1467_v20 = vpack.c.bf16 %v3673_v14, %v3672_v10  ;;  %v3743_v61 = vld [vmem:[%s5895_s1 + $0x3c] sm:$0xf]  ;;  %v3703_v10 = vld [vmem:[%s4868_s4 + $0x63] sm:$0xff] }
  0xfd   : >> { %v483_v6 = vpop.f32.mrf.mxu0  ;;  %4486 = vmatmul.mubr.msk.bf16.gmra.mxu0 %vm215_vm2, %v1582_v60  ;;  %v1585_v60 = vpack.c.bf16 %v3691_v46, %v3691_v46 }
  0xfe   : >> { %v383_v7 = vpop.f32.mrf.mxu1  ;;  %v5271_v8 = vadd.f32 %v483_v6, %v376_v47  ;;  %4468 = vmatmul.mubr.msk.bf16.gmra.mxu1 %vm215_vm2, %v1466_v63  ;;  %4489 = vmatprep.mubr.msk.bf16.mxu0 %vm4803_vm1, %v4802_v2  ;;  %v1956_v6 = vsel %vm231_vm0, %v3743_v61, 0 }
  0xff   : >> { %v384_v12 = vadd.f32 %v383_v7, %v5189_v36  ;;  %v4271_v13 = vpop.f32.mrf.mxu0  ;;  %4471 = vmatprep.mubr.msk.bf16.mxu1 %vm4803_vm1, %v4802_v2 }
 0x100   : >> { %v4253_v15 = vpop.f32.mrf.mxu1 }
 0x101   : >> { %v486_v16 = vpop.f32.mrf.mxu0  ;;  %v3760_v15 = vld [vmem:[%s5895_s1 + $0x40] sm:$0xf] }
 0x102   : >> { %v386_v18 = vpop.f32.mrf.mxu1  ;;  %v5283_v19 = vadd.f32 %v486_v16, %v379_v1  ;;  %v1698_v1 = vpack.c.bf16 %v3701_v57, %v3700_v55 }
 0x103   : >> { %v387_v22 = vadd.f32 %v386_v18, %v5201_v45  ;;  %v4272_v23 = vpop.f32.mrf.mxu0  ;;  %v3674_v45 = vld [vmem:[%s4868_s4 + $0x89] sm:$0xff] }
 0x104   : >> { %v4254_v36 = vpop.f32.mrf.mxu1  ;;  %v1468_v34 = vpack.c.bf16 %v3674_v45, %v3674_v45 }
 0x105   : >> { %v491_v24 = vpop.f32.mrf.mxu0  ;;  %4490 = vmatmul.mubr.msk.bf16.gmra.mxu0 %vm215_vm2, %v1583_v17  ;;  %v1815_v17 = vpack.c.bf16 %v5071_v41, %v5058_v35  ;;  %v2073_v36 = vsel %vm231_vm0, %v3760_v15, 0 }
 0x106   : >> { %v391_v25 = vpop.f32.mrf.mxu1  ;;  %v5287_v26 = vadd.f32 %v491_v24, %v384_v12  ;;  %4472 = vmatmul.mubr.msk.bf16.gmra.mxu1 %vm215_vm2, %v1467_v20  ;;  %4493 = vmatprep.mubr.msk.bf16.mxu0 %vm4803_vm1, %v4802_v2 }
 0x107   : >> { %v392_v29 = vadd.f32 %v391_v25, %v5204_v51  ;;  %v4275_v30 = vpop.f32.mrf.mxu0  ;;  %4475 = vmatprep.mubr.msk.bf16.mxu1 %vm4803_vm1, %v4802_v2 }
 0x108   : >> { %v4257_v31 = vpop.f32.mrf.mxu1 }
 0x109   : >> { %v494_v32 = vpop.f32.mrf.mxu0  ;;  %v1816_v31 = vpack.c.bf16 %v5087_v50, %v5074_v42  ;;  %v3721_v42 = vld [vmem:[%s4868_s4 + $0x6c] sm:$0xff]  ;;  %v3722_v50 = vld [vmem:[%s4868_s4 + $0x74] sm:$0xff] }
 0x10a   : >> { %v394_v52 = vpop.f32.mrf.mxu1  ;;  %v5298_v33 = vadd.f32 %v494_v32, %v387_v22 }
 0x10b   : >> { %v4276_v44 = vpop.f32.mrf.mxu0 }
 0x10c   : >> { %v4258_v56 = vpop.f32.mrf.mxu1 }
 0x10d   : >> { %v499_v37 = vpop.f32.mrf.mxu0  ;;  %4494 = vmatmul.mubr.msk.bf16.gmra.mxu0 %vm215_vm2, %v1584_v43 }
 0x10e   : >> { %v5301_v51 = vadd.f32 %v499_v37, %v392_v29  ;;  %v584_v40 = vpop.f32.mrf.mxu1  ;;  %4476 = vmatmul.mubr.msk.bf16.gmra.mxu1 %vm215_vm2, %v1468_v34  ;;  %4497 = vmatprep.mubr.msk.bf16.mxu0 %vm4803_vm1, %v4802_v2  ;;  %v3705_v29 = vld [vmem:[%s4868_s4 + $0x73] sm:$0xff] }
 0x10f   : >> { %v622_v47 = vadd.f32 %v584_v40, %v5237_v21  ;;  %v4279_v48 = vpop.f32.mrf.mxu0  ;;  %4503 = vmatprep.mubr.msk.bf16.mxu1 %vm4803_vm1, %v4802_v2 }
 0x110   : >> { %v4285_v58 = vpop.f32.mrf.mxu1  ;;  %v3707_v48 = vld [vmem:[%s4868_s4 + $0x83] sm:$0xff] }
 0x111   : >> { %v502_v59 = vpop.f32.mrf.mxu0  ;;  %v1817_v58 = vpack.c.bf16 %v3722_v50, %v3721_v42 }
 0x112   : >> { %v587_v63 = vpop.f32.mrf.mxu1 }
 0x113   : >> { %v623_v3 = vadd.f32 %v587_v63, %v5252_v38  ;;  %v4280_v21 = vpop.f32.mrf.mxu0  ;;  %v3702_v38 = vld [vmem:[%s4868_s4 + $0x5b] sm:$0xff] }
 0x114   : >> { %v4286_v5 = vpop.f32.mrf.mxu1  ;;  %v1699_v20 = vpack.c.bf16 %v3703_v10, %v3702_v38 }
 0x115   : >> { %v701_v7 = vpop.f32.mrf.mxu0  ;;  %4498 = vmatmul.mubr.msk.bf16.gmra.mxu0 %vm215_vm2, %v1585_v60 }
 0x116   : >> { %v592_v9 = vpop.f32.mrf.mxu1  ;;  %v5318_v11 = vadd.f32 %v701_v7, %v622_v47  ;;  %4504 = vmatmul.mubr.msk.bf16.vlgmr.msra.gmra.mxu1 %vm215_vm2, %v1698_v1  ;;  %4525 = vmatprep.mubr.msk.bf16.mxu0 %vm4803_vm1, %v4802_v2  ;;  %v3724_v7 = vld [vmem:[%s4868_s4 + $0x84] sm:$0xff] }
 0x117   : >> { %v624_v12 = vadd.f32 %v592_v9, %v5256_v39  ;;  %v4307_v13 = vpop.f32.mrf.mxu0  ;;  %4546 = vmatpush3.bf16.msra.mxu1 %v1956_v6  ;;  %4507 = vmatprep.mubr.msk.bf16.mxu1 %vm4803_vm1, %v4802_v2  ;;  %v3723_v6 = vld [vmem:[%s4868_s4 + $0x7c] sm:$0xff] }
 0x118   : >> { %v4289_v14 = vpop.f32.mrf.mxu1  ;;  %4589 = vmatprep.subr.bf16.mxu1 %v4802_v2  ;;  %v1818_v10 = vpack.c.bf16 %v3724_v7, %v3723_v6 }
 0x119   : >> { %v704_v16 = vpop.f32.mrf.mxu0 }
 0x11a   : >> { %v595_v18 = vpop.f32.mrf.mxu1  ;;  %v5334_v39 = vadd.f32 %v704_v16, %v623_v3 }
 0x11b   : >> { %v625_v22 = vadd.f32 %v595_v18, %v5268_v62  ;;  %v4308_v23 = vpop.f32.mrf.mxu0  ;;  %v3704_v62 = vld [vmem:[%s4868_s4 + $0x6b] sm:$0xff] }
 0x11c   : >> { %v4290_v24 = vpop.f32.mrf.mxu1  ;;  %v1700_v43 = vpack.c.bf16 %v3705_v29, %v3704_v62  ;;  %v5392_v23 = vld [vmem:[%s4868_s4 + $0x8c] sm:$0xff] }
 0x11d   : >> { %v709_v25 = vpop.f32.mrf.mxu0  ;;  %4526 = vmatmul.mubr.msk.bf16.vlgmr.msra.gmra.mxu0 %vm215_vm2, %v1815_v17 }
 0x11e   : >> { %v600_v27 = vpop.f32.mrf.mxu1  ;;  %v5339_v28 = vadd.f32 %v709_v25, %v624_v12  ;;  %4508 = vmatmul.mubr.msk.bf16.gmra.mxu1 %vm215_vm2, %v1699_v20  ;;  %4568 = vmatpush3.bf16.msra.mxu0 %v2073_v36 }
 0x11f   : >> { %v626_v35 = vadd.f32 %v600_v27, %v5271_v8  ;;  %v4311_v41 = vpop.f32.mrf.mxu0  ;;  %4511 = vmatprep.mubr.msk.bf16.mxu1 %vm4803_vm1, %v4802_v2  ;;  %4529 = vmatprep.mubr.msk.bf16.mxu0 %vm4803_vm1, %v4802_v2 }
 0x120   : >> { %v4293_v30 = vpop.f32.mrf.mxu1  ;;  %4611 = vmatprep.subr.bf16.mxu0 %v4802_v2  ;;  %v3777_v41 = vld [vmem:[%s5895_s1 + $0x44] sm:$0xf] }
 0x121   : >> { %v712_v45 = vpop.f32.mrf.mxu0 }
 0x122   : >> { %v603_v32 = vpop.f32.mrf.mxu1  ;;  %v5352_v8 = vadd.f32 %v712_v45, %v625_v22  ;;  %v2190_v45 = vsel %vm231_vm0, %v3777_v41, 0 }
 0x123   : >> { %v627_v52 = vadd.f32 %v603_v32, %v5283_v19  ;;  %v4312_v34 = vpop.f32.mrf.mxu0  ;;  %v3706_v19 = vld [vmem:[%s4868_s4 + $0x7b] sm:$0xff] }
 0x124   : >> { %v4294_v44 = vpop.f32.mrf.mxu1  ;;  %v1701_v61 = vpack.c.bf16 %v3707_v48, %v3706_v19  ;;  %v3752_v34 = vld [vmem:[%s4868_s4 + $0x75] sm:$0xff] }
 0x125   : >> { %v717_v56 = vpop.f32.mrf.mxu0  ;;  %4530 = vmatmul.mubr.msk.bf16.gmra.mxu0 %vm215_vm2, %v1816_v31 }
 0x126   : >> { %v608_v37 = vpop.f32.mrf.mxu1  ;;  %v5356_v40 = vadd.f32 %v717_v56, %v626_v35  ;;  %4512 = vmatmul.mubr.msk.bf16.gmra.mxu1 %vm215_vm2, %v1700_v43  ;;  %4533 = vmatprep.mubr.msk.bf16.mxu0 %vm4803_vm1, %v4802_v2  ;;  %v1819_v35 = vpack.c.bf16 %v5392_v23, %v5392_v23 }
 0x127   : >> { %v628_v46 = vadd.f32 %v608_v37, %v5287_v26  ;;  %v4315_v47 = vpop.f32.mrf.mxu0  ;;  %4515 = vmatprep.mubr.msk.bf16.mxu1 %vm4803_vm1, %v4802_v2  ;;  %v3794_v37 = vld [vmem:[%s5895_s1 + $0x48] sm:$0xf] }
 0x128   : >> { %v4297_v55 = vpop.f32.mrf.mxu1  ;;  %v2307_v48 = vsel %vm231_vm0, %v3794_v37, 0 }
 0x129   : >> { %v720_v57 = vpop.f32.mrf.mxu0 }
 0x12a   : >> { %v611_v59 = vpop.f32.mrf.mxu1  ;;  %v5368_v60 = vadd.f32 %v720_v57, %v627_v52  ;;  %v3751_v52 = vld [vmem:[%s4868_s4 + $0x6d] sm:$0xff] }
 0x12b   : >> { %v629_v63 = vadd.f32 %v611_v59, %v5298_v33  ;;  %v4316_v1 = vpop.f32.mrf.mxu0  ;;  %v3708_v33 = vld [vmem:[%s4868_s4 + $0x8b] sm:$0xff]  ;;  %v2050_v50 = vpack.c.bf16 %v3752_v34, %v3751_v52 }
 0x12c   : >> { %v4298_v26 = vpop.f32.mrf.mxu1  ;;  %v1702_v16 = vpack.c.bf16 %v3708_v33, %v3708_v33 }
 0x12d   : >> { %v725_v3 = vpop.f32.mrf.mxu0  ;;  %4534 = vmatmul.mubr.msk.bf16.gmra.mxu0 %vm215_vm2, %v1817_v58 }
 0x12e   : >> { %v616_v21 = vpop.f32.mrf.mxu1  ;;  %v5372_v5 = vadd.f32 %v725_v3, %v628_v46  ;;  %4516 = vmatmul.mubr.msk.bf16.gmra.mxu1 %vm215_vm2, %v1701_v61  ;;  %4537 = vmatprep.mubr.msk.bf16.mxu0 %vm4803_vm1, %v4802_v2  ;;  %v3753_v61 = vld [vmem:[%s4868_s4 + $0x7d] sm:$0xff] }
 0x12f   : >> { %v630_v9 = vadd.f32 %v616_v21, %v5301_v51  ;;  %v4319_v12 = vpop.f32.mrf.mxu0  ;;  %4519 = vmatprep.mubr.msk.bf16.mxu1 %vm4803_vm1, %v4802_v2 }
 0x130   : >> { %v4301_v13 = vpop.f32.mrf.mxu1 }
 0x131   : >> { %v728_v38 = vpop.f32.mrf.mxu0 }
 0x132   : >> { %v619_v14 = vpop.f32.mrf.mxu1  ;;  %v5383_v15 = vadd.f32 %v728_v38, %v629_v63  ;;  %v3754_v63 = vld [vmem:[%s4868_s4 + $0x85] sm:$0xff] }
 0x133   : >> { %v4320_v17 = vpop.f32.mrf.mxu0  ;;  %v2051_v6 = vpack.c.bf16 %v3754_v63, %v3753_v61  ;;  %v3769_v61 = vld [vmem:[%s4868_s4 + $0x76] sm:$0xff] }
 0x134   : >> { %v4302_v18 = vpop.f32.mrf.mxu1  ;;  %v3756_v17 = vld [vmem:[%s4868_s4 + $0x95] sm:$0xff] }
 0x135   : >> { %v733_v20 = vpop.f32.mrf.mxu0  ;;  %4538 = vmatmul.mubr.msk.bf16.gmra.mxu0 %vm215_vm2, %v1818_v10 }
 0x136   : >> { %v5386_v22 = vadd.f32 %v733_v20, %v630_v9  ;;  %v820_v51 = vpop.f32.mrf.mxu1  ;;  %4520 = vmatmul.mubr.msk.bf16.gmra.mxu1 %vm215_vm2, %v1702_v16  ;;  %4541 = vmatprep.mubr.msk.bf16.mxu0 %vm4803_vm1, %v4802_v2  ;;  %v3755_v16 = vld [vmem:[%s4868_s4 + $0x8d] sm:$0xff] }
 0x137   : >> { %v858_v36 = vadd.f32 %v820_v51, %v5318_v11  ;;  %v4323_v24 = vpop.f32.mrf.mxu0  ;;  %4547 = vmatprep.mubr.msk.bf16.mxu1 %vm4803_vm1, %v4802_v2  ;;  %v5458_v51 = vld [vmem:[%s4868_s4 + $0xa4] sm:$0xff] }
 0x138   : >> { %v4329_v25 = vpop.f32.mrf.mxu1  ;;  %v2052_v24 = vpack.c.bf16 %v3756_v17, %v3755_v16  ;;  %v3786_v16 = vld [vmem:[%s4868_s4 + $0x77] sm:$0xff] }
 0x139   : >> { %v736_v27 = vpop.f32.mrf.mxu0 }
 0x13a   : >> { %v823_v62 = vpop.f32.mrf.mxu1 }
 0x13b   : >> { %v859_v29 = vadd.f32 %v823_v62, %v5334_v39  ;;  %v4324_v30 = vpop.f32.mrf.mxu0 }
 0x13c   : >> { %v4330_v11 = vpop.f32.mrf.mxu1 }
 0x13d   : >> { %v937_v31 = vpop.f32.mrf.mxu0  ;;  %4542 = vmatmul.mubr.msk.bf16.gmra.mxu0 %vm215_vm2, %v1819_v35 }
 0x13e   : >> { %v828_v32 = vpop.f32.mrf.mxu1  ;;  %v5405_v43 = vadd.f32 %v937_v31, %v858_v36  ;;  %4548 = vmatmul.mubr.msk.bf16.vlgmr.msra.gmra.mxu1 %vm215_vm2, %v1817_v58  ;;  %4569 = vmatprep.mubr.msk.bf16.mxu0 %vm4803_vm1, %v4802_v2  ;;  %v3758_v31 = vld [vmem:[%s4868_s4 + $0xa5] sm:$0xff] }
 0x13f   : >> { %v860_v44 = vadd.f32 %v828_v32, %v5339_v28  ;;  %v4351_v39 = vpop.f32.mrf.mxu0  ;;  %4590 = vmatpush3.bf16.msra.mxu1 %v2190_v45  ;;  %4551 = vmatprep.mubr.msk.bf16.mxu1 %vm4803_vm1, %v4802_v2  ;;  %v3757_v45 = vld [vmem:[%s4868_s4 + $0x9d] sm:$0xff] }
 0x140   : >> { %v4333_v56 = vpop.f32.mrf.mxu1  ;;  %4633 = vmatprep.subr.bf16.mxu1 %v4802_v2  ;;  %v2053_v39 = vpack.c.bf16 %v3758_v31, %v3757_v45 }
 0x141   : >> { %v940_v42 = vpop.f32.mrf.mxu0 }
 0x142   : >> { %v831_v46 = vpop.f32.mrf.mxu1  ;;  %v5419_v47 = vadd.f32 %v940_v42, %v859_v29 }
 0x143   : >> { %v861_v28 = vadd.f32 %v831_v46, %v5352_v8  ;;  %v4352_v19 = vpop.f32.mrf.mxu0  ;;  %v5435_v8 = vld [vmem:[%s4868_s4 + $0x94] sm:$0xff] }
 0x144   : >> { %v4334_v55 = vpop.f32.mrf.mxu1 }
 0x145   : >> { %v945_v57 = vpop.f32.mrf.mxu0  ;;  %4570 = vmatmul.mubr.msk.bf16.vlgmr.msra.gmra.mxu0 %vm215_vm2, %v2050_v50 }
 0x146   : >> { %v836_v58 = vpop.f32.mrf.mxu1  ;;  %v5424_v59 = vadd.f32 %v945_v57, %v860_v44  ;;  %4552 = vmatmul.mubr.msk.bf16.gmra.mxu1 %vm215_vm2, %v1818_v10  ;;  %4612 = vmatpush3.bf16.msra.mxu0 %v2307_v48  ;;  %v3759_v48 = vld [vmem:[%s4868_s4 + $0xad] sm:$0xff] }
 0x147   : >> { %v862_v1 = vadd.f32 %v836_v58, %v5356_v40  ;;  %v4355_v26 = vpop.f32.mrf.mxu0  ;;  %4555 = vmatprep.mubr.msk.bf16.mxu1 %vm4803_vm1, %v4802_v2  ;;  %4573 = vmatprep.mubr.msk.bf16.mxu0 %vm4803_vm1, %v4802_v2  ;;  %v1935_v40 = vpack.c.bf16 %v5435_v8, %v5392_v23  ;;  %v3768_v58 = vld [vmem:[%s4868_s4 + $0x6e] sm:$0xff] }
 0x148   : >> { %v4337_v3 = vpop.f32.mrf.mxu1  ;;  %4655 = vmatprep.subr.bf16.mxu0 %v4802_v2  ;;  %v2054_v26 = vpack.c.bf16 %v3759_v48, %v3759_v48 }
 0x149   : >> { %v948_v21 = vpop.f32.mrf.mxu0  ;;  %v3811_v3 = vld [vmem:[%s5895_s1 + $0x4c] sm:$0xf] }
 0x14a   : >> { %v839_v7 = vpop.f32.mrf.mxu1  ;;  %v5438_v9 = vadd.f32 %v948_v21, %v861_v28 }
 0x14b   : >> { %v863_v12 = vadd.f32 %v839_v7, %v5368_v60  ;;  %v4356_v33 = vpop.f32.mrf.mxu0  ;;  %v5455_v60 = vld [vmem:[%s4868_s4 + $0x9c] sm:$0xff] }
 0x14c   : >> { %v4338_v13 = vpop.f32.mrf.mxu1 }
 0x14d   : >> { %v953_v38 = vpop.f32.mrf.mxu0  ;;  %4574 = vmatmul.mubr.msk.bf16.gmra.mxu0 %vm215_vm2, %v2051_v6  ;;  %v2167_v6 = vpack.c.bf16 %v3769_v61, %v3768_v58 }
 0x14e   : >> { %v844_v10 = vpop.f32.mrf.mxu1  ;;  %v5444_v14 = vadd.f32 %v953_v38, %v862_v1  ;;  %4556 = vmatmul.mubr.msk.bf16.gmra.mxu1 %vm215_vm2, %v1935_v40  ;;  %4577 = vmatprep.mubr.msk.bf16.mxu0 %vm4803_vm1, %v4802_v2 }
 0x14f   : >> { %v864_v18 = vadd.f32 %v844_v10, %v5372_v5  ;;  %v4359_v20 = vpop.f32.mrf.mxu0  ;;  %4559 = vmatprep.mubr.msk.bf16.mxu1 %vm4803_vm1, %v4802_v2  ;;  %v1936_v5 = vpack.c.bf16 %v5458_v51, %v5455_v60  ;;  %v3785_v10 = vld [vmem:[%s4868_s4 + $0x6f] sm:$0xff] }
 0x150   : >> { %v4341_v23 = vpop.f32.mrf.mxu1  ;;  %v3771_v20 = vld [vmem:[%s4868_s4 + $0x86] sm:$0xff] }
 0x151   : >> { %v956_v36 = vpop.f32.mrf.mxu0 }
 0x152   : >> { %v847_v25 = vpop.f32.mrf.mxu1  ;;  %v5460_v27 = vadd.f32 %v956_v36, %v863_v12  ;;  %v2424_v12 = vsel %vm231_vm0, %v3811_v3, 0  ;;  %v3828_v36 = vld [vmem:[%s5895_s1 + $0x50] sm:$0xf] }
 0x153   : >> { %v865_v35 = vadd.f32 %v847_v25, %v5383_v15  ;;  %v4360_v41 = vpop.f32.mrf.mxu0  ;;  %v5477_v15 = vld [vmem:[%s4868_s4 + $0xac] sm:$0xff]  ;;  %v2284_v25 = vpack.c.bf16 %v3786_v16, %v3785_v10 }
 0x154   : >> { %v4342_v62 = vpop.f32.mrf.mxu1  ;;  %v1937_v42 = vpack.c.bf16 %v5477_v15, %v5477_v15 }
 0x155   : >> { %v961_v29 = vpop.f32.mrf.mxu0  ;;  %4578 = vmatmul.mubr.msk.bf16.gmra.mxu0 %vm215_vm2, %v2052_v24 }
 0x156   : >> { %v852_v30 = vpop.f32.mrf.mxu1  ;;  %v5466_v11 = vadd.f32 %v961_v29, %v864_v18  ;;  %4560 = vmatmul.mubr.msk.bf16.gmra.mxu1 %vm215_vm2, %v1936_v5  ;;  %4581 = vmatprep.mubr.msk.bf16.mxu0 %vm4803_vm1, %v4802_v2  ;;  %v3770_v18 = vld [vmem:[%s4868_s4 + $0x7e] sm:$0xff]  ;;  %v2542_v29 = vsel %vm231_vm0, %v3828_v36, 0 }
 0x157   : >> { %v866_v32 = vadd.f32 %v852_v30, %v5386_v22  ;;  %v4363_v52 = vpop.f32.mrf.mxu0  ;;  %4563 = vmatprep.mubr.msk.bf16.mxu1 %vm4803_vm1, %v4802_v2 }
 0x158   : >> { %v4345_v34 = vpop.f32.mrf.mxu1  ;;  %v3787_v52 = vld [vmem:[%s4868_s4 + $0x7f] sm:$0xff] }
 0x159   : >> { %v964_v44 = vpop.f32.mrf.mxu0  ;;  %v3788_v34 = vld [vmem:[%s4868_s4 + $0x87] sm:$0xff] }
 0x15a   : >> { %v855_v56 = vpop.f32.mrf.mxu1  ;;  %v5479_v37 = vadd.f32 %v964_v44, %v865_v35  ;;  %v2168_v35 = vpack.c.bf16 %v3771_v20, %v3770_v18  ;;  %v3791_v20 = vld [vmem:[%s4868_s4 + $0x9f] sm:$0xff] }
 0x15b   : >> { %v4364_v50 = vpop.f32.mrf.mxu0  ;;  %v3773_v56 = vld [vmem:[%s4868_s4 + $0x96] sm:$0xff] }
 0x15c   : >> { %v4346_v22 = vpop.f32.mrf.mxu1 }
 0x15d   : >> { %v969_v46 = vpop.f32.mrf.mxu0  ;;  %4582 = vmatmul.mubr.msk.bf16.gmra.mxu0 %vm215_vm2, %v2053_v39  ;;  %v3772_v39 = vld [vmem:[%s4868_s4 + $0x8e] sm:$0xff]  ;;  %v2285_v22 = vpack.c.bf16 %v3788_v34, %v3787_v52 }
 0x15e   : >> { %v5484_v28 = vadd.f32 %v969_v46, %v866_v32  ;;  %v1054_v19 = vpop.f32.mrf.mxu1  ;;  %4564 = vmatmul.mubr.msk.bf16.gmra.mxu1 %vm215_vm2, %v1937_v42  ;;  %4585 = vmatprep.mubr.msk.bf16.mxu0 %vm4803_vm1, %v4802_v2  ;;  %v3793_v34 = vld [vmem:[%s4868_s4 + $0xaf] sm:$0xff] }
 0x15f   : >> { %v1092_v55 = vadd.f32 %v1054_v19, %v5405_v43  ;;  %v4367_v57 = vpop.f32.mrf.mxu0  ;;  %4591 = vmatprep.mubr.msk.bf16.mxu1 %vm4803_vm1, %v4802_v2 }
 0x160   : >> { %v4373_v63 = vpop.f32.mrf.mxu1 }
 0x161   : >> { %v972_v1 = vpop.f32.mrf.mxu0 }
 0x162   : >> { %v1057_v21 = vpop.f32.mrf.mxu1  ;;  %v3789_v1 = vld [vmem:[%s4868_s4 + $0x8f] sm:$0xff] }
 0x163   : >> { %v1093_v7 = vadd.f32 %v1057_v21, %v5419_v47  ;;  %v4368_v43 = vpop.f32.mrf.mxu0 }
 0x164   : >> { %v4374_v40 = vpop.f32.mrf.mxu1 }
 0x165   : >> { %v1171_v33 = vpop.f32.mrf.mxu0  ;;  %4586 = vmatmul.mubr.msk.bf16.gmra.mxu0 %vm215_vm2, %v2054_v26  ;;  %v3790_v26 = vld [vmem:[%s4868_s4 + $0x97] sm:$0xff] }
 0x166   : >> { %v1062_v13 = vpop.f32.mrf.mxu1  ;;  %v5501_v38 = vadd.f32 %v1171_v33, %v1092_v55  ;;  %4592 = vmatmul.mubr.msk.bf16.vlgmr.msra.gmra.mxu1 %vm215_vm2, %v2167_v6  ;;  %4613 = vmatprep.mubr.msk.bf16.mxu0 %vm4803_vm1, %v4802_v2  ;;  %v3775_v6 = vld [vmem:[%s4868_s4 + $0xa6] sm:$0xff]  ;;  %v2286_v40 = vpack.c.bf16 %v3790_v26, %v3789_v1  ;;  %v3819_v1 = vld [vmem:[%s4868_s4 + $0x90] sm:$0xff]  ;;  %v3820_v26 = vld [vmem:[%s4868_s4 + $0x98] sm:$0xff] }
 0x167   : >> { %v1094_v47 = vadd.f32 %v1062_v13, %v5424_v59  ;;  %v4395_v17 = vpop.f32.mrf.mxu0  ;;  %4634 = vmatpush3.bf16.msra.mxu1 %v2424_v12  ;;  %4595 = vmatprep.mubr.msk.bf16.mxu1 %vm4803_vm1, %v4802_v2 }
 0x168   : >> { %v4377_v23 = vpop.f32.mrf.mxu1  ;;  %4677 = vmatprep.subr.bf16.mxu1 %v4802_v2 }
 0x169   : >> { %v1174_v24 = vpop.f32.mrf.mxu0  ;;  %v3792_v23 = vld [vmem:[%s4868_s4 + $0xa7] sm:$0xff] }
 0x16a   : >> { %v1065_v5 = vpop.f32.mrf.mxu1  ;;  %v5517_v59 = vadd.f32 %v1174_v24, %v1093_v7 }
 0x16b   : >> { %v1095_v41 = vadd.f32 %v1065_v5, %v5438_v9  ;;  %v4396_v62 = vpop.f32.mrf.mxu0 }
 0x16c   : >> { %v4378_v30 = vpop.f32.mrf.mxu1 }
 0x16d   : >> { %v1179_v45 = vpop.f32.mrf.mxu0  ;;  %4614 = vmatmul.mubr.msk.bf16.vlgmr.msra.gmra.mxu0 %vm215_vm2, %v2284_v25 }
 0x16e   : >> { %v1070_v31 = vpop.f32.mrf.mxu1  ;;  %v5522_v32 = vadd.f32 %v1179_v45, %v1094_v47  ;;  %4596 = vmatmul.mubr.msk.bf16.gmra.mxu1 %vm215_vm2, %v2168_v35  ;;  %4656 = vmatpush3.bf16.msra.mxu0 %v2542_v29  ;;  %v2287_v35 = vpack.c.bf16 %v3792_v23, %v3791_v20 }
 0x16f   : >> { %v1096_v44 = vadd.f32 %v1070_v31, %v5444_v14  ;;  %v4399_v9 = vpop.f32.mrf.mxu0  ;;  %4599 = vmatprep.mubr.msk.bf16.mxu1 %vm4803_vm1, %v4802_v2  ;;  %4617 = vmatprep.mubr.msk.bf16.mxu0 %vm4803_vm1, %v4802_v2  ;;  %v2169_v14 = vpack.c.bf16 %v3773_v56, %v3772_v39 }
 0x170   : >> { %v4381_v42 = vpop.f32.mrf.mxu1  ;;  %4699 = vmatprep.subr.bf16.mxu0 %v4802_v2 }
 0x171   : >> { %v1182_v50 = vpop.f32.mrf.mxu0  ;;  %v2288_v42 = vpack.c.bf16 %v3793_v34, %v3793_v34 }
 0x172   : >> { %v1073_v46 = vpop.f32.mrf.mxu1  ;;  %v5535_v19 = vadd.f32 %v1182_v50, %v1095_v41  ;;  %v3845_v50 = vld [vmem:[%s5895_s1 + $0x54] sm:$0xf] }
 0x173   : >> { %v1097_v48 = vadd.f32 %v1073_v46, %v5460_v27  ;;  %v4400_v55 = vpop.f32.mrf.mxu0  ;;  %v3774_v27 = vld [vmem:[%s4868_s4 + $0x9e] sm:$0xff]  ;;  %v2401_v46 = vpack.c.bf16 %v5210_v53, %v5196_v49 }
 0x174   : >> { %v4382_v57 = vpop.f32.mrf.mxu1  ;;  %v2170_v13 = vpack.c.bf16 %v3775_v6, %v3774_v27  ;;  %v2659_v55 = vsel %vm231_vm0, %v3845_v50, 0  ;;  %v2519_v27 = vpack.c.bf16 %v3820_v26, %v3819_v1 }
 0x175   : >> { %v1187_v58 = vpop.f32.mrf.mxu0  ;;  %4618 = vmatmul.mubr.msk.bf16.gmra.mxu0 %vm215_vm2, %v2285_v22 }
 0x176   : >> { %v1078_v61 = vpop.f32.mrf.mxu1  ;;  %v5539_v63 = vadd.f32 %v1187_v58, %v1096_v44  ;;  %4600 = vmatmul.mubr.msk.bf16.gmra.mxu1 %vm215_vm2, %v2169_v14  ;;  %4621 = vmatprep.mubr.msk.bf16.mxu0 %vm4803_vm1, %v4802_v2 }
 0x177   : >> { %v1098_v3 = vadd.f32 %v1078_v61, %v5466_v11  ;;  %v4403_v21 = vpop.f32.mrf.mxu0  ;;  %4603 = vmatprep.mubr.msk.bf16.mxu1 %vm4803_vm1, %v4802_v2 }
 0x178   : >> { %v4385_v7 = vpop.f32.mrf.mxu1 }
 0x179   : >> { %v1190_v43 = vpop.f32.mrf.mxu0 }
 0x17a   : >> { %v1081_v12 = vpop.f32.mrf.mxu1  ;;  %v5551_v33 = vadd.f32 %v1190_v43, %v1097_v48 }
 0x17b   : >> { %v1099_v10 = vadd.f32 %v1081_v12, %v5479_v37  ;;  %v4404_v16 = vpop.f32.mrf.mxu0  ;;  %v3776_v37 = vld [vmem:[%s4868_s4 + $0xae] sm:$0xff] }
 0x17c   : >> { %v4386_v11 = vpop.f32.mrf.mxu1  ;;  %v2171_v29 = vpack.c.bf16 %v3776_v37, %v3776_v37 }
 0x17d   : >> { %v1195_v47 = vpop.f32.mrf.mxu0  ;;  %4622 = vmatmul.mubr.msk.bf16.gmra.mxu0 %vm215_vm2, %v2286_v40 }
 0x17e   : >> { %v1086_v17 = vpop.f32.mrf.mxu1  ;;  %v5555_v18 = vadd.f32 %v1195_v47, %v1098_v3  ;;  %4604 = vmatmul.mubr.msk.bf16.gmra.mxu1 %vm215_vm2, %v2170_v13  ;;  %4625 = vmatprep.mubr.msk.bf16.mxu0 %vm4803_vm1, %v4802_v2  ;;  %v3862_v3 = vld [vmem:[%s5895_s1 + $0x58] sm:$0xf]  ;;  %v3821_v47 = vld [vmem:[%s4868_s4 + $0xa0] sm:$0xff] }
 0x17f   : >> { %v1100_v36 = vadd.f32 %v1086_v17, %v5484_v28  ;;  %v4407_v24 = vpop.f32.mrf.mxu0  ;;  %4607 = vmatprep.mubr.msk.bf16.mxu1 %vm4803_vm1, %v4802_v2  ;;  %v2776_v12 = vsel %vm231_vm0, %v3862_v3, 0  ;;  %v3822_v17 = vld [vmem:[%s4868_s4 + $0xa8] sm:$0xff] }
 0x180   : >> { %v4389_v25 = vpop.f32.mrf.mxu1  ;;  %v2520_v23 = vpack.c.bf16 %v3822_v17, %v3821_v47 }
 0x181   : >> { %v1198_v5 = vpop.f32.mrf.mxu0 }
 0x182   : >> { %v1089_v41 = vpop.f32.mrf.mxu1  ;;  %v5566_v62 = vadd.f32 %v1198_v5, %v1099_v10 }
 0x183   : >> { %v4408_v30 = vpop.f32.mrf.mxu0 }
 0x184   : >> { %v4390_v45 = vpop.f32.mrf.mxu1  ;;  %v3824_v30 = vld [vmem:[%s4868_s4 + $0xb8] sm:$0xff] }
 0x185   : >> { %v1203_v31 = vpop.f32.mrf.mxu0  ;;  %4626 = vmatmul.mubr.msk.bf16.gmra.mxu0 %vm215_vm2, %v2287_v35 }
 0x186   : >> { %v5569_v52 = vadd.f32 %v1203_v31, %v1100_v36  ;;  %v1288_v28 = vpop.f32.mrf.mxu1  ;;  %4608 = vmatmul.mubr.msk.bf16.gmra.mxu1 %vm215_vm2, %v2171_v29  ;;  %4629 = vmatprep.mubr.msk.bf16.mxu0 %vm4803_vm1, %v4802_v2  ;;  %v3823_v29 = vld [vmem:[%s4868_s4 + $0xb0] sm:$0xff] }
 0x187   : >> { %v1326_v44 = vadd.f32 %v1288_v28, %v5501_v38  ;;  %v4411_v9 = vpop.f32.mrf.mxu0  ;;  %4635 = vmatprep.mubr.msk.bf16.mxu1 %vm4803_vm1, %v4802_v2  ;;  %v2521_v34 = vpack.c.bf16 %v3824_v30, %v3823_v29  ;;  %v2405_v26 = vpack.c.bf16 %v3823_v29, %v3823_v29  ;;  %v3896_v29 = vld [vmem:[%s5895_s1 + $0x60] sm:$0xf] }
 0x188   : >> { %v4417_v39 = vpop.f32.mrf.mxu1 }
 0x189   : >> { %v1206_v56 = vpop.f32.mrf.mxu0 }
 0x18a   : >> { %v1291_v22 = vpop.f32.mrf.mxu1 }
 0x18b   : >> { %v1327_v14 = vadd.f32 %v1291_v22, %v5517_v59  ;;  %v4412_v38 = vpop.f32.mrf.mxu0 }
 0x18c   : >> { %v4418_v48 = vpop.f32.mrf.mxu1 }
 0x18d   : >> { %v1406_v57 = vpop.f32.mrf.mxu0  ;;  %4630 = vmatmul.mubr.msk.bf16.gmra.mxu0 %vm215_vm2, %v2288_v42 }
 0x18e   : >> { %v1296_v58 = vpop.f32.mrf.mxu1  ;;  %v5586_v61 = vadd.f32 %v1406_v57, %v1326_v44  ;;  %4636 = vmatmul.mubr.msk.bf16.vlgmr.msra.gmra.mxu1 %vm215_vm2, %v2401_v46  ;;  %4657 = vmatprep.mubr.msk.bf16.mxu0 %vm4803_vm1, %v4802_v2  ;;  %v3825_v46 = vld [vmem:[%s4868_s4 + $0xc0] sm:$0xff] }
 0x18f   : >> { %v1328_v49 = vadd.f32 %v1296_v58, %v5522_v32  ;;  %v4439_v53 = vpop.f32.mrf.mxu0  ;;  %4678 = vmatpush3.bf16.msra.mxu1 %v2659_v55  ;;  %4639 = vmatprep.mubr.msk.bf16.mxu1 %vm4803_vm1, %v4802_v2  ;;  %v2402_v32 = vpack.c.bf16 %v5224_v4, %v5213_v54 }
 0x190   : >> { %v4421_v59 = vpop.f32.mrf.mxu1  ;;  %4721 = vmatprep.subr.bf16.mxu1 %v4802_v2 }
 0x191   : >> { %v1409_v21 = vpop.f32.mrf.mxu0 }
 0x192   : >> { %v1299_v6 = vpop.f32.mrf.mxu1  ;;  %v5600_v7 = vadd.f32 %v1409_v21, %v1327_v14  ;;  %v3826_v14 = vld [vmem:[%s4868_s4 + $0xc8] sm:$0xff]  ;;  %v3827_v21 = vld [vmem:[%s4868_s4 + $0xd0] sm:$0xff] }
 0x193   : >> { %v1329_v43 = vadd.f32 %v1299_v6, %v5535_v19  ;;  %v4440_v40 = vpop.f32.mrf.mxu0  ;;  %v2522_v57 = vpack.c.bf16 %v3826_v14, %v3825_v46  ;;  %v3856_v46 = vld [vmem:[%s4868_s4 + $0xaa] sm:$0xff] }
 0x194   : >> { %v4422_v13 = vpop.f32.mrf.mxu1 }
 0x195   : >> { %v1414_v10 = vpop.f32.mrf.mxu0  ;;  %4658 = vmatmul.mubr.msk.bf16.vlgmr.msra.gmra.mxu0 %vm215_vm2, %v2519_v27  ;;  %v2523_v13 = vpack.c.bf16 %v3827_v21, %v3827_v21 }
 0x196   : >> { %v1304_v16 = vpop.f32.mrf.mxu1  ;;  %v5607_v11 = vadd.f32 %v1414_v10, %v1328_v49  ;;  %4640 = vmatmul.mubr.msk.bf16.gmra.mxu1 %vm215_vm2, %v2402_v32  ;;  %4700 = vmatpush3.bf16.msra.mxu0 %v2776_v12  ;;  %v3836_v32 = vld [vmem:[%s4868_s4 + $0x91] sm:$0xff]  ;;  %v3879_v10 = vld [vmem:[%s5895_s1 + $0x5c] sm:$0xf] }
 0x197   : >> { %v1330_v20 = vadd.f32 %v1304_v16, %v5539_v63  ;;  %v4443_v54 = vpop.f32.mrf.mxu0  ;;  %4643 = vmatprep.mubr.msk.bf16.mxu1 %vm4803_vm1, %v4802_v2  ;;  %4661 = vmatprep.mubr.msk.bf16.mxu0 %vm4803_vm1, %v4802_v2 }
 0x198   : >> { %v4425_v4 = vpop.f32.mrf.mxu1  ;;  %4743 = vmatprep.subr.bf16.mxu0 %v4802_v2  ;;  %v2893_v54 = vsel %vm231_vm0, %v3879_v10, 0 }
 0x199   : >> { %v1417_v19 = vpop.f32.mrf.mxu0 }
 0x19a   : >> { %v1307_v36 = vpop.f32.mrf.mxu1  ;;  %v5618_v24 = vadd.f32 %v1417_v19, %v1329_v43  ;;  %v3837_v43 = vld [vmem:[%s4868_s4 + $0x99] sm:$0xff] }
 0x19b   : >> { %v1331_v37 = vadd.f32 %v1307_v36, %v5551_v33  ;;  %v4444_v63 = vpop.f32.mrf.mxu0  ;;  %v2636_v47 = vpack.c.bf16 %v3837_v43, %v3836_v32  ;;  %v3853_v36 = vld [vmem:[%s4868_s4 + $0x92] sm:$0xff]  ;;  %v3858_v32 = vld [vmem:[%s4868_s4 + $0xba] sm:$0xff] }
 0x19c   : >> { %v4426_v25 = vpop.f32.mrf.mxu1 }
 0x19d   : >> { %v1422_v5 = vpop.f32.mrf.mxu0  ;;  %4662 = vmatmul.mubr.msk.bf16.gmra.mxu0 %vm215_vm2, %v2520_v23  ;;  %v3838_v25 = vld [vmem:[%s4868_s4 + $0xa1] sm:$0xff] }
 0x19e   : >> { %v1312_v35 = vpop.f32.mrf.mxu1  ;;  %v5622_v41 = vadd.f32 %v1422_v5, %v1330_v20  ;;  %4644 = vmatmul.mubr.msk.bf16.gmra.mxu1 %vm215_vm2, %v2519_v27  ;;  %4665 = vmatprep.mubr.msk.bf16.mxu0 %vm4803_vm1, %v4802_v2  ;;  %v3839_v5 = vld [vmem:[%s4868_s4 + $0xa9] sm:$0xff] }
 0x19f   : >> { %v1332_v45 = vadd.f32 %v1312_v35, %v5555_v18  ;;  %v4447_v31 = vpop.f32.mrf.mxu0  ;;  %4647 = vmatprep.mubr.msk.bf16.mxu1 %vm4803_vm1, %v4802_v2 }
 0x1a0   : >> { %v4429_v33 = vpop.f32.mrf.mxu1 }
 0x1a1   : >> { %v1425_v28 = vpop.f32.mrf.mxu0 }
 0x1a2   : >> { %v1315_v44 = vpop.f32.mrf.mxu1  ;;  %v5632_v9 = vadd.f32 %v1425_v28, %v1331_v37  ;;  %v3854_v37 = vld [vmem:[%s4868_s4 + $0x9a] sm:$0xff] }
 0x1a3   : >> { %v1333_v39 = vadd.f32 %v1315_v44, %v5566_v62  ;;  %v4448_v56 = vpop.f32.mrf.mxu0  ;;  %v3010_v44 = vsel %vm231_vm0, %v3896_v29, 0 }
 0x1a4   : >> { %v4430_v42 = vpop.f32.mrf.mxu1 }
 0x1a5   : >> { %v1430_v50 = vpop.f32.mrf.mxu0  ;;  %4666 = vmatmul.mubr.msk.bf16.gmra.mxu0 %vm215_vm2, %v2521_v34 }
 0x1a6   : >> { %v1320_v18 = vpop.f32.mrf.mxu1  ;;  %v5636_v22 = vadd.f32 %v1430_v50, %v1332_v45  ;;  %4648 = vmatmul.mubr.msk.bf16.gmra.mxu1 %vm215_vm2, %v2520_v23  ;;  %4669 = vmatprep.mubr.msk.bf16.mxu0 %vm4803_vm1, %v4802_v2  ;;  %v2753_v45 = vpack.c.bf16 %v3854_v37, %v3853_v36  ;;  %v3859_v37 = vld [vmem:[%s4868_s4 + $0xc2] sm:$0xff] }
 0x1a7   : >> { %v1334_v38 = vadd.f32 %v1320_v18, %v5569_v52  ;;  %v4451_v48 = vpop.f32.mrf.mxu0  ;;  %4651 = vmatprep.mubr.msk.bf16.mxu1 %vm4803_vm1, %v4802_v2  ;;  %v3855_v18 = vld [vmem:[%s4868_s4 + $0xa2] sm:$0xff] }
 0x1a8   : >> { %v4433_v62 = vpop.f32.mrf.mxu1  ;;  %v3841_v48 = vld [vmem:[%s4868_s4 + $0xb9] sm:$0xff] }
 0x1a9   : >> { %v1433_v55 = vpop.f32.mrf.mxu0 }
 0x1aa   : >> { %v1323_v58 = vpop.f32.mrf.mxu1  ;;  %v5646_v1 = vadd.f32 %v1433_v55, %v1333_v39 }
 0x1ab   : >> { %v4452_v49 = vpop.f32.mrf.mxu0 }
 0x1ac   : >> { %v4434_v53 = vpop.f32.mrf.mxu1 }
 0x1ad   : >> { %v1438_v59 = vpop.f32.mrf.mxu0  ;;  %4670 = vmatmul.mubr.msk.bf16.gmra.mxu0 %vm215_vm2, %v2522_v57  ;;  %v2754_v57 = vpack.c.bf16 %v3856_v46, %v3855_v18  ;;  %v3870_v18 = vld [vmem:[%s4868_s4 + $0x93] sm:$0xff]  ;;  %v3871_v46 = vld [vmem:[%s4868_s4 + $0x9b] sm:$0xff] }
 0x1ae   : >> { %v5649_v52 = vadd.f32 %v1438_v59, %v1334_v38  ;;  %v1523_v3 = vpop.f32.mrf.mxu1  ;;  %4652 = vmatmul.mubr.msk.bf16.gmra.mxu1 %vm215_vm2, %v2405_v26  ;;  %4673 = vmatprep.mubr.msk.bf16.mxu0 %vm4803_vm1, %v4802_v2  ;;  %v3840_v38 = vld [vmem:[%s4868_s4 + $0xb1] sm:$0xff] }
 0x1af   : >> { %v1561_v27 = vadd.f32 %v1523_v3, %v5586_v61  ;;  %v4455_v6 = vpop.f32.mrf.mxu0  ;;  %4679 = vmatprep.mubr.msk.bf16.mxu1 %vm4803_vm1, %v4802_v2  ;;  %v2638_v49 = vpack.c.bf16 %v3841_v48, %v3840_v38 }
 0x1b0   : >> { %v4461_v40 = vpop.f32.mrf.mxu1  ;;  %v3857_v6 = vld [vmem:[%s4868_s4 + $0xb2] sm:$0xff] }
 0x1b1   : >> { %v1441_v12 = vpop.f32.mrf.mxu0 }
 0x1b2   : >> { %v1526_v16 = vpop.f32.mrf.mxu1  ;;  %v3843_v12 = vld [vmem:[%s4868_s4 + $0xc9] sm:$0xff] }
 0x1b3   : >> { %v1562_v17 = vadd.f32 %v1526_v16, %v5600_v7  ;;  %v4456_v61 = vpop.f32.mrf.mxu0  ;;  %v2755_v16 = vpack.c.bf16 %v3858_v32, %v3857_v6  ;;  %v2987_v32 = vpack.c.bf16 %v5455_v60, %v5435_v8 }
 0x1b4   : >> { %v4462_v20 = vpop.f32.mrf.mxu1 }
 0x1b5   : >> { %v1640_v4 = vpop.f32.mrf.mxu0  ;;  %4674 = vmatmul.mubr.msk.bf16.gmra.mxu0 %vm215_vm2, %v2523_v13 }
 0x1b6   : >> { %v1531_v19 = vpop.f32.mrf.mxu1  ;;  %v5666_v23 = vadd.f32 %v1640_v4, %v1561_v27  ;;  %4680 = vmatmul.mubr.msk.bf16.vlgmr.msra.gmra.mxu1 %vm215_vm2, %v2636_v47  ;;  %4701 = vmatprep.mubr.msk.bf16.mxu0 %vm4803_vm1, %v4802_v2 }
 0x1b7   : >> { %v1563_v7 = vadd.f32 %v1531_v19, %v5607_v11  ;;  %v4483_v63 = vpop.f32.mrf.mxu0  ;;  %4722 = vmatpush3.bf16.msra.mxu1 %v2893_v54  ;;  %4683 = vmatprep.mubr.msk.bf16.mxu1 %vm4803_vm1, %v4802_v2  ;;  %v2637_v11 = vpack.c.bf16 %v3839_v5, %v3838_v25 }
 0x1b8   : >> { %v4465_v35 = vpop.f32.mrf.mxu1 }
 0x1b9   : >> { %v1643_v30 = vpop.f32.mrf.mxu0 }
 0x1ba   : >> { %v1534_v31 = vpop.f32.mrf.mxu1  ;;  %v5681_v33 = vadd.f32 %v1643_v30, %v1562_v17 }
 0x1bb   : >> { %v1564_v28 = vadd.f32 %v1534_v31, %v5618_v24  ;;  %v4484_v34 = vpop.f32.mrf.mxu0 }
 0x1bc   : >> { %v4466_v39 = vpop.f32.mrf.mxu1 }
 0x1bd   : >> { %v1648_v56 = vpop.f32.mrf.mxu0  ;;  %4702 = vmatmul.mubr.msk.bf16.vlgmr.msra.gmra.mxu0 %vm215_vm2, %v2753_v45  ;;  %v3861_v39 = vld [vmem:[%s4868_s4 + $0xd2] sm:$0xff] }
 0x1be   : >> { %v1539_v42 = vpop.f32.mrf.mxu1  ;;  %v5686_v50 = vadd.f32 %v1648_v56, %v1563_v7  ;;  %4684 = vmatmul.mubr.msk.bf16.gmra.mxu1 %vm215_vm2, %v2637_v11  ;;  %4744 = vmatpush3.bf16.msra.mxu0 %v3010_v44  ;;  %v3860_v7 = vld [vmem:[%s4868_s4 + $0xca] sm:$0xff]  ;;  %v2757_v38 = vpack.c.bf16 %v3861_v39, %v3861_v39 }
 0x1bf   : >> { %v1565_v14 = vadd.f32 %v1539_v42, %v5622_v41  ;;  %v4487_v24 = vpop.f32.mrf.mxu0  ;;  %4687 = vmatprep.mubr.msk.bf16.mxu1 %vm4803_vm1, %v4802_v2  ;;  %4705 = vmatprep.mubr.msk.bf16.mxu0 %vm4803_vm1, %v4802_v2  ;;  %v2756_v29 = vpack.c.bf16 %v3860_v7, %v3859_v37 }
 0x1c0   : >> { %v4469_v62 = vpop.f32.mrf.mxu1 }
 0x1c1   : >> { %v1651_v55 = vpop.f32.mrf.mxu0  ;;  %v2870_v62 = vpack.c.bf16 %v3871_v46, %v3870_v18 }
 0x1c2   : >> { %v1542_v58 = vpop.f32.mrf.mxu1  ;;  %v5698_v26 = vadd.f32 %v1651_v55, %v1564_v28 }
 0x1c3   : >> { %v1566_v41 = vadd.f32 %v1542_v58, %v5632_v9  ;;  %v4488_v53 = vpop.f32.mrf.mxu0  ;;  %v3842_v9 = vld [vmem:[%s4868_s4 + $0xc1] sm:$0xff] }
 0x1c4   : >> { %v4470_v59 = vpop.f32.mrf.mxu1  ;;  %v2639_v61 = vpack.c.bf16 %v3843_v12, %v3842_v9 }
 0x1c5   : >> { %v1656_v3 = vpop.f32.mrf.mxu0  ;;  %4706 = vmatmul.mubr.msk.bf16.gmra.mxu0 %vm215_vm2, %v2754_v57 }
 0x1c6   : >> { %v1547_v21 = vpop.f32.mrf.mxu1  ;;  %v5702_v27 = vadd.f32 %v1656_v3, %v1565_v14  ;;  %4688 = vmatmul.mubr.msk.bf16.gmra.mxu1 %vm215_vm2, %v2638_v49  ;;  %4709 = vmatprep.mubr.msk.bf16.mxu0 %vm4803_vm1, %v4802_v2  ;;  %v3873_v3 = vld [vmem:[%s4868_s4 + $0xab] sm:$0xff] }
 0x1c7   : >> { %v1567_v43 = vadd.f32 %v1547_v21, %v5636_v22  ;;  %v4491_v40 = vpop.f32.mrf.mxu0  ;;  %4691 = vmatprep.mubr.msk.bf16.mxu1 %vm4803_vm1, %v4802_v2 }
 0x1c8   : >> { %v4473_v13 = vpop.f32.mrf.mxu1 }
 0x1c9   : >> { %v1659_v10 = vpop.f32.mrf.mxu0 }
 0x1ca   : >> { %v1550_v47 = vpop.f32.mrf.mxu1  ;;  %v5714_v17 = vadd.f32 %v1659_v10, %v1566_v41 }
 0x1cb   : >> { %v1568_v20 = vadd.f32 %v1550_v47, %v5646_v1  ;;  %v4492_v54 = vpop.f32.mrf.mxu0  ;;  %v3844_v1 = vld [vmem:[%s4868_s4 + $0xd1] sm:$0xff] }
 0x1cc   : >> { %v4474_v22 = vpop.f32.mrf.mxu1  ;;  %v2640_v31 = vpack.c.bf16 %v3844_v1, %v3844_v1 }
 0x1cd   : >> { %v1664_v4 = vpop.f32.mrf.mxu0  ;;  %4710 = vmatmul.mubr.msk.bf16.gmra.mxu0 %vm215_vm2, %v2755_v16  ;;  %v2988_v22 = vpack.c.bf16 %v5477_v15, %v5458_v51  ;;  %v3891_v51 = vld [vmem:[%s4868_s4 + $0xb4] sm:$0xff]  ;;  %v3892_v15 = vld [vmem:[%s4868_s4 + $0xbc] sm:$0xff] }
 0x1ce   : >> { %v1555_v19 = vpop.f32.mrf.mxu1  ;;  %v5718_v36 = vadd.f32 %v1664_v4, %v1567_v43  ;;  %4692 = vmatmul.mubr.msk.bf16.gmra.mxu1 %vm215_vm2, %v2639_v61  ;;  %4713 = vmatprep.mubr.msk.bf16.mxu0 %vm4803_vm1, %v4802_v2  ;;  %v3875_v61 = vld [vmem:[%s4868_s4 + $0xbb] sm:$0xff] }
 0x1cf   : >> { %v1569_v63 = vadd.f32 %v1555_v19, %v5649_v52  ;;  %v4495_v25 = vpop.f32.mrf.mxu0  ;;  %4695 = vmatprep.mubr.msk.bf16.mxu1 %vm4803_vm1, %v4802_v2 }
 0x1d0   : >> { %v4477_v5 = vpop.f32.mrf.mxu1 }
 0x1d1   : >> { %v1667_v35 = vpop.f32.mrf.mxu0 }
 0x1d2   : >> { %v1558_v30 = vpop.f32.mrf.mxu1  ;;  %v5729_v45 = vadd.f32 %v1667_v35, %v1568_v20 }
 0x1d3   : >> { %v4496_v11 = vpop.f32.mrf.mxu0  ;;  %v3877_v30 = vld [vmem:[%s4868_s4 + $0xcb] sm:$0xff] }
 0x1d4   : >> { %v4478_v28 = vpop.f32.mrf.mxu1 }
 0x1d5   : >> { %v1672_v34 = vpop.f32.mrf.mxu0  ;;  %4714 = vmatmul.mubr.msk.bf16.gmra.mxu0 %vm215_vm2, %v2756_v29  ;;  %v2989_v28 = vpack.c.bf16 %v3892_v15, %v3891_v51 }
 0x1d6   : >> { %v5732_v52 = vadd.f32 %v1672_v34, %v1569_v63  ;;  %v1757_v44 = vpop.f32.mrf.mxu1  ;;  %4696 = vmatmul.mubr.msk.bf16.gmra.mxu1 %vm215_vm2, %v2640_v31  ;;  %4717 = vmatprep.mubr.msk.bf16.mxu0 %vm4803_vm1, %v4802_v2 }
 0x1d7   : >> { %v1795_v56 = vadd.f32 %v1757_v44, %v5666_v23  ;;  %v4499_v42 = vpop.f32.mrf.mxu0  ;;  %4723 = vmatprep.mubr.msk.bf16.mxu1 %vm4803_vm1, %v4802_v2 }
 0x1d8   : >> { %v4505_v14 = vpop.f32.mrf.mxu1 }
 0x1d9   : >> { %v1675_v24 = vpop.f32.mrf.mxu0 }
 0x1da   : >> { %v1760_v48 = vpop.f32.mrf.mxu1  ;;  %v3893_v24 = vld [vmem:[%s4868_s4 + $0xc4] sm:$0xff] }
 0x1db   : >> { %v1796_v55 = vadd.f32 %v1760_v48, %v5681_v33  ;;  %v4500_v57 = vpop.f32.mrf.mxu0  ;;  %v3872_v33 = vld [vmem:[%s4868_s4 + $0xa3] sm:$0xff] }
 0x1dc   : >> { %v4506_v58 = vpop.f32.mrf.mxu1  ;;  %v2871_v9 = vpack.c.bf16 %v3873_v3, %v3872_v33 }
 0x1dd   : >> { %v1874_v49 = vpop.f32.mrf.mxu0  ;;  %4718 = vmatmul.mubr.msk.bf16.gmra.mxu0 %vm215_vm2, %v2757_v38  ;;  %v3894_v38 = vld [vmem:[%s4868_s4 + $0xcc] sm:$0xff] }
 0x1de   : >> { %v1765_v23 = vpop.f32.mrf.mxu1  ;;  %v5745_v41 = vadd.f32 %v1874_v49, %v1795_v56  ;;  %4724 = vmatmul.mubr.msk.bf16.vlgmr.msra.gmra.mxu1 %vm215_vm2, %v2870_v62  ;;  %4745 = vmatprep.mubr.msk.bf16.mxu0 %vm4803_vm1, %v4802_v2  ;;  %v2990_v58 = vpack.c.bf16 %v3894_v38, %v3893_v24 }
 0x1df   : >> { %v1797_v53 = vadd.f32 %v1765_v23, %v5686_v50  ;;  %v4527_v59 = vpop.f32.mrf.mxu0  ;;  %4727 = vmatprep.mubr.msk.bf16.mxu1 %vm4803_vm1, %v4802_v2 }
 0x1e0   : >> { %v4509_v21 = vpop.f32.mrf.mxu1 }
 0x1e1   : >> { %v1877_v6 = vpop.f32.mrf.mxu0 }
 0x1e2   : >> { %v1768_v43 = vpop.f32.mrf.mxu1  ;;  %v5757_v40 = vadd.f32 %v1877_v6, %v1796_v55 }
 0x1e3   : >> { %v1798_v12 = vadd.f32 %v1768_v43, %v5698_v26  ;;  %v4528_v50 = vpop.f32.mrf.mxu0  ;;  %v3874_v26 = vld [vmem:[%s4868_s4 + $0xb3] sm:$0xff] }
 0x1e4   : >> { %v4510_v13 = vpop.f32.mrf.mxu1  ;;  %v2872_v37 = vpack.c.bf16 %v3875_v61, %v3874_v26 }
 0x1e5   : >> { %v1882_v10 = vpop.f32.mrf.mxu0  ;;  %4746 = vmatmul.mubr.msk.bf16.vlgmr.msra.gmra.mxu0 %vm215_vm2, %v2987_v32 }
 0x1e6   : >> { %v1773_v16 = vpop.f32.mrf.mxu1  ;;  %v5761_v47 = vadd.f32 %v1882_v10, %v1797_v53  ;;  %4728 = vmatmul.mubr.msk.bf16.gmra.mxu1 %vm215_vm2, %v2871_v9  ;;  %4749 = vmatprep.mubr.msk.bf16.mxu0 %vm4803_vm1, %v4802_v2 }
 0x1e7   : >> { %v1799_v8 = vadd.f32 %v1773_v16, %v5702_v27  ;;  %v4531_v60 = vpop.f32.mrf.mxu0  ;;  %4731 = vmatprep.mubr.msk.bf16.mxu1 %vm4803_vm1, %v4802_v2 }
 0x1e8   : >> { %v4513_v20 = vpop.f32.mrf.mxu1 }
 0x1e9   : >> { %v1885_v54 = vpop.f32.mrf.mxu0 }
 0x1ea   : >> { %v1776_v4 = vpop.f32.mrf.mxu1  ;;  %v5773_v19 = vadd.f32 %v1885_v54, %v1798_v12 }
 0x1eb   : >> { %v1800_v27 = vadd.f32 %v1776_v4, %v5714_v17  ;;  %v4532_v7 = vpop.f32.mrf.mxu0  ;;  %v3876_v17 = vld [vmem:[%s4868_s4 + $0xc3] sm:$0xff] }
 0x1ec   : >> { %v4514_v63 = vpop.f32.mrf.mxu1  ;;  %v2873_v39 = vpack.c.bf16 %v3877_v30, %v3876_v17 }
 0x1ed   : >> { %v1890_v25 = vpop.f32.mrf.mxu0  ;;  %4750 = vmatmul.mubr.msk.bf16.gmra.mxu0 %vm215_vm2, %v2988_v22 }
 0x1ee   : >> { %v1781_v1 = vpop.f32.mrf.mxu1  ;;  %v5777_v5 = vadd.f32 %v1890_v25, %v1799_v8  ;;  %4732 = vmatmul.mubr.msk.bf16.gmra.mxu1 %vm215_vm2, %v2872_v37  ;;  %4753 = vmatprep.mubr.msk.bf16.mxu0 %vm4803_vm1, %v4802_v2 }
 0x1ef   : >> { %v1801_v35 = vadd.f32 %v1781_v1, %v5718_v36  ;;  %v4535_v29 = vpop.f32.mrf.mxu0  ;;  %4735 = vmatprep.mubr.msk.bf16.mxu1 %vm4803_vm1, %v4802_v2 }
 0x1f0   : >> { %v4517_v31 = vpop.f32.mrf.mxu1 }
 0x1f1   : >> { %v1893_v11 = vpop.f32.mrf.mxu0 }
 0x1f2   : >> { %v1784_v34 = vpop.f32.mrf.mxu1  ;;  %v5789_v44 = vadd.f32 %v1893_v11, %v1800_v27 }
 0x1f3   : >> { %v1802_v56 = vadd.f32 %v1784_v34, %v5729_v45  ;;  %v4536_v42 = vpop.f32.mrf.mxu0  ;;  %v3878_v45 = vld [vmem:[%s4868_s4 + $0xd3] sm:$0xff] }
 0x1f4   : >> { %v4518_v36 = vpop.f32.mrf.mxu1  ;;  %v2874_v53 = vpack.c.bf16 %v3878_v45, %v3878_v45 }
 0x1f5   : >> { %v1898_v18 = vpop.f32.mrf.mxu0  ;;  %4754 = vmatmul.mubr.msk.bf16.gmra.mxu0 %vm215_vm2, %v2989_v28 }
 0x1f6   : >> { %v1789_v46 = vpop.f32.mrf.mxu1  ;;  %v1918_v14 = vadd.f32 %v1898_v18, %v1801_v35  ;;  %4736 = vmatmul.mubr.msk.bf16.gmra.mxu1 %vm215_vm2, %v2873_v39  ;;  %4757 = vmatprep.mubr.msk.bf16.mxu0 %vm4803_vm1, %v4802_v2 }
 0x1f7   : >> { %v1803_v48 = vadd.f32 %v1789_v46, %v5732_v52  ;;  %v4539_v62 = vpop.f32.mrf.mxu0  ;;  %4739 = vmatprep.mubr.msk.bf16.mxu1 %vm4803_vm1, %v4802_v2  ;;  %v3895_v52 = vld [vmem:[%s4868_s4 + $0xd4] sm:$0xff]  ;;  %s3903_s4 = sshll.u32 %s4800_s25, 4  ;;  %s179_s25 = sadd.s32 1, %s4800_s25  }
 0x1f8   : >> { %v4521_v55 = vpop.f32.mrf.mxu1  ;;  %v2991_v50 = vpack.c.bf16 %v3895_v52, %v3895_v52  ;;  %s3137_s7 = scalar_lea.vmem [#allocation3], %s3903_s4  ;;  %p176_p5 = scmp.ge.s32.totalorder %s179_s25, 16  }
 0x1f9   : >> { %v1901_v57 = vpop.f32.mrf.mxu0 }
 0x1fa   : >> { %v1792_v49 = vpop.f32.mrf.mxu1  ;;  %v1919_v23 = vadd.f32 %v1901_v57, %v1802_v56 }
 0x1fb   : >> { %v4540_v59 = vpop.f32.mrf.mxu0 }
 0x1fc   : >> { %v4522_v33 = vpop.f32.mrf.mxu1 }
 0x1fd   : >> { %v1906_v3 = vpop.f32.mrf.mxu0  ;;  %4758 = vmatmul.mubr.msk.bf16.gmra.mxu0 %vm215_vm2, %v2990_v58 }
 0x1fe   : >> { %v1920_v21 = vadd.f32 %v1906_v3, %v1803_v48  ;;  %v1992_v6 = vpop.f32.mrf.mxu1  ;;  %4740 = vmatmul.mubr.msk.bf16.gmra.mxu1 %vm215_vm2, %v2874_v53  ;;  %4761 = vmatprep.mubr.msk.bf16.mxu0 %vm4803_vm1, %v4802_v2 }
 0x1ff   : >> { %v2030_v32 = vadd.f32 %v1992_v6, %v5745_v41  ;;  %v4543_v43 = vpop.f32.mrf.mxu0 }
 0x200   : >> { %v4549_v9 = vpop.f32.mrf.mxu1 }
 0x201   : >> { %v1909_v12 = vpop.f32.mrf.mxu0 }
 0x202   : >> { %v1995_v13 = vpop.f32.mrf.mxu1 }
 0x203   : >> { %v2031_v10 = vadd.f32 %v1995_v13, %v5757_v40  ;;  %v4544_v16 = vpop.f32.mrf.mxu0 }
 0x204   : >> { %v4550_v8 = vpop.f32.mrf.mxu1 }
 0x205   : >> { %v2109_v60 = vpop.f32.mrf.mxu0  ;;  %4762 = vmatmul.mubr.msk.bf16.gmra.mxu0 %vm215_vm2, %v2991_v50 }
 0x206   : >> { %v2000_v26 = vpop.f32.mrf.mxu1  ;;  %v2147_v61 = vadd.f32 %v2109_v60, %v2030_v32 }
 0x207   : >> { %v2032_v20 = vadd.f32 %v2000_v26, %v5761_v47  ;;  %v4571_v2 = vpop.f32.mrf.mxu0 }
 0x208   : >> { %v4553_v54 = vpop.f32.mrf.mxu1 }
 0x209   : >> { %v2112_v22 = vpop.f32.mrf.mxu0 }
 0x20a   : >> { %v2003_v41 = vpop.f32.mrf.mxu1  ;;  %v2148_v4 = vadd.f32 %v2112_v22, %v2031_v10 }
 0x20b   : >> { %v2033_v37 = vadd.f32 %v2003_v41, %v5773_v19  ;;  %v4572_v27 = vpop.f32.mrf.mxu0 }
 0x20c   : >> { %v4554_v7 = vpop.f32.mrf.mxu1 }
 0x20d   : >> { %v2117_v63 = vpop.f32.mrf.mxu0 }
 0x20e   : >> { %v2008_v40 = vpop.f32.mrf.mxu1  ;;  %v2149_v25 = vadd.f32 %v2117_v63, %v2032_v20 }
 0x20f   : >> { %v2034_v1 = vadd.f32 %v2008_v40, %v5777_v5  ;;  %v4575_v51 = vpop.f32.mrf.mxu0 }
 0x210   : >> { %v4557_v15 = vpop.f32.mrf.mxu1 }
 0x211   : >> { %v2120_v35 = vpop.f32.mrf.mxu0 }
 0x212   : >> { %v2011_v29 = vpop.f32.mrf.mxu1  ;;  %v2150_v17 = vadd.f32 %v2120_v35, %v2033_v37 }
 0x213   : >> { %v2035_v47 = vadd.f32 %v2011_v29, %v5789_v44  ;;  %v4576_v30 = vpop.f32.mrf.mxu0 }
 0x214   : >> { %v4558_v31 = vpop.f32.mrf.mxu1 }
 0x215   : >> { %v2125_v11 = vpop.f32.mrf.mxu0 }
 0x216   : >> { %v2016_v28 = vpop.f32.mrf.mxu1  ;;  %v2151_v34 = vadd.f32 %v2125_v11, %v2034_v1 }
 0x217   : >> { %v2036_v19 = vadd.f32 %v2016_v28, %v1918_v14  ;;  %v4579_v39 = vpop.f32.mrf.mxu0 }
 0x218   : >> { %v4561_v56 = vpop.f32.mrf.mxu1 }
 0x219   : >> { %v2128_v42 = vpop.f32.mrf.mxu0 }
 0x21a   : >> { %v2019_v36 = vpop.f32.mrf.mxu1  ;;  %v2152_v18 = vadd.f32 %v2128_v42, %v2035_v47 }
 0x21b   : >> { %v2037_v46 = vadd.f32 %v2019_v36, %v1919_v23  ;;  %v4580_v5 = vpop.f32.mrf.mxu0 }
 0x21c   : >> { %v4562_v24 = vpop.f32.mrf.mxu1 }
 0x21d   : >> { %v2133_v38 = vpop.f32.mrf.mxu0 }
 0x21e   : >> { %v2024_v48 = vpop.f32.mrf.mxu1  ;;  %v2153_v62 = vadd.f32 %v2133_v38, %v2036_v19 }
 0x21f   : >> { %v2038_v45 = vadd.f32 %v2024_v48, %v1920_v21  ;;  %v4583_v55 = vpop.f32.mrf.mxu0 }
 0x220   : >> { %v4565_v44 = vpop.f32.mrf.mxu1 }
 0x221   : >> { %v2136_v57 = vpop.f32.mrf.mxu0 }
 0x222   : >> { %v2027_v58 = vpop.f32.mrf.mxu1  ;;  %v2154_v49 = vadd.f32 %v2136_v57, %v2037_v46 }
 0x223   : >> { %v4584_v53 = vpop.f32.mrf.mxu0 }
 0x224   : >> { %v4566_v59 = vpop.f32.mrf.mxu1 }
 0x225   : >> { %v2141_v14 = vpop.f32.mrf.mxu0 }
 0x226   : >> { %v2155_v33 = vadd.f32 %v2141_v14, %v2038_v45  ;;  %v2226_v3 = vpop.f32.mrf.mxu1 }
 0x227   : >> { %v2264_v6 = vadd.f32 %v2226_v3, %v2147_v61  ;;  %v4587_v52 = vpop.f32.mrf.mxu0 }
 0x228   : >> { %v4593_v32 = vpop.f32.mrf.mxu1 }
 0x229   : >> { %v2144_v23 = vpop.f32.mrf.mxu0 }
 0x22a   : >> { %v2229_v43 = vpop.f32.mrf.mxu1 }
 0x22b   : >> { %v2265_v9 = vadd.f32 %v2229_v43, %v2148_v4  ;;  %v4588_v12 = vpop.f32.mrf.mxu0 }
 0x22c   : >> { %v4594_v50 = vpop.f32.mrf.mxu1 }
 0x22d   : >> { %v2343_v13 = vpop.f32.mrf.mxu0 }
 0x22e   : >> { %v2234_v21 = vpop.f32.mrf.mxu1  ;;  %v2381_v10 = vadd.f32 %v2343_v13, %v2264_v6 }
 0x22f   : >> { %v2266_v16 = vadd.f32 %v2234_v21, %v2149_v25  ;;  %v4615_v8 = vpop.f32.mrf.mxu0 }
 0x230   : >> { %v4597_v60 = vpop.f32.mrf.mxu1 }
 0x231   : >> { %v2346_v26 = vpop.f32.mrf.mxu0 }
 0x232   : >> { %v2237_v20 = vpop.f32.mrf.mxu1  ;;  %v2382_v2 = vadd.f32 %v2346_v26, %v2265_v9 }
 0x233   : >> { %v2267_v54 = vadd.f32 %v2237_v20, %v2150_v17  ;;  %v4616_v22 = vpop.f32.mrf.mxu0 }
 0x234   : >> { %v4598_v41 = vpop.f32.mrf.mxu1 }
 0x235   : >> { %v2351_v61 = vpop.f32.mrf.mxu0 }
 0x236   : >> { %v2242_v37 = vpop.f32.mrf.mxu1  ;;  %v2383_v27 = vadd.f32 %v2351_v61, %v2266_v16 }
 0x237   : >> { %v2268_v7 = vadd.f32 %v2242_v37, %v2151_v34  ;;  %v4619_v63 = vpop.f32.mrf.mxu0 }
 0x238   : >> { %v4601_v4 = vpop.f32.mrf.mxu1 }
 0x239   : >> { %v2354_v40 = vpop.f32.mrf.mxu0 }
 0x23a   : >> { %v2245_v1 = vpop.f32.mrf.mxu1  ;;  %v2384_v51 = vadd.f32 %v2354_v40, %v2267_v54 }
 0x23b   : >> { %v2269_v15 = vadd.f32 %v2245_v1, %v2152_v18  ;;  %v4620_v35 = vpop.f32.mrf.mxu0 }
 0x23c   : >> { %v4602_v25 = vpop.f32.mrf.mxu1 }
 0x23d   : >> { %v2359_v29 = vpop.f32.mrf.mxu0 }
 0x23e   : >> { %v2250_v47 = vpop.f32.mrf.mxu1  ;;  %v2385_v30 = vadd.f32 %v2359_v29, %v2268_v7 }
 0x23f   : >> { %v2270_v31 = vadd.f32 %v2250_v47, %v2153_v62  ;;  %v4623_v11 = vpop.f32.mrf.mxu0 }
 0x240   : >> { %v4605_v17 = vpop.f32.mrf.mxu1 }
 0x241   : >> { %v2362_v28 = vpop.f32.mrf.mxu0 }
 0x242   : >> { %v2253_v19 = vpop.f32.mrf.mxu1  ;;  %v2386_v39 = vadd.f32 %v2362_v28, %v2269_v15 }
 0x243   : >> { %v2271_v56 = vadd.f32 %v2253_v19, %v2154_v49  ;;  %v4624_v42 = vpop.f32.mrf.mxu0 }
 0x244   : >> { %v4606_v34 = vpop.f32.mrf.mxu1 }
 0x245   : >> { %v2367_v36 = vpop.f32.mrf.mxu0 }
 0x246   : >> { %v2258_v46 = vpop.f32.mrf.mxu1  ;;  %v2387_v5 = vadd.f32 %v2367_v36, %v2270_v31 }
 0x247   : >> { %v2272_v24 = vadd.f32 %v2258_v46, %v2155_v33  ;;  %v4627_v38 = vpop.f32.mrf.mxu0 }
 0x248   : >> { %v4609_v18 = vpop.f32.mrf.mxu1 }
 0x249   : >> { %v2370_v48 = vpop.f32.mrf.mxu0 }
 0x24a   : >> { %v2261_v45 = vpop.f32.mrf.mxu1  ;;  %v2388_v55 = vadd.f32 %v2370_v48, %v2271_v56 }
 0x24b   : >> { %v4628_v44 = vpop.f32.mrf.mxu0 }
 0x24c   : >> { %v4610_v57 = vpop.f32.mrf.mxu1 }
 0x24d   : >> { %v2375_v62 = vpop.f32.mrf.mxu0 }
 0x24e   : >> { %v2389_v58 = vadd.f32 %v2375_v62, %v2272_v24  ;;  %v2460_v53 = vpop.f32.mrf.mxu1 }
 0x24f   : >> { %v2498_v59 = vadd.f32 %v2460_v53, %v2381_v10  ;;  %v4631_v14 = vpop.f32.mrf.mxu0 }
 0x250   : >> { %v4637_v3 = vpop.f32.mrf.mxu1 }
 0x251   : >> { %v2378_v49 = vpop.f32.mrf.mxu0 }
 0x252   : >> { %v2463_v6 = vpop.f32.mrf.mxu1 }
 0x253   : >> { %v2499_v52 = vadd.f32 %v2463_v6, %v2382_v2  ;;  %v4632_v32 = vpop.f32.mrf.mxu0 }
 0x254   : >> { %v4638_v23 = vpop.f32.mrf.mxu1 }
 0x255   : >> { %v2578_v43 = vpop.f32.mrf.mxu0 }
 0x256   : >> { %v2468_v33 = vpop.f32.mrf.mxu1  ;;  %v2616_v9 = vadd.f32 %v2578_v43, %v2498_v59 }
 0x257   : >> { %v2500_v12 = vadd.f32 %v2468_v33, %v2383_v27  ;;  %v4659_v50 = vpop.f32.mrf.mxu0 }
 0x258   : >> { %v4641_v13 = vpop.f32.mrf.mxu1 }
 0x259   : >> { %v2581_v21 = vpop.f32.mrf.mxu0 }
 0x25a   : >> { %v2471_v16 = vpop.f32.mrf.mxu1  ;;  %v2617_v8 = vadd.f32 %v2581_v21, %v2499_v52 }
 0x25b   : >> { %v2501_v60 = vadd.f32 %v2471_v16, %v2384_v51  ;;  %v4660_v26 = vpop.f32.mrf.mxu0 }
 0x25c   : >> { %v4642_v20 = vpop.f32.mrf.mxu1 }
 0x25d   : >> { %v2586_v10 = vpop.f32.mrf.mxu0 }
 0x25e   : >> { %v2476_v54 = vpop.f32.mrf.mxu1  ;;  %v2618_v22 = vadd.f32 %v2586_v10, %v2500_v12 }
 0x25f   : >> { %v2502_v41 = vadd.f32 %v2476_v54, %v2385_v30  ;;  %v4663_v61 = vpop.f32.mrf.mxu0 }
 0x260   : >> { %v4645_v2 = vpop.f32.mrf.mxu1 }
 0x261   : >> { %v2589_v37 = vpop.f32.mrf.mxu0 }
 0x262   : >> { %v2479_v7 = vpop.f32.mrf.mxu1  ;;  %v2619_v63 = vadd.f32 %v2589_v37, %v2501_v60 }
 0x263   : >> { %v2503_v4 = vadd.f32 %v2479_v7, %v2386_v39  ;;  %v4664_v40 = vpop.f32.mrf.mxu0 }
 0x264   : >> { %v4646_v27 = vpop.f32.mrf.mxu1 }
 0x265   : >> { %v2594_v1 = vpop.f32.mrf.mxu0 }
 0x266   : >> { %v2484_v15 = vpop.f32.mrf.mxu1  ;;  %v5814_v35 = vadd.f32 %v2594_v1, %v2502_v41 }
 0x267   : >> { %v2504_v25 = vadd.f32 %v2484_v15, %v2387_v5  ;;  %v4667_v51 = vpop.f32.mrf.mxu0 }
 0x268   : >> { %v4649_v29 = vpop.f32.mrf.mxu1 }
 0x269   : >> { %v2597_v47 = vpop.f32.mrf.mxu0 }
 0x26a   : >> { %v2487_v31 = vpop.f32.mrf.mxu1  ;;  %v5816_v11 = vadd.f32 %v2597_v47, %v2503_v4 }
 0x26b   : >> { %v2505_v30 = vadd.f32 %v2487_v31, %v2388_v55  ;;  %v4668_v17 = vpop.f32.mrf.mxu0 }
 0x26c   : >> { %v4650_v28 = vpop.f32.mrf.mxu1 }
 0x26d   : >> { %v2602_v19 = vpop.f32.mrf.mxu0 }
 0x26e   : >> { %v2492_v56 = vpop.f32.mrf.mxu1  ;;  %v5818_v42 = vadd.f32 %v2602_v19, %v2504_v25 }
 0x26f   : >> { %v2506_v39 = vadd.f32 %v2492_v56, %v2389_v58  ;;  %v4671_v34 = vpop.f32.mrf.mxu0 }
 0x270   : >> { %v4653_v36 = vpop.f32.mrf.mxu1 }
 0x271   : >> { %v2605_v46 = vpop.f32.mrf.mxu0 }
 0x272   : >> { %v2495_v24 = vpop.f32.mrf.mxu1  ;;  %v5820_v38 = vadd.f32 %v2605_v46, %v2505_v30 }
 0x273   : >> { %v4672_v5 = vpop.f32.mrf.mxu0 }
 0x274   : >> { %v4654_v18 = vpop.f32.mrf.mxu1 }
 0x275   : >> { %v2610_v48 = vpop.f32.mrf.mxu0 }
 0x276   : >> { %v5822_v45 = vadd.f32 %v2610_v48, %v2506_v39  ;;  %v2695_v44 = vpop.f32.mrf.mxu1 }
 0x277   : >> { %v5824_v55 = vadd.f32 %v2695_v44, %v2616_v9  ;;  %v4675_v57 = vpop.f32.mrf.mxu0 }
 0x278   : >> { %v4681_v62 = vpop.f32.mrf.mxu1 }
 0x279   : >> { %v2613_v53 = vpop.f32.mrf.mxu0 }
 0x27a   : >> { %v2698_v59 = vpop.f32.mrf.mxu1 }
 0x27b   : >> { %v5826_v14 = vadd.f32 %v2698_v59, %v2617_v8  ;;  %v4676_v58 = vpop.f32.mrf.mxu0 }
 0x27c   : >> { %v4682_v3 = vpop.f32.mrf.mxu1 }
 0x27d   : >> { %v5828_v49 = vpop.f32.mrf.mxu0 }
 0x27e   : >> { %v2703_v6 = vpop.f32.mrf.mxu1 }
 0x27f   : >> { %v5830_v52 = vadd.f32 %v2703_v6, %v2618_v22  ;;  %v4703_v32 = vpop.f32.mrf.mxu0 }
 0x280   : >> { %v4685_v23 = vpop.f32.mrf.mxu1 }
 0x281   : >> { %v5832_v43 = vpop.f32.mrf.mxu0 }
 0x282   : >> { %v2706_v33 = vpop.f32.mrf.mxu1 }
 0x283   : >> { %v5834_v9 = vadd.f32 %v2706_v33, %v2619_v63  ;;  %v4704_v12 = vpop.f32.mrf.mxu0 }
 0x284   : >> { %v4686_v50 = vpop.f32.mrf.mxu1 }
 0x285   : >> { %v5836_v13 = vpop.f32.mrf.mxu0 }
 0x286   : >> { %v2711_v21 = vpop.f32.mrf.mxu1 }
 0x287   : >> { %v4707_v16 = vpop.f32.mrf.mxu0  ;;  %v2737_v3 = vadd.f32 %v2711_v21, %v5814_v35 }
 0x288   : >> { %v4689_v8 = vpop.f32.mrf.mxu1 }
 0x289   : >> { %v5838_v60 = vpop.f32.mrf.mxu0 }
 0x28a   : >> { %v2714_v26 = vpop.f32.mrf.mxu1 }
 0x28b   : >> { %v4708_v20 = vpop.f32.mrf.mxu0  ;;  %v2738_v23 = vadd.f32 %v2714_v26, %v5816_v11 }
 0x28c   : >> { %v4690_v10 = vpop.f32.mrf.mxu1 }
 0x28d   : >> { %v2828_v54 = vpop.f32.mrf.mxu0 }
 0x28e   : >> { %v2719_v22 = vpop.f32.mrf.mxu1  ;;  %v2854_v33 = vadd.f32 %v2828_v54, %v2737_v3 }
 0x28f   : >> { %v4711_v41 = vpop.f32.mrf.mxu0 }
 0x290   : >> { %v4693_v61 = vpop.f32.mrf.mxu1  ;;  %v2739_v41 = vadd.f32 %v2719_v22, %v5818_v42  ;;  %v2851_v42 = vadd.f32 %v5832_v43, %v5826_v14 }
 0x291   : >> { %v2831_v2 = vpop.f32.mrf.mxu0 }
 0x292   : >> { %v2722_v37 = vpop.f32.mrf.mxu1  ;;  %v2855_v16 = vadd.f32 %v2831_v2, %v2738_v23 }
 0x293   : >> { %v4712_v7 = vpop.f32.mrf.mxu0  ;;  %v2740_v54 = vadd.f32 %v2722_v37, %v5820_v38 }
 0x294   : >> { %v4694_v63 = vpop.f32.mrf.mxu1 }
 0x295   : >> { %v2836_v4 = vpop.f32.mrf.mxu0 }
 0x296   : >> { %v5840_v40 = vpop.f32.mrf.mxu1  ;;  %v2856_v21 = vadd.f32 %v2836_v4, %v2739_v41 }
 0x297   : >> { %v4715_v27 = vpop.f32.mrf.mxu0  ;;  %v2741_v38 = vadd.f32 %v5840_v40, %v5822_v45 }
 0x298   : >> { %v4697_v1 = vpop.f32.mrf.mxu1  ;;  %v2850_v27 = vadd.f32 %v5828_v49, %v5824_v55 }
 0x299   : >> { %v2839_v15 = vpop.f32.mrf.mxu0 }
 0x29a   : >> { %v2730_v25 = vpop.f32.mrf.mxu1 }
 0x29b   : >> { %v4716_v51 = vpop.f32.mrf.mxu0 }
 0x29c   : >> { %v4698_v29 = vpop.f32.mrf.mxu1 }
 0x29d   : >> { %v5842_v47 = vpop.f32.mrf.mxu0 }
 0x29e   : >> { %v2929_v31 = vpop.f32.mrf.mxu1 }
 0x29f   : >> { %v4719_v30 = vpop.f32.mrf.mxu0  ;;  %v2967_v11 = vadd.f32 %v2929_v31, %v2850_v27 }
 0x2a0   : >> { %v4725_v17 = vpop.f32.mrf.mxu1 }
 0x2a1   : >> { %v2847_v28 = vpop.f32.mrf.mxu0 }
 0x2a2   : >> { %v2932_v19 = vpop.f32.mrf.mxu1  ;;  %v2857_v28 = vadd.f32 %v2839_v15, %v2740_v54  ;;  %v2858_v15 = vadd.f32 %v5842_v47, %v2741_v38 }
 0x2a3   : >> { %v4720_v56 = vpop.f32.mrf.mxu0 }
 0x2a4   : >> { %v4726_v39 = vpop.f32.mrf.mxu1  ;;  %v2968_v56 = vadd.f32 %v2932_v19, %v2851_v42 }
 0x2a5   : >> { %v3046_v34 = vpop.f32.mrf.mxu0 }
 0x2a6   : >> { %v2937_v36 = vpop.f32.mrf.mxu1  ;;  %v3084_v22 = vadd.f32 %v3046_v34, %v2967_v11 }
 0x2a7   : >> { %v4747_v46 = vpop.f32.mrf.mxu0 }
 0x2a8   : >> { %v4729_v24 = vpop.f32.mrf.mxu1 }
 0x2a9   : >> { %v3049_v5 = vpop.f32.mrf.mxu0 }
 0x2aa   : >> { %v5844_v18 = vpop.f32.mrf.mxu1  ;;  %v3085_v14 = vadd.f32 %v3049_v5, %v2968_v56 }
 0x2ab   : >> { %v4748_v48 = vpop.f32.mrf.mxu0 }
 0x2ac   : >> { %v4730_v44 = vpop.f32.mrf.mxu1  ;;  %v2852_v48 = vadd.f32 %v5836_v13, %v5830_v52 }
 0x2ad   : >> { %v3054_v57 = vpop.f32.mrf.mxu0 }
 0x2ae   : >> { %v2945_v62 = vpop.f32.mrf.mxu1 }
 0x2af   : >> { %v4751_v53 = vpop.f32.mrf.mxu0  ;;  %v2971_v8 = vadd.f32 %v2945_v62, %v2854_v33  ;;  %v2969_v62 = vadd.f32 %v2937_v36, %v2852_v48 }
 0x2b0   : >> { %v4733_v59 = vpop.f32.mrf.mxu1 }
 0x2b1   : >> { %v5846_v58 = vpop.f32.mrf.mxu0  ;;  %v3086_v52 = vadd.f32 %v3054_v57, %v2969_v62 }
 0x2b2   : >> { %v2948_v6 = vpop.f32.mrf.mxu1 }
 0x2b3   : >> { %v4752_v32 = vpop.f32.mrf.mxu0  ;;  %v2972_v61 = vadd.f32 %v2948_v6, %v2855_v16  ;;  %v2853_v6 = vadd.f32 %v5838_v60, %v5834_v9 }
 0x2b4   : >> { %v4734_v12 = vpop.f32.mrf.mxu1 }
 0x2b5   : >> { %v3062_v50 = vpop.f32.mrf.mxu0  ;;  %v2970_v32 = vadd.f32 %v5844_v18, %v2853_v6 }
 0x2b6   : >> { %v2953_v20 = vpop.f32.mrf.mxu1  ;;  %v3088_v7 = vadd.f32 %v3062_v50, %v2971_v8 }
 0x2b7   : >> { %v4755_v10 = vpop.f32.mrf.mxu0  ;;  %v2973_v2 = vadd.f32 %v2953_v20, %v2856_v21  ;;  %v3087_v12 = vadd.f32 %v5846_v58, %v2970_v32 }
 0x2b8   : >> { %v4737_v63 = vpop.f32.mrf.mxu1  ;;  %v3098_v51 = vrot.slane %v3088_v7, 4 }
 0x2b9   : >> { %v3065_v35 = vpop.f32.mrf.mxu0 }
 0x2ba   : >> { %v2956_v1 = vpop.f32.mrf.mxu1  ;;  %v3089_v25 = vadd.f32 %v3065_v35, %v2972_v61 }
 0x2bb   : >> { %v4756_v26 = vpop.f32.mrf.mxu0  ;;  %v2974_v37 = vadd.f32 %v2956_v1, %v2857_v28 }
 0x2bc   : >> { %v3099_v29 = vrot.slane %v3089_v25, 4  ;;  %v4738_v30 = vpop.f32.mrf.mxu1 }
 0x2bd   : >> { %v3070_v17 = vpop.f32.mrf.mxu0 }
 0x2be   : >> { %v3100_v55 = vsel %vm231_vm0, %v3098_v51, %v3099_v29  ;;  %v2961_v49 = vpop.f32.mrf.mxu1  ;;  %v3090_v4 = vadd.f32 %v3070_v17, %v2973_v2 }
 0x2bf   : >> { %v3111_v39 = vmax.f32 %v3084_v22, %v3100_v55  ;;  %v4759_v31 = vpop.f32.mrf.mxu0  ;;  %v2975_v3 = vadd.f32 %v2961_v49, %v2858_v15 }
 0x2c0   : >> { %v3101_v46 = vrot.slane %v3090_v4, 4  ;;  %v4741_v24 = vpop.f32.mrf.mxu1 }
 0x2c1   : >> { %3115 = vst [vmem:[#allocation2] sm:$0xff] %v3111_v39  ;;  %v3073_v43 = vpop.f32.mrf.mxu0 }
 0x2c2   : >> { %v3102_v34 = vsel %vm231_vm0, %v3099_v29, %v3101_v46  ;;  %v2964_v44 = vpop.f32.mrf.mxu1  ;;  %v3091_v19 = vadd.f32 %v3073_v43, %v2974_v37 }
 0x2c3   : >> { %v3112_v53 = vmax.f32 %v3085_v14, %v3102_v34  ;;  %v4760_v59 = vpop.f32.mrf.mxu0 }
 0x2c4   : >> { %v3103_v45 = vrot.slane %v3091_v19, 4  ;;  %v4742_v40 = vpop.f32.mrf.mxu1 }
 0x2c5   : >> { %3116 = vst [vmem:[#allocation2 + $0x8] sm:$0xff] %v3112_v53  ;;  %v3078_v13 = vpop.f32.mrf.mxu0 }
 0x2c6   : >> { %v3104_v5 = vsel %vm231_vm0, %v3101_v46, %v3103_v45  ;;  %v3092_v47 = vadd.f32 %v3078_v13, %v2975_v3 }
 0x2c7   : >> { %v3113_v23 = vmax.f32 %v3086_v52, %v3104_v5  ;;  %v4763_v33 = vpop.f32.mrf.mxu0 }
 0x2c8   : >> { %v3105_v36 = vrot.slane %v3092_v47, 4 }
 0x2c9   : >> { %3117 = vst [vmem:[#allocation2 + $0x10] sm:$0xff] %v3113_v23  ;;  %v3081_v50 = vpop.f32.mrf.mxu0 }
 0x2ca   : >> { %v3106_v16 = vsel %vm231_vm0, %v3103_v45, %v3105_v36 }
 0x2cb   : >> { %v3114_v8 = vmax.f32 %v3087_v12, %v3106_v16  ;;  %v4764_v9 = vpop.f32.mrf.mxu0 }
 0x2cc   : >> { %v3119_v60 = vld [vmem:[#allocation2] ss:$2 sm:$0xff]  ;;  %v3123_v57 = vld [vmem:[#allocation2 + $0x1] ss:$2 sm:$0xff] }
 0x2cd   : >> { %v3126_v20 = vmax.f32 %v3119_v60, %v3123_v57  ;;  %3118 = vst [vmem:[#allocation2 + $0x18] sm:$0xff] %v3114_v8 }
 0x2cf   : >> { %v3134_v10 = vadd.f32 %v4835_v0, %v3126_v20 }
 0x2d1   : >> { %3138 = vst [vmem:[%s3137_s7] sm:$0xff] %v3134_v10 }
 0x2d4   : >> { %v3121_v18 = vld [vmem:[#allocation2 + $0x10] ss:$2 sm:$0xff]  ;;  %v3125_v41 = vld [vmem:[#allocation2 + $0x11] ss:$2 sm:$0xff] }
 0x2d5   : >> { %v3127_v61 = vmax.f32 %v3121_v18, %v3125_v41  ;;  %178 = sbr.rel (!%p176_p5) target bundleno = 15 (0xf), region = 122 }
 0x2d7   : >> { %v3135_v58 = vadd.f32 %v4835_v0, %v3127_v61 }
 0x2d9   : >> { %3139 = vst [vmem:[%s3137_s7 + $0x8] sm:$0xff] %v3135_v58 }
 0x2e0   : > { %v3140_v7 = vld [vmem:[#allocation3] sm:$0xff]  ;;  %v3141_v63 = vld [vmem:[#allocation3 + $0x8] sm:$0xff]  ;;  %v3142_v27 = vld [vmem:[#allocation3 + $0x10] sm:$0xff] }
 0x2e1   : > { %v3973_v35 = vpack.c.bf16 %v3141_v63, %v3140_v7  ;;  %v3143_v21 = vld [vmem:[#allocation3 + $0x18] sm:$0xff]  ;;  %v3144_v1 = vld [vmem:[#allocation3 + $0x20] sm:$0xff]  ;;  %v3145_v25 = vld [vmem:[#allocation3 + $0x28] sm:$0xff] }
 0x2e2   : > { %v3978_v11 = vpack.c.bf16 %v3143_v21, %v3142_v27  ;;  %v3983_v26 = vpack.c.bf16 %v3145_v25, %v3144_v1  ;;  %v3146_v54 = vld [vmem:[#allocation3 + $0x30] sm:$0xff]  ;;  %v3147_v2 = vld [vmem:[#allocation3 + $0x38] sm:$0xff]  ;;  %v3148_v51 = vld [vmem:[#allocation3 + $0x40] sm:$0xff] }
 0x2e3   : > { %3974 = vst [vmem:[%s4845_s24] sm:$0xff] %v3973_v35   ;;  %v3988_v29 = vpack.c.bf16 %v3147_v2, %v3146_v54  ;;  %v3149_v30 = vld [vmem:[#allocation3 + $0x48] sm:$0xff]  ;;  %v3150_v0 = vld [vmem:[#allocation3 + $0x50] sm:$0xff]  ;;  %v3151_v42 = vld [vmem:[#allocation3 + $0x58] sm:$0xff] }
 0x2e4   : > { %4050 = vst [vmem:[%s4845_s24 + $0x8] sm:$0xff] %v3978_v11   ;;  %4051 = vst [vmem:[%s4845_s24 + $0x10] sm:$0xff] %v3983_v26   ;;  %v3993_v22 = vpack.c.bf16 %v3149_v30, %v3148_v51  ;;  %v3998_v17 = vpack.c.bf16 %v3151_v42, %v3150_v0  ;;  %v3152_v28 = vld [vmem:[#allocation3 + $0x60] sm:$0xff]  ;;  %v3153_v55 = vld [vmem:[#allocation3 + $0x68] sm:$0xff] }
 0x2e5   : > { %v3154_v49 = vld [vmem:[#allocation3 + $0x70] sm:$0xff]  ;;  %4052 = vst [vmem:[%s4845_s24 + $0x18] sm:$0xff] %v3988_v29   ;;  %v4003_v4 = vpack.c.bf16 %v3153_v55, %v3152_v28  ;;  %v3155_v56 = vld [vmem:[#allocation3 + $0x78] sm:$0xff]  ;;  %v3156_v39 = vld [vmem:[#allocation3 + $0x80] sm:$0xff] }
 0x2e6   : > { %v3157_v31 = vld [vmem:[#allocation3 + $0x88] sm:$0xff]  ;;  %4053 = vst [vmem:[%s4845_s24 + $0x20] sm:$0xff] %v3993_v22   ;;  %4054 = vst [vmem:[%s4845_s24 + $0x28] sm:$0xff] %v3998_v17   ;;  %v4008_v38 = vpack.c.bf16 %v3155_v56, %v3154_v49  ;;  %v3158_v46 = vld [vmem:[#allocation3 + $0x90] sm:$0xff] }
 0x2e7   : > { %v4013_v37 = vpack.c.bf16 %v3157_v31, %v3156_v39  ;;  %v3159_v24 = vld [vmem:[#allocation3 + $0x98] sm:$0xff]  ;;  %v3160_v48 = vld [vmem:[#allocation3 + $0xa0] sm:$0xff]  ;;  %4055 = vst [vmem:[%s4845_s24 + $0x30] sm:$0xff] %v4003_v4   ;;  %v3161_v43 = vld [vmem:[#allocation3 + $0xa8] sm:$0xff] }
 0x2e8   : > { %v4018_v14 = vpack.c.bf16 %v3159_v24, %v3158_v46  ;;  %v3162_v15 = vld [vmem:[#allocation3 + $0xb0] sm:$0xff]  ;;  %v3163_v34 = vld [vmem:[#allocation3 + $0xb8] sm:$0xff]  ;;  %4056 = vst [vmem:[%s4845_s24 + $0x38] sm:$0xff] %v4008_v38   ;;  %v4023_v44 = vpack.c.bf16 %v3161_v43, %v3160_v48  ;;  %v3164_v62 = vld [vmem:[#allocation3 + $0xc0] sm:$0xff] }
 0x2e9   : > { %4057 = vst [vmem:[%s4845_s24 + $0x40] sm:$0xff] %v4013_v37   ;;  %v4028_v19 = vpack.c.bf16 %v3163_v34, %v3162_v15  ;;  %v3165_v53 = vld [vmem:[#allocation3 + $0xc8] sm:$0xff]  ;;  %v3166_v59 = vld [vmem:[#allocation3 + $0xd0] sm:$0xff]  ;;  %v3167_v45 = vld [vmem:[#allocation3 + $0xd8] sm:$0xff] }
 0x2ea   : > { %4058 = vst [vmem:[%s4845_s24 + $0x48] sm:$0xff] %v4018_v14   ;;  %v4033_v3 = vpack.c.bf16 %v3165_v53, %v3164_v62  ;;  %v3168_v40 = vld [vmem:[#allocation3 + $0xe0] sm:$0xff]  ;;  %v3169_v6 = vld [vmem:[#allocation3 + $0xe8] sm:$0xff]  ;;  %4059 = vst [vmem:[%s4845_s24 + $0x50] sm:$0xff] %v4023_v44   ;;  %v4038_v52 = vpack.c.bf16 %v3167_v45, %v3166_v59 }
 0x2eb   : > { %4060 = vst [vmem:[%s4845_s24 + $0x58] sm:$0xff] %v4028_v19   ;;  %v4043_v13 = vpack.c.bf16 %v3169_v6, %v3168_v40  ;;  %v3170_v5 = vld [vmem:[#allocation3 + $0xf0] sm:$0xff]  ;;  %v3171_v47 = vld [vmem:[#allocation3 + $0xf8] sm:$0xff] }
 0x2ec   : > { %4061 = vst [vmem:[%s4845_s24 + $0x60] sm:$0xff] %v4033_v3   ;;  %v4048_v32 = vpack.c.bf16 %v3171_v47, %v3170_v5  ;;  %4062 = vst [vmem:[%s4845_s24 + $0x68] sm:$0xff] %v4038_v52  }
 0x2ed   : > { %4063 = vst [vmem:[%s4845_s24 + $0x70] sm:$0xff] %v4043_v13  }
 0x2ee   : > { %4064 = vst [vmem:[%s4845_s24 + $0x78] sm:$0xff] %v4048_v32  }
 0x2ef PF: > { %s13_s12 = sadd.s32 1, %s4796_s12  }
 0x2f0   : > { %p10_p6 = scmp.ge.s32.totalorder %s13_s12, 4  }
 0x2f2   :  { %12 = sbr.rel (!%p10_p6) target bundleno = 1 (0x1), region = 133 }

// kernel: tian_forward.5
= control target key start
LH: loop header
LB: loop body
LE: loop exit
PB: predicated region body
PF: predicated region fallthrough
CT: control target
= control target key end

     0   :  { %s3902_s12 = smov 0   ;;  %s4569_s0 = inlined_call_operand.vmem [shape: f32[2,420,32], index: 0, kind: input, shape index: {}]   ;;  %s4570_s1 = inlined_call_operand.vmem [shape: bf16[25,32,128], index: 1, kind: input, shape index: {}]   ;;  %s4571_s2 = inlined_call_operand.vmem [shape: f32[1,128], index: 2, kind: input, shape index: {}]   ;;  %s4572_s3 = inlined_call_operand.vmem [shape: bf16[128,128], index: 3, kind: output, shape index: {}]  }
   0x1 LB: > { %s2834_s13 = sadd.s32 4294967295, %s3874_s12   ;;  %p2838_p0 = scmp.ge.s32.totalorder %s3874_s12, 1  ;;  %s3874_s12 = sphi %s3902_s12, %s13_s12  }
   0x2   : > { %p137_p1 = scmp.lt.s32.totalorder %s3874_s12, 3 }
   0x4   : > { %p138_p2 = pnand %p2838_p0, %p137_p1 }
   0x5   : > { %p161_p3 = scmp.lt.s32.totalorder (!%p138_p2), %s2834_s13, 1  ;;  %s2840_s14 = sshll.u32 (!%p138_p2), %s2834_s13, 3 }
   0x6   : > { %141 = sbr.rel (%p138_p2) target bundleno = 547 (0x223), region = 32  ;;  %p167_p4 = scmp.lt.s32.totalorder (!%p138_p2), %s2840_s14, 15 }
   0x7   : > { %s3925_s25 = smov (!%p138_p2), 0  }
   0xb   : > { %v3913_v0 = vld [vmem:[%s4571_s2] ss:$0 sm:$0xff]  ;;  %s4574_s13 = smov (!%p161_p3, %s2834_s13), 1  ;;  %s4576_s14 = smov (!%p167_p4, %s2840_s14), 15 }
   0xc   : > { %s3795_s17 = smul.u32 424, %s4574_s13  ;;  %s2841_s18 = sshll.u32 %s4576_s14, 2 }
   0xd   : > { %s3923_s24 = scalar_lea.vmem %s4572_s3, %s2841_s18 }
   0xe   : > { %s3918_s21 = scalar_lea.vmem %s4569_s0, %s3795_s17 }
   0xf LB: >> { %v3814_v1 = vld [vmem:[%s4570_s1 + $0x18] sm:$0xff]   ;;  %v3880_v2 = vmov 0.0   ;;  %v3815_v3 = vld [vmem:[%s4570_s1 + $0x10] sm:$0xff]   ;;  %s180_s30 = smul.u32 40, %s3878_s25  ;;  %vm3881_vm0 = vmmov 0   ;;  %vm221_vm1 = vcmask 261120   ;;  %s3878_s25 = sphi %s3925_s25, %s179_s25  }
  0x10   : >> { %3791 = vmatprep.subr.bf16.mxu1 %v3880_v2  ;;  %3391 = vmatprep.subr.bf16.mxu0 %v3880_v2  ;;  %v3816_v8 = vld [vmem:[%s4570_s1 + $0x8] sm:$0xff]   ;;  %v3818_v13 = vld [vmem:[%s4570_s1] sm:$0xff]   ;;  %v3820_v30 = vld [vmem:[%s4570_s1 + $0x38] sm:$0xff]   ;;  %vm2603_vm2 = vcmask 1043456  }
  0x11   : >> { %3793 = vmatpush3.bf16.msra.mxu1 %v3814_v1  ;;  %3392 = vmatpush3.bf16.msra.mxu0 %v3814_v1  ;;  %s3943_s4 = scalar_lea.vmem %s3918_s21, %s180_s30  ;;  %v3817_v10 = vld [vmem:[%s4570_s1 + $0x28] sm:$0xff]   ;;  %v3819_v14 = vld [vmem:[%s4570_s1 + $0x20] sm:$0xff]   ;;  %v3822_v33 = vld [vmem:[%s4570_s1 + $0x30] sm:$0xff]  }
  0x12   : >> { %3792 = vmatprep.subr.bf16.mxu1 %v3880_v2  ;;  %3399 = vmatprep.mubr.msk.bf16.mxu1 %vm3881_vm0, %v3880_v2  ;;  %v2844_v4 = vld [vmem:[%s3943_s4 + $0x11] sm:$0xff]  ;;  %v2845_v5 = vld [vmem:[%s3943_s4 + $0x19] sm:$0xff]  ;;  %v2842_v6 = vld [vmem:[%s3943_s4 + $0x1] sm:$0xff] }
  0x13   : >> { %3393 = vmatprep.subr.bf16.mxu0 %v3880_v2  ;;  %3395 = vmatprep.mubr.msk.bf16.mxu0 %vm3881_vm0, %v3880_v2  ;;  %v202_v7 = vpack.c.bf16 %v2845_v5, %v2844_v4  ;;  %v2843_v9 = vld [vmem:[%s3943_s4 + $0x9] sm:$0xff]  ;;  %v2846_v12 = vld [vmem:[%s3943_s4 + $0x21] sm:$0xff]  ;;  %v3983_v20 = vld [vmem:[%s3943_s4 + $0x18] sm:$0xff] }
  0x14   : >> { %v201_v11 = vpack.c.bf16 %v2843_v9, %v2842_v6  ;;  %v2861_v15 = vld [vmem:[%s3943_s4 + $0x2] sm:$0xff]  ;;  %v2862_v16 = vld [vmem:[%s3943_s4 + $0xa] sm:$0xff]  ;;  %v203_v17 = vpack.c.bf16 %v2846_v12, %v2846_v12  ;;  %v2863_v25 = vld [vmem:[%s3943_s4 + $0x12] sm:$0xff] }
  0x15   : >> { %3794 = vmatpush3.bf16.msra.mxu1 %v3815_v3  ;;  %3394 = vmatpush3.bf16.msra.mxu0 %v3815_v3  ;;  %v371_v18 = vpack.c.bf16 %v2862_v16, %v2861_v15  ;;  %v3821_v19 = vld [vmem:[%s4570_s1 + $0x48] sm:$0xff]   ;;  %v3986_v21 = vld [vmem:[%s3943_s4 + $0x20] sm:$0xff]  ;;  %v184_v31 = vld [vmem:[%s3943_s4 + $0x10] sm:$0xff] }
  0x16   : >> { %3407 = vmatprep.subr.bf16.mxu1 %v3880_v2  ;;  %3423 = vmatprep.subr.bf16.mxu0 %v3880_v2  ;;  %v182_v22 = vld [vmem:[%s3943_s4] sm:$0xff]  ;;  %v183_v23 = vld [vmem:[%s3943_s4 + $0x8] sm:$0xff]  ;;  %v1052_v24 = vpack.c.bf16 %v3986_v21, %v3983_v20  ;;  %v188_v34 = vpack.c.bf16 %v3983_v20, %v184_v31  ;;  %v4026_v37 = vld [vmem:[%s3943_s4 + $0x34] sm:$0xff]  ;;  %v189_v41 = vpack.c.bf16 %v3986_v21, %v3986_v21 }
  0x17   : >> { %v2864_v26 = vld [vmem:[%s3943_s4 + $0x1a] sm:$0xff]  ;;  %v187_v28 = vpack.c.bf16 %v183_v23, %v182_v22  ;;  %v2865_v32 = vld [vmem:[%s3943_s4 + $0x22] sm:$0xff]  ;;  %v4023_v36 = vld [vmem:[%s3943_s4 + $0x2c] sm:$0xff] }
  0x18   : >> { %3400 = vmatmul.mubr.msk.bf16.vlgmr.msra.gmra.mxu1 %vm221_vm1, %v202_v7  ;;  %3396 = vmatmul.mubr.msk.bf16.vlgmr.msra.gmra.mxu0 %vm221_vm1, %v201_v11  ;;  %v3823_v27 = vld [vmem:[%s4570_s1 + $0x40] sm:$0xff]   ;;  %v372_v29 = vpack.c.bf16 %v2864_v26, %v2863_v25  ;;  %v373_v35 = vpack.c.bf16 %v2865_v32, %v2865_v32  ;;  %v1538_v39 = vpack.c.bf16 %v4026_v37, %v4023_v36  ;;  %v2890_v40 = vld [vmem:[%s3943_s4 + $0xc] sm:$0xff]  ;;  %v2891_v46 = vld [vmem:[%s3943_s4 + $0x14] sm:$0xff] }
  0x19   : >> { %3408 = vmatpush3.bf16.msra.mxu1 %v3816_v8  ;;  %3424 = vmatpush3.bf16.msra.mxu0 %v3817_v10  ;;  %v2889_v38 = vld [vmem:[%s3943_s4 + $0x4] sm:$0xff]  ;;  %v2892_v47 = vld [vmem:[%s3943_s4 + $0x1c] sm:$0xff]  ;;  %v2877_v52 = vld [vmem:[%s3943_s4 + $0x13] sm:$0xff] }
  0x1a   : >> { %3403 = vmatprep.mubr.msk.bf16.mxu1 %vm3881_vm0, %v3880_v2  ;;  %3409 = vmatprep.subr.bf16.mxu1 %v3880_v2  ;;  %v565_v42 = vpack.c.bf16 %v2890_v40, %v2889_v38  ;;  %v3825_v43 = vld [vmem:[%s4570_s1 + $0x68] sm:$0xff]   ;;  %v3827_v48 = vld [vmem:[%s4570_s1 + $0x60] sm:$0xff]   ;;  %v566_v50 = vpack.c.bf16 %v2892_v47, %v2891_v46  ;;  %v3824_v51 = vld [vmem:[%s4570_s1 + $0x58] sm:$0xff]  }
  0x1b   : >> { %3425 = vmatprep.subr.bf16.mxu0 %v3880_v2  ;;  %3427 = vmatprep.mubr.msk.bf16.mxu0 %vm3881_vm0, %v3880_v2  ;;  %v2875_v44 = vld [vmem:[%s3943_s4 + $0x3] sm:$0xff]  ;;  %v2876_v45 = vld [vmem:[%s3943_s4 + $0xb] sm:$0xff]  ;;  %v2878_v53 = vld [vmem:[%s3943_s4 + $0x1b] sm:$0xff] }
  0x1c   : >> { %v468_v49 = vpack.c.bf16 %v2876_v45, %v2875_v44  ;;  %v2893_v54 = vld [vmem:[%s3943_s4 + $0x24] sm:$0xff]  ;;  %v3826_v55 = vld [vmem:[%s4570_s1 + $0x50] sm:$0xff]   ;;  %v469_v56 = vpack.c.bf16 %v2878_v53, %v2877_v52  ;;  %v3828_v6 = vld [vmem:[%s4570_s1 + $0x78] sm:$0xff]  }
  0x1d   : >> { %3410 = vmatpush3.bf16.msra.mxu1 %v3818_v13  ;;  %3426 = vmatpush3.bf16.msra.mxu0 %v3819_v14  ;;  %v567_v57 = vpack.c.bf16 %v2893_v54, %v2893_v54  ;;  %v2879_v58 = vld [vmem:[%s3943_s4 + $0x23] sm:$0xff]  ;;  %v2921_v59 = vld [vmem:[%s3943_s4 + $0x15] sm:$0xff]  ;;  %v2924_v3 = vld [vmem:[%s3943_s4 + $0x2d] sm:$0xff]  ;;  %v665_v9 = vpack.c.bf16 %v4023_v36, %v2893_v54  ;;  %v666_v13 = vpack.c.bf16 %v4026_v37, %v4026_v37 }
  0x1e   : >> { %3439 = vmatprep.subr.bf16.mxu1 %v3880_v2  ;;  %3455 = vmatprep.subr.bf16.mxu0 %v3880_v2  ;;  %v2922_v60 = vld [vmem:[%s3943_s4 + $0x1d] sm:$0xff]  ;;  %v3829_v61 = vld [vmem:[%s4570_s1 + $0x88] sm:$0xff]   ;;  %v470_v62 = vpack.c.bf16 %v2879_v58, %v2879_v58  ;;  %v2925_v7 = vld [vmem:[%s3943_s4 + $0x35] sm:$0xff] }
  0x1f   : >> { %v761_v63 = vpack.c.bf16 %v2922_v60, %v2921_v59  ;;  %v2923_v1 = vld [vmem:[%s3943_s4 + $0x25] sm:$0xff]  ;;  %v3830_v8 = vld [vmem:[%s4570_s1 + $0x70] sm:$0xff]   ;;  %v763_v10 = vpack.c.bf16 %v2925_v7, %v2925_v7  ;;  %v3832_v26 = vld [vmem:[%s4570_s1 + $0x98] sm:$0xff]  }
  0x20   : >> { %3404 = vmatmul.mubr.msk.bf16.gmra.mxu1 %vm221_vm1, %v203_v17  ;;  %3428 = vmatmul.mubr.msk.bf16.vlgmr.msra.gmra.mxu0 %vm221_vm1, %v371_v18  ;;  %v3831_v4 = vld [vmem:[%s4570_s1 + $0x80] sm:$0xff]   ;;  %v762_v5 = vpack.c.bf16 %v2924_v3, %v2923_v1  ;;  %v2953_v11 = vld [vmem:[%s3943_s4 + $0x17] sm:$0xff]  ;;  %v3833_v15 = vld [vmem:[%s4570_s1 + $0xa8] sm:$0xff]  }
  0x21   : >> { %3411 = vmatprep.mubr.msk.bf16.mxu1 %vm3881_vm0, %v3880_v2  ;;  %3456 = vmatpush3.bf16.msra.mxu0 %v3821_v19  ;;  %v2954_v12 = vld [vmem:[%s3943_s4 + $0x1f] sm:$0xff]  ;;  %v2937_v16 = vld [vmem:[%s3943_s4 + $0x16] sm:$0xff]  ;;  %v2955_v18 = vld [vmem:[%s3943_s4 + $0x27] sm:$0xff] }
  0x22   : >> { %3431 = vmatprep.mubr.msk.bf16.mxu0 %vm3881_vm0, %v3880_v2  ;;  %3457 = vmatprep.subr.bf16.mxu0 %v3880_v2  ;;  %v955_v14 = vpack.c.bf16 %v2954_v12, %v2953_v11  ;;  %v2938_v17 = vld [vmem:[%s3943_s4 + $0x1e] sm:$0xff]  ;;  %v2956_v19 = vld [vmem:[%s3943_s4 + $0x2f] sm:$0xff] }
  0x23   : >> { %v3835_v22 = vld [vmem:[%s4570_s1 + $0xa0] sm:$0xff]   ;;  %v858_v23 = vpack.c.bf16 %v2938_v17, %v2937_v16  ;;  %v956_v25 = vpack.c.bf16 %v2956_v19, %v2955_v18  ;;  %v3836_v46 = vld [vmem:[%s4570_s1 + $0xb8] sm:$0xff]   ;;  %v4200_v47 = vld [vmem:[%s3943_s4 + $0x48] sm:$0xff] }
  0x24   : >> { %v3839_v44 = vld [vmem:[%s4570_s1 + $0xc0] sm:$0xff]   ;;  %v1152_v20 = vpack.c.bf16 %v4200_v47, %v4200_v47  ;;  %v3017_v21 = vld [vmem:[%s3943_s4 + $0x2a] sm:$0xff]  ;;  %v3840_v59 = vld [vmem:[%s4570_s1 + $0xd8] sm:$0xff]  }
  0x25   : >> { %3458 = vmatpush3.bf16.msra.mxu0 %v3823_v27  ;;  %v2939_v27 = vld [vmem:[%s3943_s4 + $0x26] sm:$0xff]  ;;  %v3002_v53 = vld [vmem:[%s3943_s4 + $0x31] sm:$0xff]  ;;  %v3019_v54 = vld [vmem:[%s3943_s4 + $0x3a] sm:$0xff] }
  0x26   : >> { %3487 = vmatprep.subr.bf16.mxu0 %v3880_v2  ;;  %v3001_v52 = vld [vmem:[%s3943_s4 + $0x29] sm:$0xff]  ;;  %v3003_v60 = vld [vmem:[%s3943_s4 + $0x39] sm:$0xff] }
  0x27   : >> { %v3033_v7 = vld [vmem:[%s3943_s4 + $0x2b] sm:$0xff]  ;;  %v3847_v11 = vld [vmem:[%s4570_s1 + $0x100] sm:$0xff]  }
  0x28   : >> { %3412 = vmatmul.mubr.msk.bf16.vlgmr.msra.gmra.mxu1 %vm221_vm1, %v187_v28  ;;  %3432 = vmatmul.mubr.msk.bf16.gmra.mxu0 %vm221_vm1, %v372_v29  ;;  %v2940_v28 = vld [vmem:[%s3943_s4 + $0x2e] sm:$0xff]  ;;  %v2957_v29 = vld [vmem:[%s3943_s4 + $0x37] sm:$0xff] }
  0x29   : >> { %3440 = vmatpush3.bf16.msra.mxu1 %v3820_v30  ;;  %3415 = vmatprep.mubr.msk.bf16.mxu1 %vm3881_vm0, %v3880_v2  ;;  %v3834_v30 = vld [vmem:[%s4570_s1 + $0x90] sm:$0xff]   ;;  %v859_v31 = vpack.c.bf16 %v2940_v28, %v2939_v27  ;;  %v957_v32 = vpack.c.bf16 %v2957_v29, %v2957_v29  ;;  %v3035_v12 = vld [vmem:[%s3943_s4 + $0x3b] sm:$0xff] }
  0x2a   : >> { %3435 = vmatprep.mubr.msk.bf16.mxu0 %vm3881_vm0, %v3880_v2  ;;  %3441 = vmatprep.subr.bf16.mxu1 %v3880_v2  ;;  %v3037_v18 = vld [vmem:[%s3943_s4 + $0x4b] sm:$0xff]  ;;  %v3081_v19 = vld [vmem:[%s3943_s4 + $0x3d] sm:$0xff]  ;;  %v3084_v28 = vld [vmem:[%s3943_s4 + $0x55] sm:$0xff] }
  0x2b   : >> { %v3083_v27 = vld [vmem:[%s3943_s4 + $0x4d] sm:$0xff]  ;;  %v3851_v29 = vld [vmem:[%s4570_s1 + $0x120] sm:$0xff]  }
  0x2d   : >> { %3442 = vmatpush3.bf16.msra.mxu1 %v3822_v33  ;;  %v2941_v33 = vld [vmem:[%s3943_s4 + $0x36] sm:$0xff] }
  0x2e   : >> { %3471 = vmatprep.subr.bf16.mxu1 %v3880_v2  ;;  %v860_v38 = vpack.c.bf16 %v2941_v33, %v2941_v33  ;;  %v3085_v33 = vld [vmem:[%s3943_s4 + $0x5d] sm:$0xff] }
  0x30   : >> { %3416 = vmatmul.mubr.msk.bf16.gmra.mxu1 %vm221_vm1, %v188_v34  ;;  %3436 = vmatmul.mubr.msk.bf16.gmra.mxu0 %vm221_vm1, %v373_v35  ;;  %v2985_v34 = vld [vmem:[%s3943_s4 + $0x28] sm:$0xff]  ;;  %v2986_v35 = vld [vmem:[%s3943_s4 + $0x30] sm:$0xff] }
  0x31   : >> { %3419 = vmatprep.mubr.msk.bf16.mxu1 %vm3881_vm0, %v3880_v2  ;;  %3459 = vmatprep.mubr.msk.bf16.mxu0 %vm3881_vm0, %v3880_v2  ;;  %v1150_v40 = vpack.c.bf16 %v2986_v35, %v2985_v34  ;;  %v3850_v34 = vld [vmem:[%s4570_s1 + $0x110] sm:$0xff]  }
  0x38   : >> { %3420 = vmatmul.mubr.msk.bf16.gmra.mxu1 %vm221_vm1, %v189_v41  ;;  %3460 = vmatmul.mubr.msk.bf16.vlgmr.msra.gmra.mxu0 %vm221_vm1, %v565_v42  ;;  %v3837_v41 = vld [vmem:[%s4570_s1 + $0xc8] sm:$0xff]   ;;  %v2987_v42 = vld [vmem:[%s3943_s4 + $0x38] sm:$0xff] }
  0x39   : >> { %3443 = vmatprep.mubr.msk.bf16.mxu1 %vm3881_vm0, %v3880_v2  ;;  %3488 = vmatpush3.bf16.msra.mxu0 %v3825_v43  ;;  %v4179_v43 = vld [vmem:[%s3943_s4 + $0x40] sm:$0xff] }
  0x3a   : >> { %3463 = vmatprep.mubr.msk.bf16.mxu0 %vm3881_vm0, %v3880_v2  ;;  %3489 = vmatprep.subr.bf16.mxu0 %v3880_v2  ;;  %v1151_v45 = vpack.c.bf16 %v4179_v43, %v2987_v42 }
  0x3d   : >> { %3490 = vmatpush3.bf16.msra.mxu0 %v3827_v48  ;;  %v3838_v48 = vld [vmem:[%s4570_s1 + $0xb0] sm:$0xff]  }
  0x3e   : >> { %3519 = vmatprep.subr.bf16.mxu0 %v3880_v2 }
  0x40   : >> { %3444 = vmatmul.mubr.msk.bf16.vlgmr.msra.gmra.mxu1 %vm221_vm1, %v468_v49  ;;  %3464 = vmatmul.mubr.msk.bf16.gmra.mxu0 %vm221_vm1, %v566_v50  ;;  %v1054_v49 = vpack.c.bf16 %v2987_v42, %v2987_v42  ;;  %v4350_v42 = vld [vmem:[%s3943_s4 + $0x5c] sm:$0xff] }
  0x41   : >> { %3472 = vmatpush3.bf16.msra.mxu1 %v3824_v51  ;;  %3447 = vmatprep.mubr.msk.bf16.mxu1 %vm3881_vm0, %v3880_v2  ;;  %v3841_v51 = vld [vmem:[%s4570_s1 + $0xe8] sm:$0xff]  }
  0x42   : >> { %3467 = vmatprep.mubr.msk.bf16.mxu0 %vm3881_vm0, %v3880_v2  ;;  %3473 = vmatprep.subr.bf16.mxu1 %v3880_v2 }
  0x45   : >> { %3474 = vmatpush3.bf16.msra.mxu1 %v3826_v55  ;;  %v3020_v55 = vld [vmem:[%s3943_s4 + $0x42] sm:$0xff] }
  0x46   : >> { %3503 = vmatprep.subr.bf16.mxu1 %v3880_v2  ;;  %v1345_v58 = vpack.c.bf16 %v3020_v55, %v3019_v54  ;;  %v3097_v55 = vld [vmem:[%s3943_s4 + $0x3e] sm:$0xff] }
  0x48   : >> { %3448 = vmatmul.mubr.msk.bf16.gmra.mxu1 %vm221_vm1, %v469_v56  ;;  %3468 = vmatmul.mubr.msk.bf16.gmra.mxu0 %vm221_vm1, %v567_v57  ;;  %v3843_v56 = vld [vmem:[%s4570_s1 + $0xe0] sm:$0xff]   ;;  %v1247_v57 = vpack.c.bf16 %v3002_v53, %v3001_v52 }
  0x49   : >> { %3451 = vmatprep.mubr.msk.bf16.mxu1 %vm3881_vm0, %v3880_v2  ;;  %3491 = vmatprep.mubr.msk.bf16.mxu0 %vm3881_vm0, %v3880_v2 }
  0x50   : >> { %3452 = vmatmul.mubr.msk.bf16.gmra.mxu1 %vm221_vm1, %v470_v62  ;;  %3492 = vmatmul.mubr.msk.bf16.vlgmr.msra.gmra.mxu0 %vm221_vm1, %v761_v63  ;;  %v3021_v62 = vld [vmem:[%s3943_s4 + $0x4a] sm:$0xff] }
  0x51   : >> { %3475 = vmatprep.mubr.msk.bf16.mxu1 %vm3881_vm0, %v3880_v2  ;;  %3520 = vmatpush3.bf16.msra.mxu0 %v3829_v61  ;;  %v3004_v61 = vld [vmem:[%s3943_s4 + $0x41] sm:$0xff]  ;;  %v3842_v63 = vld [vmem:[%s4570_s1 + $0xd0] sm:$0xff]   ;;  %v1346_v3 = vpack.c.bf16 %v3021_v62, %v3021_v62 }
  0x52   : >> { %3495 = vmatprep.mubr.msk.bf16.mxu0 %vm3881_vm0, %v3880_v2  ;;  %3521 = vmatprep.subr.bf16.mxu0 %v3880_v2  ;;  %v1248_v1 = vpack.c.bf16 %v3004_v61, %v3003_v60 }
  0x55   : >> { %3522 = vmatpush3.bf16.msra.mxu0 %v3831_v4  ;;  %v3005_v4 = vld [vmem:[%s3943_s4 + $0x49] sm:$0xff] }
  0x56   : >> { %3551 = vmatprep.subr.bf16.mxu0 %v3880_v2 }
  0x58   : >> { %3476 = vmatmul.mubr.msk.bf16.vlgmr.msra.gmra.mxu1 %vm221_vm1, %v566_v50  ;;  %3496 = vmatmul.mubr.msk.bf16.gmra.mxu0 %vm221_vm1, %v762_v5  ;;  %v1249_v5 = vpack.c.bf16 %v3005_v4, %v3005_v4  ;;  %v3852_v4 = vld [vmem:[%s4570_s1 + $0x138] sm:$0xff]  }
  0x59   : >> { %3504 = vmatpush3.bf16.msra.mxu1 %v3828_v6  ;;  %3479 = vmatprep.mubr.msk.bf16.mxu1 %vm3881_vm0, %v3880_v2  ;;  %v3845_v6 = vld [vmem:[%s4570_s1 + $0x108] sm:$0xff]  }
  0x5a   : >> { %3499 = vmatprep.mubr.msk.bf16.mxu0 %vm3881_vm0, %v3880_v2  ;;  %3505 = vmatprep.subr.bf16.mxu1 %v3880_v2 }
  0x5d   : >> { %3506 = vmatpush3.bf16.msra.mxu1 %v3830_v8  ;;  %v3034_v8 = vld [vmem:[%s3943_s4 + $0x33] sm:$0xff] }
  0x5e   : >> { %3535 = vmatprep.subr.bf16.mxu1 %v3880_v2  ;;  %v1441_v36 = vpack.c.bf16 %v3034_v8, %v3033_v7 }
  0x60   : >> { %3480 = vmatmul.mubr.msk.bf16.gmra.mxu1 %vm221_vm1, %v665_v9  ;;  %3500 = vmatmul.mubr.msk.bf16.gmra.mxu0 %vm221_vm1, %v763_v10  ;;  %v3051_v9 = vld [vmem:[%s3943_s4 + $0x3c] sm:$0xff]  ;;  %v3052_v10 = vld [vmem:[%s3943_s4 + $0x44] sm:$0xff] }
  0x61   : >> { %3483 = vmatprep.mubr.msk.bf16.mxu1 %vm3881_vm0, %v3880_v2  ;;  %3523 = vmatprep.mubr.msk.bf16.mxu0 %vm3881_vm0, %v3880_v2  ;;  %v1539_v37 = vpack.c.bf16 %v3052_v10, %v3051_v9  ;;  %v3099_v9 = vld [vmem:[%s3943_s4 + $0x4e] sm:$0xff] }
  0x68   : >> { %3484 = vmatmul.mubr.msk.bf16.gmra.mxu1 %vm221_vm1, %v666_v13  ;;  %3524 = vmatmul.mubr.msk.bf16.vlgmr.msra.gmra.mxu0 %vm221_vm1, %v955_v14  ;;  %v3036_v13 = vld [vmem:[%s3943_s4 + $0x43] sm:$0xff]  ;;  %v3053_v14 = vld [vmem:[%s3943_s4 + $0x4c] sm:$0xff] }
  0x69   : >> { %3507 = vmatprep.mubr.msk.bf16.mxu1 %vm3881_vm0, %v3880_v2  ;;  %3552 = vmatpush3.bf16.msra.mxu0 %v3833_v15  ;;  %v3846_v15 = vld [vmem:[%s4570_s1 + $0xf0] sm:$0xff]   ;;  %v1442_v16 = vpack.c.bf16 %v3036_v13, %v3035_v12  ;;  %v1540_v17 = vpack.c.bf16 %v3053_v14, %v3053_v14 }
  0x6a   : >> { %3527 = vmatprep.mubr.msk.bf16.mxu0 %vm3881_vm0, %v3880_v2  ;;  %3553 = vmatprep.subr.bf16.mxu0 %v3880_v2 }
  0x6d   : >> { %3554 = vmatpush3.bf16.msra.mxu0 %v3835_v22  ;;  %v3082_v22 = vld [vmem:[%s3943_s4 + $0x45] sm:$0xff] }
  0x6e   : >> { %3583 = vmatprep.subr.bf16.mxu0 %v3880_v2 }
  0x70   : >> { %3508 = vmatmul.mubr.msk.bf16.vlgmr.msra.gmra.mxu1 %vm221_vm1, %v858_v23  ;;  %3528 = vmatmul.mubr.msk.bf16.gmra.mxu0 %vm221_vm1, %v956_v25  ;;  %v1443_v23 = vpack.c.bf16 %v3037_v18, %v3037_v18  ;;  %v1733_v25 = vpack.c.bf16 %v3082_v22, %v3081_v19 }
  0x71   : >> { %3536 = vmatpush3.bf16.msra.mxu1 %v3832_v26  ;;  %3511 = vmatprep.mubr.msk.bf16.mxu1 %vm3881_vm0, %v3880_v2  ;;  %v3849_v26 = vld [vmem:[%s4570_s1 + $0x128] sm:$0xff]  }
  0x72   : >> { %3531 = vmatprep.mubr.msk.bf16.mxu0 %vm3881_vm0, %v3880_v2  ;;  %3537 = vmatprep.subr.bf16.mxu1 %v3880_v2 }
  0x75   : >> { %3538 = vmatpush3.bf16.msra.mxu1 %v3834_v30  ;;  %v1734_v30 = vpack.c.bf16 %v3084_v28, %v3083_v27  ;;  %v3101_v28 = vld [vmem:[%s3943_s4 + $0x5e] sm:$0xff] }
  0x76   : >> { %3567 = vmatprep.subr.bf16.mxu1 %v3880_v2 }
  0x78   : >> { %3512 = vmatmul.mubr.msk.bf16.gmra.mxu1 %vm221_vm1, %v859_v31  ;;  %3532 = vmatmul.mubr.msk.bf16.gmra.mxu0 %vm221_vm1, %v957_v32  ;;  %v3848_v31 = vld [vmem:[%s4570_s1 + $0x118] sm:$0xff]  }
  0x79   : >> { %3515 = vmatprep.mubr.msk.bf16.mxu1 %vm3881_vm0, %v3880_v2  ;;  %3555 = vmatprep.mubr.msk.bf16.mxu0 %vm3881_vm0, %v3880_v2  ;;  %v4332_v32 = vld [vmem:[%s3943_s4 + $0x54] sm:$0xff] }
  0x7a   : >> { %v1637_v35 = vpack.c.bf16 %v4332_v32, %v3053_v14 }
  0x80   : >> { %3516 = vmatmul.mubr.msk.bf16.gmra.mxu1 %vm221_vm1, %v860_v38  ;;  %3556 = vmatmul.mubr.msk.bf16.vlgmr.msra.gmra.mxu0 %vm221_vm1, %v1150_v40  ;;  %v1735_v38 = vpack.c.bf16 %v3085_v33, %v3085_v33 }
  0x81   : >> { %3539 = vmatprep.mubr.msk.bf16.mxu1 %vm3881_vm0, %v3880_v2  ;;  %3584 = vmatpush3.bf16.msra.mxu0 %v3837_v41 }
  0x82   : >> { %3559 = vmatprep.mubr.msk.bf16.mxu0 %vm3881_vm0, %v3880_v2  ;;  %3585 = vmatprep.subr.bf16.mxu0 %v3880_v2 }
  0x85   : >> { %3586 = vmatpush3.bf16.msra.mxu0 %v3839_v44  ;;  %v3113_v44 = vld [vmem:[%s3943_s4 + $0x3f] sm:$0xff] }
  0x86   : >> { %3615 = vmatprep.subr.bf16.mxu0 %v3880_v2 }
  0x88   : >> { %3540 = vmatmul.mubr.msk.bf16.vlgmr.msra.gmra.mxu1 %vm221_vm1, %v1052_v24  ;;  %3560 = vmatmul.mubr.msk.bf16.gmra.mxu0 %vm221_vm1, %v1151_v45  ;;  %v3018_v24 = vld [vmem:[%s3943_s4 + $0x32] sm:$0xff]  ;;  %v3114_v45 = vld [vmem:[%s3943_s4 + $0x47] sm:$0xff] }
  0x89   : >> { %3568 = vmatpush3.bf16.msra.mxu1 %v3836_v46  ;;  %3543 = vmatprep.mubr.msk.bf16.mxu1 %vm3881_vm0, %v3880_v2  ;;  %v1344_v50 = vpack.c.bf16 %v3018_v24, %v3017_v21  ;;  %v1638_v21 = vpack.c.bf16 %v4350_v42, %v4350_v42 }
  0x8a   : >> { %3563 = vmatprep.mubr.msk.bf16.mxu0 %vm3881_vm0, %v3880_v2  ;;  %3569 = vmatprep.subr.bf16.mxu1 %v3880_v2 }
  0x8d   : >> { %3570 = vmatpush3.bf16.msra.mxu1 %v3838_v48 }
  0x8e   : >> { %3599 = vmatprep.subr.bf16.mxu1 %v3880_v2 }
  0x90   : >> { %3544 = vmatmul.mubr.msk.bf16.gmra.mxu1 %vm221_vm1, %v1150_v40  ;;  %3564 = vmatmul.mubr.msk.bf16.gmra.mxu0 %vm221_vm1, %v1152_v20 }
  0x91   : >> { %3547 = vmatprep.mubr.msk.bf16.mxu1 %vm3881_vm0, %v3880_v2  ;;  %3587 = vmatprep.mubr.msk.bf16.mxu0 %vm3881_vm0, %v3880_v2 }
  0x98   : >> { %3548 = vmatmul.mubr.msk.bf16.gmra.mxu1 %vm221_vm1, %v1054_v49  ;;  %3588 = vmatmul.mubr.msk.bf16.vlgmr.msra.gmra.mxu0 %vm221_vm1, %v1344_v50  ;;  %v1927_v49 = vpack.c.bf16 %v3114_v45, %v3113_v44  ;;  %v3853_v50 = vld [vmem:[%s4570_s1 + $0x148] sm:$0xff]  }
  0x99   : >> { %3571 = vmatprep.mubr.msk.bf16.mxu1 %vm3881_vm0, %v3880_v2  ;;  %3616 = vmatpush3.bf16.msra.mxu0 %v3841_v51  ;;  %v3857_v45 = vld [vmem:[%s4570_s1 + $0x168] sm:$0xff]  }
  0x9a   : >> { %3591 = vmatprep.mubr.msk.bf16.mxu0 %vm3881_vm0, %v3880_v2  ;;  %3617 = vmatprep.subr.bf16.mxu0 %v3880_v2 }
  0x9d   : >> { %3618 = vmatpush3.bf16.msra.mxu0 %v3843_v56  ;;  %v3098_v56 = vld [vmem:[%s3943_s4 + $0x46] sm:$0xff] }
  0x9e   : >> { %3647 = vmatprep.subr.bf16.mxu0 %v3880_v2 }
  0xa0   : >> { %3572 = vmatmul.mubr.msk.bf16.vlgmr.msra.gmra.mxu1 %vm221_vm1, %v1247_v57  ;;  %3592 = vmatmul.mubr.msk.bf16.gmra.mxu0 %vm221_vm1, %v1345_v58  ;;  %v3115_v57 = vld [vmem:[%s3943_s4 + $0x4f] sm:$0xff]  ;;  %v3116_v58 = vld [vmem:[%s3943_s4 + $0x57] sm:$0xff] }
  0xa1   : >> { %3600 = vmatpush3.bf16.msra.mxu1 %v3840_v59  ;;  %3575 = vmatprep.mubr.msk.bf16.mxu1 %vm3881_vm0, %v3880_v2  ;;  %v3855_v59 = vld [vmem:[%s4570_s1 + $0x140] sm:$0xff]  }
  0xa2   : >> { %3595 = vmatprep.mubr.msk.bf16.mxu0 %vm3881_vm0, %v3880_v2  ;;  %3601 = vmatprep.subr.bf16.mxu1 %v3880_v2 }
  0xa5   : >> { %3602 = vmatpush3.bf16.msra.mxu1 %v3842_v63  ;;  %v1830_v63 = vpack.c.bf16 %v3098_v56, %v3097_v55 }
  0xa6   : >> { %3631 = vmatprep.subr.bf16.mxu1 %v3880_v2 }
  0xa8   : >> { %3576 = vmatmul.mubr.msk.bf16.gmra.mxu1 %vm221_vm1, %v1248_v1  ;;  %3596 = vmatmul.mubr.msk.bf16.gmra.mxu0 %vm221_vm1, %v1346_v3  ;;  %v1928_v3 = vpack.c.bf16 %v3116_v58, %v3115_v57  ;;  %v2024_v57 = vpack.c.bf16 %v4200_v47, %v4179_v43  ;;  %v3149_v43 = vld [vmem:[%s3943_s4 + $0x70] sm:$0xff] }
  0xa9   : >> { %3579 = vmatprep.mubr.msk.bf16.mxu1 %vm3881_vm0, %v3880_v2  ;;  %3619 = vmatprep.mubr.msk.bf16.mxu0 %vm3881_vm0, %v3880_v2  ;;  %v3858_v47 = vld [vmem:[%s4570_s1 + $0x150] sm:$0xff]  }
  0xb0   : >> { %3580 = vmatmul.mubr.msk.bf16.gmra.mxu1 %vm221_vm1, %v1249_v5  ;;  %3620 = vmatmul.mubr.msk.bf16.vlgmr.msra.gmra.mxu0 %vm221_vm1, %v1538_v39  ;;  %v3844_v39 = vld [vmem:[%s4570_s1 + $0xf8] sm:$0xff]  }
  0xb1   : >> { %3603 = vmatprep.mubr.msk.bf16.mxu1 %vm3881_vm0, %v3880_v2  ;;  %3648 = vmatpush3.bf16.msra.mxu0 %v3845_v6 }
  0xb2   : >> { %3623 = vmatprep.mubr.msk.bf16.mxu0 %vm3881_vm0, %v3880_v2  ;;  %3649 = vmatprep.subr.bf16.mxu0 %v3880_v2 }
  0xb5   : >> { %3650 = vmatpush3.bf16.msra.mxu0 %v3847_v11  ;;  %v3100_v11 = vld [vmem:[%s3943_s4 + $0x56] sm:$0xff] }
  0xb6   : >> { %3679 = vmatprep.subr.bf16.mxu0 %v3880_v2 }
  0xb8   : >> { %3604 = vmatmul.mubr.msk.bf16.vlgmr.msra.gmra.mxu1 %vm221_vm1, %v1441_v36  ;;  %3624 = vmatmul.mubr.msk.bf16.gmra.mxu0 %vm221_vm1, %v1539_v37  ;;  %v3117_v36 = vld [vmem:[%s3943_s4 + $0x5f] sm:$0xff] }
  0xb9   : >> { %3632 = vmatpush3.bf16.msra.mxu1 %v3844_v39  ;;  %3607 = vmatprep.mubr.msk.bf16.mxu1 %vm3881_vm0, %v3880_v2 }
  0xba   : >> { %3627 = vmatprep.mubr.msk.bf16.mxu0 %vm3881_vm0, %v3880_v2  ;;  %3633 = vmatprep.subr.bf16.mxu1 %v3880_v2 }
  0xbd   : >> { %3634 = vmatpush3.bf16.msra.mxu1 %v3846_v15  ;;  %v1831_v15 = vpack.c.bf16 %v3100_v11, %v3099_v9  ;;  %v2124_v9 = vpack.c.bf16 %v3149_v43, %v3149_v43 }
  0xbe   : >> { %3663 = vmatprep.subr.bf16.mxu1 %v3880_v2 }
  0xc0   : >> { %3608 = vmatmul.mubr.msk.bf16.gmra.mxu1 %vm221_vm1, %v1442_v16  ;;  %3628 = vmatmul.mubr.msk.bf16.gmra.mxu0 %vm221_vm1, %v1540_v17  ;;  %v1929_v17 = vpack.c.bf16 %v3117_v36, %v3117_v36 }
  0xc1   : >> { %3611 = vmatprep.mubr.msk.bf16.mxu1 %vm3881_vm0, %v3880_v2  ;;  %3651 = vmatprep.mubr.msk.bf16.mxu0 %vm3881_vm0, %v3880_v2 }
  0xc8   : >> { %3612 = vmatmul.mubr.msk.bf16.gmra.mxu1 %vm221_vm1, %v1443_v23  ;;  %3652 = vmatmul.mubr.msk.bf16.vlgmr.msra.gmra.mxu0 %vm221_vm1, %v1733_v25 }
  0xc9   : >> { %3635 = vmatprep.mubr.msk.bf16.mxu1 %vm3881_vm0, %v3880_v2  ;;  %3680 = vmatpush3.bf16.msra.mxu0 %v3849_v26 }
  0xca   : >> { %3655 = vmatprep.mubr.msk.bf16.mxu0 %vm3881_vm0, %v3880_v2  ;;  %3681 = vmatprep.subr.bf16.mxu0 %v3880_v2 }
  0xcd   : >> { %3682 = vmatpush3.bf16.msra.mxu0 %v3851_v29  ;;  %v3145_v29 = vld [vmem:[%s3943_s4 + $0x50] sm:$0xff] }
  0xce   : >> { %3711 = vmatprep.subr.bf16.mxu0 %v3880_v2 }
  0xd0   : >> { %3636 = vmatmul.mubr.msk.bf16.vlgmr.msra.gmra.mxu1 %vm221_vm1, %v1539_v37  ;;  %3656 = vmatmul.mubr.msk.bf16.gmra.mxu0 %vm221_vm1, %v1734_v30  ;;  %v3854_v37 = vld [vmem:[%s4570_s1 + $0x130] sm:$0xff]   ;;  %v3146_v30 = vld [vmem:[%s3943_s4 + $0x58] sm:$0xff] }
  0xd1   : >> { %3664 = vmatpush3.bf16.msra.mxu1 %v3848_v31  ;;  %3639 = vmatprep.mubr.msk.bf16.mxu1 %vm3881_vm0, %v3880_v2  ;;  %v2122_v44 = vpack.c.bf16 %v3146_v30, %v3145_v29 }
  0xd2   : >> { %3659 = vmatprep.mubr.msk.bf16.mxu0 %vm3881_vm0, %v3880_v2  ;;  %3665 = vmatprep.subr.bf16.mxu1 %v3880_v2 }
  0xd5   : >> { %3666 = vmatpush3.bf16.msra.mxu1 %v3850_v34 }
  0xd6   : >> { %3695 = vmatprep.subr.bf16.mxu1 %v3880_v2 }
  0xd8   : >> { %v4343_v40 = vpop.f32.mrf.mxu1  ;;  %3640 = vmatmul.mubr.msk.bf16.gmra.mxu1 %vm221_vm1, %v1637_v35  ;;  %v265_v41 = vpop.f32.mrf.mxu0  ;;  %3660 = vmatmul.mubr.msk.bf16.gmra.mxu0 %vm221_vm1, %v1735_v38  ;;  %v1832_v38 = vpack.c.bf16 %v3101_v28, %v3101_v28 }
  0xd9   : >> { %3643 = vmatprep.mubr.msk.bf16.mxu1 %vm3881_vm0, %v3880_v2  ;;  %3683 = vmatprep.mubr.msk.bf16.mxu0 %vm3881_vm0, %v3880_v2 }
  0xda   : >> { %v3401_v46 = vpop.f32.mrf.mxu1  ;;  %v3397_v48 = vpop.f32.mrf.mxu0 }
  0xdc   : >> { %v4356_v20 = vpop.f32.mrf.mxu1  ;;  %v268_v24 = vpop.f32.mrf.mxu0 }
  0xde   : >> { %v3402_v51 = vpop.f32.mrf.mxu1  ;;  %v3398_v52 = vpop.f32.mrf.mxu0 }
  0xdf   : >> { %v3148_v51 = vld [vmem:[%s3943_s4 + $0x68] sm:$0xff]  ;;  %v3859_v52 = vld [vmem:[%s4570_s1 + $0x160] sm:$0xff]  }
  0xe0   : >> { %v4363_v53 = vpop.f32.mrf.mxu1  ;;  %3644 = vmatmul.mubr.msk.bf16.gmra.mxu1 %vm221_vm1, %v1638_v21  ;;  %v434_v54 = vpop.f32.mrf.mxu0  ;;  %3684 = vmatmul.mubr.msk.bf16.vlgmr.msra.gmra.mxu0 %vm221_vm1, %v1927_v49 }
  0xe1   : >> { %3667 = vmatprep.mubr.msk.bf16.mxu1 %vm3881_vm0, %v3880_v2  ;;  %3712 = vmatpush3.bf16.msra.mxu0 %v3853_v50 }
  0xe2   : >> { %v3405_v60 = vpop.f32.mrf.mxu1  ;;  %v3429_v61 = vpop.f32.mrf.mxu0  ;;  %3687 = vmatprep.mubr.msk.bf16.mxu0 %vm3881_vm0, %v3880_v2  ;;  %3713 = vmatprep.subr.bf16.mxu0 %v3880_v2 }
  0xe3   : >> { %v3856_v60 = vld [vmem:[%s4570_s1 + $0x158] sm:$0xff]  }
  0xe4   : >> { %v284_v62 = vpop.f32.mrf.mxu1  ;;  %v437_v1 = vpop.f32.mrf.mxu0 }
  0xe5   : >> { %3714 = vmatpush3.bf16.msra.mxu0 %v3855_v59 }
  0xe6   : >> { %v3406_v5 = vpop.f32.mrf.mxu1  ;;  %v3430_v6 = vpop.f32.mrf.mxu0  ;;  %3743 = vmatprep.subr.bf16.mxu0 %v3880_v2 }
  0xe8   : >> { %v342_v7 = vpop.f32.mrf.mxu1  ;;  %3668 = vmatmul.mubr.msk.bf16.vlgmr.msra.gmra.mxu1 %vm221_vm1, %v1830_v63  ;;  %v442_v8 = vpop.f32.mrf.mxu0  ;;  %3688 = vmatmul.mubr.msk.bf16.gmra.mxu0 %vm221_vm1, %v1928_v3 }
  0xe9   : >> { %v343_v10 = vadd.f32 %v342_v7, %v265_v41  ;;  %3696 = vmatpush3.bf16.msra.mxu1 %v3852_v4  ;;  %3671 = vmatprep.mubr.msk.bf16.mxu1 %vm3881_vm0, %v3880_v2 }
  0xea   : >> { %v3413_v39 = vpop.f32.mrf.mxu1  ;;  %v3433_v12 = vpop.f32.mrf.mxu0  ;;  %3691 = vmatprep.mubr.msk.bf16.mxu0 %vm3881_vm0, %v3880_v2  ;;  %3697 = vmatprep.subr.bf16.mxu1 %v3880_v2 }
  0xeb   : >> { %v456_v13 = vadd.f32 %v434_v54, %v343_v10 }
  0xec   : >> { %v345_v14 = vpop.f32.mrf.mxu1  ;;  %v445_v16 = vpop.f32.mrf.mxu0 }
  0xed   : >> { %v346_v18 = vadd.f32 %v345_v14, %v268_v24  ;;  %3698 = vmatpush3.bf16.msra.mxu1 %v3854_v37  ;;  %v3177_v14 = vld [vmem:[%s3943_s4 + $0x52] sm:$0xff] }
  0xee   : >> { %v3414_v19 = vpop.f32.mrf.mxu1  ;;  %v3434_v22 = vpop.f32.mrf.mxu0  ;;  %3727 = vmatprep.subr.bf16.mxu1 %v3880_v2 }
  0xef   : >> { %v4397_v23 = vadd.f32 %v437_v1, %v346_v18 }
  0xf0   : >> { %v350_v25 = vpop.f32.mrf.mxu1  ;;  %3672 = vmatmul.mubr.msk.bf16.gmra.mxu1 %vm221_vm1, %v1831_v15  ;;  %v450_v26 = vpop.f32.mrf.mxu0  ;;  %3692 = vmatmul.mubr.msk.bf16.gmra.mxu0 %vm221_vm1, %v1929_v17  ;;  %v3178_v15 = vld [vmem:[%s3943_s4 + $0x5a] sm:$0xff] }
  0xf1   : >> { %v351_v27 = vadd.f32 %v350_v25, %v4343_v40  ;;  %3675 = vmatprep.mubr.msk.bf16.mxu1 %vm3881_vm0, %v3880_v2  ;;  %3715 = vmatprep.mubr.msk.bf16.mxu0 %vm3881_vm0, %v3880_v2  ;;  %v2316_v25 = vpack.c.bf16 %v3178_v15, %v3177_v14  ;;  %v2510_v14 = vpack.c.bf16 %v4350_v42, %v4332_v32  ;;  %v3211_v32 = vld [vmem:[%s3943_s4 + $0x64] sm:$0xff]  ;;  %v3212_v42 = vld [vmem:[%s3943_s4 + $0x6c] sm:$0xff] }
  0xf2   : >> { %v3417_v31 = vpop.f32.mrf.mxu1  ;;  %v3437_v33 = vpop.f32.mrf.mxu0 }
  0xf3   : >> { %v458_v34 = vadd.f32 %v442_v8, %v351_v27  ;;  %v3861_v27 = vld [vmem:[%s4570_s1 + $0x188] sm:$0xff]  }
  0xf4   : >> { %v353_v35 = vpop.f32.mrf.mxu1  ;;  %v453_v41 = vpop.f32.mrf.mxu0 }
  0xf5   : >> { %v354_v40 = vadd.f32 %v353_v35, %v4356_v20  ;;  %v4421_v20 = vld [vmem:[%s3943_s4 + $0x60] sm:$0xff] }
  0xf6   : >> { %v3418_v46 = vpop.f32.mrf.mxu1  ;;  %v3438_v48 = vpop.f32.mrf.mxu0  ;;  %v2123_v59 = vpack.c.bf16 %v3148_v51, %v4421_v20  ;;  %v2026_v22 = vpack.c.bf16 %v4421_v20, %v4421_v20  ;;  %v3162_v35 = vld [vmem:[%s3943_s4 + $0x59] sm:$0xff]  ;;  %v3179_v41 = vld [vmem:[%s3943_s4 + $0x62] sm:$0xff] }
  0xf7   : >> { %v4413_v21 = vadd.f32 %v445_v16, %v354_v40  ;;  %v3863_v40 = vld [vmem:[%s4570_s1 + $0x180] sm:$0xff]   ;;  %v3860_v20 = vld [vmem:[%s4570_s1 + $0x178] sm:$0xff]  }
  0xf8   : >> { %v358_v24 = vpop.f32.mrf.mxu1  ;;  %3676 = vmatmul.mubr.msk.bf16.gmra.mxu1 %vm221_vm1, %v1832_v38  ;;  %v628_v49 = vpop.f32.mrf.mxu0  ;;  %3716 = vmatmul.mubr.msk.bf16.vlgmr.msra.gmra.mxu0 %vm221_vm1, %v2122_v44 }
  0xf9   : >> { %v359_v50 = vadd.f32 %v358_v24, %v4363_v53  ;;  %3699 = vmatprep.mubr.msk.bf16.mxu1 %vm3881_vm0, %v3880_v2  ;;  %3744 = vmatpush3.bf16.msra.mxu0 %v3857_v45 }
  0xfa   : >> { %v3421_v54 = vpop.f32.mrf.mxu1  ;;  %v3461_v55 = vpop.f32.mrf.mxu0  ;;  %3719 = vmatprep.mubr.msk.bf16.mxu0 %vm3881_vm0, %v3880_v2  ;;  %3745 = vmatprep.subr.bf16.mxu0 %v3880_v2 }
  0xfb   : >> { %v460_v56 = vadd.f32 %v450_v26, %v359_v50 }
  0xfc   : >> { %v361_v53 = vpop.f32.mrf.mxu1  ;;  %v631_v58 = vpop.f32.mrf.mxu0 }
  0xfd   : >> { %3746 = vmatpush3.bf16.msra.mxu0 %v3859_v52 }
  0xfe   : >> { %v3422_v61 = vpop.f32.mrf.mxu1  ;;  %v3462_v62 = vpop.f32.mrf.mxu0  ;;  %3775 = vmatprep.subr.bf16.mxu0 %v3880_v2 }
 0x100   : >> { %v531_v63 = vpop.f32.mrf.mxu1  ;;  %3700 = vmatmul.mubr.msk.bf16.vlgmr.msra.gmra.mxu1 %vm221_vm1, %v2024_v57  ;;  %v636_v1 = vpop.f32.mrf.mxu0  ;;  %3720 = vmatmul.mubr.msk.bf16.gmra.mxu0 %vm221_vm1, %v2123_v59  ;;  %v3164_v57 = vld [vmem:[%s3943_s4 + $0x69] sm:$0xff] }
 0x101   : >> { %v553_v3 = vadd.f32 %v531_v63, %v456_v13  ;;  %3728 = vmatpush3.bf16.msra.mxu1 %v3856_v60  ;;  %3703 = vmatprep.mubr.msk.bf16.mxu1 %vm3881_vm0, %v3880_v2  ;;  %v3862_v59 = vld [vmem:[%s4570_s1 + $0x170] sm:$0xff]  }
 0x102   : >> { %v3445_v4 = vpop.f32.mrf.mxu1  ;;  %v3465_v5 = vpop.f32.mrf.mxu0  ;;  %3723 = vmatprep.mubr.msk.bf16.mxu0 %vm3881_vm0, %v3880_v2  ;;  %3729 = vmatprep.subr.bf16.mxu1 %v3880_v2 }
 0x103   : >> { %v650_v6 = vadd.f32 %v628_v49, %v553_v3 }
 0x104   : >> { %v534_v7 = vpop.f32.mrf.mxu1  ;;  %v639_v8 = vpop.f32.mrf.mxu0 }
 0x105   : >> { %v554_v10 = vadd.f32 %v534_v7, %v4397_v23  ;;  %3730 = vmatpush3.bf16.msra.mxu1 %v3858_v47 }
 0x106   : >> { %v3446_v11 = vpop.f32.mrf.mxu1  ;;  %v3466_v36 = vpop.f32.mrf.mxu0  ;;  %3759 = vmatprep.subr.bf16.mxu1 %v3880_v2 }
 0x107   : >> { %v4450_v37 = vadd.f32 %v631_v58, %v554_v10  ;;  %v3181_v58 = vld [vmem:[%s3943_s4 + $0x72] sm:$0xff] }
 0x108   : >> { %v539_v39 = vpop.f32.mrf.mxu1  ;;  %3704 = vmatmul.mubr.msk.bf16.gmra.mxu1 %vm221_vm1, %v2122_v44  ;;  %v644_v12 = vpop.f32.mrf.mxu0  ;;  %3724 = vmatmul.mubr.msk.bf16.gmra.mxu0 %vm221_vm1, %v2124_v9  ;;  %v3180_v44 = vld [vmem:[%s3943_s4 + $0x6a] sm:$0xff]  ;;  %v2318_v43 = vpack.c.bf16 %v3181_v58, %v3181_v58 }
 0x109   : >> { %v555_v13 = vadd.f32 %v539_v39, %v458_v34  ;;  %3707 = vmatprep.mubr.msk.bf16.mxu1 %vm3881_vm0, %v3880_v2  ;;  %3747 = vmatprep.mubr.msk.bf16.mxu0 %vm3881_vm0, %v3880_v2  ;;  %v3161_v34 = vld [vmem:[%s3943_s4 + $0x51] sm:$0xff]  ;;  %v2317_v50 = vpack.c.bf16 %v3180_v44, %v3179_v41 }
 0x10a   : >> { %v3449_v16 = vpop.f32.mrf.mxu1  ;;  %v3469_v17 = vpop.f32.mrf.mxu0  ;;  %v2219_v24 = vpack.c.bf16 %v3162_v35, %v3161_v34  ;;  %v3165_v10 = vld [vmem:[%s3943_s4 + $0x71] sm:$0xff]  ;;  %v2511_v34 = vpack.c.bf16 %v3212_v42, %v3211_v32 }
 0x10b   : >> { %v4460_v18 = vadd.f32 %v636_v1, %v555_v13 }
 0x10c   : >> { %v542_v19 = vpop.f32.mrf.mxu1  ;;  %v647_v23 = vpop.f32.mrf.mxu0 }
 0x10d   : >> { %v556_v26 = vadd.f32 %v542_v19, %v4413_v21  ;;  %v3193_v23 = vld [vmem:[%s3943_s4 + $0x53] sm:$0xff] }
 0x10e   : >> { %v3450_v28 = vpop.f32.mrf.mxu1  ;;  %v3470_v29 = vpop.f32.mrf.mxu0 }
 0x10f   : >> { %v4468_v30 = vadd.f32 %v639_v8, %v556_v26  ;;  %v3194_v26 = vld [vmem:[%s3943_s4 + $0x5b] sm:$0xff] }
 0x110   : >> { %v547_v31 = vpop.f32.mrf.mxu1  ;;  %3708 = vmatmul.mubr.msk.bf16.gmra.mxu1 %vm221_vm1, %v2026_v22  ;;  %v824_v33 = vpop.f32.mrf.mxu0  ;;  %3748 = vmatmul.mubr.msk.bf16.vlgmr.msra.gmra.mxu0 %vm221_vm1, %v2316_v25 }
 0x111   : >> { %v557_v38 = vadd.f32 %v547_v31, %v460_v56  ;;  %3731 = vmatprep.mubr.msk.bf16.mxu1 %vm3881_vm0, %v3880_v2  ;;  %3776 = vmatpush3.bf16.msra.mxu0 %v3861_v27  ;;  %v3163_v56 = vld [vmem:[%s3943_s4 + $0x61] sm:$0xff]  ;;  %v2413_v31 = vpack.c.bf16 %v3194_v26, %v3193_v23 }
 0x112   : >> { %v3453_v45 = vpop.f32.mrf.mxu1  ;;  %v3493_v46 = vpop.f32.mrf.mxu0  ;;  %3751 = vmatprep.mubr.msk.bf16.mxu0 %vm3881_vm0, %v3880_v2  ;;  %3777 = vmatprep.subr.bf16.mxu0 %v3880_v2  ;;  %v2220_v1 = vpack.c.bf16 %v3164_v57, %v3163_v56 }
 0x113   : >> { %v654_v48 = vadd.f32 %v644_v12, %v557_v38  ;;  %v2221_v12 = vpack.c.bf16 %v3165_v10, %v3165_v10  ;;  %v3195_v45 = vld [vmem:[%s3943_s4 + $0x63] sm:$0xff]  ;;  %v3196_v46 = vld [vmem:[%s3943_s4 + $0x6b] sm:$0xff] }
 0x114   : >> { %v550_v21 = vpop.f32.mrf.mxu1  ;;  %v827_v49 = vpop.f32.mrf.mxu0 }
 0x115   : >> { %3778 = vmatpush3.bf16.msra.mxu0 %v3863_v40 }
 0x116   : >> { %v3454_v51 = vpop.f32.mrf.mxu1  ;;  %v3494_v52 = vpop.f32.mrf.mxu0 }
 0x118   : >> { %v727_v54 = vpop.f32.mrf.mxu1  ;;  %3732 = vmatmul.mubr.msk.bf16.vlgmr.msra.gmra.mxu1 %vm221_vm1, %v2219_v24  ;;  %v832_v55 = vpop.f32.mrf.mxu0  ;;  %3752 = vmatmul.mubr.msk.bf16.gmra.mxu0 %vm221_vm1, %v2317_v50 }
 0x119   : >> { %v749_v53 = vadd.f32 %v727_v54, %v650_v6  ;;  %3760 = vmatpush3.bf16.msra.mxu1 %v3860_v20  ;;  %3735 = vmatprep.mubr.msk.bf16.mxu1 %vm3881_vm0, %v3880_v2  ;;  %v2414_v20 = vpack.c.bf16 %v3196_v46, %v3195_v45 }
 0x11a   : >> { %v3477_v60 = vpop.f32.mrf.mxu1  ;;  %v3497_v61 = vpop.f32.mrf.mxu0  ;;  %3755 = vmatprep.mubr.msk.bf16.mxu0 %vm3881_vm0, %v3880_v2  ;;  %3761 = vmatprep.subr.bf16.mxu1 %v3880_v2 }
 0x11b   : >> { %v846_v62 = vadd.f32 %v824_v33, %v749_v53  ;;  %v3197_v60 = vld [vmem:[%s3943_s4 + $0x73] sm:$0xff] }
 0x11c   : >> { %v730_v63 = vpop.f32.mrf.mxu1  ;;  %v835_v3 = vpop.f32.mrf.mxu0 }
 0x11d   : >> { %v750_v47 = vadd.f32 %v730_v63, %v4450_v37  ;;  %3762 = vmatpush3.bf16.msra.mxu1 %v3862_v59 }
 0x11e   : >> { %v3478_v4 = vpop.f32.mrf.mxu1  ;;  %v3498_v5 = vpop.f32.mrf.mxu0 }
 0x11f   : >> { %v847_v6 = vadd.f32 %v827_v49, %v750_v47 }
 0x120   : >> { %v735_v7 = vpop.f32.mrf.mxu1  ;;  %3736 = vmatmul.mubr.msk.bf16.gmra.mxu1 %vm221_vm1, %v2220_v1  ;;  %v840_v8 = vpop.f32.mrf.mxu0  ;;  %3756 = vmatmul.mubr.msk.bf16.gmra.mxu0 %vm221_vm1, %v2318_v43 }
 0x121   : >> { %v751_v9 = vadd.f32 %v735_v7, %v4460_v18  ;;  %3739 = vmatprep.mubr.msk.bf16.mxu1 %vm3881_vm0, %v3880_v2  ;;  %3779 = vmatprep.mubr.msk.bf16.mxu0 %vm3881_vm0, %v3880_v2 }
 0x122   : >> { %v3481_v11 = vpop.f32.mrf.mxu1  ;;  %v3501_v36 = vpop.f32.mrf.mxu0 }
 0x123   : >> { %v848_v37 = vadd.f32 %v832_v55, %v751_v9 }
 0x124   : >> { %v738_v39 = vpop.f32.mrf.mxu1  ;;  %v843_v13 = vpop.f32.mrf.mxu0 }
 0x125   : >> { %v752_v15 = vadd.f32 %v738_v39, %v4468_v30 }
 0x126   : >> { %v3482_v16 = vpop.f32.mrf.mxu1  ;;  %v3502_v17 = vpop.f32.mrf.mxu0 }
 0x127   : >> { %v849_v18 = vadd.f32 %v835_v3, %v752_v15  ;;  %v2415_v3 = vpack.c.bf16 %v3197_v60, %v3197_v60 }
 0x128   : >> { %v743_v19 = vpop.f32.mrf.mxu1  ;;  %3740 = vmatmul.mubr.msk.bf16.gmra.mxu1 %vm221_vm1, %v2221_v12  ;;  %v1018_v22 = vpop.f32.mrf.mxu0  ;;  %3780 = vmatmul.mubr.msk.bf16.vlgmr.msra.gmra.mxu0 %vm221_vm1, %v2510_v14 }
 0x129   : >> { %v753_v25 = vadd.f32 %v743_v19, %v654_v48  ;;  %3763 = vmatprep.mubr.msk.bf16.mxu1 %vm3881_vm0, %v3880_v2  ;;  %3783 = vmatprep.mubr.msk.bf16.mxu0 %vm3881_vm0, %v3880_v2  ;;  %v3213_v48 = vld [vmem:[%s3943_s4 + $0x74] sm:$0xff]  ;;  %s3224_s4 = sshll.u32 %s3878_s25, 3  ;;  %s179_s25 = sadd.s32 1, %s3878_s25  }
 0x12a   : >> { %v3485_v27 = vpop.f32.mrf.mxu1  ;;  %v3525_v28 = vpop.f32.mrf.mxu0  ;;  %v2512_v52 = vpack.c.bf16 %v3213_v48, %v3213_v48  ;;  %s2627_s14 = scalar_lea.vmem [#allocation3], %s3224_s4  ;;  %p176_p5 = scmp.ge.s32.totalorder %s179_s25, 8  }
 0x12b   : >> { %v850_v29 = vadd.f32 %v840_v8, %v753_v25 }
 0x12c   : >> { %v746_v30 = vpop.f32.mrf.mxu1  ;;  %v1021_v33 = vpop.f32.mrf.mxu0 }
 0x12e   : >> { %v3486_v35 = vpop.f32.mrf.mxu1  ;;  %v3526_v38 = vpop.f32.mrf.mxu0 }
 0x130   : >> { %v921_v41 = vpop.f32.mrf.mxu1  ;;  %3764 = vmatmul.mubr.msk.bf16.vlgmr.msra.gmra.mxu1 %vm221_vm1, %v2413_v31  ;;  %v1026_v44 = vpop.f32.mrf.mxu0  ;;  %3784 = vmatmul.mubr.msk.bf16.gmra.mxu0 %vm221_vm1, %v2511_v34 }
 0x131   : >> { %v943_v40 = vadd.f32 %v921_v41, %v846_v62  ;;  %3767 = vmatprep.mubr.msk.bf16.mxu1 %vm3881_vm0, %v3880_v2  ;;  %3787 = vmatprep.mubr.msk.bf16.mxu0 %vm3881_vm0, %v3880_v2 }
 0x132   : >> { %v3509_v21 = vpop.f32.mrf.mxu1  ;;  %v3529_v24 = vpop.f32.mrf.mxu0 }
 0x133   : >> { %v1040_v49 = vadd.f32 %v1018_v22, %v943_v40 }
 0x134   : >> { %v924_v50 = vpop.f32.mrf.mxu1  ;;  %v1029_v51 = vpop.f32.mrf.mxu0 }
 0x135   : >> { %v944_v54 = vadd.f32 %v924_v50, %v847_v6 }
 0x136   : >> { %v3510_v55 = vpop.f32.mrf.mxu1  ;;  %v3530_v56 = vpop.f32.mrf.mxu0 }
 0x137   : >> { %v1041_v53 = vadd.f32 %v1021_v33, %v944_v54 }
 0x138   : >> { %v929_v57 = vpop.f32.mrf.mxu1  ;;  %3768 = vmatmul.mubr.msk.bf16.gmra.mxu1 %vm221_vm1, %v2414_v20  ;;  %v1034_v58 = vpop.f32.mrf.mxu0  ;;  %3788 = vmatmul.mubr.msk.bf16.gmra.mxu0 %vm221_vm1, %v2512_v52 }
 0x139   : >> { %v945_v59 = vadd.f32 %v929_v57, %v848_v37  ;;  %3771 = vmatprep.mubr.msk.bf16.mxu1 %vm3881_vm0, %v3880_v2 }
 0x13a   : >> { %v3513_v61 = vpop.f32.mrf.mxu1  ;;  %v3533_v62 = vpop.f32.mrf.mxu0 }
 0x13b   : >> { %v1042_v63 = vadd.f32 %v1026_v44, %v945_v59 }
 0x13c   : >> { %v932_v1 = vpop.f32.mrf.mxu1  ;;  %v1037_v43 = vpop.f32.mrf.mxu0 }
 0x13d   : >> { %v946_v47 = vadd.f32 %v932_v1, %v849_v18 }
 0x13e   : >> { %v3514_v4 = vpop.f32.mrf.mxu1  ;;  %v3534_v5 = vpop.f32.mrf.mxu0 }
 0x13f   : >> { %v1043_v6 = vadd.f32 %v1029_v51, %v946_v47 }
 0x140   : >> { %v937_v7 = vpop.f32.mrf.mxu1  ;;  %3772 = vmatmul.mubr.msk.bf16.gmra.mxu1 %vm221_vm1, %v2415_v3  ;;  %v1213_v8 = vpop.f32.mrf.mxu0 }
 0x141   : >> { %v947_v9 = vadd.f32 %v937_v7, %v850_v29 }
 0x142   : >> { %v3517_v10 = vpop.f32.mrf.mxu1  ;;  %v3557_v11 = vpop.f32.mrf.mxu0 }
 0x143   : >> { %v1044_v36 = vadd.f32 %v1034_v58, %v947_v9 }
 0x144   : >> { %v940_v2 = vpop.f32.mrf.mxu1  ;;  %v1216_v37 = vpop.f32.mrf.mxu0 }
 0x146   : >> { %v3518_v39 = vpop.f32.mrf.mxu1  ;;  %v3558_v12 = vpop.f32.mrf.mxu0 }
 0x148   : >> { %v1115_v13 = vpop.f32.mrf.mxu1  ;;  %v1221_v14 = vpop.f32.mrf.mxu0 }
 0x149   : >> { %v1137_v15 = vadd.f32 %v1115_v13, %v1040_v49 }
 0x14a   : >> { %v3541_v16 = vpop.f32.mrf.mxu1  ;;  %v3561_v17 = vpop.f32.mrf.mxu0 }
 0x14b   : >> { %v1235_v18 = vadd.f32 %v1213_v8, %v1137_v15 }
 0x14c   : >> { %v1118_v19 = vpop.f32.mrf.mxu1  ;;  %v1224_v22 = vpop.f32.mrf.mxu0 }
 0x14d   : >> { %v1138_v23 = vadd.f32 %v1118_v19, %v1041_v53 }
 0x14e   : >> { %v3542_v25 = vpop.f32.mrf.mxu1  ;;  %v3562_v26 = vpop.f32.mrf.mxu0 }
 0x14f   : >> { %v1236_v32 = vadd.f32 %v1216_v37, %v1138_v23 }
 0x150   : >> { %v1123_v42 = vpop.f32.mrf.mxu1  ;;  %v1229_v27 = vpop.f32.mrf.mxu0 }
 0x151   : >> { %v1139_v28 = vadd.f32 %v1123_v42, %v1042_v63 }
 0x152   : >> { %v3545_v29 = vpop.f32.mrf.mxu1  ;;  %v3565_v30 = vpop.f32.mrf.mxu0 }
 0x153   : >> { %v1237_v31 = vadd.f32 %v1221_v14, %v1139_v28 }
 0x154   : >> { %v1126_v33 = vpop.f32.mrf.mxu1  ;;  %v1232_v34 = vpop.f32.mrf.mxu0 }
 0x155   : >> { %v1140_v35 = vadd.f32 %v1126_v33, %v1043_v6 }
 0x156   : >> { %v3546_v38 = vpop.f32.mrf.mxu1  ;;  %v3566_v41 = vpop.f32.mrf.mxu0 }
 0x157   : >> { %v1238_v44 = vadd.f32 %v1224_v22, %v1140_v35 }
 0x158   : >> { %v1131_v40 = vpop.f32.mrf.mxu1  ;;  %v1407_v45 = vpop.f32.mrf.mxu0 }
 0x159   : >> { %v1141_v46 = vadd.f32 %v1131_v40, %v1044_v36 }
 0x15a   : >> { %v3549_v48 = vpop.f32.mrf.mxu1  ;;  %v3589_v21 = vpop.f32.mrf.mxu0 }
 0x15b   : >> { %v1239_v24 = vadd.f32 %v1229_v27, %v1141_v46 }
 0x15c   : >> { %v1134_v49 = vpop.f32.mrf.mxu1  ;;  %v1410_v50 = vpop.f32.mrf.mxu0 }
 0x15e   : >> { %v3550_v20 = vpop.f32.mrf.mxu1  ;;  %v3590_v51 = vpop.f32.mrf.mxu0 }
 0x160   : >> { %v1310_v52 = vpop.f32.mrf.mxu1  ;;  %v1415_v54 = vpop.f32.mrf.mxu0 }
 0x161   : >> { %v1332_v55 = vadd.f32 %v1310_v52, %v1235_v18 }
 0x162   : >> { %v3573_v56 = vpop.f32.mrf.mxu1  ;;  %v3593_v53 = vpop.f32.mrf.mxu0 }
 0x163   : >> { %v1429_v57 = vadd.f32 %v1407_v45, %v1332_v55 }
 0x164   : >> { %v1313_v58 = vpop.f32.mrf.mxu1  ;;  %v1418_v59 = vpop.f32.mrf.mxu0 }
 0x165   : >> { %v1333_v60 = vadd.f32 %v1313_v58, %v1236_v32 }
 0x166   : >> { %v3574_v61 = vpop.f32.mrf.mxu1  ;;  %v3594_v62 = vpop.f32.mrf.mxu0 }
 0x167   : >> { %v1430_v63 = vadd.f32 %v1410_v50, %v1333_v60 }
 0x168   : >> { %v1318_v1 = vpop.f32.mrf.mxu1  ;;  %v1423_v3 = vpop.f32.mrf.mxu0 }
 0x169   : >> { %v1334_v43 = vadd.f32 %v1318_v1, %v1237_v31 }
 0x16a   : >> { %v3577_v47 = vpop.f32.mrf.mxu1  ;;  %v3597_v4 = vpop.f32.mrf.mxu0 }
 0x16b   : >> { %v1431_v5 = vadd.f32 %v1415_v54, %v1334_v43 }
 0x16c   : >> { %v1321_v6 = vpop.f32.mrf.mxu1  ;;  %v1426_v7 = vpop.f32.mrf.mxu0 }
 0x16d   : >> { %v1335_v8 = vadd.f32 %v1321_v6, %v1238_v44 }
 0x16e   : >> { %v3578_v9 = vpop.f32.mrf.mxu1  ;;  %v3598_v10 = vpop.f32.mrf.mxu0 }
 0x16f   : >> { %v1432_v11 = vadd.f32 %v1418_v59, %v1335_v8 }
 0x170   : >> { %v1326_v36 = vpop.f32.mrf.mxu1  ;;  %v1601_v2 = vpop.f32.mrf.mxu0 }
 0x171   : >> { %v1336_v37 = vadd.f32 %v1326_v36, %v1239_v24 }
 0x172   : >> { %v3581_v39 = vpop.f32.mrf.mxu1  ;;  %v3621_v12 = vpop.f32.mrf.mxu0 }
 0x173   : >> { %v1433_v13 = vadd.f32 %v1423_v3, %v1336_v37 }
 0x174   : >> { %v1329_v14 = vpop.f32.mrf.mxu1  ;;  %v1604_v15 = vpop.f32.mrf.mxu0 }
 0x176   : >> { %v3582_v16 = vpop.f32.mrf.mxu1  ;;  %v3622_v17 = vpop.f32.mrf.mxu0 }
 0x178   : >> { %v1504_v18 = vpop.f32.mrf.mxu1  ;;  %v1609_v19 = vpop.f32.mrf.mxu0 }
 0x179   : >> { %v1526_v22 = vadd.f32 %v1504_v18, %v1429_v57 }
 0x17a   : >> { %v3605_v23 = vpop.f32.mrf.mxu1  ;;  %v3625_v25 = vpop.f32.mrf.mxu0 }
 0x17b   : >> { %v1623_v26 = vadd.f32 %v1601_v2, %v1526_v22 }
 0x17c   : >> { %v1507_v32 = vpop.f32.mrf.mxu1  ;;  %v1612_v42 = vpop.f32.mrf.mxu0 }
 0x17d   : >> { %v1527_v27 = vadd.f32 %v1507_v32, %v1430_v63 }
 0x17e   : >> { %v3606_v28 = vpop.f32.mrf.mxu1  ;;  %v3626_v29 = vpop.f32.mrf.mxu0 }
 0x17f   : >> { %v1624_v30 = vadd.f32 %v1604_v15, %v1527_v27 }
 0x180   : >> { %v1512_v31 = vpop.f32.mrf.mxu1  ;;  %v1617_v33 = vpop.f32.mrf.mxu0 }
 0x181   : >> { %v1528_v34 = vadd.f32 %v1512_v31, %v1431_v5 }
 0x182   : >> { %v3609_v35 = vpop.f32.mrf.mxu1  ;;  %v3629_v38 = vpop.f32.mrf.mxu0 }
 0x183   : >> { %v1625_v41 = vadd.f32 %v1609_v19, %v1528_v34 }
 0x184   : >> { %v1515_v44 = vpop.f32.mrf.mxu1  ;;  %v1620_v40 = vpop.f32.mrf.mxu0 }
 0x185   : >> { %v1529_v45 = vadd.f32 %v1515_v44, %v1432_v11 }
 0x186   : >> { %v3610_v46 = vpop.f32.mrf.mxu1  ;;  %v3630_v48 = vpop.f32.mrf.mxu0 }
 0x187   : >> { %v1626_v21 = vadd.f32 %v1612_v42, %v1529_v45 }
 0x188   : >> { %v1520_v24 = vpop.f32.mrf.mxu1  ;;  %v1796_v49 = vpop.f32.mrf.mxu0 }
 0x189   : >> { %v1530_v50 = vadd.f32 %v1520_v24, %v1433_v13 }
 0x18a   : >> { %v3613_v20 = vpop.f32.mrf.mxu1  ;;  %v3653_v51 = vpop.f32.mrf.mxu0 }
 0x18b   : >> { %v1627_v52 = vadd.f32 %v1617_v33, %v1530_v50 }
 0x18c   : >> { %v1523_v54 = vpop.f32.mrf.mxu1  ;;  %v1799_v55 = vpop.f32.mrf.mxu0 }
 0x18e   : >> { %v3614_v56 = vpop.f32.mrf.mxu1  ;;  %v3654_v53 = vpop.f32.mrf.mxu0 }
 0x190   : >> { %v1699_v57 = vpop.f32.mrf.mxu1  ;;  %v1804_v58 = vpop.f32.mrf.mxu0 }
 0x191   : >> { %v1721_v59 = vadd.f32 %v1699_v57, %v1623_v26 }
 0x192   : >> { %v3637_v60 = vpop.f32.mrf.mxu1  ;;  %v3657_v61 = vpop.f32.mrf.mxu0 }
 0x193   : >> { %v1818_v62 = vadd.f32 %v1796_v49, %v1721_v59 }
 0x194   : >> { %v1702_v63 = vpop.f32.mrf.mxu1  ;;  %v1807_v1 = vpop.f32.mrf.mxu0 }
 0x195   : >> { %v1722_v3 = vadd.f32 %v1702_v63, %v1624_v30 }
 0x196   : >> { %v3638_v43 = vpop.f32.mrf.mxu1  ;;  %v3658_v47 = vpop.f32.mrf.mxu0 }
 0x197   : >> { %v1819_v4 = vadd.f32 %v1799_v55, %v1722_v3 }
 0x198   : >> { %v1707_v5 = vpop.f32.mrf.mxu1  ;;  %v1812_v6 = vpop.f32.mrf.mxu0 }
 0x199   : >> { %v1723_v7 = vadd.f32 %v1707_v5, %v1625_v41 }
 0x19a   : >> { %v3641_v8 = vpop.f32.mrf.mxu1  ;;  %v3661_v9 = vpop.f32.mrf.mxu0 }
 0x19b   : >> { %v1820_v10 = vadd.f32 %v1804_v58, %v1723_v7 }
 0x19c   : >> { %v1710_v11 = vpop.f32.mrf.mxu1  ;;  %v1815_v36 = vpop.f32.mrf.mxu0 }
 0x19d   : >> { %v1724_v2 = vadd.f32 %v1710_v11, %v1626_v21 }
 0x19e   : >> { %v3642_v37 = vpop.f32.mrf.mxu1  ;;  %v3662_v39 = vpop.f32.mrf.mxu0 }
 0x19f   : >> { %v1821_v12 = vadd.f32 %v1807_v1, %v1724_v2 }
 0x1a0   : >> { %v1715_v13 = vpop.f32.mrf.mxu1  ;;  %v1990_v14 = vpop.f32.mrf.mxu0 }
 0x1a1   : >> { %v1725_v15 = vadd.f32 %v1715_v13, %v1627_v52 }
 0x1a2   : >> { %v3645_v16 = vpop.f32.mrf.mxu1  ;;  %v3685_v17 = vpop.f32.mrf.mxu0 }
 0x1a3   : >> { %v1822_v18 = vadd.f32 %v1812_v6, %v1725_v15 }
 0x1a4   : >> { %v1718_v19 = vpop.f32.mrf.mxu1  ;;  %v1993_v22 = vpop.f32.mrf.mxu0 }
 0x1a6   : >> { %v3646_v23 = vpop.f32.mrf.mxu1  ;;  %v3686_v25 = vpop.f32.mrf.mxu0 }
 0x1a8   : >> { %v1893_v26 = vpop.f32.mrf.mxu1  ;;  %v1998_v32 = vpop.f32.mrf.mxu0 }
 0x1a9   : >> { %v1915_v42 = vadd.f32 %v1893_v26, %v1818_v62 }
 0x1aa   : >> { %v3669_v27 = vpop.f32.mrf.mxu1  ;;  %v3689_v28 = vpop.f32.mrf.mxu0 }
 0x1ab   : >> { %v2012_v29 = vadd.f32 %v1990_v14, %v1915_v42 }
 0x1ac   : >> { %v1896_v30 = vpop.f32.mrf.mxu1  ;;  %v2001_v31 = vpop.f32.mrf.mxu0 }
 0x1ad   : >> { %v1916_v33 = vadd.f32 %v1896_v30, %v1819_v4 }
 0x1ae   : >> { %v3670_v34 = vpop.f32.mrf.mxu1  ;;  %v3690_v35 = vpop.f32.mrf.mxu0 }
 0x1af   : >> { %v2013_v38 = vadd.f32 %v1993_v22, %v1916_v33 }
 0x1b0   : >> { %v1901_v41 = vpop.f32.mrf.mxu1  ;;  %v2006_v44 = vpop.f32.mrf.mxu0 }
 0x1b1   : >> { %v1917_v40 = vadd.f32 %v1901_v41, %v1820_v10 }
 0x1b2   : >> { %v3673_v45 = vpop.f32.mrf.mxu1  ;;  %v3693_v46 = vpop.f32.mrf.mxu0 }
 0x1b3   : >> { %v4537_v48 = vadd.f32 %v1998_v32, %v1917_v40 }
 0x1b4   : >> { %v1904_v21 = vpop.f32.mrf.mxu1  ;;  %v2009_v24 = vpop.f32.mrf.mxu0 }
 0x1b5   : >> { %v1918_v49 = vadd.f32 %v1904_v21, %v1821_v12 }
 0x1b6   : >> { %v3674_v50 = vpop.f32.mrf.mxu1  ;;  %v3694_v20 = vpop.f32.mrf.mxu0 }
 0x1b7   : >> { %v4539_v51 = vadd.f32 %v2001_v31, %v1918_v49 }
 0x1b8   : >> { %v1909_v52 = vpop.f32.mrf.mxu1  ;;  %v2185_v54 = vpop.f32.mrf.mxu0 }
 0x1b9   : >> { %v1919_v55 = vadd.f32 %v1909_v52, %v1822_v18 }
 0x1ba   : >> { %v3677_v56 = vpop.f32.mrf.mxu1  ;;  %v3717_v53 = vpop.f32.mrf.mxu0 }
 0x1bb   : >> { %v4541_v57 = vadd.f32 %v2006_v44, %v1919_v55 }
 0x1bc   : >> { %v1912_v58 = vpop.f32.mrf.mxu1  ;;  %v2188_v59 = vpop.f32.mrf.mxu0 }
 0x1be   : >> { %v3678_v60 = vpop.f32.mrf.mxu1  ;;  %v3718_v61 = vpop.f32.mrf.mxu0 }
 0x1c0   : >> { %v2087_v62 = vpop.f32.mrf.mxu1  ;;  %v2193_v63 = vpop.f32.mrf.mxu0 }
 0x1c1   : >> { %v2109_v1 = vadd.f32 %v2087_v62, %v2012_v29 }
 0x1c2   : >> { %v3701_v3 = vpop.f32.mrf.mxu1  ;;  %v3721_v43 = vpop.f32.mrf.mxu0 }
 0x1c3   : >> { %v4543_v47 = vadd.f32 %v2185_v54, %v2109_v1 }
 0x1c4   : >> { %v2090_v4 = vpop.f32.mrf.mxu1  ;;  %v2196_v5 = vpop.f32.mrf.mxu0 }
 0x1c5   : >> { %v2110_v6 = vadd.f32 %v2090_v4, %v2013_v38 }
 0x1c6   : >> { %v3702_v7 = vpop.f32.mrf.mxu1  ;;  %v3722_v8 = vpop.f32.mrf.mxu0 }
 0x1c7   : >> { %v4545_v9 = vadd.f32 %v2188_v59, %v2110_v6 }
 0x1c8   : >> { %v2095_v10 = vpop.f32.mrf.mxu1  ;;  %v2201_v11 = vpop.f32.mrf.mxu0 }
 0x1c9   : >> { %v2111_v20 = vadd.f32 %v2095_v10, %v4537_v48 }
 0x1ca   : >> { %v3705_v36 = vpop.f32.mrf.mxu1  ;;  %v3725_v2 = vpop.f32.mrf.mxu0 }
 0x1cb   : >> { %v2209_v58 = vadd.f32 %v2193_v63, %v2111_v20 }
 0x1cc   : >> { %v2098_v37 = vpop.f32.mrf.mxu1  ;;  %v2204_v39 = vpop.f32.mrf.mxu0 }
 0x1cd   : >> { %v2112_v53 = vadd.f32 %v2098_v37, %v4539_v51 }
 0x1ce   : >> { %v3706_v12 = vpop.f32.mrf.mxu1  ;;  %v3726_v13 = vpop.f32.mrf.mxu0 }
 0x1cf   : >> { %v2210_v43 = vadd.f32 %v2196_v5, %v2112_v53 }
 0x1d0   : >> { %v2103_v14 = vpop.f32.mrf.mxu1  ;;  %v2379_v15 = vpop.f32.mrf.mxu0 }
 0x1d1   : >> { %v2113_v3 = vadd.f32 %v2103_v14, %v4541_v57 }
 0x1d2   : >> { %v3709_v16 = vpop.f32.mrf.mxu1  ;;  %v3749_v17 = vpop.f32.mrf.mxu0 }
 0x1d3   : >> { %v2211_v2 = vadd.f32 %v2201_v11, %v2113_v3 }
 0x1d4   : >> { %v2106_v18 = vpop.f32.mrf.mxu1  ;;  %v4547_v19 = vpop.f32.mrf.mxu0 }
 0x1d6   : >> { %v3710_v22 = vpop.f32.mrf.mxu1  ;;  %v3750_v23 = vpop.f32.mrf.mxu0 }
 0x1d8   : >> { %v2282_v25 = vpop.f32.mrf.mxu1  ;;  %v2387_v26 = vpop.f32.mrf.mxu0 }
 0x1d9   : >> { %v2304_v48 = vadd.f32 %v2282_v25, %v4543_v47 }
 0x1da   : >> { %v3733_v32 = vpop.f32.mrf.mxu1  ;;  %v3753_v42 = vpop.f32.mrf.mxu0 }
 0x1db   : >> { %v2401_v16 = vadd.f32 %v2379_v15, %v2304_v48 }
 0x1dc   : >> { %v2285_v27 = vpop.f32.mrf.mxu1  ;;  %v2390_v28 = vpop.f32.mrf.mxu0 }
 0x1dd   : >> { %v2305_v13 = vadd.f32 %v2285_v27, %v4545_v9 }
 0x1de   : >> { %v3734_v29 = vpop.f32.mrf.mxu1  ;;  %v3754_v30 = vpop.f32.mrf.mxu0 }
 0x1df   : >> { %v2402_v25 = vadd.f32 %v4547_v19, %v2305_v13 }
 0x1e0   : >> { %v2290_v31 = vpop.f32.mrf.mxu1  ;;  %v2395_v33 = vpop.f32.mrf.mxu0 }
 0x1e1   : >> { %v2306_v61 = vadd.f32 %v2290_v31, %v2209_v58 }
 0x1e2   : >> { %v3737_v34 = vpop.f32.mrf.mxu1  ;;  %v3757_v35 = vpop.f32.mrf.mxu0 }
 0x1e3   : >> { %v2403_v8 = vadd.f32 %v2387_v26, %v2306_v61 }
 0x1e4   : >> { %v2293_v38 = vpop.f32.mrf.mxu1  ;;  %v2398_v41 = vpop.f32.mrf.mxu0 }
 0x1e5   : >> { %v2307_v7 = vadd.f32 %v2293_v38, %v2210_v43 }
 0x1e6   : >> { %v3738_v44 = vpop.f32.mrf.mxu1  ;;  %v3758_v40 = vpop.f32.mrf.mxu0 }
 0x1e7   : >> { %v2404_v12 = vadd.f32 %v2390_v28, %v2307_v7 }
 0x1e8   : >> { %v2298_v45 = vpop.f32.mrf.mxu1  ;;  %v2573_v46 = vpop.f32.mrf.mxu0 }
 0x1e9   : >> { %v2308_v37 = vadd.f32 %v2298_v45, %v2211_v2 }
 0x1ea   : >> { %v3741_v21 = vpop.f32.mrf.mxu1  ;;  %v3781_v24 = vpop.f32.mrf.mxu0 }
 0x1eb   : >> { %v2405_v47 = vadd.f32 %v2395_v33, %v2308_v37 }
 0x1ec   : >> { %v2301_v49 = vpop.f32.mrf.mxu1  ;;  %v2576_v50 = vpop.f32.mrf.mxu0 }
 0x1ee   : >> { %v3742_v52 = vpop.f32.mrf.mxu1  ;;  %v3782_v54 = vpop.f32.mrf.mxu0 }
 0x1f0   : >> { %v2476_v55 = vpop.f32.mrf.mxu1  ;;  %v2581_v56 = vpop.f32.mrf.mxu0 }
 0x1f1   : >> { %v2498_v18 = vadd.f32 %v2476_v55, %v2401_v16 }
 0x1f2   : >> { %v3765_v59 = vpop.f32.mrf.mxu1  ;;  %v3785_v60 = vpop.f32.mrf.mxu0 }
 0x1f3   : >> { %v2595_v29 = vadd.f32 %v2573_v46, %v2498_v18 }
 0x1f4   : >> { %v2479_v62 = vpop.f32.mrf.mxu1  ;;  %v2584_v1 = vpop.f32.mrf.mxu0 }
 0x1f5   : >> { %v2499_v9 = vadd.f32 %v2479_v62, %v2402_v25 }
 0x1f6   : >> { %v3766_v4 = vpop.f32.mrf.mxu1  ;;  %v3786_v6 = vpop.f32.mrf.mxu0 }
 0x1f7   : >> { %v2596_v38 = vadd.f32 %v2576_v50, %v2499_v9 }
 0x1f8   : >> { %v2484_v10 = vpop.f32.mrf.mxu1  ;;  %v2589_v36 = vpop.f32.mrf.mxu0 }
 0x1f9   : >> { %v2500_v39 = vadd.f32 %v2484_v10, %v2403_v8 }
 0x1fa   : >> { %v3769_v51 = vpop.f32.mrf.mxu1  ;;  %v3789_v63 = vpop.f32.mrf.mxu0 }
 0x1fb   : >> { %v2597_v5 = vadd.f32 %v2581_v56, %v2500_v39 }
 0x1fc   : >> { %v2487_v17 = vpop.f32.mrf.mxu1  ;;  %v2592_v57 = vpop.f32.mrf.mxu0 }
 0x1fd   : >> { %v2501_v14 = vadd.f32 %v2487_v17, %v2404_v12  ;;  %v2604_v32 = vrot.slane %v2597_v5, 4 }
 0x1fe   : >> { %v3770_v22 = vpop.f32.mrf.mxu1  ;;  %v3790_v23 = vpop.f32.mrf.mxu0 }
 0x1ff   : >> { %v2598_v26 = vadd.f32 %v2584_v1, %v2501_v14 }
 0x200   : >> { %v2492_v11 = vpop.f32.mrf.mxu1 }
 0x201   : >> { %v2605_v42 = vrot.slane %v2598_v26, 4  ;;  %v2502_v28 = vadd.f32 %v2492_v11, %v2405_v47 }
 0x202   : >> { %v3773_v15 = vpop.f32.mrf.mxu1 }
 0x203   : >> { %v2606_v27 = vsel %vm2603_vm2, %v2604_v32, %v2605_v42  ;;  %v2599_v30 = vadd.f32 %v2589_v36, %v2502_v28 }
 0x204   : >> { %v2611_v31 = vmax.f32 %v2595_v29, %v2606_v27  ;;  %v2495_v34 = vpop.f32.mrf.mxu1 }
 0x205   : >> { %v2607_v35 = vrot.slane %v2599_v30, 4 }
 0x206   : >> { %2613 = vst [vmem:[#allocation2] sm:$0xff] %v2611_v31  ;;  %v3774_v33 = vpop.f32.mrf.mxu1 }
 0x207   : >> { %v2608_v19 = vsel %vm2603_vm2, %v2605_v42, %v2607_v35 }
 0x208   : >> { %v2612_v41 = vmax.f32 %v2596_v38, %v2608_v19 }
 0x20a   : >> { %2614 = vst [vmem:[#allocation2 + $0x8] sm:$0xff] %v2612_v41 }
 0x211   : >> { %v2615_v44 = vld [vmem:[#allocation2] ss:$2 sm:$0xff]  ;;  %v2617_v40 = vld [vmem:[#allocation2 + $0x1] ss:$2 sm:$0xff] }
 0x212   : >> { %v2618_v45 = vmax.f32 %v2615_v44, %v2617_v40  ;;  %178 = sbr.rel (!%p176_p5) target bundleno = 15 (0xf), region = 120 }
 0x214   : >> { %v2625_v46 = vadd.f32 %v3913_v0, %v2618_v45 }
 0x216   : >> { %2628 = vst [vmem:[%s2627_s14] sm:$0xff] %v2625_v46 }
 0x21d   : > { %v2629_v21 = vld [vmem:[#allocation3] sm:$0xff]  ;;  %v2630_v24 = vld [vmem:[#allocation3 + $0x8] sm:$0xff]  ;;  %v2631_v49 = vld [vmem:[#allocation3 + $0x10] sm:$0xff] }
 0x21e   : > { %v3246_v50 = vpack.c.bf16 %v2630_v24, %v2629_v21  ;;  %v2632_v20 = vld [vmem:[#allocation3 + $0x18] sm:$0xff]  ;;  %v2633_v52 = vld [vmem:[#allocation3 + $0x20] sm:$0xff]  ;;  %v2634_v54 = vld [vmem:[#allocation3 + $0x28] sm:$0xff] }
 0x21f   : > { %v3251_v55 = vpack.c.bf16 %v2632_v20, %v2631_v49  ;;  %v3256_v56 = vpack.c.bf16 %v2634_v54, %v2633_v52  ;;  %v2635_v53 = vld [vmem:[#allocation3 + $0x30] sm:$0xff]  ;;  %v2636_v58 = vld [vmem:[#allocation3 + $0x38] sm:$0xff] }
 0x220   : > { %3247 = vst [vmem:[%s3923_s24] sm:$0xff] %v3246_v50   ;;  %v3261_v59 = vpack.c.bf16 %v2636_v58, %v2635_v53 }
 0x221   : > { %3263 = vst [vmem:[%s3923_s24 + $0x8] sm:$0xff] %v3251_v55   ;;  %3264 = vst [vmem:[%s3923_s24 + $0x10] sm:$0xff] %v3256_v56  }
 0x222   : > { %3265 = vst [vmem:[%s3923_s24 + $0x18] sm:$0xff] %v3261_v59  }
 0x223 PF: > { %s13_s12 = sadd.s32 1, %s3874_s12  }
 0x224   : > { %p10_p6 = scmp.ge.s32.totalorder %s13_s12, 4  }
 0x226   :  { %12 = sbr.rel (!%p10_p6) target bundleno = 1 (0x1), region = 131 }

// kernel: tian_forward.7
= control target key start
LH: loop header
LB: loop body
LE: loop exit
PB: predicated region body
PF: predicated region fallthrough
CT: control target
= control target key end

     0   :  { %v293_v28 = vlaneseq  ;;  %v2125_v36 = vmov 1966171168   ;;  %s2606_s0 = inlined_call_operand.vmem [shape: bf16[2,2048], index: 0, kind: input, shape index: {}]   ;;  %s2607_s1 = inlined_call_operand.vmem [shape: bf16[2048,128], index: 1, kind: input, shape index: {}]   ;;  %s2608_s2 = inlined_call_operand.vmem [shape: f32[1,128], index: 2, kind: input, shape index: {}]   ;;  %s2609_s3 = inlined_call_operand.vmem [shape: bf16[128,128], index: 3, kind: input, shape index: {}]   ;;  %s2610_s4 = inlined_call_operand.vmem [shape: f32[1,128], index: 4, kind: input, shape index: {}]   ;;  %s2611_s5 = inlined_call_operand.hbm [shape: f32[2,128], index: 5, kind: output, shape index: {}]  }
   0x1   :  { %v1965_v0 = vld [vmem:[%s2607_s1 + $0x78] sm:$0xff]   ;;  %v1969_v4 = vld [vmem:[%s2607_s1 + $0x70] sm:$0xff]   ;;  %v1973_v8 = vld [vmem:[%s2607_s1 + $0x68] sm:$0xff]   ;;  %v291_v37 = vunpack.c.l.s4 %v2125_v36 }
   0x2   :  { %v1966_v1 = vld [vmem:[%s2607_s1 + $0xf8] sm:$0xff]   ;;  %1756 = vmatprep.subr.bf16.mxu0 %v1965_v0  ;;  %v1970_v5 = vld [vmem:[%s2607_s1 + $0xf0] sm:$0xff]   ;;  %v1974_v9 = vld [vmem:[%s2607_s1 + $0xe8] sm:$0xff]   ;;  %v294_v33 = vshrl.u32 %v293_v28, 7 }
   0x3   :  { %v1967_v2 = vld [vmem:[%s2607_s1 + $0x38] sm:$0xff]   ;;  %1778 = vmatprep.subr.bf16.mxu1 %v1966_v1  ;;  %v1971_v6 = vld [vmem:[%s2607_s1 + $0x30] sm:$0xff]   ;;  %v1975_v10 = vld [vmem:[%s2607_s1 + $0x28] sm:$0xff]   ;;  %v292_v40 = vunpack.c.0.s8 %v291_v37 }
   0x4   :  { %v1968_v3 = vld [vmem:[%s2607_s1 + $0xb8] sm:$0xff]   ;;  %1757 = vmatpush3.bf16.msra.mxu0 %v1967_v2  ;;  %v1972_v7 = vld [vmem:[%s2607_s1 + $0xb0] sm:$0xff]   ;;  %v1976_v11 = vld [vmem:[%s2607_s1 + $0xa8] sm:$0xff]  }
   0x5   :  { %1779 = vmatpush3.bf16.msra.mxu1 %v1968_v3  ;;  %1758 = vmatprep.subr.bf16.mxu0 %v1969_v4  ;;  %v1977_v12 = vld [vmem:[%s2607_s1 + $0x60] sm:$0xff]   ;;  %v1981_v16 = vld [vmem:[%s2607_s1 + $0x58] sm:$0xff]   ;;  %v1985_v20 = vld [vmem:[%s2607_s1 + $0x50] sm:$0xff]   ;;  %v2264_v41 = vsub.s32 %v292_v40, %v294_v33 }
   0x6   :  { %1780 = vmatprep.subr.bf16.mxu1 %v1970_v5  ;;  %v1978_v13 = vld [vmem:[%s2607_s1 + $0xe0] sm:$0xff]   ;;  %v1982_v17 = vld [vmem:[%s2607_s1 + $0xd8] sm:$0xff]   ;;  %v1986_v21 = vld [vmem:[%s2607_s1 + $0xd0] sm:$0xff]  }
   0x7   :  { %v1979_v14 = vld [vmem:[%s2607_s1 + $0x20] sm:$0xff]   ;;  %v1983_v18 = vld [vmem:[%s2607_s1 + $0x18] sm:$0xff]   ;;  %v1987_v22 = vld [vmem:[%s2607_s1 + $0x10] sm:$0xff]  }
   0x8   :  { %1759 = vmatpush3.bf16.msra.mxu0 %v1971_v6  ;;  %v1980_v15 = vld [vmem:[%s2607_s1 + $0xa0] sm:$0xff]   ;;  %v1984_v19 = vld [vmem:[%s2607_s1 + $0x98] sm:$0xff]   ;;  %v1988_v23 = vld [vmem:[%s2607_s1 + $0x90] sm:$0xff]  }
   0x9   :  { %1781 = vmatpush3.bf16.msra.mxu1 %v1972_v7  ;;  %1760 = vmatprep.subr.bf16.mxu0 %v1973_v8  ;;  %v1989_v24 = vld [vmem:[%s2607_s1 + $0x48] sm:$0xff]   ;;  %v1993_v29 = vld [vmem:[%s2607_s1 + $0x40] sm:$0xff]   ;;  %v1998_v35 = vld [vmem:[%s2607_s1 + $0x178] sm:$0xff]  }
   0xa   :  { %1782 = vmatprep.subr.bf16.mxu1 %v1974_v9  ;;  %v1990_v25 = vld [vmem:[%s2607_s1 + $0xc8] sm:$0xff]   ;;  %v1994_v30 = vld [vmem:[%s2607_s1 + $0xc0] sm:$0xff]   ;;  %v1999_v38 = vld [vmem:[%s2607_s1 + $0x1f8] sm:$0xff]  }
   0xb   :  { %v1991_v26 = vld [vmem:[%s2607_s1 + $0x8] sm:$0xff]   ;;  %v1995_v31 = vld [vmem:[%s2607_s1] sm:$0xff]   ;;  %v2000_v47 = vld [vmem:[%s2607_s1 + $0x138] sm:$0xff]  }
   0xc   :  { %1761 = vmatpush3.bf16.msra.mxu0 %v1975_v10  ;;  %v1992_v27 = vld [vmem:[%s2607_s1 + $0x88] sm:$0xff]   ;;  %v1996_v32 = vld [vmem:[%s2607_s1 + $0x80] sm:$0xff]   ;;  %v2001_v49 = vld [vmem:[%s2607_s1 + $0x1b8] sm:$0xff]  }
   0xd   :  { %1783 = vmatpush3.bf16.msra.mxu1 %v1976_v11  ;;  %1762 = vmatprep.subr.bf16.mxu0 %v1977_v12  ;;  %v22_v34 = vld [vmem:[%s2606_s0] sm:$0xff]  ;;  %v2002_v52 = vld [vmem:[%s2607_s1 + $0x170] sm:$0xff]   ;;  %v2006_v58 = vld [vmem:[%s2607_s1 + $0x168] sm:$0xff]  }
   0xe   :  { %1784 = vmatprep.subr.bf16.mxu1 %v1978_v13  ;;  %v289_v39 = vcombine.high %v22_v34, %v22_v34  ;;  %v296_v42 = vrot.slane %v22_v34, %v2264_v41  ;;  %v2003_v54 = vld [vmem:[%s2607_s1 + $0x1f0] sm:$0xff]   ;;  %v2007_v59 = vld [vmem:[%s2607_s1 + $0x1e8] sm:$0xff]   ;;  %v2010_v62 = vld [vmem:[%s2607_s1 + $0x160] sm:$0xff]  }
   0xf   :  { %v2004_v55 = vld [vmem:[%s2607_s1 + $0x130] sm:$0xff]   ;;  %v2008_v60 = vld [vmem:[%s2607_s1 + $0x128] sm:$0xff]   ;;  %v2011_v63 = vld [vmem:[%s2607_s1 + $0x1e0] sm:$0xff]  }
  0x10   :  { %1763 = vmatpush3.bf16.msra.mxu0 %v1979_v14  ;;  %v2268_v43 = vrot.slane %v289_v39, %v2264_v41  ;;  %v304_v44 = vcombine.high %v296_v42, %v296_v42  ;;  %v312_v45 = vrot.slane %v296_v42, %v2264_v41  ;;  %v2005_v57 = vld [vmem:[%s2607_s1 + $0x1b0] sm:$0xff]   ;;  %v2009_v61 = vld [vmem:[%s2607_s1 + $0x1a8] sm:$0xff]   ;;  %v2012_v0 = vld [vmem:[%s2607_s1 + $0x120] sm:$0xff]  }
  0x11   :  { %1785 = vmatpush3.bf16.msra.mxu1 %v1980_v15  ;;  %1764 = vmatprep.subr.bf16.mxu0 %v1981_v16  ;;  %v2013_v1 = vld [vmem:[%s2607_s1 + $0x1a0] sm:$0xff]   ;;  %v2014_v2 = vld [vmem:[%s2607_s1 + $0x158] sm:$0xff]   ;;  %v2018_v6 = vld [vmem:[%s2607_s1 + $0x150] sm:$0xff]  }
  0x12   :  { %1786 = vmatprep.subr.bf16.mxu1 %v1982_v17  ;;  %v305_v46 = vcombine.high %v2268_v43, %v2268_v43  ;;  %v326_v48 = vrot.slane %v304_v44, %v2264_v41  ;;  %v334_v51 = vcombine.high %v312_v45, %v312_v45  ;;  %v2015_v3 = vld [vmem:[%s2607_s1 + $0x1d8] sm:$0xff]   ;;  %v2019_v7 = vld [vmem:[%s2607_s1 + $0x1d0] sm:$0xff]   ;;  %v2022_v10 = vld [vmem:[%s2607_s1 + $0x148] sm:$0xff]  }
  0x13   :  { %v2016_v4 = vld [vmem:[%s2607_s1 + $0x118] sm:$0xff]   ;;  %v2020_v8 = vld [vmem:[%s2607_s1 + $0x110] sm:$0xff]   ;;  %v2023_v11 = vld [vmem:[%s2607_s1 + $0x1c8] sm:$0xff]  }
  0x14   :  { %1765 = vmatpush3.bf16.msra.mxu0 %v1983_v18  ;;  %v333_v50 = vrot.slane %v305_v46, %v2264_v41  ;;  %1203 = vmatprep.mubr.bf16.mxu0 %v326_v48  ;;  %v336_v53 = vcombine.high %v326_v48, %v326_v48  ;;  %v2017_v5 = vld [vmem:[%s2607_s1 + $0x198] sm:$0xff]   ;;  %v2021_v9 = vld [vmem:[%s2607_s1 + $0x190] sm:$0xff]   ;;  %v2024_v12 = vld [vmem:[%s2607_s1 + $0x108] sm:$0xff]   ;;  %v319_v18 = vrot.slane %v2268_v43, %v2264_v41 }
  0x15   :  { %1787 = vmatpush3.bf16.msra.mxu1 %v1984_v19  ;;  %1766 = vmatprep.subr.bf16.mxu0 %v1985_v20  ;;  %v2025_v13 = vld [vmem:[%s2607_s1 + $0x188] sm:$0xff]   ;;  %v2026_v14 = vld [vmem:[%s2607_s1 + $0x140] sm:$0xff]   ;;  %v2030_v19 = vld [vmem:[%s2607_s1 + $0x278] sm:$0xff]  }
  0x16   :  { %1788 = vmatprep.subr.bf16.mxu1 %v1986_v21  ;;  %v337_v56 = vcombine.high %v333_v50, %v333_v50  ;;  %1243 = vmatprep.mubr.bf16.mxu1 %v336_v53  ;;  %v2027_v15 = vld [vmem:[%s2607_s1 + $0x1c0] sm:$0xff]   ;;  %v2031_v20 = vld [vmem:[%s2607_s1 + $0x2f8] sm:$0xff]   ;;  %v2038_v28 = vld [vmem:[%s2607_s1 + $0x268] sm:$0xff]  }
  0x17   :  { %v2028_v16 = vld [vmem:[%s2607_s1 + $0x100] sm:$0xff]   ;;  %v2032_v21 = vld [vmem:[%s2607_s1 + $0x238] sm:$0xff]   ;;  %v2050_v40 = vld [vmem:[%s2607_s1 + $0x250] sm:$0xff]  }
  0x18   :  { %1767 = vmatpush3.bf16.msra.mxu0 %v1987_v22  ;;  %v2029_v17 = vld [vmem:[%s2607_s1 + $0x180] sm:$0xff]   ;;  %v2033_v22 = vld [vmem:[%s2607_s1 + $0x2b8] sm:$0xff]   ;;  %v2051_v42 = vld [vmem:[%s2607_s1 + $0x2d0] sm:$0xff]  }
  0x19   :  { %1789 = vmatpush3.bf16.msra.mxu1 %v1988_v23  ;;  %1768 = vmatprep.subr.bf16.mxu0 %v1989_v24  ;;  %v335_v23 = vcombine.high %v319_v18, %v319_v18  ;;  %v2034_v24 = vld [vmem:[%s2607_s1 + $0x270] sm:$0xff]   ;;  %v2043_v33 = vld [vmem:[%s2607_s1 + $0x2e0] sm:$0xff]   ;;  %v2046_v36 = vld [vmem:[%s2607_s1 + $0x258] sm:$0xff]  }
  0x1a   :  { %1790 = vmatprep.subr.bf16.mxu1 %v1990_v25  ;;  %v2035_v25 = vld [vmem:[%s2607_s1 + $0x2f0] sm:$0xff]   ;;  %v2044_v34 = vld [vmem:[%s2607_s1 + $0x220] sm:$0xff]   ;;  %v2047_v37 = vld [vmem:[%s2607_s1 + $0x2d8] sm:$0xff]  }
  0x1b   :  { %v2049_v39 = vld [vmem:[%s2607_s1 + $0x298] sm:$0xff]   ;;  %v2052_v43 = vld [vmem:[%s2607_s1 + $0x210] sm:$0xff]   ;;  %v23_v46 = vld [vmem:[%s2606_s0 + $0x8] sm:$0xff] }
  0x1c   :  { %1769 = vmatpush3.bf16.msra.mxu0 %v1991_v26  ;;  %v2036_v26 = vld [vmem:[%s2607_s1 + $0x230] sm:$0xff]   ;;  %v345_v48 = vrot.slane %v23_v46, %v2264_v41 }
  0x1d   :  { %1791 = vmatpush3.bf16.msra.mxu1 %v1992_v27  ;;  %1770 = vmatprep.subr.bf16.mxu0 %v1993_v29  ;;  %v2037_v27 = vld [vmem:[%s2607_s1 + $0x2b0] sm:$0xff]   ;;  %v2039_v29 = vld [vmem:[%s2607_s1 + $0x2e8] sm:$0xff]  }
  0x1e   :  { %1792 = vmatprep.subr.bf16.mxu1 %v1994_v30  ;;  %v2040_v30 = vld [vmem:[%s2607_s1 + $0x228] sm:$0xff]   ;;  %v2053_v44 = vld [vmem:[%s2607_s1 + $0x290] sm:$0xff]  }
  0x20   :  { %1771 = vmatpush3.bf16.msra.mxu0 %v1995_v31  ;;  %v2041_v31 = vld [vmem:[%s2607_s1 + $0x2a8] sm:$0xff]  }
  0x21   :  { %1793 = vmatpush3.bf16.msra.mxu1 %v1996_v32  ;;  %1800 = vmatprep.subr.bf16.mxu0 %v1998_v35  ;;  %v2042_v32 = vld [vmem:[%s2607_s1 + $0x260] sm:$0xff]  }
  0x22   :  { %1822 = vmatprep.subr.bf16.mxu1 %v1999_v38  ;;  %v2045_v35 = vld [vmem:[%s2607_s1 + $0x2a0] sm:$0xff]   ;;  %v2048_v38 = vld [vmem:[%s2607_s1 + $0x218] sm:$0xff]  }
  0x23   :  { %1204 = vmatmul.mubr.bf16.vlgmr.msra.gmra.mxu0 %v312_v45  ;;  %v2054_v45 = vld [vmem:[%s2607_s1 + $0x248] sm:$0xff]  }
  0x24   :  { %1801 = vmatpush3.bf16.msra.mxu0 %v2000_v47  ;;  %1244 = vmatmul.mubr.bf16.vlgmr.msra.gmra.mxu1 %v334_v51  ;;  %v2055_v47 = vld [vmem:[%s2607_s1 + $0x2c8] sm:$0xff]  }
  0x25   :  { %1802 = vmatprep.subr.bf16.mxu0 %v2002_v52  ;;  %1823 = vmatpush3.bf16.msra.mxu1 %v2001_v49  ;;  %v338_v49 = vcombine.high %v23_v46, %v23_v46  ;;  %v2057_v51 = vld [vmem:[%s2607_s1 + $0x288] sm:$0xff]   ;;  %v353_v52 = vcombine.high %v345_v48, %v345_v48 }
  0x26   :  { %1283 = vmatprep.mubr.bf16.mxu0 %v333_v50  ;;  %1824 = vmatprep.subr.bf16.mxu1 %v2003_v54  ;;  %v2056_v50 = vld [vmem:[%s2607_s1 + $0x208] sm:$0xff]   ;;  %v2058_v54 = vld [vmem:[%s2607_s1 + $0x240] sm:$0xff]  }
  0x27   :  { %1323 = vmatprep.mubr.bf16.mxu1 %v337_v56  ;;  %v2456_v53 = vrot.slane %v338_v49, %v2264_v41  ;;  %v375_v56 = vrot.slane %v353_v52, %v2264_v41 }
  0x28   :  { %1803 = vmatpush3.bf16.msra.mxu0 %v2004_v55  ;;  %v2059_v55 = vld [vmem:[%s2607_s1 + $0x2c0] sm:$0xff]  }
  0x29   :  { %1804 = vmatprep.subr.bf16.mxu0 %v2006_v58  ;;  %1825 = vmatpush3.bf16.msra.mxu1 %v2005_v57  ;;  %v354_v57 = vcombine.high %v2456_v53, %v2456_v53  ;;  %v2060_v58 = vld [vmem:[%s2607_s1 + $0x200] sm:$0xff]  }
  0x2a   :  { %1826 = vmatprep.subr.bf16.mxu1 %v2007_v59  ;;  %v2061_v59 = vld [vmem:[%s2607_s1 + $0x280] sm:$0xff]  }
  0x2c   :  { %1805 = vmatpush3.bf16.msra.mxu0 %v2008_v60  ;;  %v385_v60 = vcombine.high %v375_v56, %v375_v56 }
  0x2d   :  { %1806 = vmatprep.subr.bf16.mxu0 %v2010_v62  ;;  %1827 = vmatpush3.bf16.msra.mxu1 %v2009_v61  ;;  %v361_v61 = vrot.slane %v345_v48, %v2264_v41  ;;  %v2062_v62 = vld [vmem:[%s2607_s1 + $0x378] sm:$0xff]  }
  0x2e   :  { %1828 = vmatprep.subr.bf16.mxu1 %v2011_v63  ;;  %v2063_v63 = vld [vmem:[%s2607_s1 + $0x3f8] sm:$0xff]  }
  0x30   :  { %1807 = vmatpush3.bf16.msra.mxu0 %v2012_v0  ;;  %v382_v0 = vrot.slane %v354_v57, %v2264_v41 }
  0x31   :  { %1808 = vmatprep.subr.bf16.mxu0 %v2014_v2  ;;  %1829 = vmatpush3.bf16.msra.mxu1 %v2013_v1  ;;  %v2064_v1 = vld [vmem:[%s2607_s1 + $0x338] sm:$0xff]  }
  0x32   :  { %1830 = vmatprep.subr.bf16.mxu1 %v2015_v3  ;;  %v2065_v2 = vld [vmem:[%s2607_s1 + $0x3b8] sm:$0xff]   ;;  %v383_v3 = vcombine.high %v361_v61, %v361_v61 }
  0x34   :  { %1809 = vmatpush3.bf16.msra.mxu0 %v2016_v4  ;;  %v2066_v4 = vld [vmem:[%s2607_s1 + $0x370] sm:$0xff]  }
  0x35   :  { %1810 = vmatprep.subr.bf16.mxu0 %v2018_v6  ;;  %1831 = vmatpush3.bf16.msra.mxu1 %v2017_v5  ;;  %v2067_v5 = vld [vmem:[%s2607_s1 + $0x3f0] sm:$0xff]   ;;  %v386_v6 = vcombine.high %v382_v0, %v382_v0 }
  0x36   :  { %1832 = vmatprep.subr.bf16.mxu1 %v2019_v7  ;;  %v2068_v7 = vld [vmem:[%s2607_s1 + $0x330] sm:$0xff]  }
  0x38   :  { %1811 = vmatpush3.bf16.msra.mxu0 %v2020_v8  ;;  %v2069_v8 = vld [vmem:[%s2607_s1 + $0x3b0] sm:$0xff]  }
  0x39   :  { %1812 = vmatprep.subr.bf16.mxu0 %v2022_v10  ;;  %1833 = vmatpush3.bf16.msra.mxu1 %v2021_v9  ;;  %v2070_v9 = vld [vmem:[%s2607_s1 + $0x368] sm:$0xff]  }
  0x3a   :  { %1834 = vmatprep.subr.bf16.mxu1 %v2023_v11  ;;  %v2071_v10 = vld [vmem:[%s2607_s1 + $0x3e8] sm:$0xff]  }
  0x3b   :  { %v2072_v11 = vld [vmem:[%s2607_s1 + $0x328] sm:$0xff]  }
  0x3c   :  { %1813 = vmatpush3.bf16.msra.mxu0 %v2024_v12  ;;  %v2073_v12 = vld [vmem:[%s2607_s1 + $0x3a8] sm:$0xff]  }
  0x3d   :  { %1814 = vmatprep.subr.bf16.mxu0 %v2026_v14  ;;  %1835 = vmatpush3.bf16.msra.mxu1 %v2025_v13  ;;  %v2074_v13 = vld [vmem:[%s2607_s1 + $0x360] sm:$0xff]  }
  0x3e   :  { %1836 = vmatprep.subr.bf16.mxu1 %v2027_v15  ;;  %v2075_v14 = vld [vmem:[%s2607_s1 + $0x3e0] sm:$0xff]  }
  0x3f   :  { %v2076_v15 = vld [vmem:[%s2607_s1 + $0x320] sm:$0xff]  }
  0x40   :  { %1815 = vmatpush3.bf16.msra.mxu0 %v2028_v16  ;;  %v2077_v16 = vld [vmem:[%s2607_s1 + $0x3a0] sm:$0xff]  }
  0x41   :  { %1844 = vmatprep.subr.bf16.mxu0 %v2030_v19  ;;  %1837 = vmatpush3.bf16.msra.mxu1 %v2029_v17  ;;  %v2078_v17 = vld [vmem:[%s2607_s1 + $0x358] sm:$0xff]  }
  0x42   :  { %1866 = vmatprep.subr.bf16.mxu1 %v2031_v20  ;;  %v2080_v19 = vld [vmem:[%s2607_s1 + $0x318] sm:$0xff]  }
  0x43   :  { %1284 = vmatmul.mubr.bf16.vlgmr.msra.gmra.mxu0 %v319_v18  ;;  %v2079_v18 = vld [vmem:[%s2607_s1 + $0x3d8] sm:$0xff]  }
  0x44   :  { %1845 = vmatpush3.bf16.msra.mxu0 %v2032_v21  ;;  %1324 = vmatmul.mubr.bf16.vlgmr.msra.gmra.mxu1 %v335_v23  ;;  %v2081_v20 = vld [vmem:[%s2607_s1 + $0x398] sm:$0xff]   ;;  %v2082_v21 = vld [vmem:[%s2607_s1 + $0x350] sm:$0xff]  }
  0x45   :  { %1846 = vmatprep.subr.bf16.mxu0 %v2034_v24  ;;  %1867 = vmatpush3.bf16.msra.mxu1 %v2033_v22  ;;  %v2083_v22 = vld [vmem:[%s2607_s1 + $0x3d0] sm:$0xff]  }
  0x46   :  { %1868 = vmatprep.subr.bf16.mxu1 %v2035_v25  ;;  %1363 = vmatprep.mubr.bf16.mxu0 %v375_v56  ;;  %v2084_v23 = vld [vmem:[%s2607_s1 + $0x310] sm:$0xff]   ;;  %v2086_v25 = vld [vmem:[%s2607_s1 + $0x348] sm:$0xff]  }
  0x47   :  { %1403 = vmatprep.mubr.bf16.mxu1 %v385_v60  ;;  %v2085_v24 = vld [vmem:[%s2607_s1 + $0x390] sm:$0xff]  }
  0x48   :  { %1847 = vmatpush3.bf16.msra.mxu0 %v2036_v26  ;;  %v2087_v26 = vld [vmem:[%s2607_s1 + $0x3c8] sm:$0xff]  }
  0x49   :  { %1848 = vmatprep.subr.bf16.mxu0 %v2038_v28  ;;  %1869 = vmatpush3.bf16.msra.mxu1 %v2037_v27  ;;  %v2088_v27 = vld [vmem:[%s2607_s1 + $0x308] sm:$0xff]   ;;  %v2090_v28 = vld [vmem:[%s2607_s1 + $0x340] sm:$0xff]  }
  0x4a   :  { %1870 = vmatprep.subr.bf16.mxu1 %v2039_v29  ;;  %v2089_v29 = vld [vmem:[%s2607_s1 + $0x388] sm:$0xff]  }
  0x4c   :  { %1849 = vmatpush3.bf16.msra.mxu0 %v2040_v30  ;;  %v2091_v30 = vld [vmem:[%s2607_s1 + $0x3c0] sm:$0xff]  }
  0x4d   :  { %1850 = vmatprep.subr.bf16.mxu0 %v2042_v32  ;;  %1871 = vmatpush3.bf16.msra.mxu1 %v2041_v31 }
  0x4e   :  { %1872 = vmatprep.subr.bf16.mxu1 %v2043_v33 }
  0x50   :  { %1851 = vmatpush3.bf16.msra.mxu0 %v2044_v34 }
  0x51   :  { %1852 = vmatprep.subr.bf16.mxu0 %v2046_v36  ;;  %1873 = vmatpush3.bf16.msra.mxu1 %v2045_v35 }
  0x52   :  { %1874 = vmatprep.subr.bf16.mxu1 %v2047_v37 }
  0x54   :  { %1853 = vmatpush3.bf16.msra.mxu0 %v2048_v38 }
  0x55   :  { %1854 = vmatprep.subr.bf16.mxu0 %v2050_v40  ;;  %1875 = vmatpush3.bf16.msra.mxu1 %v2049_v39 }
  0x56   :  { %1876 = vmatprep.subr.bf16.mxu1 %v2051_v42 }
  0x58   :  { %1855 = vmatpush3.bf16.msra.mxu0 %v2052_v43 }
  0x59   :  { %1856 = vmatprep.subr.bf16.mxu0 %v2054_v45  ;;  %1877 = vmatpush3.bf16.msra.mxu1 %v2053_v44 }
  0x5a   :  { %1878 = vmatprep.subr.bf16.mxu1 %v2055_v47 }
  0x5c   :  { %1857 = vmatpush3.bf16.msra.mxu0 %v2056_v50 }
  0x5d   :  { %1858 = vmatprep.subr.bf16.mxu0 %v2058_v54  ;;  %1879 = vmatpush3.bf16.msra.mxu1 %v2057_v51 }
  0x5e   :  { %1880 = vmatprep.subr.bf16.mxu1 %v2059_v55 }
  0x60   :  { %1859 = vmatpush3.bf16.msra.mxu0 %v2060_v58 }
  0x61   :  { %1888 = vmatprep.subr.bf16.mxu0 %v2062_v62  ;;  %1881 = vmatpush3.bf16.msra.mxu1 %v2061_v59 }
  0x62   :  { %1910 = vmatprep.subr.bf16.mxu1 %v2063_v63 }
  0x63   :  { %1364 = vmatmul.mubr.bf16.vlgmr.msra.gmra.mxu0 %v361_v61 }
  0x64   :  { %1889 = vmatpush3.bf16.msra.mxu0 %v2064_v1  ;;  %1443 = vmatprep.mubr.bf16.mxu0 %v382_v0 }
  0x65   :  { %1404 = vmatmul.mubr.bf16.vlgmr.msra.gmra.mxu1 %v383_v3  ;;  %1890 = vmatprep.subr.bf16.mxu0 %v2066_v4 }
  0x66   :  { %1911 = vmatpush3.bf16.msra.mxu1 %v2065_v2  ;;  %1483 = vmatprep.mubr.bf16.mxu1 %v386_v6 }
  0x67   :  { %1912 = vmatprep.subr.bf16.mxu1 %v2067_v5 }
  0x68   :  { %1891 = vmatpush3.bf16.msra.mxu0 %v2068_v7 }
  0x69   :  { %1892 = vmatprep.subr.bf16.mxu0 %v2070_v9 }
  0x6a   :  { %1913 = vmatpush3.bf16.msra.mxu1 %v2069_v8 }
  0x6b   :  { %1914 = vmatprep.subr.bf16.mxu1 %v2071_v10 }
  0x6c   :  { %1893 = vmatpush3.bf16.msra.mxu0 %v2072_v11 }
  0x6d   :  { %1894 = vmatprep.subr.bf16.mxu0 %v2074_v13 }
  0x6e   :  { %1915 = vmatpush3.bf16.msra.mxu1 %v2073_v12 }
  0x6f   :  { %1916 = vmatprep.subr.bf16.mxu1 %v2075_v14 }
  0x70   :  { %1895 = vmatpush3.bf16.msra.mxu0 %v2076_v15 }
  0x71   :  { %1896 = vmatprep.subr.bf16.mxu0 %v2078_v17 }
  0x72   :  { %1917 = vmatpush3.bf16.msra.mxu1 %v2077_v16 }
  0x73   :  { %1918 = vmatprep.subr.bf16.mxu1 %v2079_v18 }
  0x74   :  { %1897 = vmatpush3.bf16.msra.mxu0 %v2080_v19 }
  0x75   :  { %1898 = vmatprep.subr.bf16.mxu0 %v2082_v21 }
  0x76   :  { %1919 = vmatpush3.bf16.msra.mxu1 %v2081_v20 }
  0x77   :  { %1920 = vmatprep.subr.bf16.mxu1 %v2083_v22 }
  0x78   :  { %1899 = vmatpush3.bf16.msra.mxu0 %v2084_v23 }
  0x79   :  { %1900 = vmatprep.subr.bf16.mxu0 %v2086_v25 }
  0x7a   :  { %1921 = vmatpush3.bf16.msra.mxu1 %v2085_v24 }
  0x7b   :  { %1922 = vmatprep.subr.bf16.mxu1 %v2087_v26 }
  0x7c   :  { %10 = vsyncpa [#allocation3], 0  ;;  %1901 = vmatpush3.bf16.msra.mxu0 %v2088_v27  ;;  %v2092_v31 = vld [vmem:[%s2607_s1 + $0x300] sm:$0xff]   ;;  %v368_v32 = vrot.slane %v2456_v53, %v2264_v41  ;;  %v2095_v35 = vld [vmem:[%s2609_s3 + $0x38] sm:$0xff]   ;;  %v2126_v36 = vmov 0.0   ;;  %vm2127_vm0 = vmmov 0  }
  0x7d   :  { %1902 = vmatprep.subr.bf16.mxu0 %v2090_v28  ;;  %v2093_v33 = vld [vmem:[%s2607_s1 + $0x380] sm:$0xff]   ;;  %v2096_v41 = vld [vmem:[%s2609_s3 + $0x30] sm:$0xff]   ;;  %v2097_v37 = vld [vmem:[%s2609_s3 + $0x28] sm:$0xff]   ;;  %s2128_s16 = smov [#allocation2]  }
  0x7e   :  { %1923 = vmatpush3.bf16.msra.mxu1 %v2089_v29  ;;  %v384_v34 = vcombine.high %v368_v32, %v368_v32  ;;  %v2098_v38 = vld [vmem:[%s2609_s3 + $0x20] sm:$0xff]   ;;  %v2099_v39 = vld [vmem:[%s2609_s3 + $0x18] sm:$0xff]   ;;  %v2100_v40 = vld [vmem:[%s2609_s3 + $0x10] sm:$0xff]   ;;  %s1610_s17 = sshll.u32 %s2128_s16, 4  ;;  %s1611_s17 = int_to_ptr.vmem [resolvable:$true] %s1610_s17 }
  0x7f   :  { %1924 = vmatprep.subr.bf16.mxu1 %v2091_v30  ;;  %v2101_v42 = vld [vmem:[%s2609_s3 + $0x8] sm:$0xff]   ;;  %v2102_v43 = vld [vmem:[%s2609_s3] sm:$0xff]   ;;  %s2103_s18 = scalar_lea.vmem %s1611_s17, 32  ;;  %p2108_p1 = scmp.lt.s32.totalorder %s1611_s17, %s1611_s17 }
  0x80   :  { %1903 = vmatpush3.bf16.msra.mxu0 %v2092_v31  ;;  %v1618_v46 = vld [vmem:[%s2608_s2] ss:$0 sm:$0xff]  ;;  %p2104_p0 = scmp.ne.s32.totalorder %s1611_s17, %s2103_s18  ;;  %p2109_p2 = scmp.lt.s32.totalorder %s2103_s18, %s2103_s18 }
  0x81   :  { %1941 = vmatprep.subr.bf16.mxu0 %v2126_v36  ;;  %v1747_v30 = vld [vmem:[%s2610_s4] ss:$0 sm:$0xff] }
  0x82   :  { %1925 = vmatpush3.bf16.msra.mxu1 %v2093_v33  ;;  %p2110_p3 = por %p2109_p2, %p2108_p1 }
  0x83   :  { %1444 = vmatmul.mubr.bf16.vlgmr.msra.gmra.mxu0 %v368_v32 }
  0x84   :  { %1942 = vmatpush3.bf16.msra.mxu0 %v2095_v35  ;;  %1957 = vmatprep.mubr.msk.bf16.mxu0 %vm2127_vm0, %v2126_v36  ;;  %p2111_p4 = pnand %p2110_p3, %p2104_p0 }
  0x85   :  { %1484 = vmatmul.mubr.bf16.vlgmr.msra.gmra.mxu1 %v384_v34  ;;  %1943 = vmatprep.subr.bf16.mxu0 %v2126_v36 }
  0x88   :  { %1944 = vmatpush3.bf16.msra.mxu0 %v2096_v41 }
  0x89   :  { %1945 = vmatprep.subr.bf16.mxu0 %v2126_v36 }
  0x8c   :  { %1946 = vmatpush3.bf16.msra.mxu0 %v2097_v37 }
  0x8d   :  { %1947 = vmatprep.subr.bf16.mxu0 %v2126_v36 }
  0x90   :  { %1948 = vmatpush3.bf16.msra.mxu0 %v2098_v38 }
  0x91   :  { %1949 = vmatprep.subr.bf16.mxu0 %v2126_v36 }
  0x94   :  { %1950 = vmatpush3.bf16.msra.mxu0 %v2099_v39 }
  0x95   :  { %1951 = vmatprep.subr.bf16.mxu0 %v2126_v36 }
  0x98   :  { %1952 = vmatpush3.bf16.msra.mxu0 %v2100_v40 }
  0x99   :  { %1953 = vmatprep.subr.bf16.mxu0 %v2126_v36 }
  0x9c   :  { %1954 = vmatpush3.bf16.msra.mxu0 %v2101_v42 }
  0x9d   :  { %1955 = vmatprep.subr.bf16.mxu0 %v2126_v36 }
  0xa0   :  { %1956 = vmatpush3.bf16.msra.mxu0 %v2102_v43 }
  0xe3   :  { %v1772_v44 = vpop.f32.mrf.mxu0 }
  0xe4   :  { %v1794_v45 = vpop.f32.mrf.mxu1 }
  0xe5   :  { %v1773_v47 = vpop.f32.mrf.mxu0 }
  0xe6   :  { %v1774_v48 = vadd.f32 %v1773_v47, %v1772_v44  ;;  %v1795_v49 = vpop.f32.mrf.mxu1 }
  0xe7   :  { %v1775_v50 = vpop.f32.mrf.mxu0  ;;  %v1796_v52 = vadd.f32 %v1795_v49, %v1794_v45 }
  0xe8   :  { %v1206_v51 = vadd.f32 %v1774_v48, %v1618_v46  ;;  %v1797_v53 = vpop.f32.mrf.mxu1 }
  0xe9   :  { %v1776_v54 = vpop.f32.mrf.mxu0 }
  0xea   :  { %v1246_v55 = vadd.f32 %v1796_v52, %v1206_v51  ;;  %v1798_v56 = vpop.f32.mrf.mxu1 }
 0x103   :  { %v1816_v57 = vpop.f32.mrf.mxu0 }
 0x104   :  { %v1838_v58 = vpop.f32.mrf.mxu1 }
 0x105   :  { %v1817_v59 = vpop.f32.mrf.mxu0 }
 0x106   :  { %v1839_v60 = vpop.f32.mrf.mxu1  ;;  %v1818_v9 = vadd.f32 %v1817_v59, %v1816_v57 }
 0x107   :  { %v1819_v61 = vpop.f32.mrf.mxu0  ;;  %v1840_v11 = vadd.f32 %v1839_v60, %v1838_v58 }
 0x108   :  { %v1841_v62 = vpop.f32.mrf.mxu1  ;;  %v1286_v10 = vadd.f32 %v1818_v9, %v1246_v55 }
 0x109   :  { %v1820_v63 = vpop.f32.mrf.mxu0 }
 0x10a   :  { %v1842_v0 = vpop.f32.mrf.mxu1  ;;  %v1326_v13 = vadd.f32 %v1840_v11, %v1286_v10 }
 0x123   :  { %v1860_v1 = vpop.f32.mrf.mxu0 }
 0x125   :  { %v1882_v2 = vpop.f32.mrf.mxu1  ;;  %v1861_v3 = vpop.f32.mrf.mxu0 }
 0x126   :  { %v1862_v12 = vadd.f32 %v1861_v3, %v1860_v1 }
 0x127   :  { %v1883_v4 = vpop.f32.mrf.mxu1  ;;  %v1863_v5 = vpop.f32.mrf.mxu0 }
 0x128   :  { %v1366_v14 = vadd.f32 %v1862_v12, %v1326_v13  ;;  %v1884_v15 = vadd.f32 %v1883_v4, %v1882_v2 }
 0x129   :  { %v1885_v6 = vpop.f32.mrf.mxu1  ;;  %v1864_v7 = vpop.f32.mrf.mxu0 }
 0x12a   :  { %v1406_v19 = vadd.f32 %v1884_v15, %v1366_v14 }
 0x12b   :  { %v1886_v8 = vpop.f32.mrf.mxu1 }
 0x143   :  { %v1904_v16 = vpop.f32.mrf.mxu0 }
 0x145   :  { %v1926_v17 = vpop.f32.mrf.mxu1  ;;  %v1905_v18 = vpop.f32.mrf.mxu0 }
 0x146   :  { %v1906_v20 = vadd.f32 %v1905_v18, %v1904_v16 }
 0x147   :  { %v1927_v21 = vpop.f32.mrf.mxu1  ;;  %v1907_v22 = vpop.f32.mrf.mxu0 }
 0x148   :  { %v1446_v23 = vadd.f32 %v1906_v20, %v1406_v19  ;;  %v1928_v24 = vadd.f32 %v1927_v21, %v1926_v17 }
 0x149   :  { %v1929_v25 = vpop.f32.mrf.mxu1  ;;  %v1908_v26 = vpop.f32.mrf.mxu0 }
 0x14a   :  { %v1486_v27 = vadd.f32 %v1928_v24, %v1446_v23 }
 0x14b   :  { %v1930_v28 = vpop.f32.mrf.mxu1 }
 0x14c   :  { %v1491_v29 = vpack.c.bf16 %v1486_v27, %v1486_v27 }
 0x14e   :  { %1958 = vmatmul.mubr.bf16.vlgmr.msra.gmra.mxu0 %v1491_v29 }
 0x20e   :  { %v1597_v31 = vpop.f32.mrf.mxu0 }
 0x20f   :  { %v1598_v32 = vadd.f32 %v1747_v30, %v1597_v31 }
 0x210   :  { %v1959_v33 = vpop.f32.mrf.mxu0 }
 0x211   :  { %1603 = vst [vmem:[#allocation2] sm:$0x3] %v1598_v32 }
 0x212   :  { %v1600_v34 = vpop.f32.mrf.mxu0 }
 0x213   :  { %2114 = shalt.err (!%p2111_p4)
}
 0x214   :  { %1613 = dma.vmem_to_hbm [thread:$0]  %s1611_s17, 32, %s2611_s5, [#allocation3]   ;;  %v1960_v35 = vpop.f32.mrf.mxu0 }
 0x215   :  { %2123 = dma.done.wait [#allocation3], 32  }
 0x216   :  { %2124 = vsyncadd [#allocation3], 4294967264 }
 0x217   :  { %1617 = vsyncpa [#allocation3], 1 }

// kernel: tian_forward.6
= control target key start
LH: loop header
LB: loop body
LE: loop exit
PB: predicated region body
PF: predicated region fallthrough
CT: control target
= control target key end

     0   :  { %s3128_s12 = smov 0   ;;  %s3452_s0 = inlined_call_operand.vmem [shape: f32[2,156,32], index: 0, kind: input, shape index: {}]   ;;  %s3453_s1 = inlined_call_operand.vmem [shape: bf16[25,32,128], index: 1, kind: input, shape index: {}]   ;;  %s3454_s2 = inlined_call_operand.vmem [shape: f32[1,128], index: 2, kind: input, shape index: {}]   ;;  %s3455_s3 = inlined_call_operand.vmem [shape: bf16[32,128], index: 3, kind: output, shape index: {}]  }
   0x1 LB: > { %s2396_s13 = sadd.s32 4294967295, %s3102_s12   ;;  %p2400_p0 = scmp.ge.s32.totalorder %s3102_s12, 1  ;;  %s3102_s12 = sphi %s3128_s12, %s13_s12  }
   0x2   : > { %p137_p1 = scmp.lt.s32.totalorder %s3102_s12, 3 }
   0x4   : > { %p138_p2 = pnand %p2400_p0, %p137_p1 }
   0x5   : > { %p161_p3 = scmp.lt.s32.totalorder (!%p138_p2), %s2396_s13, 1  ;;  %s2402_s14 = sshll.u32 (!%p138_p2), %s2396_s13, 1 }
   0x6   : > { %141 = sbr.rel (%p138_p2) target bundleno = 349 (0x15d), region = 32  ;;  %p167_p4 = scmp.lt.s32.totalorder (!%p138_p2), %s2402_s14, 3 }
   0x7   : > { %s3151_s25 = smov (!%p138_p2), 0  }
   0xb   : > { %v3139_v0 = vld [vmem:[%s3454_s2] ss:$0 sm:$0xff]  ;;  %s3457_s13 = smov (!%p161_p3, %s2396_s13), 1  ;;  %s3459_s14 = smov (!%p167_p4, %s2402_s14), 3 }
   0xc   : > { %s3025_s17 = smul.u32 160, %s3457_s13  ;;  %s2403_s18 = sshll.u32 %s3459_s14, 2 }
   0xd   : > { %s3149_s24 = scalar_lea.vmem %s3455_s3, %s2403_s18 }
   0xe   : > { %s3144_s21 = scalar_lea.vmem %s3452_s0, %s3025_s17 }
   0xf LB: >> { %v3042_v1 = vld [vmem:[%s3453_s1 + $0x18] sm:$0xff]   ;;  %v3043_v2 = vld [vmem:[%s3453_s1 + $0x8] sm:$0xff]   ;;  %v3044_v3 = vld [vmem:[%s3453_s1 + $0x10] sm:$0xff]   ;;  %s180_s5 = smul.u32 24, %s3106_s25  ;;  %vm215_vm0 = vcmask 261120   ;;  %vm2206_vm1 = vcmask 1043456   ;;  %s3106_s25 = sphi %s3151_s25, %s179_s25  }
  0x10   : >> { %2825 = vmatprep.subr.bf16.mxu0 %v3042_v1  ;;  %2833 = vmatprep.subr.bf16.mxu1 %v3043_v2  ;;  %v3045_v4 = vld [vmem:[%s3453_s1] sm:$0xff]   ;;  %v3046_v5 = vld [vmem:[%s3453_s1 + $0x28] sm:$0xff]   ;;  %v3047_v16 = vld [vmem:[%s3453_s1 + $0x38] sm:$0xff]  }
  0x11   : >> { %2826 = vmatpush3.bf16.msra.mxu0 %v3042_v1  ;;  %2834 = vmatpush3.bf16.msra.mxu1 %v3043_v2  ;;  %s3170_s8 = scalar_lea.vmem %s3144_s21, %s180_s5  ;;  %v3048_v17 = vld [vmem:[%s3453_s1 + $0x20] sm:$0xff]   ;;  %v3049_v18 = vld [vmem:[%s3453_s1 + $0x30] sm:$0xff]   ;;  %v3050_v26 = vld [vmem:[%s3453_s1 + $0x48] sm:$0xff]  }
  0x12   : >> { %2827 = vmatprep.subr.bf16.mxu0 %v3044_v3  ;;  %2835 = vmatprep.subr.bf16.mxu1 %v3045_v4  ;;  %v2404_v6 = vld [vmem:[%s3170_s8 + $0x1] sm:$0xff]  ;;  %v2405_v7 = vld [vmem:[%s3170_s8 + $0x9] sm:$0xff]  ;;  %v2406_v11 = vld [vmem:[%s3170_s8 + $0x11] sm:$0xff] }
  0x13   : >> { %v182_v8 = vld [vmem:[%s3170_s8] sm:$0xff]  ;;  %v196_v9 = vpack.c.bf16 %v2405_v7, %v2404_v6  ;;  %v183_v10 = vld [vmem:[%s3170_s8 + $0x8] sm:$0xff]  ;;  %v3181_v12 = vld [vmem:[%s3170_s8 + $0x10] sm:$0xff]  ;;  %v197_v14 = vpack.c.bf16 %v2406_v11, %v2406_v11 }
  0x14   : >> { %v185_v13 = vpack.c.bf16 %v183_v10, %v182_v8  ;;  %v186_v15 = vpack.c.bf16 %v3181_v12, %v3181_v12  ;;  %v2419_v19 = vld [vmem:[%s3170_s8 + $0x2] sm:$0xff]  ;;  %v2420_v20 = vld [vmem:[%s3170_s8 + $0xa] sm:$0xff]  ;;  %v2421_v21 = vld [vmem:[%s3170_s8 + $0x12] sm:$0xff] }
  0x15   : >> { %2828 = vmatpush3.bf16.msra.mxu0 %v3044_v3  ;;  %2836 = vmatpush3.bf16.msra.mxu1 %v3045_v4  ;;  %v341_v22 = vpack.c.bf16 %v2420_v20, %v2419_v19  ;;  %v2430_v23 = vld [vmem:[%s3170_s8 + $0x3] sm:$0xff]  ;;  %v2431_v24 = vld [vmem:[%s3170_s8 + $0xb] sm:$0xff]  ;;  %v2432_v27 = vld [vmem:[%s3170_s8 + $0x13] sm:$0xff]  ;;  %v342_v29 = vpack.c.bf16 %v2421_v21, %v2421_v21 }
  0x16   : >> { %2829 = vmatprep.mubr.msk.bf16.mxu0 %vm215_vm0, %v196_v9  ;;  %2837 = vmatprep.mubr.msk.bf16.mxu1 %vm215_vm0, %v185_v13  ;;  %v422_v25 = vpack.c.bf16 %v2431_v24, %v2430_v23  ;;  %v3051_v28 = vld [vmem:[%s3453_s1 + $0x58] sm:$0xff]   ;;  %v423_v30 = vpack.c.bf16 %v2432_v27, %v2432_v27  ;;  %v3052_v31 = vld [vmem:[%s3453_s1 + $0x40] sm:$0xff]   ;;  %v2442_v33 = vld [vmem:[%s3170_s8 + $0xc] sm:$0xff] }
  0x17   : >> { %2841 = vmatprep.subr.bf16.mxu0 %v3046_v5  ;;  %2849 = vmatprep.subr.bf16.mxu1 %v3047_v16  ;;  %v2441_v32 = vld [vmem:[%s3170_s8 + $0x4] sm:$0xff]  ;;  %v2443_v34 = vld [vmem:[%s3170_s8 + $0x14] sm:$0xff]  ;;  %v3227_v39 = vld [vmem:[%s3170_s8 + $0x1c] sm:$0xff] }
  0x18   : >> { %2830 = vmatmul.mubr.msk.bf16.vlgmr.msra.gmra.mxu0 %vm215_vm0, %v197_v14  ;;  %2838 = vmatmul.mubr.msk.bf16.vlgmr.msra.gmra.mxu1 %vm215_vm0, %v186_v15  ;;  %v3053_v35 = vld [vmem:[%s3453_s1 + $0x50] sm:$0xff]   ;;  %v503_v36 = vpack.c.bf16 %v2442_v33, %v2441_v32  ;;  %v586_v37 = vpack.c.bf16 %v2443_v34, %v2442_v33  ;;  %v3054_v38 = vld [vmem:[%s3453_s1 + $0x68] sm:$0xff]   ;;  %v3055_v40 = vld [vmem:[%s3453_s1 + $0x78] sm:$0xff]   ;;  %v504_v41 = vpack.c.bf16 %v2443_v34, %v2443_v34 }
  0x19   : >> { %2842 = vmatpush3.bf16.msra.mxu0 %v3046_v5  ;;  %2850 = vmatpush3.bf16.msra.mxu1 %v3047_v16  ;;  %v2467_v42 = vld [vmem:[%s3170_s8 + $0xd] sm:$0xff]  ;;  %v2468_v43 = vld [vmem:[%s3170_s8 + $0x15] sm:$0xff]  ;;  %v587_v45 = vpack.c.bf16 %v3227_v39, %v3227_v39  ;;  %v3056_v47 = vld [vmem:[%s3453_s1 + $0x60] sm:$0xff]  }
  0x1a   : >> { %2843 = vmatprep.subr.bf16.mxu0 %v3048_v17  ;;  %2851 = vmatprep.subr.bf16.mxu1 %v3049_v18  ;;  %v2480_v44 = vld [vmem:[%s3170_s8 + $0xe] sm:$0xff]  ;;  %v2481_v46 = vld [vmem:[%s3170_s8 + $0x16] sm:$0xff]  ;;  %v667_v49 = vpack.c.bf16 %v2468_v43, %v2467_v42  ;;  %v2482_v53 = vld [vmem:[%s3170_s8 + $0x1e] sm:$0xff] }
  0x1b   : >> { %2845 = vmatprep.mubr.msk.bf16.mxu0 %vm215_vm0, %v341_v22  ;;  %2853 = vmatprep.mubr.msk.bf16.mxu1 %vm215_vm0, %v422_v25  ;;  %v3057_v48 = vld [vmem:[%s3453_s1 + $0x70] sm:$0xff]   ;;  %v748_v50 = vpack.c.bf16 %v2481_v46, %v2480_v44  ;;  %v2469_v51 = vld [vmem:[%s3170_s8 + $0x1d] sm:$0xff]  ;;  %v3058_v52 = vld [vmem:[%s3453_s1 + $0x88] sm:$0xff]   ;;  %v749_v58 = vpack.c.bf16 %v2482_v53, %v2482_v53 }
  0x1c   : >> { %v3059_v54 = vld [vmem:[%s3453_s1 + $0x98] sm:$0xff]   ;;  %v2493_v55 = vld [vmem:[%s3170_s8 + $0xf] sm:$0xff]  ;;  %v668_v56 = vpack.c.bf16 %v2469_v51, %v2469_v51  ;;  %v3060_v60 = vld [vmem:[%s3453_s1 + $0x80] sm:$0xff]  }
  0x1d   : >> { %2844 = vmatpush3.bf16.msra.mxu0 %v3048_v17  ;;  %2852 = vmatpush3.bf16.msra.mxu1 %v3049_v18  ;;  %v2494_v57 = vld [vmem:[%s3170_s8 + $0x17] sm:$0xff]  ;;  %v2495_v63 = vld [vmem:[%s3170_s8 + $0x1f] sm:$0xff]  ;;  %v3062_v2 = vld [vmem:[%s3453_s1 + $0xa8] sm:$0xff]  }
  0x1e   : >> { %2857 = vmatprep.subr.bf16.mxu0 %v3050_v26  ;;  %2865 = vmatprep.subr.bf16.mxu1 %v3051_v28  ;;  %v2507_v59 = vld [vmem:[%s3170_s8 + $0x18] sm:$0xff]  ;;  %v3061_v61 = vld [vmem:[%s3453_s1 + $0x90] sm:$0xff]   ;;  %v829_v62 = vpack.c.bf16 %v2494_v57, %v2493_v55  ;;  %v2508_v3 = vld [vmem:[%s3170_s8 + $0x20] sm:$0xff]  ;;  %v830_v5 = vpack.c.bf16 %v2495_v63, %v2495_v63 }
  0x1f   : >> { %v910_v1 = vpack.c.bf16 %v2507_v59, %v3181_v12  ;;  %v3063_v4 = vld [vmem:[%s3453_s1 + $0xb8] sm:$0xff]   ;;  %v911_v6 = vpack.c.bf16 %v2508_v3, %v2508_v3  ;;  %v2533_v8 = vld [vmem:[%s3170_s8 + $0x21] sm:$0xff]  ;;  %v3065_v10 = vld [vmem:[%s3453_s1 + $0xb0] sm:$0xff]   ;;  %v992_v11 = vpack.c.bf16 %v2508_v3, %v2507_v59 }
  0x20   : >> { %2846 = vmatmul.mubr.msk.bf16.vlgmr.msra.gmra.mxu0 %vm215_vm0, %v342_v29  ;;  %2854 = vmatmul.mubr.msk.bf16.vlgmr.msra.gmra.mxu1 %vm215_vm0, %v423_v30  ;;  %v2532_v7 = vld [vmem:[%s3170_s8 + $0x19] sm:$0xff]  ;;  %v3290_v12 = vld [vmem:[%s3170_s8 + $0x28] sm:$0xff]  ;;  %v3069_v24 = vld [vmem:[%s3453_s1 + $0xd0] sm:$0xff]  }
  0x21   : >> { %2858 = vmatpush3.bf16.msra.mxu0 %v3050_v26  ;;  %2866 = vmatpush3.bf16.msra.mxu1 %v3051_v28  ;;  %v3064_v9 = vld [vmem:[%s3453_s1 + $0xa0] sm:$0xff]   ;;  %v1073_v13 = vpack.c.bf16 %v2533_v8, %v2532_v7  ;;  %v3066_v14 = vld [vmem:[%s3453_s1 + $0xc8] sm:$0xff]   ;;  %v3067_v16 = vld [vmem:[%s3453_s1 + $0xd8] sm:$0xff]   ;;  %v993_v19 = vpack.c.bf16 %v3290_v12, %v3290_v12 }
  0x22   : >> { %2859 = vmatprep.subr.bf16.mxu0 %v3052_v31  ;;  %2867 = vmatprep.subr.bf16.mxu1 %v3053_v35  ;;  %v2534_v15 = vld [vmem:[%s3170_s8 + $0x29] sm:$0xff]  ;;  %v2545_v17 = vld [vmem:[%s3170_s8 + $0x1a] sm:$0xff]  ;;  %v2662_v8 = vld [vmem:[%s3170_s8 + $0x31] sm:$0xff] }
  0x23   : >> { %2861 = vmatprep.mubr.msk.bf16.mxu0 %vm215_vm0, %v503_v36  ;;  %2869 = vmatprep.mubr.msk.bf16.mxu1 %vm215_vm0, %v586_v37  ;;  %v2546_v18 = vld [vmem:[%s3170_s8 + $0x22] sm:$0xff]  ;;  %v1074_v21 = vpack.c.bf16 %v2534_v15, %v2534_v15  ;;  %v2547_v26 = vld [vmem:[%s3170_s8 + $0x2a] sm:$0xff]  ;;  %v3071_v30 = vld [vmem:[%s3453_s1 + $0xf8] sm:$0xff]  }
  0x24   : >> { %v2558_v20 = vld [vmem:[%s3170_s8 + $0x1b] sm:$0xff]  ;;  %v2559_v22 = vld [vmem:[%s3170_s8 + $0x23] sm:$0xff]  ;;  %v1154_v25 = vpack.c.bf16 %v2546_v18, %v2545_v17  ;;  %v2560_v29 = vld [vmem:[%s3170_s8 + $0x2b] sm:$0xff] }
  0x25   : >> { %2860 = vmatpush3.bf16.msra.mxu0 %v3052_v31  ;;  %2868 = vmatpush3.bf16.msra.mxu1 %v3053_v35  ;;  %v3068_v23 = vld [vmem:[%s3453_s1 + $0xc0] sm:$0xff]   ;;  %v1235_v27 = vpack.c.bf16 %v2559_v22, %v2558_v20  ;;  %v3070_v28 = vld [vmem:[%s3453_s1 + $0xe8] sm:$0xff]   ;;  %v1155_v31 = vpack.c.bf16 %v2547_v26, %v2547_v26  ;;  %v1236_v33 = vpack.c.bf16 %v2560_v29, %v2560_v29  ;;  %v3073_v36 = vld [vmem:[%s3453_s1 + $0xf0] sm:$0xff]  }
  0x26   : >> { %2873 = vmatprep.subr.bf16.mxu0 %v3054_v38  ;;  %2881 = vmatprep.subr.bf16.mxu1 %v3055_v40  ;;  %v2572_v32 = vld [vmem:[%s3170_s8 + $0x24] sm:$0xff]  ;;  %v2573_v34 = vld [vmem:[%s3170_s8 + $0x2c] sm:$0xff]  ;;  %v3079_v55 = vld [vmem:[%s3453_s1 + $0x138] sm:$0xff]  }
  0x27   : >> { %v3072_v35 = vld [vmem:[%s3453_s1 + $0xe0] sm:$0xff]   ;;  %v1316_v37 = vpack.c.bf16 %v2572_v32, %v3227_v39  ;;  %v3075_v39 = vld [vmem:[%s3453_s1 + $0x118] sm:$0xff]   ;;  %v2598_v43 = vld [vmem:[%s3170_s8 + $0x2d] sm:$0xff]  ;;  %v1317_v44 = vpack.c.bf16 %v2573_v34, %v2573_v34 }
  0x28   : >> { %2862 = vmatmul.mubr.msk.bf16.vlgmr.msra.gmra.mxu0 %vm215_vm0, %v504_v41  ;;  %2870 = vmatmul.mubr.msk.bf16.vlgmr.msra.gmra.mxu1 %vm215_vm0, %v587_v45  ;;  %v3341_v41 = vld [vmem:[%s3170_s8 + $0x34] sm:$0xff]  ;;  %v2597_v42 = vld [vmem:[%s3170_s8 + $0x25] sm:$0xff] }
  0x29   : >> { %2874 = vmatpush3.bf16.msra.mxu0 %v3054_v38  ;;  %2882 = vmatpush3.bf16.msra.mxu1 %v3055_v40  ;;  %v1398_v38 = vpack.c.bf16 %v2573_v34, %v2572_v32  ;;  %v3074_v40 = vld [vmem:[%s3453_s1 + $0x108] sm:$0xff]   ;;  %v1399_v46 = vpack.c.bf16 %v3341_v41, %v3341_v41  ;;  %v3087_v17 = vld [vmem:[%s3453_s1 + $0x178] sm:$0xff]   ;;  %v3091_v34 = vld [vmem:[%s3453_s1 + $0x180] sm:$0xff]  }
  0x2a   : >> { %2875 = vmatprep.subr.bf16.mxu0 %v3056_v47  ;;  %2883 = vmatprep.subr.bf16.mxu1 %v3057_v48  ;;  %v2610_v45 = vld [vmem:[%s3170_s8 + $0x26] sm:$0xff]  ;;  %v2676_v20 = vld [vmem:[%s3170_s8 + $0x3a] sm:$0xff] }
  0x2b   : >> { %2877 = vmatprep.mubr.msk.bf16.mxu0 %vm215_vm0, %v667_v49  ;;  %2885 = vmatprep.mubr.msk.bf16.mxu1 %vm215_vm0, %v748_v50  ;;  %v3077_v49 = vld [vmem:[%s3453_s1 + $0x110] sm:$0xff]   ;;  %v1479_v50 = vpack.c.bf16 %v2598_v43, %v2597_v42  ;;  %v3078_v53 = vld [vmem:[%s3453_s1 + $0x128] sm:$0xff]  }
  0x2c   : >> { %v2623_v57 = vld [vmem:[%s3170_s8 + $0x27] sm:$0xff]  ;;  %v2688_v22 = vld [vmem:[%s3170_s8 + $0x33] sm:$0xff] }
  0x2d   : >> { %2876 = vmatpush3.bf16.msra.mxu0 %v3056_v47  ;;  %2884 = vmatpush3.bf16.msra.mxu1 %v3057_v48  ;;  %v2611_v47 = vld [vmem:[%s3170_s8 + $0x2e] sm:$0xff]  ;;  %v3076_v48 = vld [vmem:[%s3453_s1 + $0x100] sm:$0xff]  }
  0x2e   : >> { %2889 = vmatprep.subr.bf16.mxu0 %v3058_v52  ;;  %2897 = vmatprep.subr.bf16.mxu1 %v3059_v54  ;;  %v1560_v51 = vpack.c.bf16 %v2611_v47, %v2610_v45  ;;  %v3082_v3 = vld [vmem:[%s3453_s1 + $0x148] sm:$0xff]  }
  0x2f   : >> { %v3086_v15 = vld [vmem:[%s3453_s1 + $0x168] sm:$0xff]  }
  0x30   : >> { %2878 = vmatmul.mubr.msk.bf16.vlgmr.msra.gmra.mxu0 %vm215_vm0, %v668_v56  ;;  %2886 = vmatmul.mubr.msk.bf16.vlgmr.msra.gmra.mxu1 %vm215_vm0, %v749_v58  ;;  %v2624_v58 = vld [vmem:[%s3170_s8 + $0x2f] sm:$0xff] }
  0x31   : >> { %2890 = vmatpush3.bf16.msra.mxu0 %v3058_v52  ;;  %2898 = vmatpush3.bf16.msra.mxu1 %v3059_v54  ;;  %v2599_v52 = vld [vmem:[%s3170_s8 + $0x35] sm:$0xff]  ;;  %v1641_v63 = vpack.c.bf16 %v2624_v58, %v2623_v57  ;;  %v3090_v29 = vld [vmem:[%s3453_s1 + $0x188] sm:$0xff]  }
  0x32   : >> { %2891 = vmatprep.subr.bf16.mxu0 %v3060_v60  ;;  %2899 = vmatprep.subr.bf16.mxu1 %v3061_v61  ;;  %v2612_v54 = vld [vmem:[%s3170_s8 + $0x36] sm:$0xff]  ;;  %v1480_v56 = vpack.c.bf16 %v2599_v52, %v2599_v52 }
  0x33   : >> { %2893 = vmatprep.mubr.msk.bf16.mxu0 %vm215_vm0, %v829_v62  ;;  %2901 = vmatprep.mubr.msk.bf16.mxu1 %vm215_vm0, %v910_v1  ;;  %v1561_v59 = vpack.c.bf16 %v2612_v54, %v2612_v54  ;;  %v3081_v62 = vld [vmem:[%s3453_s1 + $0x130] sm:$0xff]  }
  0x35   : >> { %2892 = vmatpush3.bf16.msra.mxu0 %v3060_v60  ;;  %2900 = vmatpush3.bf16.msra.mxu1 %v3061_v61  ;;  %v2637_v60 = vld [vmem:[%s3170_s8 + $0x30] sm:$0xff]  ;;  %v3080_v61 = vld [vmem:[%s3453_s1 + $0x120] sm:$0xff]  }
  0x36   : >> { %2905 = vmatprep.subr.bf16.mxu0 %v3062_v2  ;;  %2913 = vmatprep.subr.bf16.mxu1 %v3063_v4  ;;  %v1722_v1 = vpack.c.bf16 %v2637_v60, %v3290_v12 }
  0x38   : >> { %2894 = vmatmul.mubr.msk.bf16.vlgmr.msra.gmra.mxu0 %vm215_vm0, %v830_v5  ;;  %2902 = vmatmul.mubr.msk.bf16.vlgmr.msra.gmra.mxu1 %vm215_vm0, %v911_v6  ;;  %v3083_v5 = vld [vmem:[%s3453_s1 + $0x158] sm:$0xff]  }
  0x39   : >> { %2906 = vmatpush3.bf16.msra.mxu0 %v3062_v2  ;;  %2914 = vmatpush3.bf16.msra.mxu1 %v3063_v4  ;;  %v2625_v2 = vld [vmem:[%s3170_s8 + $0x37] sm:$0xff] }
  0x3a   : >> { %2907 = vmatprep.subr.bf16.mxu0 %v3064_v9  ;;  %2915 = vmatprep.subr.bf16.mxu1 %v3065_v10  ;;  %v2638_v4 = vld [vmem:[%s3170_s8 + $0x38] sm:$0xff]  ;;  %v1642_v6 = vpack.c.bf16 %v2625_v2, %v2625_v2 }
  0x3b   : >> { %2909 = vmatprep.mubr.msk.bf16.mxu0 %vm215_vm0, %v992_v11  ;;  %2917 = vmatprep.mubr.msk.bf16.mxu1 %vm215_vm0, %v1073_v13  ;;  %v1723_v7 = vpack.c.bf16 %v2638_v4, %v2638_v4  ;;  %v3085_v11 = vld [vmem:[%s3453_s1 + $0x150] sm:$0xff]   ;;  %v1804_v12 = vpack.c.bf16 %v2638_v4, %v2637_v60 }
  0x3d   : >> { %2908 = vmatpush3.bf16.msra.mxu0 %v3064_v9  ;;  %2916 = vmatpush3.bf16.msra.mxu1 %v3065_v10  ;;  %v2663_v9 = vld [vmem:[%s3170_s8 + $0x39] sm:$0xff] }
  0x3e   : >> { %2921 = vmatprep.subr.bf16.mxu0 %v3066_v14  ;;  %2929 = vmatprep.subr.bf16.mxu1 %v3067_v16  ;;  %v3084_v10 = vld [vmem:[%s3453_s1 + $0x140] sm:$0xff]   ;;  %v1885_v13 = vpack.c.bf16 %v2663_v9, %v2662_v8 }
  0x40   : >> { %2910 = vmatmul.mubr.msk.bf16.vlgmr.msra.gmra.mxu0 %vm215_vm0, %v993_v19  ;;  %2918 = vmatmul.mubr.msk.bf16.vlgmr.msra.gmra.mxu1 %vm215_vm0, %v1074_v21  ;;  %v2675_v19 = vld [vmem:[%s3170_s8 + $0x32] sm:$0xff] }
  0x41   : >> { %2922 = vmatpush3.bf16.msra.mxu0 %v3066_v14  ;;  %2930 = vmatpush3.bf16.msra.mxu1 %v3067_v16  ;;  %v2651_v14 = vld [vmem:[%s3170_s8 + $0x40] sm:$0xff]  ;;  %v1966_v26 = vpack.c.bf16 %v2676_v20, %v2675_v19 }
  0x42   : >> { %2923 = vmatprep.subr.bf16.mxu0 %v3068_v23  ;;  %2931 = vmatprep.subr.bf16.mxu1 %v3069_v24  ;;  %v2664_v16 = vld [vmem:[%s3170_s8 + $0x41] sm:$0xff]  ;;  %v1805_v18 = vpack.c.bf16 %v2651_v14, %v2651_v14 }
  0x43   : >> { %2925 = vmatprep.mubr.msk.bf16.mxu0 %vm215_vm0, %v1154_v25  ;;  %2933 = vmatprep.mubr.msk.bf16.mxu1 %vm215_vm0, %v1235_v27  ;;  %v1886_v21 = vpack.c.bf16 %v2664_v16, %v2664_v16  ;;  %v3089_v25 = vld [vmem:[%s3453_s1 + $0x170] sm:$0xff]  }
  0x45   : >> { %2924 = vmatpush3.bf16.msra.mxu0 %v3068_v23  ;;  %2932 = vmatpush3.bf16.msra.mxu1 %v3069_v24  ;;  %v2689_v23 = vld [vmem:[%s3170_s8 + $0x3b] sm:$0xff] }
  0x46   : >> { %2937 = vmatprep.subr.bf16.mxu0 %v3070_v28  ;;  %2945 = vmatprep.subr.bf16.mxu1 %v3071_v30  ;;  %v3088_v24 = vld [vmem:[%s3453_s1 + $0x160] sm:$0xff]   ;;  %v2047_v27 = vpack.c.bf16 %v2689_v23, %v2688_v22 }
  0x48   : >> { %2926 = vmatmul.mubr.msk.bf16.vlgmr.msra.gmra.mxu0 %vm215_vm0, %v1155_v31  ;;  %2934 = vmatmul.mubr.msk.bf16.vlgmr.msra.gmra.mxu1 %vm215_vm0, %v1236_v33  ;;  %v2702_v31 = vld [vmem:[%s3170_s8 + $0x3c] sm:$0xff] }
  0x49   : >> { %2938 = vmatpush3.bf16.msra.mxu0 %v3070_v28  ;;  %2946 = vmatpush3.bf16.msra.mxu1 %v3071_v30  ;;  %v2677_v28 = vld [vmem:[%s3170_s8 + $0x42] sm:$0xff] }
  0x4a   : >> { %2939 = vmatprep.subr.bf16.mxu0 %v3072_v35  ;;  %2947 = vmatprep.subr.bf16.mxu1 %v3073_v36  ;;  %v2690_v30 = vld [vmem:[%s3170_s8 + $0x43] sm:$0xff]  ;;  %v1967_v32 = vpack.c.bf16 %v2677_v28, %v2677_v28 }
  0x4b   : >> { %2941 = vmatprep.mubr.msk.bf16.mxu0 %vm215_vm0, %v1316_v37  ;;  %2949 = vmatprep.mubr.msk.bf16.mxu1 %vm215_vm0, %v1398_v38  ;;  %v2048_v33 = vpack.c.bf16 %v2690_v30, %v2690_v30 }
  0x4d   : >> { %2940 = vmatpush3.bf16.msra.mxu0 %v3072_v35  ;;  %2948 = vmatpush3.bf16.msra.mxu1 %v3073_v36  ;;  %v2128_v35 = vpack.c.bf16 %v2702_v31, %v3341_v41  ;;  %v2703_v36 = vld [vmem:[%s3170_s8 + $0x44] sm:$0xff]  ;;  %s2713_s8 = sshll.u32 %s3106_s25, 2  ;;  %s179_s25 = sadd.s32 1, %s3106_s25  }
  0x4e   : >> { %2953 = vmatprep.subr.bf16.mxu0 %v3074_v40  ;;  %2961 = vmatprep.subr.bf16.mxu1 %v3075_v39  ;;  %v2129_v37 = vpack.c.bf16 %v2703_v36, %v2703_v36  ;;  %s2225_s14 = scalar_lea.vmem [#allocation3], %s2713_s8  ;;  %p176_p5 = scmp.ge.s32.totalorder %s179_s25, 4  }
  0x50   : >> { %2942 = vmatmul.mubr.msk.bf16.vlgmr.msra.gmra.mxu0 %vm215_vm0, %v1317_v44  ;;  %2950 = vmatmul.mubr.msk.bf16.vlgmr.msra.gmra.mxu1 %vm215_vm0, %v1399_v46 }
  0x51   : >> { %2954 = vmatpush3.bf16.msra.mxu0 %v3074_v40  ;;  %2962 = vmatpush3.bf16.msra.mxu1 %v3075_v39 }
  0x52   : >> { %2955 = vmatprep.subr.bf16.mxu0 %v3076_v48  ;;  %2963 = vmatprep.subr.bf16.mxu1 %v3077_v49 }
  0x53   : >> { %2957 = vmatprep.mubr.msk.bf16.mxu0 %vm215_vm0, %v1479_v50  ;;  %2965 = vmatprep.mubr.msk.bf16.mxu1 %vm215_vm0, %v1560_v51 }
  0x55   : >> { %2956 = vmatpush3.bf16.msra.mxu0 %v3076_v48  ;;  %2964 = vmatpush3.bf16.msra.mxu1 %v3077_v49 }
  0x56   : >> { %2969 = vmatprep.subr.bf16.mxu0 %v3078_v53  ;;  %2977 = vmatprep.subr.bf16.mxu1 %v3079_v55 }
  0x58   : >> { %2958 = vmatmul.mubr.msk.bf16.vlgmr.msra.gmra.mxu0 %vm215_vm0, %v1480_v56  ;;  %2966 = vmatmul.mubr.msk.bf16.vlgmr.msra.gmra.mxu1 %vm215_vm0, %v1561_v59 }
  0x59   : >> { %2970 = vmatpush3.bf16.msra.mxu0 %v3078_v53  ;;  %2978 = vmatpush3.bf16.msra.mxu1 %v3079_v55 }
  0x5a   : >> { %2971 = vmatprep.subr.bf16.mxu0 %v3080_v61  ;;  %2979 = vmatprep.subr.bf16.mxu1 %v3081_v62 }
  0x5b   : >> { %2973 = vmatprep.mubr.msk.bf16.mxu0 %vm215_vm0, %v1641_v63  ;;  %2981 = vmatprep.mubr.msk.bf16.mxu1 %vm215_vm0, %v1722_v1 }
  0x5d   : >> { %2972 = vmatpush3.bf16.msra.mxu0 %v3080_v61  ;;  %2980 = vmatpush3.bf16.msra.mxu1 %v3081_v62 }
  0x5e   : >> { %2985 = vmatprep.subr.bf16.mxu0 %v3082_v3  ;;  %2993 = vmatprep.subr.bf16.mxu1 %v3083_v5 }
  0x60   : >> { %2974 = vmatmul.mubr.msk.bf16.vlgmr.msra.gmra.mxu0 %vm215_vm0, %v1642_v6  ;;  %2982 = vmatmul.mubr.msk.bf16.vlgmr.msra.gmra.mxu1 %vm215_vm0, %v1723_v7 }
  0x61   : >> { %2986 = vmatpush3.bf16.msra.mxu0 %v3082_v3  ;;  %2994 = vmatpush3.bf16.msra.mxu1 %v3083_v5 }
  0x62   : >> { %2987 = vmatprep.subr.bf16.mxu0 %v3084_v10  ;;  %2995 = vmatprep.subr.bf16.mxu1 %v3085_v11 }
  0x63   : >> { %2989 = vmatprep.mubr.msk.bf16.mxu0 %vm215_vm0, %v1804_v12  ;;  %2997 = vmatprep.mubr.msk.bf16.mxu1 %vm215_vm0, %v1885_v13 }
  0x65   : >> { %2988 = vmatpush3.bf16.msra.mxu0 %v3084_v10  ;;  %2996 = vmatpush3.bf16.msra.mxu1 %v3085_v11 }
  0x66   : >> { %3001 = vmatprep.subr.bf16.mxu0 %v3086_v15  ;;  %3009 = vmatprep.subr.bf16.mxu1 %v3087_v17 }
  0x68   : >> { %2990 = vmatmul.mubr.msk.bf16.vlgmr.msra.gmra.mxu0 %vm215_vm0, %v1805_v18  ;;  %2998 = vmatmul.mubr.msk.bf16.vlgmr.msra.gmra.mxu1 %vm215_vm0, %v1886_v21 }
  0x69   : >> { %3002 = vmatpush3.bf16.msra.mxu0 %v3086_v15  ;;  %3010 = vmatpush3.bf16.msra.mxu1 %v3087_v17 }
  0x6a   : >> { %3003 = vmatprep.subr.bf16.mxu0 %v3088_v24  ;;  %3011 = vmatprep.subr.bf16.mxu1 %v3089_v25 }
  0x6b   : >> { %3005 = vmatprep.mubr.msk.bf16.mxu0 %vm215_vm0, %v1966_v26  ;;  %3013 = vmatprep.mubr.msk.bf16.mxu1 %vm215_vm0, %v2047_v27 }
  0x6d   : >> { %3004 = vmatpush3.bf16.msra.mxu0 %v3088_v24  ;;  %3012 = vmatpush3.bf16.msra.mxu1 %v3089_v25 }
  0x6e   : >> { %3017 = vmatprep.subr.bf16.mxu0 %v3090_v29 }
  0x70   : >> { %3006 = vmatmul.mubr.msk.bf16.vlgmr.msra.gmra.mxu0 %vm215_vm0, %v1967_v32  ;;  %3014 = vmatmul.mubr.msk.bf16.vlgmr.msra.gmra.mxu1 %vm215_vm0, %v2048_v33 }
  0x71   : >> { %3018 = vmatpush3.bf16.msra.mxu0 %v3090_v29  ;;  %3021 = vmatprep.mubr.msk.bf16.mxu0 %vm215_vm0, %v2128_v35 }
  0x72   : >> { %3019 = vmatprep.subr.bf16.mxu0 %v3091_v34 }
  0x75   : >> { %3020 = vmatpush3.bf16.msra.mxu0 %v3091_v34 }
  0x78   : >> { %3022 = vmatmul.mubr.msk.bf16.vlgmr.msra.gmra.mxu0 %vm215_vm0, %v2129_v37 }
  0xd8   : >> { %v2831_v38 = vpop.f32.mrf.mxu0  ;;  %v2839_v40 = vpop.f32.mrf.mxu1 }
  0xd9   : >> { %v331_v8 = vadd.f32 %v2839_v40, %v2831_v38 }
  0xda   : >> { %v256_v39 = vpop.f32.mrf.mxu0  ;;  %v322_v42 = vpop.f32.mrf.mxu1 }
  0xdb   : >> { %v323_v17 = vadd.f32 %v322_v42, %v256_v39 }
  0xdc   : >> { %v2832_v43 = vpop.f32.mrf.mxu0  ;;  %v2840_v44 = vpop.f32.mrf.mxu1 }
  0xde   : >> { %v259_v41 = vpop.f32.mrf.mxu0  ;;  %v325_v45 = vpop.f32.mrf.mxu1 }
  0xdf   : >> { %v326_v11 = vadd.f32 %v325_v45, %v259_v41 }
  0xe0   : >> { %v2847_v46 = vpop.f32.mrf.mxu0  ;;  %v2855_v47 = vpop.f32.mrf.mxu1 }
  0xe1   : >> { %v416_v12 = vadd.f32 %v2847_v46, %v331_v8 }
  0xe2   : >> { %v400_v48 = vpop.f32.mrf.mxu0  ;;  %v481_v49 = vpop.f32.mrf.mxu1 }
  0xe3   : >> { %v497_v19 = vadd.f32 %v2855_v47, %v416_v12  ;;  %v414_v21 = vadd.f32 %v400_v48, %v323_v17 }
  0xe4   : >> { %v2848_v50 = vpop.f32.mrf.mxu0  ;;  %v2856_v51 = vpop.f32.mrf.mxu1 }
  0xe5   : >> { %v495_v29 = vadd.f32 %v481_v49, %v414_v21 }
  0xe6   : >> { %v403_v52 = vpop.f32.mrf.mxu0  ;;  %v484_v53 = vpop.f32.mrf.mxu1 }
  0xe7   : >> { %v415_v15 = vadd.f32 %v403_v52, %v326_v11 }
  0xe8   : >> { %v2863_v54 = vpop.f32.mrf.mxu0  ;;  %v2871_v55 = vpop.f32.mrf.mxu1 }
  0xe9   : >> { %v496_v23 = vadd.f32 %v484_v53, %v415_v15  ;;  %v578_v24 = vadd.f32 %v2863_v54, %v497_v19 }
  0xea   : >> { %v562_v56 = vpop.f32.mrf.mxu0  ;;  %v645_v57 = vpop.f32.mrf.mxu1 }
  0xeb   : >> { %v661_v31 = vadd.f32 %v2871_v55, %v578_v24  ;;  %v576_v33 = vadd.f32 %v562_v56, %v495_v29 }
  0xec   : >> { %v2864_v58 = vpop.f32.mrf.mxu0  ;;  %v2872_v59 = vpop.f32.mrf.mxu1 }
  0xed   : >> { %v659_v42 = vadd.f32 %v645_v57, %v576_v33 }
  0xee   : >> { %v565_v60 = vpop.f32.mrf.mxu0  ;;  %v648_v61 = vpop.f32.mrf.mxu1 }
  0xef   : >> { %v577_v27 = vadd.f32 %v565_v60, %v496_v23 }
  0xf0   : >> { %v2879_v62 = vpop.f32.mrf.mxu0  ;;  %v2887_v63 = vpop.f32.mrf.mxu1 }
  0xf1   : >> { %v660_v35 = vadd.f32 %v648_v61, %v577_v27  ;;  %v742_v36 = vadd.f32 %v2879_v62, %v661_v31 }
  0xf2   : >> { %v726_v1 = vpop.f32.mrf.mxu0  ;;  %v807_v2 = vpop.f32.mrf.mxu1 }
  0xf3   : >> { %v823_v44 = vadd.f32 %v2887_v63, %v742_v36  ;;  %v740_v45 = vadd.f32 %v726_v1, %v659_v42 }
  0xf4   : >> { %v2880_v3 = vpop.f32.mrf.mxu0  ;;  %v2888_v4 = vpop.f32.mrf.mxu1 }
  0xf5   : >> { %v821_v53 = vadd.f32 %v807_v2, %v740_v45 }
  0xf6   : >> { %v729_v5 = vpop.f32.mrf.mxu0  ;;  %v810_v6 = vpop.f32.mrf.mxu1 }
  0xf7   : >> { %v741_v40 = vadd.f32 %v729_v5, %v660_v35 }
  0xf8   : >> { %v2895_v7 = vpop.f32.mrf.mxu0  ;;  %v2903_v9 = vpop.f32.mrf.mxu1 }
  0xf9   : >> { %v822_v47 = vadd.f32 %v810_v6, %v741_v40  ;;  %v904_v48 = vadd.f32 %v2895_v7, %v823_v44 }
  0xfa   : >> { %v888_v10 = vpop.f32.mrf.mxu0  ;;  %v969_v13 = vpop.f32.mrf.mxu1 }
  0xfb   : >> { %v985_v55 = vadd.f32 %v2903_v9, %v904_v48  ;;  %v902_v58 = vadd.f32 %v888_v10, %v821_v53 }
  0xfc   : >> { %v2896_v14 = vpop.f32.mrf.mxu0  ;;  %v2904_v16 = vpop.f32.mrf.mxu1 }
  0xfd   : >> { %v983_v1 = vadd.f32 %v969_v13, %v902_v58 }
  0xfe   : >> { %v891_v18 = vpop.f32.mrf.mxu0  ;;  %v972_v20 = vpop.f32.mrf.mxu1 }
  0xff   : >> { %v903_v51 = vadd.f32 %v891_v18, %v822_v47 }
 0x100   : >> { %v2911_v22 = vpop.f32.mrf.mxu0  ;;  %v2919_v25 = vpop.f32.mrf.mxu1 }
 0x101   : >> { %v984_v60 = vadd.f32 %v972_v20, %v903_v51  ;;  %v1067_v61 = vadd.f32 %v2911_v22, %v985_v55 }
 0x102   : >> { %v1051_v26 = vpop.f32.mrf.mxu0  ;;  %v1132_v28 = vpop.f32.mrf.mxu1 }
 0x103   : >> { %v1148_v5 = vadd.f32 %v2919_v25, %v1067_v61  ;;  %v1065_v7 = vadd.f32 %v1051_v26, %v983_v1 }
 0x104   : >> { %v2912_v30 = vpop.f32.mrf.mxu0  ;;  %v2920_v32 = vpop.f32.mrf.mxu1 }
 0x105   : >> { %v1146_v10 = vadd.f32 %v1132_v28, %v1065_v7 }
 0x106   : >> { %v1054_v34 = vpop.f32.mrf.mxu0  ;;  %v1135_v37 = vpop.f32.mrf.mxu1 }
 0x107   : >> { %v1066_v63 = vadd.f32 %v1054_v34, %v984_v60 }
 0x108   : >> { %v2927_v38 = vpop.f32.mrf.mxu0  ;;  %v2935_v39 = vpop.f32.mrf.mxu1 }
 0x109   : >> { %v1147_v11 = vadd.f32 %v1135_v37, %v1066_v63  ;;  %v1229_v12 = vadd.f32 %v2927_v38, %v1148_v5 }
 0x10a   : >> { %v1213_v43 = vpop.f32.mrf.mxu0  ;;  %v1294_v41 = vpop.f32.mrf.mxu1 }
 0x10b   : >> { %v1310_v17 = vadd.f32 %v2935_v39, %v1229_v12  ;;  %v1227_v19 = vadd.f32 %v1213_v43, %v1146_v10 }
 0x10c   : >> { %v2928_v46 = vpop.f32.mrf.mxu0  ;;  %v2936_v49 = vpop.f32.mrf.mxu1 }
 0x10d   : >> { %v1308_v26 = vadd.f32 %v1294_v41, %v1227_v19 }
 0x10e   : >> { %v1216_v50 = vpop.f32.mrf.mxu0  ;;  %v1297_v52 = vpop.f32.mrf.mxu1 }
 0x10f   : >> { %v1228_v9 = vadd.f32 %v1216_v50, %v1147_v11 }
 0x110   : >> { %v2943_v54 = vpop.f32.mrf.mxu0  ;;  %v2951_v56 = vpop.f32.mrf.mxu1 }
 0x111   : >> { %v1309_v21 = vadd.f32 %v1297_v52, %v1228_v9  ;;  %v1391_v22 = vadd.f32 %v2943_v54, %v1310_v17 }
 0x112   : >> { %v1375_v59 = vpop.f32.mrf.mxu0  ;;  %v1457_v57 = vpop.f32.mrf.mxu1 }
 0x113   : >> { %v1473_v29 = vadd.f32 %v2951_v56, %v1391_v22  ;;  %v1389_v31 = vadd.f32 %v1375_v59, %v1308_v26 }
 0x114   : >> { %v2944_v62 = vpop.f32.mrf.mxu0  ;;  %v2952_v3 = vpop.f32.mrf.mxu1 }
 0x115   : >> { %v1471_v38 = vadd.f32 %v1457_v57, %v1389_v31 }
 0x116   : >> { %v1378_v4 = vpop.f32.mrf.mxu0  ;;  %v1460_v6 = vpop.f32.mrf.mxu1 }
 0x117   : >> { %v1390_v24 = vadd.f32 %v1378_v4, %v1309_v21 }
 0x118   : >> { %v2959_v8 = vpop.f32.mrf.mxu0  ;;  %v2967_v2 = vpop.f32.mrf.mxu1 }
 0x119   : >> { %v1472_v33 = vadd.f32 %v1460_v6, %v1390_v24  ;;  %v1554_v34 = vadd.f32 %v2959_v8, %v1473_v29 }
 0x11a   : >> { %v1538_v14 = vpop.f32.mrf.mxu0  ;;  %v1619_v15 = vpop.f32.mrf.mxu1 }
 0x11b   : >> { %v1635_v39 = vadd.f32 %v2967_v2, %v1554_v34  ;;  %v1552_v43 = vadd.f32 %v1538_v14, %v1471_v38 }
 0x11c   : >> { %v2960_v16 = vpop.f32.mrf.mxu0  ;;  %v2968_v18 = vpop.f32.mrf.mxu1 }
 0x11d   : >> { %v1633_v50 = vadd.f32 %v1619_v15, %v1552_v43 }
 0x11e   : >> { %v1541_v20 = vpop.f32.mrf.mxu0  ;;  %v1622_v13 = vpop.f32.mrf.mxu1 }
 0x11f   : >> { %v1553_v36 = vadd.f32 %v1541_v20, %v1472_v33 }
 0x120   : >> { %v2975_v23 = vpop.f32.mrf.mxu0  ;;  %v2983_v25 = vpop.f32.mrf.mxu1 }
 0x121   : >> { %v1634_v45 = vadd.f32 %v1622_v13, %v1553_v36  ;;  %v1716_v46 = vadd.f32 %v2975_v23, %v1635_v39 }
 0x122   : >> { %v1700_v27 = vpop.f32.mrf.mxu0  ;;  %v1781_v30 = vpop.f32.mrf.mxu1 }
 0x123   : >> { %v1797_v52 = vadd.f32 %v2983_v25, %v1716_v46  ;;  %v1714_v54 = vadd.f32 %v1700_v27, %v1633_v50 }
 0x124   : >> { %v2976_v32 = vpop.f32.mrf.mxu0  ;;  %v2984_v28 = vpop.f32.mrf.mxu1 }
 0x125   : >> { %v1795_v62 = vadd.f32 %v1781_v30, %v1714_v54 }
 0x126   : >> { %v1703_v35 = vpop.f32.mrf.mxu0  ;;  %v1784_v37 = vpop.f32.mrf.mxu1 }
 0x127   : >> { %v1715_v48 = vadd.f32 %v1703_v35, %v1634_v45 }
 0x128   : >> { %v2991_v40 = vpop.f32.mrf.mxu0  ;;  %v2999_v42 = vpop.f32.mrf.mxu1 }
 0x129   : >> { %v1796_v56 = vadd.f32 %v1784_v37, %v1715_v48  ;;  %v1879_v58 = vadd.f32 %v2991_v40, %v1797_v52 }
 0x12a   : >> { %v1863_v44 = vpop.f32.mrf.mxu0  ;;  %v1944_v41 = vpop.f32.mrf.mxu1 }
 0x12b   : >> { %v1960_v3 = vadd.f32 %v2999_v42, %v1879_v58  ;;  %v1877_v4 = vadd.f32 %v1863_v44, %v1795_v62 }
 0x12c   : >> { %v2992_v47 = vpop.f32.mrf.mxu0  ;;  %v3000_v49 = vpop.f32.mrf.mxu1 }
 0x12d   : >> { %v1958_v12 = vadd.f32 %v1944_v41, %v1877_v4 }
 0x12e   : >> { %v1866_v51 = vpop.f32.mrf.mxu0  ;;  %v1947_v53 = vpop.f32.mrf.mxu1 }
 0x12f   : >> { %v1878_v61 = vadd.f32 %v1866_v51, %v1796_v56 }
 0x130   : >> { %v3007_v55 = vpop.f32.mrf.mxu0  ;;  %v3015_v59 = vpop.f32.mrf.mxu1 }
 0x131   : >> { %v1959_v6 = vadd.f32 %v1947_v53, %v1878_v61  ;;  %v2041_v7 = vadd.f32 %v3007_v55, %v1960_v3 }
 0x132   : >> { %v2025_v60 = vpop.f32.mrf.mxu0  ;;  %v2106_v57 = vpop.f32.mrf.mxu1 }
 0x133   : >> { %v2122_v14 = vadd.f32 %v3015_v59, %v2041_v7  ;;  %v2039_v9 = vadd.f32 %v2025_v60, %v1958_v12 }
 0x134   : >> { %v3008_v63 = vpop.f32.mrf.mxu0  ;;  %v3016_v1 = vpop.f32.mrf.mxu1 }
 0x135   : >> { %v2120_v20 = vadd.f32 %v2106_v57, %v2039_v9 }
 0x136   : >> { %v2028_v5 = vpop.f32.mrf.mxu0  ;;  %v2109_v15 = vpop.f32.mrf.mxu1 }
 0x137   : >> { %v2040_v11 = vadd.f32 %v2028_v5, %v1959_v6 }
 0x138   : >> { %v3023_v8 = vpop.f32.mrf.mxu0 }
 0x139   : >> { %v2121_v16 = vadd.f32 %v2109_v15, %v2040_v11  ;;  %v2203_v17 = vadd.f32 %v3023_v8, %v2122_v14 }
 0x13a   : >> { %v2187_v2 = vpop.f32.mrf.mxu0 }
 0x13b   : >> { %v2208_v21 = vrot.slane %v2203_v17, 4  ;;  %v2201_v13 = vadd.f32 %v2187_v2, %v2120_v20 }
 0x13c   : >> { %v3024_v10 = vpop.f32.mrf.mxu0 }
 0x13e   : >> { %v2190_v18 = vpop.f32.mrf.mxu0 }
 0x13f   : >> { %v2202_v19 = vadd.f32 %v2190_v18, %v2121_v16 }
 0x141   : >> { %v2207_v22 = vrot.slane %v2202_v19, 4 }
 0x143   : >> { %v2209_v23 = vsel %vm2206_vm1, %v2207_v22, %v2208_v21 }
 0x144   : >> { %v2211_v24 = vmax.f32 %v2201_v13, %v2209_v23 }
 0x146   : >> { %2212 = vst [vmem:[#allocation2] sm:$0xff] %v2211_v24 }
 0x14d   : >> { %v2213_v25 = vld [vmem:[#allocation2] ss:$2 sm:$0xf]  ;;  %v2215_v26 = vld [vmem:[#allocation2 + $0x1] ss:$2 sm:$0xf] }
 0x14e   : >> { %v2216_v27 = vmax.f32 %v2213_v25, %v2215_v26  ;;  %178 = sbr.rel (!%p176_p5) target bundleno = 15 (0xf), region = 120 }
 0x150   : >> { %v2223_v29 = vadd.f32 %v3139_v0, %v2216_v27 }
 0x152   : >> { %2226 = vst [vmem:[%s2225_s14] sm:$0xf] %v2223_v29 }
 0x159   : > { %v2227_v30 = vld [vmem:[#allocation3] sm:$0xff]  ;;  %v2228_v31 = vld [vmem:[#allocation3 + $0x8] sm:$0xff] }
 0x15a   : > { %v2723_v32 = vpack.c.bf16 %v2228_v31, %v2227_v30 }
 0x15c   : > { %2724 = vst [vmem:[%s3149_s24] sm:$0xff] %v2723_v32  }
 0x15d PF: > { %s13_s12 = sadd.s32 1, %s3102_s12  }
 0x15e   : > { %p10_p6 = scmp.ge.s32.totalorder %s13_s12, 4  }
 0x160   :  { %12 = sbr.rel (!%p10_p6) target bundleno = 1 (0x1), region = 131 }

</bundles_post_ra>
